<compile_context>
chip_gen: v7x
topology: tpu7x:2x2x1
jax: 0.10.0
libtpu: 0.0.40
codegen_flags: <defaults>
</compile_context>

<pallas_src>
import functools

import jax
import jax.numpy as jnp
from jax import lax
from jax.experimental import pallas as pl
from jax.experimental.pallas import tpu as pltpu

EPS = 1e-5
_VMEM_LIMIT = 48 * 1024 * 1024   # <= 64 MiB physical VMEM per TC on v7x
_TM = 256                        # rows (N*Ho*Wo) per tile
_TC = 128                        # output channels per tile (lane-dense)


def _round_up(x, m):
    return (x + m - 1) // m * m


# --------------------------------------------------------------------------
# Kernels
# --------------------------------------------------------------------------

def _conv_stats_kernel(taps_ref, w_ref, out_ref, sum_ref, sq_ref):
    """One (tm x tc) conv tile via tap-loop MXU matmuls + BN-stat accumulation.

    taps_ref : (T, tm, Cin)  bf16   pre-extracted shifted taps (im2col per tap)
    w_ref    : (T, Cin, tc)  bf16   conv weights for this Cout tile
    out_ref  : (tm, tc)      f32    conv output tile (pre-BN)
    sum_ref  : (1, tc)       f32    per-channel sum       (resident across M axis)
    sq_ref   : (1, tc)       f32    per-channel sum of sq (resident across M axis)
    """
    @pl.when(pl.program_id(1) == 0)          # first M tile for this Cout tile
    def _():
        sum_ref[...] = jnp.zeros_like(sum_ref)
        sq_ref[...] = jnp.zeros_like(sq_ref)

    acc = jnp.zeros(out_ref.shape, jnp.float32)
    for t in range(taps_ref.shape[0]):        # static tap loop (<= 9)
        acc = acc + jnp.dot(taps_ref[t], w_ref[t],
                            preferred_element_type=jnp.float32)
    out_ref[...] = acc
    sum_ref[...] += jnp.sum(acc, axis=0, keepdims=True)
    sq_ref[...] += jnp.sum(acc * acc, axis=0, keepdims=True)


def _bn_relu_kernel(x_ref, scale_ref, shift_ref, out_ref):
    """y = relu(x * scale + shift)  -- BN(train) folded into scale/shift."""
    out_ref[...] = jnp.maximum(x_ref[...] * scale_ref[...] + shift_ref[...], 0.0)


def _maxpool_kernel(taps_ref, out_ref):
    """Elementwise max over the 9 pre-extracted strided taps."""
    r = taps_ref[0]
    for t in range(1, taps_ref.shape[0]):
        r = jnp.maximum(r, taps_ref[t])
    out_ref[...] = r


# --------------------------------------------------------------------------
# Wrappers
# --------------------------------------------------------------------------

def _extract_taps(x_nhwc, kh, kw, stride, padding):
    """Stride-aware per-tap im2col: returns (T, M, Cin) f32 and (N, Ho, Wo)."""
    N, H, W, C = x_nhwc.shape
    if padding == "same":
        assert stride == 1
        ph, pw = (kh - 1) // 2, (kw - 1) // 2
        x_nhwc = jnp.pad(x_nhwc, ((0, 0), (ph, ph), (pw, pw), (0, 0)))
        Ho, Wo = H, W
    else:  # 'valid'
        Ho = (H - kh) // stride + 1
        Wo = (W - kw) // stride + 1
    taps = []
    for i in range(kh):
        for j in range(kw):
            t = lax.slice(
                x_nhwc,
                (0, i, j, 0),
                (N, i + (Ho - 1) * stride + 1, j + (Wo - 1) * stride + 1, C),
                (1, stride, stride, 1))
            taps.append(t.reshape(N * Ho * Wo, C))
    return jnp.stack(taps, axis=0), (N, Ho, Wo)


def conv_bn_relu(x_nhwc, params, *, kh, kw, stride=1, padding="same"):
    """Conv2d(no bias) + BatchNorm2d(training-mode batch stats) + ReLU."""
    w, gamma, beta = params                       # (T, Cin, Cout), (Cout,), (Cout,)
    cout = w.shape[-1]

    taps, (N, Ho, Wo) = _extract_taps(x_nhwc, kh, kw, stride, padding)
    T, M, Cin = taps.shape

    # Pad rows to the M tile and channels to the lane tile.  Padded rows are
    # exactly zero and there is no conv bias, so BN sums are unaffected.
    Mp = _round_up(M, _TM)
    Cp = _round_up(cout, _TC)
    taps = jnp.pad(taps, ((0, 0), (0, Mp - M), (0, 0))).astype(jnp.bfloat16)
    wp = jnp.pad(w, ((0, 0), (0, 0), (0, Cp - cout))).astype(jnp.bfloat16)

    n_m = Mp // _TM
    n_c = Cp // _TC

    # Pass 1: tiled conv + per-channel sum / sum-of-squares.
    conv, s, sq = pl.pallas_call(
        _conv_stats_kernel,
        out_shape=(
            jax.ShapeDtypeStruct((Mp, Cp), jnp.float32),
            jax.ShapeDtypeStruct((1, Cp), jnp.float32),
            jax.ShapeDtypeStruct((1, Cp), jnp.float32),
        ),
        grid=(n_c, n_m),
        in_specs=[
            pl.BlockSpec((T, _TM, Cin), lambda c, m: (0, m, 0)),
            pl.BlockSpec((T, Cin, _TC), lambda c, m: (0, 0, c)),
        ],
        out_specs=(
            pl.BlockSpec((_TM, _TC), lambda c, m: (m, c)),
            pl.BlockSpec((1, _TC), lambda c, m: (0, c)),
            pl.BlockSpec((1, _TC), lambda c, m: (0, c)),
        ),
        compiler_params=pltpu.CompilerParams(
            dimension_semantics=("parallel", "arbitrary"),
            vmem_limit_bytes=_VMEM_LIMIT),
    )(taps, wp)

    # Fold BN (batch mean, biased variance, eps=1e-5) into per-channel
    # scale/shift; tiny (1, Cp) vector math stays in plain JAX.
    inv_m = 1.0 / M
    mean = s * inv_m
    var = jnp.maximum(sq * inv_m - mean * mean, 0.0)
    gp = jnp.pad(gamma, (0, Cp - cout)).reshape(1, Cp)
    bp = jnp.pad(beta, (0, Cp - cout)).reshape(1, Cp)
    scale = gp * lax.rsqrt(var + EPS)
    shift = bp - mean * scale

    # Pass 2: normalize + affine + ReLU, fully parallel tiles.
    y = pl.pallas_call(
        _bn_relu_kernel,
        out_shape=jax.ShapeDtypeStruct((Mp, Cp), jnp.float32),
        grid=(n_c, n_m),
        in_specs=[
            pl.BlockSpec((_TM, _TC), lambda c, m: (m, c)),
            pl.BlockSpec((1, _TC), lambda c, m: (0, c)),
            pl.BlockSpec((1, _TC), lambda c, m: (0, c)),
        ],
        out_specs=pl.BlockSpec((_TM, _TC), lambda c, m: (m, c)),
        compiler_params=pltpu.CompilerParams(
            dimension_semantics=("parallel", "parallel"),
            vmem_limit_bytes=_VMEM_LIMIT),
    )(conv, scale, shift)

    return y[:M, :cout].reshape(N, Ho, Wo, cout)


def maxpool3_s2(x_nhwc):
    """MaxPool2d(kernel=3, stride=2, padding=0) in NHWC."""
    N, H, W, C = x_nhwc.shape
    Ho = (H - 3) // 2 + 1
    Wo = (W - 3) // 2 + 1
    taps = []
    for i in range(3):
        for j in range(3):
            t = lax.slice(x_nhwc, (0, i, j, 0),
                          (N, i + 2 * (Ho - 1) + 1, j + 2 * (Wo - 1) + 1, C),
                          (1, 2, 2, 1))
            taps.append(t.reshape(N, Ho * Wo, C))
    taps = jnp.stack(taps, axis=0)                # (9, N, Ho*Wo, C)
    out = pl.pallas_call(
        _maxpool_kernel,
        out_shape=jax.ShapeDtypeStruct((N, Ho * Wo, C), jnp.float32),
        grid=(N,),
        in_specs=[pl.BlockSpec((9, 1, Ho * Wo, C), lambda n: (0, n, 0, 0))],
        out_specs=pl.BlockSpec((1, Ho * Wo, C), lambda n: (n, 0, 0)),
        compiler_params=pltpu.CompilerParams(
            dimension_semantics=("parallel",),
            vmem_limit_bytes=_VMEM_LIMIT),
    )(taps)
    return out.reshape(N, Ho, Wo, C)


# --------------------------------------------------------------------------
# Parameters (deterministic synthetic, no checkpoint)
# --------------------------------------------------------------------------

def init_conv_bn(key, cin, cout, kh, kw):
    # Conv2d bias is intentionally omitted: training-mode BN's mean
    # subtraction cancels a per-channel constant bias exactly.
    k1, k2, k3 = jax.random.split(key, 3)
    fan_in = cin * kh * kw
    w = jax.random.normal(k1, (kh * kw, cin, cout), jnp.float32) / jnp.sqrt(fan_in)
    gamma = 1.0 + 0.1 * jax.random.normal(k2, (cout,), jnp.float32)
    beta = 0.1 * jax.random.normal(k3, (cout,), jnp.float32)
    return (w, gamma, beta)


def init_reduction_a_params(key, inchannels):
    ks = jax.random.split(key, 4)
    return {
        "branch_3x3":     init_conv_bn(ks[0], inchannels, 384, 3, 3),
        "branch_3x3_2_a": init_conv_bn(ks[1], inchannels, 64, 1, 1),
        "branch_3x3_2_b": init_conv_bn(ks[2], 64, 96, 3, 3),
        "branch_3x3_2_c": init_conv_bn(ks[3], 96, 96, 3, 3),
    }


# --------------------------------------------------------------------------
# Forward pass (NCHW in / NCHW out, like the PyTorch module)
# --------------------------------------------------------------------------

def reduction_block_a(x_nchw, params):
    x = jnp.transpose(x_nchw, (0, 2, 3, 1))       # -> NHWC for kernels

    # branch 1: 3x3 stride-2 'valid' conv -> 384 channels
    b3 = conv_bn_relu(x, params["branch_3x3"], kh=3, kw=3,
                      stride=2, padding="valid")

    # branch 2: 1x1 -> 3x3 'same' -> 3x3 stride-2 'valid' (-> 96 channels)
    # NOTE: Cin=4 1x1 matmuls underuse the MXU K dim at this toy size; this
    # disappears at real Inception channel counts.
    b = conv_bn_relu(x, params["branch_3x3_2_a"], kh=1, kw=1)
    b = conv_bn_relu(b, params["branch_3x3_2_b"], kh=3, kw=3)
    b3_2 = conv_bn_relu(b, params["branch_3x3_2_c"], kh=3, kw=3,
                        stride=2, padding="valid")

    # branch 3: max pool 3x3 stride 2 (keeps Cin channels)
    bp = maxpool3_s2(x)

    out = jnp.concatenate([b3, b3_2, bp], axis=-1)   # NHWC, C = 384 + 96 + Cin
    return jnp.transpose(out, (0, 3, 1, 2))          # single transpose -> NCHW


if __name__ == "__main__":
    key = jax.random.PRNGKey(0)
    k_param, k_x = jax.random.split(key)

    N, C_IN, H, W = 2, 4, 16, 16
    x = jax.random.normal(k_x, (N, C_IN, H, W), jnp.float32)   # NCHW like torch

    params = init_reduction_a_params(k_param, C_IN)

    fwd = jax.jit(functools.partial(reduction_block_a, params=params))
    y = fwd(x)
    jax.block_until_ready(y)

    Ho = (H - 3) // 2 + 1
    Wo = (W - 3) // 2 + 1
    assert y.shape == (N, 384 + 96 + C_IN, Ho, Wo), y.shape
    assert bool(jnp.all(jnp.isfinite(y)))
    print("KERNEL_OK")
</pallas_src>

<mosaic_0001>
module attributes {stable_mosaic.version = 11 : i64} {
  func.func @_bn_relu_kernel(%arg0: i32, %arg1: i32, %arg2: memref<256x128xf32, #tpu.memory_space<vmem>>, %arg3: memref<1x128xf32, #tpu.memory_space<vmem>>, %arg4: memref<1x128xf32, #tpu.memory_space<vmem>>, %arg5: memref<256x128xf32, #tpu.memory_space<vmem>>) attributes {dimension_semantics = [#tpu.dimension_semantics<parallel>, #tpu.dimension_semantics<parallel>], iteration_bounds = array<i64: 1, 2>, scalar_prefetch = 0 : i64, scratch_operands = 0 : i64, tpu.core_type = #tpu.core_type<tc>, window_params = [{transform_indices = @transform_0, window_bounds = array<i64: 256, 128>}, {transform_indices = @transform_1, window_bounds = array<i64: 1, 128>}, {transform_indices = @transform_2, window_bounds = array<i64: 1, 128>}, {transform_indices = @transform_3, window_bounds = array<i64: 256, 128>}]} {
    %c0 = arith.constant 0 : index
    %c0_0 = arith.constant 0 : index
    %0 = vector.load %arg2[%c0, %c0_0] : memref<256x128xf32, #tpu.memory_space<vmem>>, vector<256x128xf32>
    %c0_1 = arith.constant 0 : index
    %c0_2 = arith.constant 0 : index
    %1 = vector.load %arg3[%c0_1, %c0_2] : memref<1x128xf32, #tpu.memory_space<vmem>>, vector<1x128xf32>
    %2 = vector.broadcast %1 : vector<1x128xf32> to vector<256x128xf32>
    %3 = arith.mulf %0, %2 : vector<256x128xf32>
    %c0_3 = arith.constant 0 : index
    %c0_4 = arith.constant 0 : index
    %4 = vector.load %arg4[%c0_3, %c0_4] : memref<1x128xf32, #tpu.memory_space<vmem>>, vector<1x128xf32>
    %5 = vector.broadcast %4 : vector<1x128xf32> to vector<256x128xf32>
    %6 = arith.addf %3, %5 : vector<256x128xf32>
    %cst = arith.constant 0.000000e+00 : f32
    %7 = vector.broadcast %cst : f32 to vector<256x128xf32>
    %8 = arith.maximumf %6, %7 : vector<256x128xf32>
    %c0_5 = arith.constant 0 : index
    %c0_6 = arith.constant 0 : index
    %9 = vector.load %arg5[%c0_5, %c0_6] : memref<256x128xf32, #tpu.memory_space<vmem>>, vector<256x128xf32>
    tpu.vector_store %arg5[%c0_5, %c0_6], %8 {strides = array<i32>} : memref<256x128xf32, #tpu.memory_space<vmem>>, vector<256x128xf32>,
    return
  }
  func.func @transform_0(%arg0: i32, %arg1: i32) -> (i32, i32) {
    %c0_i32 = arith.constant 0 : i32
    return %arg1, %arg0 : i32, i32
  }
  func.func @transform_1(%arg0: i32, %arg1: i32) -> (i32, i32) {
    %c0_i32 = arith.constant 0 : i32
    %c0_i32_0 = arith.constant 0 : i32
    return %c0_i32, %arg0 : i32, i32
  }
  func.func @transform_2(%arg0: i32, %arg1: i32) -> (i32, i32) {
    %c0_i32 = arith.constant 0 : i32
    %c0_i32_0 = arith.constant 0 : i32
    return %c0_i32, %arg0 : i32, i32
  }
  func.func @transform_3(%arg0: i32, %arg1: i32) -> (i32, i32) {
    %c0_i32 = arith.constant 0 : i32
    return %arg1, %arg0 : i32, i32
  }
}

module attributes {stable_mosaic.version = 11 : i64} {
  func.func @_conv_stats_kernel(%arg0: i32, %arg1: i32, %arg2: memref<1x256x4xbf16, #tpu.memory_space<vmem>>, %arg3: memref<1x4x128xbf16, #tpu.memory_space<vmem>>, %arg4: memref<256x128xf32, #tpu.memory_space<vmem>>, %arg5: memref<1x128xf32, #tpu.memory_space<vmem>>, %arg6: memref<1x128xf32, #tpu.memory_space<vmem>>) attributes {dimension_semantics = [#tpu.dimension_semantics<parallel>, #tpu.dimension_semantics<arbitrary>], iteration_bounds = array<i64: 1, 2>, scalar_prefetch = 0 : i64, scratch_operands = 0 : i64, tpu.core_type = #tpu.core_type<tc>, window_params = [{transform_indices = @transform_0, window_bounds = array<i64: 1, 256, 4>}, {transform_indices = @transform_1, window_bounds = array<i64: 1, 4, 128>}, {transform_indices = @transform_2, window_bounds = array<i64: 256, 128>}, {transform_indices = @transform_3, window_bounds = array<i64: 1, 128>}, {transform_indices = @transform_4, window_bounds = array<i64: 1, 128>}]} {
    %c0_i32 = arith.constant 0 : i32
    %0 = arith.cmpi eq, %arg1, %c0_i32 : i32
    %1 = arith.extui %0 : i1 to i32
    %c0_i32_0 = arith.constant 0 : i32
    %2 = arith.cmpi ne, %1, %c0_i32_0 : i32
    scf.if %2 {
      %cst_19 = arith.constant 0.000000e+00 : f32
      %22 = vector.broadcast %cst_19 : f32 to vector<1x128xf32>
      %c0_20 = arith.constant 0 : index
      %c0_21 = arith.constant 0 : index
      %23 = vector.load %arg5[%c0_20, %c0_21] : memref<1x128xf32, #tpu.memory_space<vmem>>, vector<1x128xf32>
      tpu.vector_store %arg5[%c0_20, %c0_21], %22 {strides = array<i32>} : memref<1x128xf32, #tpu.memory_space<vmem>>, vector<1x128xf32>,
      %cst_22 = arith.constant 0.000000e+00 : f32
      %24 = vector.broadcast %cst_22 : f32 to vector<1x128xf32>
      %c0_23 = arith.constant 0 : index
      %c0_24 = arith.constant 0 : index
      %25 = vector.load %arg6[%c0_23, %c0_24] : memref<1x128xf32, #tpu.memory_space<vmem>>, vector<1x128xf32>
      tpu.vector_store %arg6[%c0_23, %c0_24], %24 {strides = array<i32>} : memref<1x128xf32, #tpu.memory_space<vmem>>, vector<1x128xf32>,
    } else {
    }
    %cst = arith.constant 0.000000e+00 : f32
    %3 = vector.broadcast %cst : f32 to vector<256x128xf32>
    %c0 = arith.constant 0 : index
    %c0_1 = arith.constant 0 : index
    %c0_2 = arith.constant 0 : index
    %4 = vector.load %arg2[%c0, %c0_1, %c0_2] : memref<1x256x4xbf16, #tpu.memory_space<vmem>>, vector<1x256x4xbf16>
    %5 = vector.shape_cast %4 : vector<1x256x4xbf16> to vector<256x4xbf16>
    %c0_3 = arith.constant 0 : index
    %c0_4 = arith.constant 0 : index
    %c0_5 = arith.constant 0 : index
    %6 = vector.load %arg3[%c0_3, %c0_4, %c0_5] : memref<1x4x128xbf16, #tpu.memory_space<vmem>>, vector<1x4x128xbf16>
    %7 = vector.shape_cast %6 : vector<1x4x128xbf16> to vector<4x128xbf16>
    %cst_6 = arith.constant dense<0.000000e+00> : vector<256x128xf32>
    %8 = tpu.matmul %5, %7, %cst_6 {dimension_numbers = #tpu.dot_dimension_numbers<[1], [0], [0], [1], [0, 0, 1, 1], [], []>} : vector<256x4xbf16>, vector<4x128xbf16>, vector<256x128xf32> -> vector<256x128xf32>
    %9 = arith.addf %3, %8 : vector<256x128xf32>
    %c0_7 = arith.constant 0 : index
    %c0_8 = arith.constant 0 : index
    %10 = vector.load %arg4[%c0_7, %c0_8] : memref<256x128xf32, #tpu.memory_space<vmem>>, vector<256x128xf32>
    tpu.vector_store %arg4[%c0_7, %c0_8], %9 {strides = array<i32>} : memref<256x128xf32, #tpu.memory_space<vmem>>, vector<256x128xf32>,
    %c0_9 = arith.constant 0 : index
    %c0_10 = arith.constant 0 : index
    %11 = vector.load %arg5[%c0_9, %c0_10] : memref<1x128xf32, #tpu.memory_space<vmem>>, vector<1x128xf32>
    %cst_11 = arith.constant dense<0.000000e+00> : vector<128xf32>
    %12 = vector.multi_reduction <add>, %9, %cst_11 [0] : vector<256x128xf32> to vector<128xf32>
    %13 = vector.shape_cast %12 : vector<128xf32> to vector<1x128xf32>
    %14 = arith.addf %11, %13 : vector<1x128xf32>
    %c0_12 = arith.constant 0 : index
    %c0_13 = arith.constant 0 : index
    %15 = vector.load %arg5[%c0_12, %c0_13] : memref<1x128xf32, #tpu.memory_space<vmem>>, vector<1x128xf32>
    tpu.vector_store %arg5[%c0_12, %c0_13], %14 {strides = array<i32>} : memref<1x128xf32, #tpu.memory_space<vmem>>, vector<1x128xf32>,
    %c0_14 = arith.constant 0 : index
    %c0_15 = arith.constant 0 : index
    %16 = vector.load %arg6[%c0_14, %c0_15] : memref<1x128xf32, #tpu.memory_space<vmem>>, vector<1x128xf32>
    %17 = arith.mulf %9, %9 : vector<256x128xf32>
    %cst_16 = arith.constant dense<0.000000e+00> : vector<128xf32>
    %18 = vector.multi_reduction <add>, %17, %cst_16 [0] : vector<256x128xf32> to vector<128xf32>
    %19 = vector.shape_cast %18 : vector<128xf32> to vector<1x128xf32>
    %20 = arith.addf %16, %19 : vector<1x128xf32>
    %c0_17 = arith.constant 0 : index
    %c0_18 = arith.constant 0 : index
    %21 = vector.load %arg6[%c0_17, %c0_18] : memref<1x128xf32, #tpu.memory_space<vmem>>, vector<1x128xf32>
    tpu.vector_store %arg6[%c0_17, %c0_18], %20 {strides = array<i32>} : memref<1x128xf32, #tpu.memory_space<vmem>>, vector<1x128xf32>,
    return
  }
  func.func @transform_0(%arg0: i32, %arg1: i32) -> (i32, i32, i32) {
    %c0_i32 = arith.constant 0 : i32
    %c0_i32_0 = arith.constant 0 : i32
    %c0_i32_1 = arith.constant 0 : i32
    return %c0_i32, %arg1, %c0_i32_0 : i32, i32, i32
  }
  func.func @transform_1(%arg0: i32, %arg1: i32) -> (i32, i32, i32) {
    %c0_i32 = arith.constant 0 : i32
    %c0_i32_0 = arith.constant 0 : i32
    %c0_i32_1 = arith.constant 0 : i32
    return %c0_i32, %c0_i32_0, %arg0 : i32, i32, i32
  }
  func.func @transform_2(%arg0: i32, %arg1: i32) -> (i32, i32) {
    %c0_i32 = arith.constant 0 : i32
    return %arg1, %arg0 : i32, i32
  }
  func.func @transform_3(%arg0: i32, %arg1: i32) -> (i32, i32) {
    %c0_i32 = arith.constant 0 : i32
    %c0_i32_0 = arith.constant 0 : i32
    return %c0_i32, %arg0 : i32, i32
  }
  func.func @transform_4(%arg0: i32, %arg1: i32) -> (i32, i32) {
    %c0_i32 = arith.constant 0 : i32
    %c0_i32_0 = arith.constant 0 : i32
    return %c0_i32, %arg0 : i32, i32
  }
}

module attributes {stable_mosaic.version = 11 : i64} {
  func.func @_conv_stats_kernel(%arg0: i32, %arg1: i32, %arg2: memref<9x256x64xbf16, #tpu.memory_space<vmem>>, %arg3: memref<9x64x128xbf16, #tpu.memory_space<vmem>>, %arg4: memref<256x128xf32, #tpu.memory_space<vmem>>, %arg5: memref<1x128xf32, #tpu.memory_space<vmem>>, %arg6: memref<1x128xf32, #tpu.memory_space<vmem>>) attributes {dimension_semantics = [#tpu.dimension_semantics<parallel>, #tpu.dimension_semantics<arbitrary>], iteration_bounds = array<i64: 1, 2>, scalar_prefetch = 0 : i64, scratch_operands = 0 : i64, tpu.core_type = #tpu.core_type<tc>, window_params = [{transform_indices = @transform_0, window_bounds = array<i64: 9, 256, 64>}, {transform_indices = @transform_1, window_bounds = array<i64: 9, 64, 128>}, {transform_indices = @transform_2, window_bounds = array<i64: 256, 128>}, {transform_indices = @transform_3, window_bounds = array<i64: 1, 128>}, {transform_indices = @transform_4, window_bounds = array<i64: 1, 128>}]} {
    %c0_i32 = arith.constant 0 : i32
    %0 = arith.cmpi eq, %arg1, %c0_i32 : i32
    %1 = arith.extui %0 : i1 to i32
    %c0_i32_0 = arith.constant 0 : i32
    %2 = arith.cmpi ne, %1, %c0_i32_0 : i32
    scf.if %2 {
      %cst_67 = arith.constant 0.000000e+00 : f32
      %70 = vector.broadcast %cst_67 : f32 to vector<1x128xf32>
      %c0_68 = arith.constant 0 : index
      %c0_69 = arith.constant 0 : index
      %71 = vector.load %arg5[%c0_68, %c0_69] : memref<1x128xf32, #tpu.memory_space<vmem>>, vector<1x128xf32>
      tpu.vector_store %arg5[%c0_68, %c0_69], %70 {strides = array<i32>} : memref<1x128xf32, #tpu.memory_space<vmem>>, vector<1x128xf32>,
      %cst_70 = arith.constant 0.000000e+00 : f32
      %72 = vector.broadcast %cst_70 : f32 to vector<1x128xf32>
      %c0_71 = arith.constant 0 : index
      %c0_72 = arith.constant 0 : index
      %73 = vector.load %arg6[%c0_71, %c0_72] : memref<1x128xf32, #tpu.memory_space<vmem>>, vector<1x128xf32>
      tpu.vector_store %arg6[%c0_71, %c0_72], %72 {strides = array<i32>} : memref<1x128xf32, #tpu.memory_space<vmem>>, vector<1x128xf32>,
    } else {
    }
    %cst = arith.constant 0.000000e+00 : f32
    %3 = vector.broadcast %cst : f32 to vector<256x128xf32>
    %c0 = arith.constant 0 : index
    %c0_1 = arith.constant 0 : index
    %c0_2 = arith.constant 0 : index
    %4 = vector.load %arg2[%c0, %c0_1, %c0_2] : memref<9x256x64xbf16, #tpu.memory_space<vmem>>, vector<1x256x64xbf16>
    %5 = vector.shape_cast %4 : vector<1x256x64xbf16> to vector<256x64xbf16>
    %c0_3 = arith.constant 0 : index
    %c0_4 = arith.constant 0 : index
    %c0_5 = arith.constant 0 : index
    %6 = vector.load %arg3[%c0_3, %c0_4, %c0_5] : memref<9x64x128xbf16, #tpu.memory_space<vmem>>, vector<1x64x128xbf16>
    %7 = vector.shape_cast %6 : vector<1x64x128xbf16> to vector<64x128xbf16>
    %cst_6 = arith.constant dense<0.000000e+00> : vector<256x128xf32>
    %8 = tpu.matmul %5, %7, %cst_6 {dimension_numbers = #tpu.dot_dimension_numbers<[1], [0], [0], [1], [0, 0, 1, 1], [], []>} : vector<256x64xbf16>, vector<64x128xbf16>, vector<256x128xf32> -> vector<256x128xf32>
    %9 = arith.addf %3, %8 : vector<256x128xf32>
    %c1 = arith.constant 1 : index
    %c0_7 = arith.constant 0 : index
    %c0_8 = arith.constant 0 : index
    %10 = vector.load %arg2[%c1, %c0_7, %c0_8] : memref<9x256x64xbf16, #tpu.memory_space<vmem>>, vector<1x256x64xbf16>
    %11 = vector.shape_cast %10 : vector<1x256x64xbf16> to vector<256x64xbf16>
    %c1_9 = arith.constant 1 : index
    %c0_10 = arith.constant 0 : index
    %c0_11 = arith.constant 0 : index
    %12 = vector.load %arg3[%c1_9, %c0_10, %c0_11] : memref<9x64x128xbf16, #tpu.memory_space<vmem>>, vector<1x64x128xbf16>
    %13 = vector.shape_cast %12 : vector<1x64x128xbf16> to vector<64x128xbf16>
    %cst_12 = arith.constant dense<0.000000e+00> : vector<256x128xf32>
    %14 = tpu.matmul %11, %13, %cst_12 {dimension_numbers = #tpu.dot_dimension_numbers<[1], [0], [0], [1], [0, 0, 1, 1], [], []>} : vector<256x64xbf16>, vector<64x128xbf16>, vector<256x128xf32> -> vector<256x128xf32>
    %15 = arith.addf %9, %14 : vector<256x128xf32>
    %c2 = arith.constant 2 : index
    %c0_13 = arith.constant 0 : index
    %c0_14 = arith.constant 0 : index
    %16 = vector.load %arg2[%c2, %c0_13, %c0_14] : memref<9x256x64xbf16, #tpu.memory_space<vmem>>, vector<1x256x64xbf16>
    %17 = vector.shape_cast %16 : vector<1x256x64xbf16> to vector<256x64xbf16>
    %c2_15 = arith.constant 2 : index
    %c0_16 = arith.constant 0 : index
    %c0_17 = arith.constant 0 : index
    %18 = vector.load %arg3[%c2_15, %c0_16, %c0_17] : memref<9x64x128xbf16, #tpu.memory_space<vmem>>, vector<1x64x128xbf16>
    %19 = vector.shape_cast %18 : vector<1x64x128xbf16> to vector<64x128xbf16>
    %cst_18 = arith.constant dense<0.000000e+00> : vector<256x128xf32>
    %20 = tpu.matmul %17, %19, %cst_18 {dimension_numbers = #tpu.dot_dimension_numbers<[1], [0], [0], [1], [0, 0, 1, 1], [], []>} : vector<256x64xbf16>, vector<64x128xbf16>, vector<256x128xf32> -> vector<256x128xf32>
    %21 = arith.addf %15, %20 : vector<256x128xf32>
    %c3 = arith.constant 3 : index
    %c0_19 = arith.constant 0 : index
    %c0_20 = arith.constant 0 : index
    %22 = vector.load %arg2[%c3, %c0_19, %c0_20] : memref<9x256x64xbf16, #tpu.memory_space<vmem>>, vector<1x256x64xbf16>
    %23 = vector.shape_cast %22 : vector<1x256x64xbf16> to vector<256x64xbf16>
    %c3_21 = arith.constant 3 : index
    %c0_22 = arith.constant 0 : index
    %c0_23 = arith.constant 0 : index
    %24 = vector.load %arg3[%c3_21, %c0_22, %c0_23] : memref<9x64x128xbf16, #tpu.memory_space<vmem>>, vector<1x64x128xbf16>
    %25 = vector.shape_cast %24 : vector<1x64x128xbf16> to vector<64x128xbf16>
    %cst_24 = arith.constant dense<0.000000e+00> : vector<256x128xf32>
    %26 = tpu.matmul %23, %25, %cst_24 {dimension_numbers = #tpu.dot_dimension_numbers<[1], [0], [0], [1], [0, 0, 1, 1], [], []>} : vector<256x64xbf16>, vector<64x128xbf16>, vector<256x128xf32> -> vector<256x128xf32>
    %27 = arith.addf %21, %26 : vector<256x128xf32>
    %c4 = arith.constant 4 : index
    %c0_25 = arith.constant 0 : index
    %c0_26 = arith.constant 0 : index
    %28 = vector.load %arg2[%c4, %c0_25, %c0_26] : memref<9x256x64xbf16, #tpu.memory_space<vmem>>, vector<1x256x64xbf16>
    %29 = vector.shape_cast %28 : vector<1x256x64xbf16> to vector<256x64xbf16>
    %c4_27 = arith.constant 4 : index
    %c0_28 = arith.constant 0 : index
    %c0_29 = arith.constant 0 : index
    %30 = vector.load %arg3[%c4_27, %c0_28, %c0_29] : memref<9x64x128xbf16, #tpu.memory_space<vmem>>, vector<1x64x128xbf16>
    %31 = vector.shape_cast %30 : vector<1x64x128xbf16> to vector<64x128xbf16>
    %cst_30 = arith.constant dense<0.000000e+00> : vector<256x128xf32>
    %32 = tpu.matmul %29, %31, %cst_30 {dimension_numbers = #tpu.dot_dimension_numbers<[1], [0], [0], [1], [0, 0, 1, 1], [], []>} : vector<256x64xbf16>, vector<64x128xbf16>, vector<256x128xf32> -> vector<256x128xf32>
    %33 = arith.addf %27, %32 : vector<256x128xf32>
    %c5 = arith.constant 5 : index
    %c0_31 = arith.constant 0 : index
    %c0_32 = arith.constant 0 : index
    %34 = vector.load %arg2[%c5, %c0_31, %c0_32] : memref<9x256x64xbf16, #tpu.memory_space<vmem>>, vector<1x256x64xbf16>
    %35 = vector.shape_cast %34 : vector<1x256x64xbf16> to vector<256x64xbf16>
    %c5_33 = arith.constant 5 : index
    %c0_34 = arith.constant 0 : index
    %c0_35 = arith.constant 0 : index
    %36 = vector.load %arg3[%c5_33, %c0_34, %c0_35] : memref<9x64x128xbf16, #tpu.memory_space<vmem>>, vector<1x64x128xbf16>
    %37 = vector.shape_cast %36 : vector<1x64x128xbf16> to vector<64x128xbf16>
    %cst_36 = arith.constant dense<0.000000e+00> : vector<256x128xf32>
    %38 = tpu.matmul %35, %37, %cst_36 {dimension_numbers = #tpu.dot_dimension_numbers<[1], [0], [0], [1], [0, 0, 1, 1], [], []>} : vector<256x64xbf16>, vector<64x128xbf16>, vector<256x128xf32> -> vector<256x128xf32>
    %39 = arith.addf %33, %38 : vector<256x128xf32>
    %c6 = arith.constant 6 : index
    %c0_37 = arith.constant 0 : index
    %c0_38 = arith.constant 0 : index
    %40 = vector.load %arg2[%c6, %c0_37, %c0_38] : memref<9x256x64xbf16, #tpu.memory_space<vmem>>, vector<1x256x64xbf16>
    %41 = vector.shape_cast %40 : vector<1x256x64xbf16> to vector<256x64xbf16>
    %c6_39 = arith.constant 6 : index
    %c0_40 = arith.constant 0 : index
    %c0_41 = arith.constant 0 : index
    %42 = vector.load %arg3[%c6_39, %c0_40, %c0_41] : memref<9x64x128xbf16, #tpu.memory_space<vmem>>, vector<1x64x128xbf16>
    %43 = vector.shape_cast %42 : vector<1x64x128xbf16> to vector<64x128xbf16>
    %cst_42 = arith.constant dense<0.000000e+00> : vector<256x128xf32>
    %44 = tpu.matmul %41, %43, %cst_42 {dimension_numbers = #tpu.dot_dimension_numbers<[1], [0], [0], [1], [0, 0, 1, 1], [], []>} : vector<256x64xbf16>, vector<64x128xbf16>, vector<256x128xf32> -> vector<256x128xf32>
    %45 = arith.addf %39, %44 : vector<256x128xf32>
    %c7 = arith.constant 7 : index
    %c0_43 = arith.constant 0 : index
    %c0_44 = arith.constant 0 : index
    %46 = vector.load %arg2[%c7, %c0_43, %c0_44] : memref<9x256x64xbf16, #tpu.memory_space<vmem>>, vector<1x256x64xbf16>
    %47 = vector.shape_cast %46 : vector<1x256x64xbf16> to vector<256x64xbf16>
    %c7_45 = arith.constant 7 : index
    %c0_46 = arith.constant 0 : index
    %c0_47 = arith.constant 0 : index
    %48 = vector.load %arg3[%c7_45, %c0_46, %c0_47] : memref<9x64x128xbf16, #tpu.memory_space<vmem>>, vector<1x64x128xbf16>
    %49 = vector.shape_cast %48 : vector<1x64x128xbf16> to vector<64x128xbf16>
    %cst_48 = arith.constant dense<0.000000e+00> : vector<256x128xf32>
    %50 = tpu.matmul %47, %49, %cst_48 {dimension_numbers = #tpu.dot_dimension_numbers<[1], [0], [0], [1], [0, 0, 1, 1], [], []>} : vector<256x64xbf16>, vector<64x128xbf16>, vector<256x128xf32> -> vector<256x128xf32>
    %51 = arith.addf %45, %50 : vector<256x128xf32>
    %c8 = arith.constant 8 : index
    %c0_49 = arith.constant 0 : index
    %c0_50 = arith.constant 0 : index
    %52 = vector.load %arg2[%c8, %c0_49, %c0_50] : memref<9x256x64xbf16, #tpu.memory_space<vmem>>, vector<1x256x64xbf16>
    %53 = vector.shape_cast %52 : vector<1x256x64xbf16> to vector<256x64xbf16>
    %c8_51 = arith.constant 8 : index
    %c0_52 = arith.constant 0 : index
    %c0_53 = arith.constant 0 : index
    %54 = vector.load %arg3[%c8_51, %c0_52, %c0_53] : memref<9x64x128xbf16, #tpu.memory_space<vmem>>, vector<1x64x128xbf16>
    %55 = vector.shape_cast %54 : vector<1x64x128xbf16> to vector<64x128xbf16>
    %cst_54 = arith.constant dense<0.000000e+00> : vector<256x128xf32>
    %56 = tpu.matmul %53, %55, %cst_54 {dimension_numbers = #tpu.dot_dimension_numbers<[1], [0], [0], [1], [0, 0, 1, 1], [], []>} : vector<256x64xbf16>, vector<64x128xbf16>, vector<256x128xf32> -> vector<256x128xf32>
    %57 = arith.addf %51, %56 : vector<256x128xf32>
    %c0_55 = arith.constant 0 : index
    %c0_56 = arith.constant 0 : index
    %58 = vector.load %arg4[%c0_55, %c0_56] : memref<256x128xf32, #tpu.memory_space<vmem>>, vector<256x128xf32>
    tpu.vector_store %arg4[%c0_55, %c0_56], %57 {strides = array<i32>} : memref<256x128xf32, #tpu.memory_space<vmem>>, vector<256x128xf32>,
    %c0_57 = arith.constant 0 : index
    %c0_58 = arith.constant 0 : index
    %59 = vector.load %arg5[%c0_57, %c0_58] : memref<1x128xf32, #tpu.memory_space<vmem>>, vector<1x128xf32>
    %cst_59 = arith.constant dense<0.000000e+00> : vector<128xf32>
    %60 = vector.multi_reduction <add>, %57, %cst_59 [0] : vector<256x128xf32> to vector<128xf32>
    %61 = vector.shape_cast %60 : vector<128xf32> to vector<1x128xf32>
    %62 = arith.addf %59, %61 : vector<1x128xf32>
    %c0_60 = arith.constant 0 : index
    %c0_61 = arith.constant 0 : index
    %63 = vector.load %arg5[%c0_60, %c0_61] : memref<1x128xf32, #tpu.memory_space<vmem>>, vector<1x128xf32>
    tpu.vector_store %arg5[%c0_60, %c0_61], %62 {strides = array<i32>} : memref<1x128xf32, #tpu.memory_space<vmem>>, vector<1x128xf32>,
    %c0_62 = arith.constant 0 : index
    %c0_63 = arith.constant 0 : index
    %64 = vector.load %arg6[%c0_62, %c0_63] : memref<1x128xf32, #tpu.memory_space<vmem>>, vector<1x128xf32>
    %65 = arith.mulf %57, %57 : vector<256x128xf32>
    %cst_64 = arith.constant dense<0.000000e+00> : vector<128xf32>
    %66 = vector.multi_reduction <add>, %65, %cst_64 [0] : vector<256x128xf32> to vector<128xf32>
    %67 = vector.shape_cast %66 : vector<128xf32> to vector<1x128xf32>
    %68 = arith.addf %64, %67 : vector<1x128xf32>
    %c0_65 = arith.constant 0 : index
    %c0_66 = arith.constant 0 : index
    %69 = vector.load %arg6[%c0_65, %c0_66] : memref<1x128xf32, #tpu.memory_space<vmem>>, vector<1x128xf32>
    tpu.vector_store %arg6[%c0_65, %c0_66], %68 {strides = array<i32>} : memref<1x128xf32, #tpu.memory_space<vmem>>, vector<1x128xf32>,
    return
  }
  func.func @transform_0(%arg0: i32, %arg1: i32) -> (i32, i32, i32) {
    %c0_i32 = arith.constant 0 : i32
    %c0_i32_0 = arith.constant 0 : i32
    %c0_i32_1 = arith.constant 0 : i32
    return %c0_i32, %arg1, %c0_i32_0 : i32, i32, i32
  }
  func.func @transform_1(%arg0: i32, %arg1: i32) -> (i32, i32, i32) {
    %c0_i32 = arith.constant 0 : i32
    %c0_i32_0 = arith.constant 0 : i32
    %c0_i32_1 = arith.constant 0 : i32
    return %c0_i32, %c0_i32_0, %arg0 : i32, i32, i32
  }
  func.func @transform_2(%arg0: i32, %arg1: i32) -> (i32, i32) {
    %c0_i32 = arith.constant 0 : i32
    return %arg1, %arg0 : i32, i32
  }
  func.func @transform_3(%arg0: i32, %arg1: i32) -> (i32, i32) {
    %c0_i32 = arith.constant 0 : i32
    %c0_i32_0 = arith.constant 0 : i32
    return %c0_i32, %arg0 : i32, i32
  }
  func.func @transform_4(%arg0: i32, %arg1: i32) -> (i32, i32) {
    %c0_i32 = arith.constant 0 : i32
    %c0_i32_0 = arith.constant 0 : i32
    return %c0_i32, %arg0 : i32, i32
  }
}

module attributes {stable_mosaic.version = 11 : i64} {
  func.func @_conv_stats_kernel(%arg0: i32, %arg1: i32, %arg2: memref<9x256x96xbf16, #tpu.memory_space<vmem>>, %arg3: memref<9x96x128xbf16, #tpu.memory_space<vmem>>, %arg4: memref<256x128xf32, #tpu.memory_space<vmem>>, %arg5: memref<1x128xf32, #tpu.memory_space<vmem>>, %arg6: memref<1x128xf32, #tpu.memory_space<vmem>>) attributes {dimension_semantics = [#tpu.dimension_semantics<parallel>, #tpu.dimension_semantics<arbitrary>], iteration_bounds = array<i64: 1, 1>, scalar_prefetch = 0 : i64, scratch_operands = 0 : i64, tpu.core_type = #tpu.core_type<tc>, window_params = [{transform_indices = @transform_0, window_bounds = array<i64: 9, 256, 96>}, {transform_indices = @transform_1, window_bounds = array<i64: 9, 96, 128>}, {transform_indices = @transform_2, window_bounds = array<i64: 256, 128>}, {transform_indices = @transform_3, window_bounds = array<i64: 1, 128>}, {transform_indices = @transform_4, window_bounds = array<i64: 1, 128>}]} {
    %c0_i32 = arith.constant 0 : i32
    %0 = arith.cmpi eq, %arg1, %c0_i32 : i32
    %1 = arith.extui %0 : i1 to i32
    %c0_i32_0 = arith.constant 0 : i32
    %2 = arith.cmpi ne, %1, %c0_i32_0 : i32
    scf.if %2 {
      %cst_67 = arith.constant 0.000000e+00 : f32
      %70 = vector.broadcast %cst_67 : f32 to vector<1x128xf32>
      %c0_68 = arith.constant 0 : index
      %c0_69 = arith.constant 0 : index
      %71 = vector.load %arg5[%c0_68, %c0_69] : memref<1x128xf32, #tpu.memory_space<vmem>>, vector<1x128xf32>
      tpu.vector_store %arg5[%c0_68, %c0_69], %70 {strides = array<i32>} : memref<1x128xf32, #tpu.memory_space<vmem>>, vector<1x128xf32>,
      %cst_70 = arith.constant 0.000000e+00 : f32
      %72 = vector.broadcast %cst_70 : f32 to vector<1x128xf32>
      %c0_71 = arith.constant 0 : index
      %c0_72 = arith.constant 0 : index
      %73 = vector.load %arg6[%c0_71, %c0_72] : memref<1x128xf32, #tpu.memory_space<vmem>>, vector<1x128xf32>
      tpu.vector_store %arg6[%c0_71, %c0_72], %72 {strides = array<i32>} : memref<1x128xf32, #tpu.memory_space<vmem>>, vector<1x128xf32>,
    } else {
    }
    %cst = arith.constant 0.000000e+00 : f32
    %3 = vector.broadcast %cst : f32 to vector<256x128xf32>
    %c0 = arith.constant 0 : index
    %c0_1 = arith.constant 0 : index
    %c0_2 = arith.constant 0 : index
    %4 = vector.load %arg2[%c0, %c0_1, %c0_2] : memref<9x256x96xbf16, #tpu.memory_space<vmem>>, vector<1x256x96xbf16>
    %5 = vector.shape_cast %4 : vector<1x256x96xbf16> to vector<256x96xbf16>
    %c0_3 = arith.constant 0 : index
    %c0_4 = arith.constant 0 : index
    %c0_5 = arith.constant 0 : index
    %6 = vector.load %arg3[%c0_3, %c0_4, %c0_5] : memref<9x96x128xbf16, #tpu.memory_space<vmem>>, vector<1x96x128xbf16>
    %7 = vector.shape_cast %6 : vector<1x96x128xbf16> to vector<96x128xbf16>
    %cst_6 = arith.constant dense<0.000000e+00> : vector<256x128xf32>
    %8 = tpu.matmul %5, %7, %cst_6 {dimension_numbers = #tpu.dot_dimension_numbers<[1], [0], [0], [1], [0, 0, 1, 1], [], []>} : vector<256x96xbf16>, vector<96x128xbf16>, vector<256x128xf32> -> vector<256x128xf32>
    %9 = arith.addf %3, %8 : vector<256x128xf32>
    %c1 = arith.constant 1 : index
    %c0_7 = arith.constant 0 : index
    %c0_8 = arith.constant 0 : index
    %10 = vector.load %arg2[%c1, %c0_7, %c0_8] : memref<9x256x96xbf16, #tpu.memory_space<vmem>>, vector<1x256x96xbf16>
    %11 = vector.shape_cast %10 : vector<1x256x96xbf16> to vector<256x96xbf16>
    %c1_9 = arith.constant 1 : index
    %c0_10 = arith.constant 0 : index
    %c0_11 = arith.constant 0 : index
    %12 = vector.load %arg3[%c1_9, %c0_10, %c0_11] : memref<9x96x128xbf16, #tpu.memory_space<vmem>>, vector<1x96x128xbf16>
    %13 = vector.shape_cast %12 : vector<1x96x128xbf16> to vector<96x128xbf16>
    %cst_12 = arith.constant dense<0.000000e+00> : vector<256x128xf32>
    %14 = tpu.matmul %11, %13, %cst_12 {dimension_numbers = #tpu.dot_dimension_numbers<[1], [0], [0], [1], [0, 0, 1, 1], [], []>} : vector<256x96xbf16>, vector<96x128xbf16>, vector<256x128xf32> -> vector<256x128xf32>
    %15 = arith.addf %9, %14 : vector<256x128xf32>
    %c2 = arith.constant 2 : index
    %c0_13 = arith.constant 0 : index
    %c0_14 = arith.constant 0 : index
    %16 = vector.load %arg2[%c2, %c0_13, %c0_14] : memref<9x256x96xbf16, #tpu.memory_space<vmem>>, vector<1x256x96xbf16>
    %17 = vector.shape_cast %16 : vector<1x256x96xbf16> to vector<256x96xbf16>
    %c2_15 = arith.constant 2 : index
    %c0_16 = arith.constant 0 : index
    %c0_17 = arith.constant 0 : index
    %18 = vector.load %arg3[%c2_15, %c0_16, %c0_17] : memref<9x96x128xbf16, #tpu.memory_space<vmem>>, vector<1x96x128xbf16>
    %19 = vector.shape_cast %18 : vector<1x96x128xbf16> to vector<96x128xbf16>
    %cst_18 = arith.constant dense<0.000000e+00> : vector<256x128xf32>
    %20 = tpu.matmul %17, %19, %cst_18 {dimension_numbers = #tpu.dot_dimension_numbers<[1], [0], [0], [1], [0, 0, 1, 1], [], []>} : vector<256x96xbf16>, vector<96x128xbf16>, vector<256x128xf32> -> vector<256x128xf32>
    %21 = arith.addf %15, %20 : vector<256x128xf32>
    %c3 = arith.constant 3 : index
    %c0_19 = arith.constant 0 : index
    %c0_20 = arith.constant 0 : index
    %22 = vector.load %arg2[%c3, %c0_19, %c0_20] : memref<9x256x96xbf16, #tpu.memory_space<vmem>>, vector<1x256x96xbf16>
    %23 = vector.shape_cast %22 : vector<1x256x96xbf16> to vector<256x96xbf16>
    %c3_21 = arith.constant 3 : index
    %c0_22 = arith.constant 0 : index
    %c0_23 = arith.constant 0 : index
    %24 = vector.load %arg3[%c3_21, %c0_22, %c0_23] : memref<9x96x128xbf16, #tpu.memory_space<vmem>>, vector<1x96x128xbf16>
    %25 = vector.shape_cast %24 : vector<1x96x128xbf16> to vector<96x128xbf16>
    %cst_24 = arith.constant dense<0.000000e+00> : vector<256x128xf32>
    %26 = tpu.matmul %23, %25, %cst_24 {dimension_numbers = #tpu.dot_dimension_numbers<[1], [0], [0], [1], [0, 0, 1, 1], [], []>} : vector<256x96xbf16>, vector<96x128xbf16>, vector<256x128xf32> -> vector<256x128xf32>
    %27 = arith.addf %21, %26 : vector<256x128xf32>
    %c4 = arith.constant 4 : index
    %c0_25 = arith.constant 0 : index
    %c0_26 = arith.constant 0 : index
    %28 = vector.load %arg2[%c4, %c0_25, %c0_26] : memref<9x256x96xbf16, #tpu.memory_space<vmem>>, vector<1x256x96xbf16>
    %29 = vector.shape_cast %28 : vector<1x256x96xbf16> to vector<256x96xbf16>
    %c4_27 = arith.constant 4 : index
    %c0_28 = arith.constant 0 : index
    %c0_29 = arith.constant 0 : index
    %30 = vector.load %arg3[%c4_27, %c0_28, %c0_29] : memref<9x96x128xbf16, #tpu.memory_space<vmem>>, vector<1x96x128xbf16>
    %31 = vector.shape_cast %30 : vector<1x96x128xbf16> to vector<96x128xbf16>
    %cst_30 = arith.constant dense<0.000000e+00> : vector<256x128xf32>
    %32 = tpu.matmul %29, %31, %cst_30 {dimension_numbers = #tpu.dot_dimension_numbers<[1], [0], [0], [1], [0, 0, 1, 1], [], []>} : vector<256x96xbf16>, vector<96x128xbf16>, vector<256x128xf32> -> vector<256x128xf32>
    %33 = arith.addf %27, %32 : vector<256x128xf32>
    %c5 = arith.constant 5 : index
    %c0_31 = arith.constant 0 : index
    %c0_32 = arith.constant 0 : index
    %34 = vector.load %arg2[%c5, %c0_31, %c0_32] : memref<9x256x96xbf16, #tpu.memory_space<vmem>>, vector<1x256x96xbf16>
    %35 = vector.shape_cast %34 : vector<1x256x96xbf16> to vector<256x96xbf16>
    %c5_33 = arith.constant 5 : index
    %c0_34 = arith.constant 0 : index
    %c0_35 = arith.constant 0 : index
    %36 = vector.load %arg3[%c5_33, %c0_34, %c0_35] : memref<9x96x128xbf16, #tpu.memory_space<vmem>>, vector<1x96x128xbf16>
    %37 = vector.shape_cast %36 : vector<1x96x128xbf16> to vector<96x128xbf16>
    %cst_36 = arith.constant dense<0.000000e+00> : vector<256x128xf32>
    %38 = tpu.matmul %35, %37, %cst_36 {dimension_numbers = #tpu.dot_dimension_numbers<[1], [0], [0], [1], [0, 0, 1, 1], [], []>} : vector<256x96xbf16>, vector<96x128xbf16>, vector<256x128xf32> -> vector<256x128xf32>
    %39 = arith.addf %33, %38 : vector<256x128xf32>
    %c6 = arith.constant 6 : index
    %c0_37 = arith.constant 0 : index
    %c0_38 = arith.constant 0 : index
    %40 = vector.load %arg2[%c6, %c0_37, %c0_38] : memref<9x256x96xbf16, #tpu.memory_space<vmem>>, vector<1x256x96xbf16>
    %41 = vector.shape_cast %40 : vector<1x256x96xbf16> to vector<256x96xbf16>
    %c6_39 = arith.constant 6 : index
    %c0_40 = arith.constant 0 : index
    %c0_41 = arith.constant 0 : index
    %42 = vector.load %arg3[%c6_39, %c0_40, %c0_41] : memref<9x96x128xbf16, #tpu.memory_space<vmem>>, vector<1x96x128xbf16>
    %43 = vector.shape_cast %42 : vector<1x96x128xbf16> to vector<96x128xbf16>
    %cst_42 = arith.constant dense<0.000000e+00> : vector<256x128xf32>
    %44 = tpu.matmul %41, %43, %cst_42 {dimension_numbers = #tpu.dot_dimension_numbers<[1], [0], [0], [1], [0, 0, 1, 1], [], []>} : vector<256x96xbf16>, vector<96x128xbf16>, vector<256x128xf32> -> vector<256x128xf32>
    %45 = arith.addf %39, %44 : vector<256x128xf32>
    %c7 = arith.constant 7 : index
    %c0_43 = arith.constant 0 : index
    %c0_44 = arith.constant 0 : index
    %46 = vector.load %arg2[%c7, %c0_43, %c0_44] : memref<9x256x96xbf16, #tpu.memory_space<vmem>>, vector<1x256x96xbf16>
    %47 = vector.shape_cast %46 : vector<1x256x96xbf16> to vector<256x96xbf16>
    %c7_45 = arith.constant 7 : index
    %c0_46 = arith.constant 0 : index
    %c0_47 = arith.constant 0 : index
    %48 = vector.load %arg3[%c7_45, %c0_46, %c0_47] : memref<9x96x128xbf16, #tpu.memory_space<vmem>>, vector<1x96x128xbf16>
    %49 = vector.shape_cast %48 : vector<1x96x128xbf16> to vector<96x128xbf16>
    %cst_48 = arith.constant dense<0.000000e+00> : vector<256x128xf32>
    %50 = tpu.matmul %47, %49, %cst_48 {dimension_numbers = #tpu.dot_dimension_numbers<[1], [0], [0], [1], [0, 0, 1, 1], [], []>} : vector<256x96xbf16>, vector<96x128xbf16>, vector<256x128xf32> -> vector<256x128xf32>
    %51 = arith.addf %45, %50 : vector<256x128xf32>
    %c8 = arith.constant 8 : index
    %c0_49 = arith.constant 0 : index
    %c0_50 = arith.constant 0 : index
    %52 = vector.load %arg2[%c8, %c0_49, %c0_50] : memref<9x256x96xbf16, #tpu.memory_space<vmem>>, vector<1x256x96xbf16>
    %53 = vector.shape_cast %52 : vector<1x256x96xbf16> to vector<256x96xbf16>
    %c8_51 = arith.constant 8 : index
    %c0_52 = arith.constant 0 : index
    %c0_53 = arith.constant 0 : index
    %54 = vector.load %arg3[%c8_51, %c0_52, %c0_53] : memref<9x96x128xbf16, #tpu.memory_space<vmem>>, vector<1x96x128xbf16>
    %55 = vector.shape_cast %54 : vector<1x96x128xbf16> to vector<96x128xbf16>
    %cst_54 = arith.constant dense<0.000000e+00> : vector<256x128xf32>
    %56 = tpu.matmul %53, %55, %cst_54 {dimension_numbers = #tpu.dot_dimension_numbers<[1], [0], [0], [1], [0, 0, 1, 1], [], []>} : vector<256x96xbf16>, vector<96x128xbf16>, vector<256x128xf32> -> vector<256x128xf32>
    %57 = arith.addf %51, %56 : vector<256x128xf32>
    %c0_55 = arith.constant 0 : index
    %c0_56 = arith.constant 0 : index
    %58 = vector.load %arg4[%c0_55, %c0_56] : memref<256x128xf32, #tpu.memory_space<vmem>>, vector<256x128xf32>
    tpu.vector_store %arg4[%c0_55, %c0_56], %57 {strides = array<i32>} : memref<256x128xf32, #tpu.memory_space<vmem>>, vector<256x128xf32>,
    %c0_57 = arith.constant 0 : index
    %c0_58 = arith.constant 0 : index
    %59 = vector.load %arg5[%c0_57, %c0_58] : memref<1x128xf32, #tpu.memory_space<vmem>>, vector<1x128xf32>
    %cst_59 = arith.constant dense<0.000000e+00> : vector<128xf32>
    %60 = vector.multi_reduction <add>, %57, %cst_59 [0] : vector<256x128xf32> to vector<128xf32>
    %61 = vector.shape_cast %60 : vector<128xf32> to vector<1x128xf32>
    %62 = arith.addf %59, %61 : vector<1x128xf32>
    %c0_60 = arith.constant 0 : index
    %c0_61 = arith.constant 0 : index
    %63 = vector.load %arg5[%c0_60, %c0_61] : memref<1x128xf32, #tpu.memory_space<vmem>>, vector<1x128xf32>
    tpu.vector_store %arg5[%c0_60, %c0_61], %62 {strides = array<i32>} : memref<1x128xf32, #tpu.memory_space<vmem>>, vector<1x128xf32>,
    %c0_62 = arith.constant 0 : index
    %c0_63 = arith.constant 0 : index
    %64 = vector.load %arg6[%c0_62, %c0_63] : memref<1x128xf32, #tpu.memory_space<vmem>>, vector<1x128xf32>
    %65 = arith.mulf %57, %57 : vector<256x128xf32>
    %cst_64 = arith.constant dense<0.000000e+00> : vector<128xf32>
    %66 = vector.multi_reduction <add>, %65, %cst_64 [0] : vector<256x128xf32> to vector<128xf32>
    %67 = vector.shape_cast %66 : vector<128xf32> to vector<1x128xf32>
    %68 = arith.addf %64, %67 : vector<1x128xf32>
    %c0_65 = arith.constant 0 : index
    %c0_66 = arith.constant 0 : index
    %69 = vector.load %arg6[%c0_65, %c0_66] : memref<1x128xf32, #tpu.memory_space<vmem>>, vector<1x128xf32>
    tpu.vector_store %arg6[%c0_65, %c0_66], %68 {strides = array<i32>} : memref<1x128xf32, #tpu.memory_space<vmem>>, vector<1x128xf32>,
    return
  }
  func.func @transform_0(%arg0: i32, %arg1: i32) -> (i32, i32, i32) {
    %c0_i32 = arith.constant 0 : i32
    %c0_i32_0 = arith.constant 0 : i32
    %c0_i32_1 = arith.constant 0 : i32
    return %c0_i32, %arg1, %c0_i32_0 : i32, i32, i32
  }
  func.func @transform_1(%arg0: i32, %arg1: i32) -> (i32, i32, i32) {
    %c0_i32 = arith.constant 0 : i32
    %c0_i32_0 = arith.constant 0 : i32
    %c0_i32_1 = arith.constant 0 : i32
    return %c0_i32, %c0_i32_0, %arg0 : i32, i32, i32
  }
  func.func @transform_2(%arg0: i32, %arg1: i32) -> (i32, i32) {
    %c0_i32 = arith.constant 0 : i32
    return %arg1, %arg0 : i32, i32
  }
  func.func @transform_3(%arg0: i32, %arg1: i32) -> (i32, i32) {
    %c0_i32 = arith.constant 0 : i32
    %c0_i32_0 = arith.constant 0 : i32
    return %c0_i32, %arg0 : i32, i32
  }
  func.func @transform_4(%arg0: i32, %arg1: i32) -> (i32, i32) {
    %c0_i32 = arith.constant 0 : i32
    %c0_i32_0 = arith.constant 0 : i32
    return %c0_i32, %arg0 : i32, i32
  }
}

module attributes {stable_mosaic.version = 11 : i64} {
  func.func @_bn_relu_kernel(%arg0: i32, %arg1: i32, %arg2: memref<256x128xf32, #tpu.memory_space<vmem>>, %arg3: memref<1x128xf32, #tpu.memory_space<vmem>>, %arg4: memref<1x128xf32, #tpu.memory_space<vmem>>, %arg5: memref<256x128xf32, #tpu.memory_space<vmem>>) attributes {dimension_semantics = [#tpu.dimension_semantics<parallel>, #tpu.dimension_semantics<parallel>], iteration_bounds = array<i64: 1, 1>, scalar_prefetch = 0 : i64, scratch_operands = 0 : i64, tpu.core_type = #tpu.core_type<tc>, window_params = [{transform_indices = @transform_0, window_bounds = array<i64: 256, 128>}, {transform_indices = @transform_1, window_bounds = array<i64: 1, 128>}, {transform_indices = @transform_2, window_bounds = array<i64: 1, 128>}, {transform_indices = @transform_3, window_bounds = array<i64: 256, 128>}]} {
    %c0 = arith.constant 0 : index
    %c0_0 = arith.constant 0 : index
    %0 = vector.load %arg2[%c0, %c0_0] : memref<256x128xf32, #tpu.memory_space<vmem>>, vector<256x128xf32>
    %c0_1 = arith.constant 0 : index
    %c0_2 = arith.constant 0 : index
    %1 = vector.load %arg3[%c0_1, %c0_2] : memref<1x128xf32, #tpu.memory_space<vmem>>, vector<1x128xf32>
    %2 = vector.broadcast %1 : vector<1x128xf32> to vector<256x128xf32>
    %3 = arith.mulf %0, %2 : vector<256x128xf32>
    %c0_3 = arith.constant 0 : index
    %c0_4 = arith.constant 0 : index
    %4 = vector.load %arg4[%c0_3, %c0_4] : memref<1x128xf32, #tpu.memory_space<vmem>>, vector<1x128xf32>
    %5 = vector.broadcast %4 : vector<1x128xf32> to vector<256x128xf32>
    %6 = arith.addf %3, %5 : vector<256x128xf32>
    %cst = arith.constant 0.000000e+00 : f32
    %7 = vector.broadcast %cst : f32 to vector<256x128xf32>
    %8 = arith.maximumf %6, %7 : vector<256x128xf32>
    %c0_5 = arith.constant 0 : index
    %c0_6 = arith.constant 0 : index
    %9 = vector.load %arg5[%c0_5, %c0_6] : memref<256x128xf32, #tpu.memory_space<vmem>>, vector<256x128xf32>
    tpu.vector_store %arg5[%c0_5, %c0_6], %8 {strides = array<i32>} : memref<256x128xf32, #tpu.memory_space<vmem>>, vector<256x128xf32>,
    return
  }
  func.func @transform_0(%arg0: i32, %arg1: i32) -> (i32, i32) {
    %c0_i32 = arith.constant 0 : i32
    return %arg1, %arg0 : i32, i32
  }
  func.func @transform_1(%arg0: i32, %arg1: i32) -> (i32, i32) {
    %c0_i32 = arith.constant 0 : i32
    %c0_i32_0 = arith.constant 0 : i32
    return %c0_i32, %arg0 : i32, i32
  }
  func.func @transform_2(%arg0: i32, %arg1: i32) -> (i32, i32) {
    %c0_i32 = arith.constant 0 : i32
    %c0_i32_0 = arith.constant 0 : i32
    return %c0_i32, %arg0 : i32, i32
  }
  func.func @transform_3(%arg0: i32, %arg1: i32) -> (i32, i32) {
    %c0_i32 = arith.constant 0 : i32
    return %arg1, %arg0 : i32, i32
  }
}

module attributes {stable_mosaic.version = 11 : i64} {
  func.func @_conv_stats_kernel(%arg0: i32, %arg1: i32, %arg2: memref<9x256x4xbf16, #tpu.memory_space<vmem>>, %arg3: memref<9x4x128xbf16, #tpu.memory_space<vmem>>, %arg4: memref<256x128xf32, #tpu.memory_space<vmem>>, %arg5: memref<1x128xf32, #tpu.memory_space<vmem>>, %arg6: memref<1x128xf32, #tpu.memory_space<vmem>>) attributes {dimension_semantics = [#tpu.dimension_semantics<parallel>, #tpu.dimension_semantics<arbitrary>], iteration_bounds = array<i64: 3, 1>, scalar_prefetch = 0 : i64, scratch_operands = 0 : i64, tpu.core_type = #tpu.core_type<tc>, window_params = [{transform_indices = @transform_0, window_bounds = array<i64: 9, 256, 4>}, {transform_indices = @transform_1, window_bounds = array<i64: 9, 4, 128>}, {transform_indices = @transform_2, window_bounds = array<i64: 256, 128>}, {transform_indices = @transform_3, window_bounds = array<i64: 1, 128>}, {transform_indices = @transform_4, window_bounds = array<i64: 1, 128>}]} {
    %c0_i32 = arith.constant 0 : i32
    %0 = arith.cmpi eq, %arg1, %c0_i32 : i32
    %1 = arith.extui %0 : i1 to i32
    %c0_i32_0 = arith.constant 0 : i32
    %2 = arith.cmpi ne, %1, %c0_i32_0 : i32
    scf.if %2 {
      %cst_67 = arith.constant 0.000000e+00 : f32
      %70 = vector.broadcast %cst_67 : f32 to vector<1x128xf32>
      %c0_68 = arith.constant 0 : index
      %c0_69 = arith.constant 0 : index
      %71 = vector.load %arg5[%c0_68, %c0_69] : memref<1x128xf32, #tpu.memory_space<vmem>>, vector<1x128xf32>
      tpu.vector_store %arg5[%c0_68, %c0_69], %70 {strides = array<i32>} : memref<1x128xf32, #tpu.memory_space<vmem>>, vector<1x128xf32>,
      %cst_70 = arith.constant 0.000000e+00 : f32
      %72 = vector.broadcast %cst_70 : f32 to vector<1x128xf32>
      %c0_71 = arith.constant 0 : index
      %c0_72 = arith.constant 0 : index
      %73 = vector.load %arg6[%c0_71, %c0_72] : memref<1x128xf32, #tpu.memory_space<vmem>>, vector<1x128xf32>
      tpu.vector_store %arg6[%c0_71, %c0_72], %72 {strides = array<i32>} : memref<1x128xf32, #tpu.memory_space<vmem>>, vector<1x128xf32>,
    } else {
    }
    %cst = arith.constant 0.000000e+00 : f32
    %3 = vector.broadcast %cst : f32 to vector<256x128xf32>
    %c0 = arith.constant 0 : index
    %c0_1 = arith.constant 0 : index
    %c0_2 = arith.constant 0 : index
    %4 = vector.load %arg2[%c0, %c0_1, %c0_2] : memref<9x256x4xbf16, #tpu.memory_space<vmem>>, vector<1x256x4xbf16>
    %5 = vector.shape_cast %4 : vector<1x256x4xbf16> to vector<256x4xbf16>
    %c0_3 = arith.constant 0 : index
    %c0_4 = arith.constant 0 : index
    %c0_5 = arith.constant 0 : index
    %6 = vector.load %arg3[%c0_3, %c0_4, %c0_5] : memref<9x4x128xbf16, #tpu.memory_space<vmem>>, vector<1x4x128xbf16>
    %7 = vector.shape_cast %6 : vector<1x4x128xbf16> to vector<4x128xbf16>
    %cst_6 = arith.constant dense<0.000000e+00> : vector<256x128xf32>
    %8 = tpu.matmul %5, %7, %cst_6 {dimension_numbers = #tpu.dot_dimension_numbers<[1], [0], [0], [1], [0, 0, 1, 1], [], []>} : vector<256x4xbf16>, vector<4x128xbf16>, vector<256x128xf32> -> vector<256x128xf32>
    %9 = arith.addf %3, %8 : vector<256x128xf32>
    %c1 = arith.constant 1 : index
    %c0_7 = arith.constant 0 : index
    %c0_8 = arith.constant 0 : index
    %10 = vector.load %arg2[%c1, %c0_7, %c0_8] : memref<9x256x4xbf16, #tpu.memory_space<vmem>>, vector<1x256x4xbf16>
    %11 = vector.shape_cast %10 : vector<1x256x4xbf16> to vector<256x4xbf16>
    %c1_9 = arith.constant 1 : index
    %c0_10 = arith.constant 0 : index
    %c0_11 = arith.constant 0 : index
    %12 = vector.load %arg3[%c1_9, %c0_10, %c0_11] : memref<9x4x128xbf16, #tpu.memory_space<vmem>>, vector<1x4x128xbf16>
    %13 = vector.shape_cast %12 : vector<1x4x128xbf16> to vector<4x128xbf16>
    %cst_12 = arith.constant dense<0.000000e+00> : vector<256x128xf32>
    %14 = tpu.matmul %11, %13, %cst_12 {dimension_numbers = #tpu.dot_dimension_numbers<[1], [0], [0], [1], [0, 0, 1, 1], [], []>} : vector<256x4xbf16>, vector<4x128xbf16>, vector<256x128xf32> -> vector<256x128xf32>
    %15 = arith.addf %9, %14 : vector<256x128xf32>
    %c2 = arith.constant 2 : index
    %c0_13 = arith.constant 0 : index
    %c0_14 = arith.constant 0 : index
    %16 = vector.load %arg2[%c2, %c0_13, %c0_14] : memref<9x256x4xbf16, #tpu.memory_space<vmem>>, vector<1x256x4xbf16>
    %17 = vector.shape_cast %16 : vector<1x256x4xbf16> to vector<256x4xbf16>
    %c2_15 = arith.constant 2 : index
    %c0_16 = arith.constant 0 : index
    %c0_17 = arith.constant 0 : index
    %18 = vector.load %arg3[%c2_15, %c0_16, %c0_17] : memref<9x4x128xbf16, #tpu.memory_space<vmem>>, vector<1x4x128xbf16>
    %19 = vector.shape_cast %18 : vector<1x4x128xbf16> to vector<4x128xbf16>
    %cst_18 = arith.constant dense<0.000000e+00> : vector<256x128xf32>
    %20 = tpu.matmul %17, %19, %cst_18 {dimension_numbers = #tpu.dot_dimension_numbers<[1], [0], [0], [1], [0, 0, 1, 1], [], []>} : vector<256x4xbf16>, vector<4x128xbf16>, vector<256x128xf32> -> vector<256x128xf32>
    %21 = arith.addf %15, %20 : vector<256x128xf32>
    %c3 = arith.constant 3 : index
    %c0_19 = arith.constant 0 : index
    %c0_20 = arith.constant 0 : index
    %22 = vector.load %arg2[%c3, %c0_19, %c0_20] : memref<9x256x4xbf16, #tpu.memory_space<vmem>>, vector<1x256x4xbf16>
    %23 = vector.shape_cast %22 : vector<1x256x4xbf16> to vector<256x4xbf16>
    %c3_21 = arith.constant 3 : index
    %c0_22 = arith.constant 0 : index
    %c0_23 = arith.constant 0 : index
    %24 = vector.load %arg3[%c3_21, %c0_22, %c0_23] : memref<9x4x128xbf16, #tpu.memory_space<vmem>>, vector<1x4x128xbf16>
    %25 = vector.shape_cast %24 : vector<1x4x128xbf16> to vector<4x128xbf16>
    %cst_24 = arith.constant dense<0.000000e+00> : vector<256x128xf32>
    %26 = tpu.matmul %23, %25, %cst_24 {dimension_numbers = #tpu.dot_dimension_numbers<[1], [0], [0], [1], [0, 0, 1, 1], [], []>} : vector<256x4xbf16>, vector<4x128xbf16>, vector<256x128xf32> -> vector<256x128xf32>
    %27 = arith.addf %21, %26 : vector<256x128xf32>
    %c4 = arith.constant 4 : index
    %c0_25 = arith.constant 0 : index
    %c0_26 = arith.constant 0 : index
    %28 = vector.load %arg2[%c4, %c0_25, %c0_26] : memref<9x256x4xbf16, #tpu.memory_space<vmem>>, vector<1x256x4xbf16>
    %29 = vector.shape_cast %28 : vector<1x256x4xbf16> to vector<256x4xbf16>
    %c4_27 = arith.constant 4 : index
    %c0_28 = arith.constant 0 : index
    %c0_29 = arith.constant 0 : index
    %30 = vector.load %arg3[%c4_27, %c0_28, %c0_29] : memref<9x4x128xbf16, #tpu.memory_space<vmem>>, vector<1x4x128xbf16>
    %31 = vector.shape_cast %30 : vector<1x4x128xbf16> to vector<4x128xbf16>
    %cst_30 = arith.constant dense<0.000000e+00> : vector<256x128xf32>
    %32 = tpu.matmul %29, %31, %cst_30 {dimension_numbers = #tpu.dot_dimension_numbers<[1], [0], [0], [1], [0, 0, 1, 1], [], []>} : vector<256x4xbf16>, vector<4x128xbf16>, vector<256x128xf32> -> vector<256x128xf32>
    %33 = arith.addf %27, %32 : vector<256x128xf32>
    %c5 = arith.constant 5 : index
    %c0_31 = arith.constant 0 : index
    %c0_32 = arith.constant 0 : index
    %34 = vector.load %arg2[%c5, %c0_31, %c0_32] : memref<9x256x4xbf16, #tpu.memory_space<vmem>>, vector<1x256x4xbf16>
    %35 = vector.shape_cast %34 : vector<1x256x4xbf16> to vector<256x4xbf16>
    %c5_33 = arith.constant 5 : index
    %c0_34 = arith.constant 0 : index
    %c0_35 = arith.constant 0 : index
    %36 = vector.load %arg3[%c5_33, %c0_34, %c0_35] : memref<9x4x128xbf16, #tpu.memory_space<vmem>>, vector<1x4x128xbf16>
    %37 = vector.shape_cast %36 : vector<1x4x128xbf16> to vector<4x128xbf16>
    %cst_36 = arith.constant dense<0.000000e+00> : vector<256x128xf32>
    %38 = tpu.matmul %35, %37, %cst_36 {dimension_numbers = #tpu.dot_dimension_numbers<[1], [0], [0], [1], [0, 0, 1, 1], [], []>} : vector<256x4xbf16>, vector<4x128xbf16>, vector<256x128xf32> -> vector<256x128xf32>
    %39 = arith.addf %33, %38 : vector<256x128xf32>
    %c6 = arith.constant 6 : index
    %c0_37 = arith.constant 0 : index
    %c0_38 = arith.constant 0 : index
    %40 = vector.load %arg2[%c6, %c0_37, %c0_38] : memref<9x256x4xbf16, #tpu.memory_space<vmem>>, vector<1x256x4xbf16>
    %41 = vector.shape_cast %40 : vector<1x256x4xbf16> to vector<256x4xbf16>
    %c6_39 = arith.constant 6 : index
    %c0_40 = arith.constant 0 : index
    %c0_41 = arith.constant 0 : index
    %42 = vector.load %arg3[%c6_39, %c0_40, %c0_41] : memref<9x4x128xbf16, #tpu.memory_space<vmem>>, vector<1x4x128xbf16>
    %43 = vector.shape_cast %42 : vector<1x4x128xbf16> to vector<4x128xbf16>
    %cst_42 = arith.constant dense<0.000000e+00> : vector<256x128xf32>
    %44 = tpu.matmul %41, %43, %cst_42 {dimension_numbers = #tpu.dot_dimension_numbers<[1], [0], [0], [1], [0, 0, 1, 1], [], []>} : vector<256x4xbf16>, vector<4x128xbf16>, vector<256x128xf32> -> vector<256x128xf32>
    %45 = arith.addf %39, %44 : vector<256x128xf32>
    %c7 = arith.constant 7 : index
    %c0_43 = arith.constant 0 : index
    %c0_44 = arith.constant 0 : index
    %46 = vector.load %arg2[%c7, %c0_43, %c0_44] : memref<9x256x4xbf16, #tpu.memory_space<vmem>>, vector<1x256x4xbf16>
    %47 = vector.shape_cast %46 : vector<1x256x4xbf16> to vector<256x4xbf16>
    %c7_45 = arith.constant 7 : index
    %c0_46 = arith.constant 0 : index
    %c0_47 = arith.constant 0 : index
    %48 = vector.load %arg3[%c7_45, %c0_46, %c0_47] : memref<9x4x128xbf16, #tpu.memory_space<vmem>>, vector<1x4x128xbf16>
    %49 = vector.shape_cast %48 : vector<1x4x128xbf16> to vector<4x128xbf16>
    %cst_48 = arith.constant dense<0.000000e+00> : vector<256x128xf32>
    %50 = tpu.matmul %47, %49, %cst_48 {dimension_numbers = #tpu.dot_dimension_numbers<[1], [0], [0], [1], [0, 0, 1, 1], [], []>} : vector<256x4xbf16>, vector<4x128xbf16>, vector<256x128xf32> -> vector<256x128xf32>
    %51 = arith.addf %45, %50 : vector<256x128xf32>
    %c8 = arith.constant 8 : index
    %c0_49 = arith.constant 0 : index
    %c0_50 = arith.constant 0 : index
    %52 = vector.load %arg2[%c8, %c0_49, %c0_50] : memref<9x256x4xbf16, #tpu.memory_space<vmem>>, vector<1x256x4xbf16>
    %53 = vector.shape_cast %52 : vector<1x256x4xbf16> to vector<256x4xbf16>
    %c8_51 = arith.constant 8 : index
    %c0_52 = arith.constant 0 : index
    %c0_53 = arith.constant 0 : index
    %54 = vector.load %arg3[%c8_51, %c0_52, %c0_53] : memref<9x4x128xbf16, #tpu.memory_space<vmem>>, vector<1x4x128xbf16>
    %55 = vector.shape_cast %54 : vector<1x4x128xbf16> to vector<4x128xbf16>
    %cst_54 = arith.constant dense<0.000000e+00> : vector<256x128xf32>
    %56 = tpu.matmul %53, %55, %cst_54 {dimension_numbers = #tpu.dot_dimension_numbers<[1], [0], [0], [1], [0, 0, 1, 1], [], []>} : vector<256x4xbf16>, vector<4x128xbf16>, vector<256x128xf32> -> vector<256x128xf32>
    %57 = arith.addf %51, %56 : vector<256x128xf32>
    %c0_55 = arith.constant 0 : index
    %c0_56 = arith.constant 0 : index
    %58 = vector.load %arg4[%c0_55, %c0_56] : memref<256x128xf32, #tpu.memory_space<vmem>>, vector<256x128xf32>
    tpu.vector_store %arg4[%c0_55, %c0_56], %57 {strides = array<i32>} : memref<256x128xf32, #tpu.memory_space<vmem>>, vector<256x128xf32>,
    %c0_57 = arith.constant 0 : index
    %c0_58 = arith.constant 0 : index
    %59 = vector.load %arg5[%c0_57, %c0_58] : memref<1x128xf32, #tpu.memory_space<vmem>>, vector<1x128xf32>
    %cst_59 = arith.constant dense<0.000000e+00> : vector<128xf32>
    %60 = vector.multi_reduction <add>, %57, %cst_59 [0] : vector<256x128xf32> to vector<128xf32>
    %61 = vector.shape_cast %60 : vector<128xf32> to vector<1x128xf32>
    %62 = arith.addf %59, %61 : vector<1x128xf32>
    %c0_60 = arith.constant 0 : index
    %c0_61 = arith.constant 0 : index
    %63 = vector.load %arg5[%c0_60, %c0_61] : memref<1x128xf32, #tpu.memory_space<vmem>>, vector<1x128xf32>
    tpu.vector_store %arg5[%c0_60, %c0_61], %62 {strides = array<i32>} : memref<1x128xf32, #tpu.memory_space<vmem>>, vector<1x128xf32>,
    %c0_62 = arith.constant 0 : index
    %c0_63 = arith.constant 0 : index
    %64 = vector.load %arg6[%c0_62, %c0_63] : memref<1x128xf32, #tpu.memory_space<vmem>>, vector<1x128xf32>
    %65 = arith.mulf %57, %57 : vector<256x128xf32>
    %cst_64 = arith.constant dense<0.000000e+00> : vector<128xf32>
    %66 = vector.multi_reduction <add>, %65, %cst_64 [0] : vector<256x128xf32> to vector<128xf32>
    %67 = vector.shape_cast %66 : vector<128xf32> to vector<1x128xf32>
    %68 = arith.addf %64, %67 : vector<1x128xf32>
    %c0_65 = arith.constant 0 : index
    %c0_66 = arith.constant 0 : index
    %69 = vector.load %arg6[%c0_65, %c0_66] : memref<1x128xf32, #tpu.memory_space<vmem>>, vector<1x128xf32>
    tpu.vector_store %arg6[%c0_65, %c0_66], %68 {strides = array<i32>} : memref<1x128xf32, #tpu.memory_space<vmem>>, vector<1x128xf32>,
    return
  }
  func.func @transform_0(%arg0: i32, %arg1: i32) -> (i32, i32, i32) {
    %c0_i32 = arith.constant 0 : i32
    %c0_i32_0 = arith.constant 0 : i32
    %c0_i32_1 = arith.constant 0 : i32
    return %c0_i32, %arg1, %c0_i32_0 : i32, i32, i32
  }
  func.func @transform_1(%arg0: i32, %arg1: i32) -> (i32, i32, i32) {
    %c0_i32 = arith.constant 0 : i32
    %c0_i32_0 = arith.constant 0 : i32
    %c0_i32_1 = arith.constant 0 : i32
    return %c0_i32, %c0_i32_0, %arg0 : i32, i32, i32
  }
  func.func @transform_2(%arg0: i32, %arg1: i32) -> (i32, i32) {
    %c0_i32 = arith.constant 0 : i32
    return %arg1, %arg0 : i32, i32
  }
  func.func @transform_3(%arg0: i32, %arg1: i32) -> (i32, i32) {
    %c0_i32 = arith.constant 0 : i32
    %c0_i32_0 = arith.constant 0 : i32
    return %c0_i32, %arg0 : i32, i32
  }
  func.func @transform_4(%arg0: i32, %arg1: i32) -> (i32, i32) {
    %c0_i32 = arith.constant 0 : i32
    %c0_i32_0 = arith.constant 0 : i32
    return %c0_i32, %arg0 : i32, i32
  }
}

module attributes {stable_mosaic.version = 11 : i64} {
  func.func @_bn_relu_kernel(%arg0: i32, %arg1: i32, %arg2: memref<256x128xf32, #tpu.memory_space<vmem>>, %arg3: memref<1x128xf32, #tpu.memory_space<vmem>>, %arg4: memref<1x128xf32, #tpu.memory_space<vmem>>, %arg5: memref<256x128xf32, #tpu.memory_space<vmem>>) attributes {dimension_semantics = [#tpu.dimension_semantics<parallel>, #tpu.dimension_semantics<parallel>], iteration_bounds = array<i64: 3, 1>, scalar_prefetch = 0 : i64, scratch_operands = 0 : i64, tpu.core_type = #tpu.core_type<tc>, window_params = [{transform_indices = @transform_0, window_bounds = array<i64: 256, 128>}, {transform_indices = @transform_1, window_bounds = array<i64: 1, 128>}, {transform_indices = @transform_2, window_bounds = array<i64: 1, 128>}, {transform_indices = @transform_3, window_bounds = array<i64: 256, 128>}]} {
    %c0 = arith.constant 0 : index
    %c0_0 = arith.constant 0 : index
    %0 = vector.load %arg2[%c0, %c0_0] : memref<256x128xf32, #tpu.memory_space<vmem>>, vector<256x128xf32>
    %c0_1 = arith.constant 0 : index
    %c0_2 = arith.constant 0 : index
    %1 = vector.load %arg3[%c0_1, %c0_2] : memref<1x128xf32, #tpu.memory_space<vmem>>, vector<1x128xf32>
    %2 = vector.broadcast %1 : vector<1x128xf32> to vector<256x128xf32>
    %3 = arith.mulf %0, %2 : vector<256x128xf32>
    %c0_3 = arith.constant 0 : index
    %c0_4 = arith.constant 0 : index
    %4 = vector.load %arg4[%c0_3, %c0_4] : memref<1x128xf32, #tpu.memory_space<vmem>>, vector<1x128xf32>
    %5 = vector.broadcast %4 : vector<1x128xf32> to vector<256x128xf32>
    %6 = arith.addf %3, %5 : vector<256x128xf32>
    %cst = arith.constant 0.000000e+00 : f32
    %7 = vector.broadcast %cst : f32 to vector<256x128xf32>
    %8 = arith.maximumf %6, %7 : vector<256x128xf32>
    %c0_5 = arith.constant 0 : index
    %c0_6 = arith.constant 0 : index
    %9 = vector.load %arg5[%c0_5, %c0_6] : memref<256x128xf32, #tpu.memory_space<vmem>>, vector<256x128xf32>
    tpu.vector_store %arg5[%c0_5, %c0_6], %8 {strides = array<i32>} : memref<256x128xf32, #tpu.memory_space<vmem>>, vector<256x128xf32>,
    return
  }
  func.func @transform_0(%arg0: i32, %arg1: i32) -> (i32, i32) {
    %c0_i32 = arith.constant 0 : i32
    return %arg1, %arg0 : i32, i32
  }
  func.func @transform_1(%arg0: i32, %arg1: i32) -> (i32, i32) {
    %c0_i32 = arith.constant 0 : i32
    %c0_i32_0 = arith.constant 0 : i32
    return %c0_i32, %arg0 : i32, i32
  }
  func.func @transform_2(%arg0: i32, %arg1: i32) -> (i32, i32) {
    %c0_i32 = arith.constant 0 : i32
    %c0_i32_0 = arith.constant 0 : i32
    return %c0_i32, %arg0 : i32, i32
  }
  func.func @transform_3(%arg0: i32, %arg1: i32) -> (i32, i32) {
    %c0_i32 = arith.constant 0 : i32
    return %arg1, %arg0 : i32, i32
  }
}

module attributes {stable_mosaic.version = 11 : i64} {
  func.func @_maxpool_kernel(%arg0: i32, %arg1: memref<9x1x49x4xf32, #tpu.memory_space<vmem>>, %arg2: memref<1x49x4xf32, #tpu.memory_space<vmem>>) attributes {dimension_semantics = [#tpu.dimension_semantics<parallel>], iteration_bounds = array<i64: 2>, scalar_prefetch = 0 : i64, scratch_operands = 0 : i64, tpu.core_type = #tpu.core_type<tc>, window_params = [{transform_indices = @transform_0, window_bounds = array<i64: 9, 1, 49, 4>}, {transform_indices = @transform_1, window_bounds = array<i64: 1, 49, 4>}]} {
    %c0 = arith.constant 0 : index
    %c0_0 = arith.constant 0 : index
    %c0_1 = arith.constant 0 : index
    %c0_2 = arith.constant 0 : index
    %0 = vector.load %arg1[%c0, %c0_0, %c0_1, %c0_2] : memref<9x1x49x4xf32, #tpu.memory_space<vmem>>, vector<1x1x49x4xf32>
    %1 = vector.shape_cast %0 : vector<1x1x49x4xf32> to vector<1x49x4xf32>
    %c1 = arith.constant 1 : index
    %c0_3 = arith.constant 0 : index
    %c0_4 = arith.constant 0 : index
    %c0_5 = arith.constant 0 : index
    %2 = vector.load %arg1[%c1, %c0_3, %c0_4, %c0_5] : memref<9x1x49x4xf32, #tpu.memory_space<vmem>>, vector<1x1x49x4xf32>
    %3 = vector.shape_cast %2 : vector<1x1x49x4xf32> to vector<1x49x4xf32>
    %4 = arith.maximumf %1, %3 : vector<1x49x4xf32>
    %c2 = arith.constant 2 : index
    %c0_6 = arith.constant 0 : index
    %c0_7 = arith.constant 0 : index
    %c0_8 = arith.constant 0 : index
    %5 = vector.load %arg1[%c2, %c0_6, %c0_7, %c0_8] : memref<9x1x49x4xf32, #tpu.memory_space<vmem>>, vector<1x1x49x4xf32>
    %6 = vector.shape_cast %5 : vector<1x1x49x4xf32> to vector<1x49x4xf32>
    %7 = arith.maximumf %4, %6 : vector<1x49x4xf32>
    %c3 = arith.constant 3 : index
    %c0_9 = arith.constant 0 : index
    %c0_10 = arith.constant 0 : index
    %c0_11 = arith.constant 0 : index
    %8 = vector.load %arg1[%c3, %c0_9, %c0_10, %c0_11] : memref<9x1x49x4xf32, #tpu.memory_space<vmem>>, vector<1x1x49x4xf32>
    %9 = vector.shape_cast %8 : vector<1x1x49x4xf32> to vector<1x49x4xf32>
    %10 = arith.maximumf %7, %9 : vector<1x49x4xf32>
    %c4 = arith.constant 4 : index
    %c0_12 = arith.constant 0 : index
    %c0_13 = arith.constant 0 : index
    %c0_14 = arith.constant 0 : index
    %11 = vector.load %arg1[%c4, %c0_12, %c0_13, %c0_14] : memref<9x1x49x4xf32, #tpu.memory_space<vmem>>, vector<1x1x49x4xf32>
    %12 = vector.shape_cast %11 : vector<1x1x49x4xf32> to vector<1x49x4xf32>
    %13 = arith.maximumf %10, %12 : vector<1x49x4xf32>
    %c5 = arith.constant 5 : index
    %c0_15 = arith.constant 0 : index
    %c0_16 = arith.constant 0 : index
    %c0_17 = arith.constant 0 : index
    %14 = vector.load %arg1[%c5, %c0_15, %c0_16, %c0_17] : memref<9x1x49x4xf32, #tpu.memory_space<vmem>>, vector<1x1x49x4xf32>
    %15 = vector.shape_cast %14 : vector<1x1x49x4xf32> to vector<1x49x4xf32>
    %16 = arith.maximumf %13, %15 : vector<1x49x4xf32>
    %c6 = arith.constant 6 : index
    %c0_18 = arith.constant 0 : index
    %c0_19 = arith.constant 0 : index
    %c0_20 = arith.constant 0 : index
    %17 = vector.load %arg1[%c6, %c0_18, %c0_19, %c0_20] : memref<9x1x49x4xf32, #tpu.memory_space<vmem>>, vector<1x1x49x4xf32>
    %18 = vector.shape_cast %17 : vector<1x1x49x4xf32> to vector<1x49x4xf32>
    %19 = arith.maximumf %16, %18 : vector<1x49x4xf32>
    %c7 = arith.constant 7 : index
    %c0_21 = arith.constant 0 : index
    %c0_22 = arith.constant 0 : index
    %c0_23 = arith.constant 0 : index
    %20 = vector.load %arg1[%c7, %c0_21, %c0_22, %c0_23] : memref<9x1x49x4xf32, #tpu.memory_space<vmem>>, vector<1x1x49x4xf32>
    %21 = vector.shape_cast %20 : vector<1x1x49x4xf32> to vector<1x49x4xf32>
    %22 = arith.maximumf %19, %21 : vector<1x49x4xf32>
    %c8 = arith.constant 8 : index
    %c0_24 = arith.constant 0 : index
    %c0_25 = arith.constant 0 : index
    %c0_26 = arith.constant 0 : index
    %23 = vector.load %arg1[%c8, %c0_24, %c0_25, %c0_26] : memref<9x1x49x4xf32, #tpu.memory_space<vmem>>, vector<1x1x49x4xf32>
    %24 = vector.shape_cast %23 : vector<1x1x49x4xf32> to vector<1x49x4xf32>
    %25 = arith.maximumf %22, %24 : vector<1x49x4xf32>
    %c0_27 = arith.constant 0 : index
    %c0_28 = arith.constant 0 : index
    %c0_29 = arith.constant 0 : index
    %26 = vector.load %arg2[%c0_27, %c0_28, %c0_29] : memref<1x49x4xf32, #tpu.memory_space<vmem>>, vector<1x49x4xf32>
    tpu.vector_store %arg2[%c0_27, %c0_28, %c0_29], %25 {strides = array<i32>} : memref<1x49x4xf32, #tpu.memory_space<vmem>>, vector<1x49x4xf32>,
    return
  }
  func.func @transform_0(%arg0: i32) -> (i32, i32, i32, i32) {
    %c0_i32 = arith.constant 0 : i32
    %c0_i32_0 = arith.constant 0 : i32
    %c0_i32_1 = arith.constant 0 : i32
    %c0_i32_2 = arith.constant 0 : i32
    return %c0_i32, %arg0, %c0_i32_0, %c0_i32_1 : i32, i32, i32, i32
  }
  func.func @transform_1(%arg0: i32) -> (i32, i32, i32) {
    %c0_i32 = arith.constant 0 : i32
    %c0_i32_0 = arith.constant 0 : i32
    %c0_i32_1 = arith.constant 0 : i32
    return %arg0, %c0_i32, %c0_i32_0 : i32, i32, i32
  }
}

</mosaic_0001>

<bundles_post_ra>
// kernel: reduction_block_a.12
= control target key start
LH: loop header
LB: loop body
LE: loop exit
PB: predicated region body
PF: predicated region fallthrough
CT: control target
= control target key end

     0   :  { %s592_s12 = smov 0   ;;  %s594_s13 = smov 0   ;;  %s767_s0 = inlined_call_operand.vmem [shape: f32[512,128], index: 0, kind: input, shape index: {}]   ;;  %s768_s1 = inlined_call_operand.vmem [shape: f32[1,128], index: 1, kind: input, shape index: {}]   ;;  %s769_s2 = inlined_call_operand.vmem [shape: f32[1,128], index: 2, kind: input, shape index: {}]   ;;  %s770_s3 = inlined_call_operand.vmem [shape: f32[512,128], index: 3, kind: output, shape index: {}]  }
   0x1   :  { %s596_s14 = smov 0  }
   0x2 LB: > { %s22_s15 = sadd.s32 1, %s566_s13  ;;  %p515_p0 = scmp.ge.s32.totalorder %s570_s14, 1  ;;  %s570_s14 = sphi %s596_s14, %s13_s14   ;;  %s566_s13 = sphi %s594_s13, %s772_s13   ;;  %s562_s12 = sphi %s592_s12, %s771_s12  }
   0x3   : > { %p23_p1 = scmp.ge.s32.totalorder %s22_s15, 2  ;;  %p173_p2 = scmp.lt.s32.totalorder %s570_s14, 3 }
   0x5   : > { %s774_s15 = smov (%p23_p1, %s22_s15), 0  ;;  %p174_p3 = pnand %p515_p0, %p173_p2 }
   0x6   : > { %s516_s16 = sshll.u32 (!%p174_p3), %s562_s12, 5  ;;  %v613_v0 = vld [vmem:[%s768_s1] ss:$0 sm:$0xff] (!%p174_p3) }
   0x7   : > { %177 = sbr.rel (%p174_p3) target bundleno = 47 (0x2f), region = 32  ;;  %p210_p4 = scmp.lt.s32.totalorder (!%p174_p3), %s516_s16, 63  ;;  %v623_v1 = vld [vmem:[%s769_s2] ss:$0 sm:$0xff] (!%p174_p3) }
   0xe   : > { %s776_s16 = smov (!%p210_p4, %s516_s16), 63 }
   0xf   : > { %s517_s17 = sshll.u32 %s776_s16, 3 }
  0x10   : > { %s618_s22 = scalar_lea.vmem %s767_s0, %s517_s17  ;;  %s646_s27 = scalar_lea.vmem %s770_s3, %s517_s17 }
  0x11   : > { %v233_v2 = vld [vmem:[%s618_s22] sm:$0xff]  ;;  %v234_v3 = vld [vmem:[%s618_s22 + $0x8] sm:$0xff]  ;;  %v235_v4 = vld [vmem:[%s618_s22 + $0x10] sm:$0xff] }
  0x12   : > { %v272_v5 = vmul.f32 %v613_v0, %v233_v2  ;;  %v273_v6 = vmul.f32 %v613_v0, %v234_v3  ;;  %v274_v7 = vmul.f32 %v613_v0, %v235_v4  ;;  %v236_v8 = vld [vmem:[%s618_s22 + $0x18] sm:$0xff]  ;;  %v237_v9 = vld [vmem:[%s618_s22 + $0x20] sm:$0xff]  ;;  %v238_v10 = vld [vmem:[%s618_s22 + $0x28] sm:$0xff] }
  0x13   : > { %v275_v11 = vmul.f32 %v613_v0, %v236_v8  ;;  %v276_v12 = vmul.f32 %v613_v0, %v237_v9  ;;  %v277_v13 = vmul.f32 %v613_v0, %v238_v10  ;;  %v239_v14 = vld [vmem:[%s618_s22 + $0x30] sm:$0xff]  ;;  %v240_v15 = vld [vmem:[%s618_s22 + $0x38] sm:$0xff]  ;;  %v241_v24 = vld [vmem:[%s618_s22 + $0x40] sm:$0xff] }
  0x14   : > { %v311_v16 = vadd.f32 %v623_v1, %v272_v5  ;;  %v312_v17 = vadd.f32 %v623_v1, %v273_v6  ;;  %v313_v18 = vadd.f32 %v623_v1, %v274_v7  ;;  %v278_v19 = vmul.f32 %v613_v0, %v239_v14  ;;  %v242_v25 = vld [vmem:[%s618_s22 + $0x48] sm:$0xff]  ;;  %v243_v26 = vld [vmem:[%s618_s22 + $0x50] sm:$0xff]  ;;  %v244_v31 = vld [vmem:[%s618_s22 + $0x58] sm:$0xff] }
  0x15   : > { %v314_v20 = vadd.f32 %v623_v1, %v275_v11  ;;  %v315_v21 = vadd.f32 %v623_v1, %v276_v12  ;;  %v316_v22 = vadd.f32 %v623_v1, %v277_v13  ;;  %v279_v23 = vmul.f32 %v613_v0, %v240_v15  ;;  %v245_v32 = vld [vmem:[%s618_s22 + $0x60] sm:$0xff]  ;;  %v246_v33 = vld [vmem:[%s618_s22 + $0x68] sm:$0xff]  ;;  %v247_v38 = vld [vmem:[%s618_s22 + $0x70] sm:$0xff] }
  0x16   : > { %v343_v27 = vmax.f32 %v311_v16, 0.0  ;;  %v344_v28 = vmax.f32 %v312_v17, 0.0  ;;  %v345_v29 = vmax.f32 %v313_v18, 0.0  ;;  %v317_v30 = vadd.f32 %v623_v1, %v278_v19  ;;  %v248_v43 = vld [vmem:[%s618_s22 + $0x78] sm:$0xff]  ;;  %v249_v56 = vld [vmem:[%s618_s22 + $0x80] sm:$0xff]  ;;  %v250_v57 = vld [vmem:[%s618_s22 + $0x88] sm:$0xff] }
  0x17   : > { %v346_v34 = vmax.f32 %v314_v20, 0.0  ;;  %v347_v35 = vmax.f32 %v315_v21, 0.0  ;;  %v348_v36 = vmax.f32 %v316_v22, 0.0  ;;  %v318_v37 = vadd.f32 %v623_v1, %v279_v23  ;;  %v251_v58 = vld [vmem:[%s618_s22 + $0x90] sm:$0xff]  ;;  %v252_v63 = vld [vmem:[%s618_s22 + $0x98] sm:$0xff]  ;;  %v253_v2 = vld [vmem:[%s618_s22 + $0xa0] sm:$0xff] }
  0x18   : > { %375 = vst [vmem:[%s646_s27] sm:$0xff] %v343_v27  ;;  %376 = vst [vmem:[%s646_s27 + $0x8] sm:$0xff] %v344_v28  ;;  %v349_v39 = vmax.f32 %v317_v30, 0.0  ;;  %v280_v40 = vmul.f32 %v613_v0, %v241_v24  ;;  %v281_v41 = vmul.f32 %v613_v0, %v242_v25  ;;  %v282_v42 = vmul.f32 %v613_v0, %v243_v26  ;;  %v254_v3 = vld [vmem:[%s618_s22 + $0xa8] sm:$0xff]  ;;  %v255_v8 = vld [vmem:[%s618_s22 + $0xb0] sm:$0xff] }
  0x19   : > { %377 = vst [vmem:[%s646_s27 + $0x10] sm:$0xff] %v345_v29  ;;  %378 = vst [vmem:[%s646_s27 + $0x18] sm:$0xff] %v346_v34  ;;  %v350_v44 = vmax.f32 %v318_v37, 0.0  ;;  %v283_v45 = vmul.f32 %v613_v0, %v244_v31  ;;  %v284_v46 = vmul.f32 %v613_v0, %v245_v32  ;;  %v285_v47 = vmul.f32 %v613_v0, %v246_v33  ;;  %v256_v13 = vld [vmem:[%s618_s22 + $0xb8] sm:$0xff]  ;;  %v257_v26 = vld [vmem:[%s618_s22 + $0xc0] sm:$0xff] }
  0x1a   : > { %379 = vst [vmem:[%s646_s27 + $0x20] sm:$0xff] %v347_v35  ;;  %380 = vst [vmem:[%s646_s27 + $0x28] sm:$0xff] %v348_v36  ;;  %v319_v48 = vadd.f32 %v623_v1, %v280_v40  ;;  %v320_v49 = vadd.f32 %v623_v1, %v281_v41  ;;  %v321_v50 = vadd.f32 %v623_v1, %v282_v42  ;;  %v258_v27 = vld [vmem:[%s618_s22 + $0xc8] sm:$0xff]  ;;  %v259_v28 = vld [vmem:[%s618_s22 + $0xd0] sm:$0xff] }
  0x1b   : > { %381 = vst [vmem:[%s646_s27 + $0x30] sm:$0xff] %v349_v39  ;;  %v286_v51 = vmul.f32 %v613_v0, %v247_v38  ;;  %382 = vst [vmem:[%s646_s27 + $0x38] sm:$0xff] %v350_v44  ;;  %v322_v52 = vadd.f32 %v623_v1, %v283_v45  ;;  %v323_v53 = vadd.f32 %v623_v1, %v284_v46  ;;  %v260_v33 = vld [vmem:[%s618_s22 + $0xd8] sm:$0xff]  ;;  %v261_v34 = vld [vmem:[%s618_s22 + $0xe0] sm:$0xff] }
  0x1c   : > { %v324_v54 = vadd.f32 %v623_v1, %v285_v47  ;;  %v287_v55 = vmul.f32 %v613_v0, %v248_v43  ;;  %v351_v59 = vmax.f32 %v319_v48, 0.0  ;;  %v352_v60 = vmax.f32 %v320_v49, 0.0  ;;  %v262_v35 = vld [vmem:[%s618_s22 + $0xe8] sm:$0xff]  ;;  %v263_v40 = vld [vmem:[%s618_s22 + $0xf0] sm:$0xff]  ;;  %v264_v45 = vld [vmem:[%s618_s22 + $0xf8] sm:$0xff] }
  0x1d   : > { %v353_v61 = vmax.f32 %v321_v50, 0.0  ;;  %v325_v62 = vadd.f32 %v623_v1, %v286_v51  ;;  %v354_v4 = vmax.f32 %v322_v52, 0.0  ;;  %v355_v5 = vmax.f32 %v323_v53, 0.0 }
  0x1e   : > { %v356_v6 = vmax.f32 %v324_v54, 0.0  ;;  %v326_v7 = vadd.f32 %v623_v1, %v287_v55  ;;  %383 = vst [vmem:[%s646_s27 + $0x40] sm:$0xff] %v351_v59  ;;  %384 = vst [vmem:[%s646_s27 + $0x48] sm:$0xff] %v352_v60  ;;  %v288_v10 = vmul.f32 %v613_v0, %v249_v56  ;;  %v289_v11 = vmul.f32 %v613_v0, %v250_v57 }
  0x1f   : > { %385 = vst [vmem:[%s646_s27 + $0x50] sm:$0xff] %v353_v61  ;;  %v357_v9 = vmax.f32 %v325_v62, 0.0  ;;  %v290_v12 = vmul.f32 %v613_v0, %v251_v58  ;;  %386 = vst [vmem:[%s646_s27 + $0x58] sm:$0xff] %v354_v4  ;;  %v291_v15 = vmul.f32 %v613_v0, %v252_v63  ;;  %v292_v16 = vmul.f32 %v613_v0, %v253_v2 }
  0x20   : > { %387 = vst [vmem:[%s646_s27 + $0x60] sm:$0xff] %v355_v5  ;;  %388 = vst [vmem:[%s646_s27 + $0x68] sm:$0xff] %v356_v6  ;;  %v358_v14 = vmax.f32 %v326_v7, 0.0  ;;  %v293_v17 = vmul.f32 %v613_v0, %v254_v3  ;;  %v327_v18 = vadd.f32 %v623_v1, %v288_v10  ;;  %v328_v19 = vadd.f32 %v623_v1, %v289_v11 }
  0x21   : > { %389 = vst [vmem:[%s646_s27 + $0x70] sm:$0xff] %v357_v9  ;;  %v329_v20 = vadd.f32 %v623_v1, %v290_v12  ;;  %v294_v21 = vmul.f32 %v613_v0, %v255_v8  ;;  %v330_v22 = vadd.f32 %v623_v1, %v291_v15  ;;  %v331_v23 = vadd.f32 %v623_v1, %v292_v16 }
  0x22   : > { %390 = vst [vmem:[%s646_s27 + $0x78] sm:$0xff] %v358_v14  ;;  %v332_v24 = vadd.f32 %v623_v1, %v293_v17  ;;  %v295_v25 = vmul.f32 %v613_v0, %v256_v13  ;;  %v359_v29 = vmax.f32 %v327_v18, 0.0  ;;  %v360_v30 = vmax.f32 %v328_v19, 0.0 }
  0x23   : > { %v361_v31 = vmax.f32 %v329_v20, 0.0  ;;  %v333_v32 = vadd.f32 %v623_v1, %v294_v21  ;;  %v362_v36 = vmax.f32 %v330_v22, 0.0  ;;  %v363_v37 = vmax.f32 %v331_v23, 0.0 }
  0x24   : > { %v364_v38 = vmax.f32 %v332_v24, 0.0  ;;  %v334_v39 = vadd.f32 %v623_v1, %v295_v25  ;;  %391 = vst [vmem:[%s646_s27 + $0x80] sm:$0xff] %v359_v29  ;;  %392 = vst [vmem:[%s646_s27 + $0x88] sm:$0xff] %v360_v30  ;;  %v296_v42 = vmul.f32 %v613_v0, %v257_v26  ;;  %v297_v43 = vmul.f32 %v613_v0, %v258_v27 }
  0x25   : > { %393 = vst [vmem:[%s646_s27 + $0x90] sm:$0xff] %v361_v31  ;;  %v365_v41 = vmax.f32 %v333_v32, 0.0  ;;  %v298_v44 = vmul.f32 %v613_v0, %v259_v28  ;;  %394 = vst [vmem:[%s646_s27 + $0x98] sm:$0xff] %v362_v36  ;;  %v299_v47 = vmul.f32 %v613_v0, %v260_v33  ;;  %v300_v48 = vmul.f32 %v613_v0, %v261_v34 }
  0x26   : > { %395 = vst [vmem:[%s646_s27 + $0xa0] sm:$0xff] %v363_v37  ;;  %396 = vst [vmem:[%s646_s27 + $0xa8] sm:$0xff] %v364_v38  ;;  %v366_v46 = vmax.f32 %v334_v39, 0.0  ;;  %v301_v49 = vmul.f32 %v613_v0, %v262_v35  ;;  %v335_v50 = vadd.f32 %v623_v1, %v296_v42  ;;  %v336_v51 = vadd.f32 %v623_v1, %v297_v43 }
  0x27   : > { %397 = vst [vmem:[%s646_s27 + $0xb0] sm:$0xff] %v365_v41  ;;  %v337_v52 = vadd.f32 %v623_v1, %v298_v44  ;;  %v302_v53 = vmul.f32 %v613_v0, %v263_v40  ;;  %v338_v54 = vadd.f32 %v623_v1, %v299_v47  ;;  %v339_v55 = vadd.f32 %v623_v1, %v300_v48 }
  0x28   : > { %398 = vst [vmem:[%s646_s27 + $0xb8] sm:$0xff] %v366_v46  ;;  %v340_v56 = vadd.f32 %v623_v1, %v301_v49  ;;  %v303_v57 = vmul.f32 %v613_v0, %v264_v45  ;;  %v367_v58 = vmax.f32 %v335_v50, 0.0  ;;  %v368_v59 = vmax.f32 %v336_v51, 0.0 }
  0x29   : > { %v369_v60 = vmax.f32 %v337_v52, 0.0  ;;  %v341_v61 = vadd.f32 %v623_v1, %v302_v53  ;;  %v370_v62 = vmax.f32 %v338_v54, 0.0  ;;  %v371_v63 = vmax.f32 %v339_v55, 0.0 }
  0x2a   : > { %v372_v2 = vmax.f32 %v340_v56, 0.0  ;;  %v342_v3 = vadd.f32 %v623_v1, %v303_v57  ;;  %399 = vst [vmem:[%s646_s27 + $0xc0] sm:$0xff] %v367_v58  ;;  %400 = vst [vmem:[%s646_s27 + $0xc8] sm:$0xff] %v368_v59 }
  0x2b   : > { %401 = vst [vmem:[%s646_s27 + $0xd0] sm:$0xff] %v369_v60  ;;  %v373_v4 = vmax.f32 %v341_v61, 0.0  ;;  %402 = vst [vmem:[%s646_s27 + $0xd8] sm:$0xff] %v370_v62 }
  0x2c   : > { %403 = vst [vmem:[%s646_s27 + $0xe0] sm:$0xff] %v371_v63  ;;  %404 = vst [vmem:[%s646_s27 + $0xe8] sm:$0xff] %v372_v2  ;;  %v374_v0 = vmax.f32 %v342_v3, 0.0 }
  0x2d   : > { %405 = vst [vmem:[%s646_s27 + $0xf0] sm:$0xff] %v373_v4 }
  0x2e   : > { %406 = vst [vmem:[%s646_s27 + $0xf8] sm:$0xff] %v374_v0 }
  0x2f PF: > { %s13_s14 = sadd.s32 1, %s570_s14   ;;  %s771_s12 = smov %s566_s13 }
  0x30   : > { %p10_p5 = scmp.ge.s32.totalorder %s13_s14, 4   ;;  %s772_s13 = smov %s774_s15 }
  0x32   :  { %12 = sbr.rel (!%p10_p5) target bundleno = 2 (0x2), region = 68 }

// kernel: reduction_block_a.11
= control target key start
LH: loop header
LB: loop body
LE: loop exit
PB: predicated region body
PF: predicated region fallthrough
CT: control target
= control target key end

     0   :  { %10 = vsyncpa [#allocation3], 0  ;;  %s1107_s15 = smov 0   ;;  %s1109_s16 = smov 0   ;;  %s1329_s0 = inlined_call_operand.vmem [shape: bf16[1,512,4], index: 0, kind: input, shape index: {}]   ;;  %s1330_s1 = inlined_call_operand.hbm [shape: bf16[1,4,128], index: 1, kind: input, shape index: {}]   ;;  %s1331_s2 = inlined_call_operand.vmem [shape: f32[512,128], index: 2, kind: output, shape index: {0}]   ;;  %s1332_s3 = inlined_call_operand.vmem [shape: f32[1,128], index: 3, kind: output, shape index: {1}]   ;;  %s1333_s4 = inlined_call_operand.vmem [shape: f32[1,128], index: 4, kind: output, shape index: {2}]  }
   0x1   :  { %s1111_s17 = smov 0  }
   0x2 LB: > { %s869_s18 = sadd.s32 4294967295, %s1078_s17   ;;  %s25_s19 = sadd.s32 1, %s1074_s16  ;;  %s1078_s17 = sphi %s1111_s17, %s16_s17   ;;  %s1074_s16 = sphi %s1109_s16, %s1343_s16   ;;  %s1070_s15 = sphi %s1107_s15, %s1342_s15  }
   0x3   : > { %p26_p0 = scmp.ge.s32.totalorder %s25_s19, 2  ;;  %p871_p1 = scmp.ge.s32.totalorder %s1078_s17, 1 }
   0x4   : > { %p165_p2 = scmp.lt.s32.totalorder %s1078_s17, 3  ;;  %p1132_p4 = scmp.eq.s32.totalorder %s869_s18, 0 }
   0x5   : > { %s1345_s19 = smov (%p26_p0, %s25_s19), 0  ;;  %s1080_s22 = smov [#allocation2]  }
   0x6   : > { %p1128_p3 = pnand %p871_p1, %p165_p2  ;;  %s180_s23 = sshll.u32 %s1080_s22, 4  ;;  %s181_s23 = int_to_ptr.vmem [resolvable:$true] %s180_s23 }
   0x7   : > { %s1338_s21 = scalar_select %p1132_p4, 1, 0 }
   0x8   : > { %s1337_s20 = scalar_select %p1128_p3, 1, 0 }
   0x9   : > { %p976_p5 = pneg %p1128_p3  ;;  %s1024_s27 = scalar_lea.hbm %s1330_s1, 32 }
   0xa   : > { %p1025_p7 = scmp.ne.s32.totalorder %s1330_s1, %s1024_s27  ;;  %p1031_p11 = scmp.lt.u32.totalorder %s1024_s27, %s1330_s1 }
   0xb   : > { %p1140_p6 = pnand %p1132_p4, %p976_p5 }
   0xd   : > { %p1026_p8 = pneg %p1140_p6 }
   0xf   : > { %p1027_p9 = pnand %p1026_p8, %p1025_p7 }
  0x11   : > { %p1028_p10 = pneg %p1027_p9 }
  0x13   : > { %p1033_p12 = pnand %p1031_p11, %p1028_p10 }
  0x15   : > { %1036 = shalt.err (!%p1033_p12)
}
  0x16   : > { %s1037_s6 = scalar_lea.vmem %s181_s23, 32  ;;  %p1045_p2 = scmp.lt.s32.totalorder %s181_s23, %s181_s23 }
  0x17   : > { %p1038_p13 = scmp.ne.s32.totalorder %s181_s23, %s1037_s6  ;;  %p1046_p5 = scmp.lt.s32.totalorder %s1037_s6, %s1037_s6 }
  0x19   : > { %p1040_p0 = pnand %p1038_p13, %p1026_p8  ;;  %p1047_p4 = por %p1046_p5, %p1045_p2 }
  0x1b   : > { %p1041_p1 = pneg %p1040_p0 }
  0x1d   : > { %p1048_p3 = pnand %p1047_p4, %p1041_p1 }
  0x1f   : > { %1051 = shalt.err (!%p1048_p3)
}
  0x20   : > { %979 = dma.hbm_to_vmem [thread:$0]  (!%p1140_p6), %s1330_s1, 32, %s181_s23, [#allocation3]  }
  0x21   : > { %p1340_p7 = scmp.ne.s32.totalorder %s1337_s20, 0 }
  0x22   : > { %p1341_p9 = scmp.ne.s32.totalorder (!%p1340_p7), %s1338_s21, 0 }
  0x23   : > { %202 = sbr.rel (%p1340_p7) target bundleno = 351 (0x15f), region = 28 }
  0x2a   : > { %1065 = dma.done.wait (%p1341_p9), [#allocation3], 32  }
  0x2b   : > { %1067 = vsyncadd (%p1341_p9), [#allocation3], 4294967264  ;;  %s876_s9 = sshll.u32 %s1070_s15, 5  ;;  %p880_p3 = scmp.ne.s32.totalorder %s1070_s15, 0 }
  0x2c   : > { %p238_p8 = scmp.lt.s32.totalorder %s876_s9, 63  ;;  %v1081_v0 = vmov (!%p880_p3), 0.0  }
  0x2d   : > { %262 = sbr.rel (%p880_p3) target bundleno = 52 (0x34), region = 36  ;;  %263 = vst [vmem:[%s1332_s3] sm:$0x1] (!%p880_p3), %v1081_v0  ;;  %264 = vst [vmem:[%s1333_s4] sm:$0x1] (!%p880_p3), %v1081_v0 }
  0x2e   : > { %s1347_s9 = smov (!%p238_p8, %s876_s9), 63 }
  0x2f   : > { %s877_s10 = sshll.u32 %s1347_s9, 2  ;;  %s879_s11 = sshll.u32 %s1347_s9, 3 }
  0x30   : > { %s1170_s14 = scalar_lea.vmem %s1329_s0, %s877_s10  ;;  %s1175_s22 = scalar_lea.vmem %s1331_s2, %s879_s11 }
  0x34 PF: > { %v297_v1 = vld [vmem:[#allocation2] sm:$0x3]  ;;  %vm427_vm0 = vcmask 1041408   ;;  %vm378_vm1 = vcmask 31744   ;;  %v1009_v4 = vld [vmem:[%s1170_s14 + $0x8] sm:$0xff]   ;;  %v1010_v5 = vld [vmem:[%s1170_s14 + $0x10] sm:$0xff]  }
  0x35   : > { %v1008_v2 = vld [vmem:[%s1170_s14] sm:$0xff]   ;;  %970 = vmatprep.subr.msk.bf16.mxu0 %vm427_vm0, %v297_v1  ;;  %v429_v3 = vsel %vm427_vm0, %v297_v1, 0  ;;  %971 = vmatprep.subr.msk.bf16.mxu1 %vm427_vm0, %v297_v1  ;;  %v1011_v6 = vld [vmem:[%s1170_s14 + $0x18] sm:$0xff]   ;;  %v1017_v9 = vld [vmem:[%s1170_s14 + $0x48] sm:$0xff]  }
  0x36   : > { %935 = vmatpush3.bf16.msra.mxu0 %v429_v3  ;;  %936 = vmatprep.mubr.msk.bf16.mxu0 %vm378_vm1, %v1008_v2  ;;  %v1012_v7 = vld [vmem:[%s1170_s14 + $0x20] sm:$0xff]   ;;  %v1018_v10 = vld [vmem:[%s1170_s14 + $0x50] sm:$0xff]   ;;  %v1019_v11 = vld [vmem:[%s1170_s14 + $0x58] sm:$0xff]  }
  0x37   : > { %969 = vmatpush3.bf16.msra.mxu1 %v429_v3  ;;  %v1016_v8 = vld [vmem:[%s1170_s14 + $0x40] sm:$0xff]   ;;  %v1013_v12 = vld [vmem:[%s1170_s14 + $0x28] sm:$0xff]   ;;  %v1014_v14 = vld [vmem:[%s1170_s14 + $0x30] sm:$0xff]  }
  0x38   : > { %952 = vmatprep.mubr.msk.bf16.mxu1 %vm378_vm1, %v1016_v8  ;;  %v1020_v13 = vld [vmem:[%s1170_s14 + $0x60] sm:$0xff]   ;;  %v1021_v15 = vld [vmem:[%s1170_s14 + $0x68] sm:$0xff]   ;;  %v1015_v16 = vld [vmem:[%s1170_s14 + $0x38] sm:$0xff]  }
  0x39   : > { %937 = vmatmul.mubr.msk.bf16.vlgmr.msra.gmra.mrb[0].mxu0 %vm378_vm1, %v1009_v4  ;;  %v1022_v17 = vld [vmem:[%s1170_s14 + $0x70] sm:$0xff]   ;;  %v1023_v18 = vld [vmem:[%s1170_s14 + $0x78] sm:$0xff]  }
  0x3a   : > { %940 = vmatprep.mubr.msk.bf16.mxu0 %vm378_vm1, %v1010_v5  ;;  %953 = vmatmul.mubr.msk.bf16.vlgmr.msra.gmra.mrb[0].mxu1 %vm378_vm1, %v1017_v9 }
  0x3b   : > { %956 = vmatprep.mubr.msk.bf16.mxu1 %vm378_vm1, %v1018_v10 }
  0x41   : > { %941 = vmatmul.mubr.msk.bf16.gmra.mrb[4].mxu0 %vm378_vm1, %v1011_v6 }
  0x42   : > { %944 = vmatprep.mubr.msk.bf16.mxu0 %vm378_vm1, %v1012_v7  ;;  %957 = vmatmul.mubr.msk.bf16.gmra.mrb[4].mxu1 %vm378_vm1, %v1019_v11 }
  0x43   : > { %960 = vmatprep.mubr.msk.bf16.mxu1 %vm378_vm1, %v1020_v13 }
  0x49   : > { %945 = vmatmul.mubr.msk.bf16.gmra.mrb[8].mxu0 %vm378_vm1, %v1013_v12 }
  0x4a   : > { %948 = vmatprep.mubr.msk.bf16.mxu0 %vm378_vm1, %v1014_v14  ;;  %961 = vmatmul.mubr.msk.bf16.gmra.mrb[8].mxu1 %vm378_vm1, %v1021_v15 }
  0x4b   : > { %964 = vmatprep.mubr.msk.bf16.mxu1 %vm378_vm1, %v1022_v17 }
  0x51   : > { %949 = vmatmul.mubr.msk.bf16.gmra.mrb[12].mxu0 %vm378_vm1, %v1015_v16 }
  0x52   : > { %965 = vmatmul.mubr.msk.bf16.gmra.mrb[12].mxu1 %vm378_vm1, %v1023_v18 }
 0x10c   : > { %v938_v19 = vpop.f32.mrb[0].mxu0 }
 0x10d   : > { %594 = vst [vmem:[%s1175_s22 + $0x10] sm:$0xff] %v938_v19  ;;  %v465_v20 = vpop.f32.mrb[1].mxu0  ;;  %v667_v26 = vmul.f32 %v938_v19, %v938_v19  ;;  %v1220_v29 = vpop.f32.mrb[0].mxu1 }
 0x10e   : > { %592 = vst [vmem:[%s1175_s22] sm:$0xff] %v465_v20  ;;  %v939_v21 = vpop.f32.mrb[2].mxu0  ;;  %v665_v23 = vmul.f32 %v465_v20, %v465_v20  ;;  %610 = vst [vmem:[%s1175_s22 + $0x90] sm:$0xff] %v1220_v29  ;;  %v1224_v34 = vpop.f32.mrb[1].mxu1 }
 0x10f   : > { %595 = vst [vmem:[%s1175_s22 + $0x18] sm:$0xff] %v939_v21  ;;  %v468_v22 = vpop.f32.mrb[3].mxu0  ;;  %v668_v30 = vmul.f32 %v939_v21, %v939_v21  ;;  %608 = vst [vmem:[%s1175_s22 + $0x80] sm:$0xff] %v1224_v34  ;;  %v1229_v36 = vpop.f32.mrb[2].mxu1 }
 0x110   : > { %593 = vst [vmem:[%s1175_s22 + $0x8] sm:$0xff] %v468_v22  ;;  %v625_v24 = vadd.f32 %v468_v22, %v465_v20  ;;  %v666_v25 = vmul.f32 %v468_v22, %v468_v22  ;;  %611 = vst [vmem:[%s1175_s22 + $0x98] sm:$0xff] %v1229_v36  ;;  %v1234_v41 = vpop.f32.mrb[3].mxu1 }
 0x111   : > { %609 = vst [vmem:[%s1175_s22 + $0x88] sm:$0xff] %v1234_v41 }
 0x112   : > { %v626_v27 = vadd.f32 %v938_v19, %v625_v24  ;;  %v697_v28 = vadd.f32 %v666_v25, %v665_v23 }
 0x114   : > { %v698_v31 = vadd.f32 %v697_v28, %v667_v26  ;;  %v942_v32 = vpop.f32.mrb[4].mxu0  ;;  %v627_v33 = vadd.f32 %v939_v21, %v626_v27 }
 0x115   : > { %598 = vst [vmem:[%s1175_s22 + $0x30] sm:$0xff] %v942_v32  ;;  %v481_v35 = vpop.f32.mrb[5].mxu0  ;;  %v671_v46 = vmul.f32 %v942_v32, %v942_v32  ;;  %v1240_v49 = vpop.f32.mrb[4].mxu1 }
 0x116   : > { %596 = vst [vmem:[%s1175_s22 + $0x20] sm:$0xff] %v481_v35  ;;  %v628_v37 = vadd.f32 %v627_v33, %v481_v35  ;;  %v669_v38 = vmul.f32 %v481_v35, %v481_v35  ;;  %v699_v39 = vadd.f32 %v698_v31, %v668_v30  ;;  %v943_v40 = vpop.f32.mrb[6].mxu0  ;;  %614 = vst [vmem:[%s1175_s22 + $0xb0] sm:$0xff] %v1240_v49  ;;  %v1244_v54 = vpop.f32.mrb[5].mxu1 }
 0x117   : > { %599 = vst [vmem:[%s1175_s22 + $0x38] sm:$0xff] %v943_v40  ;;  %v484_v42 = vpop.f32.mrb[7].mxu0  ;;  %v672_v50 = vmul.f32 %v943_v40, %v943_v40  ;;  %612 = vst [vmem:[%s1175_s22 + $0xa0] sm:$0xff] %v1244_v54  ;;  %v1249_v56 = vpop.f32.mrb[6].mxu1  ;;  %v681_v30 = vmul.f32 %v1224_v34, %v1224_v34 }
 0x118   : > { %v700_v43 = vadd.f32 %v699_v39, %v669_v38  ;;  %597 = vst [vmem:[%s1175_s22 + $0x28] sm:$0xff] %v484_v42  ;;  %v629_v44 = vadd.f32 %v628_v37, %v484_v42  ;;  %v670_v45 = vmul.f32 %v484_v42, %v484_v42  ;;  %615 = vst [vmem:[%s1175_s22 + $0xb8] sm:$0xff] %v1249_v56  ;;  %v1254_v61 = vpop.f32.mrb[7].mxu1 }
 0x119   : > { %613 = vst [vmem:[%s1175_s22 + $0xa8] sm:$0xff] %v1254_v61  ;;  %v683_v42 = vmul.f32 %v1220_v29, %v1220_v29 }
 0x11a   : > { %v630_v47 = vadd.f32 %v942_v32, %v629_v44  ;;  %v701_v48 = vadd.f32 %v700_v43, %v670_v45  ;;  %v684_v45 = vmul.f32 %v1229_v36, %v1229_v36 }
 0x11c   : > { %v702_v51 = vadd.f32 %v701_v48, %v671_v46  ;;  %v946_v52 = vpop.f32.mrb[8].mxu0  ;;  %v631_v53 = vadd.f32 %v943_v40, %v630_v47  ;;  %v682_v40 = vmul.f32 %v1234_v41, %v1234_v41  ;;  %v685_v47 = vmul.f32 %v1244_v54, %v1244_v54 }
 0x11d   : > { %602 = vst [vmem:[%s1175_s22 + $0x50] sm:$0xff] %v946_v52  ;;  %v497_v55 = vpop.f32.mrb[9].mxu0  ;;  %v675_v2 = vmul.f32 %v946_v52, %v946_v52  ;;  %v1260_v5 = vpop.f32.mrb[8].mxu1 }
 0x11e   : > { %600 = vst [vmem:[%s1175_s22 + $0x40] sm:$0xff] %v497_v55  ;;  %v632_v57 = vadd.f32 %v631_v53, %v497_v55  ;;  %v673_v58 = vmul.f32 %v497_v55, %v497_v55  ;;  %v703_v59 = vadd.f32 %v702_v51, %v672_v50  ;;  %v947_v60 = vpop.f32.mrb[10].mxu0  ;;  %618 = vst [vmem:[%s1175_s22 + $0xd0] sm:$0xff] %v1260_v5  ;;  %v561_v10 = vpop.f32.mrb[9].mxu1 }
 0x11f   : > { %603 = vst [vmem:[%s1175_s22 + $0x58] sm:$0xff] %v947_v60  ;;  %v500_v62 = vpop.f32.mrb[11].mxu0  ;;  %v676_v6 = vmul.f32 %v947_v60, %v947_v60  ;;  %616 = vst [vmem:[%s1175_s22 + $0xc0] sm:$0xff] %v561_v10  ;;  %v1266_v12 = vpop.f32.mrb[10].mxu1 }
 0x120   : > { %v704_v63 = vadd.f32 %v703_v59, %v673_v58  ;;  %601 = vst [vmem:[%s1175_s22 + $0x48] sm:$0xff] %v500_v62  ;;  %v633_v0 = vadd.f32 %v632_v57, %v500_v62  ;;  %v674_v1 = vmul.f32 %v500_v62, %v500_v62  ;;  %619 = vst [vmem:[%s1175_s22 + $0xd8] sm:$0xff] %v1266_v12  ;;  %v564_v17 = vpop.f32.mrb[11].mxu1 }
 0x121   : > { %617 = vst [vmem:[%s1175_s22 + $0xc8] sm:$0xff] %v564_v17 }
 0x122   : > { %v634_v3 = vadd.f32 %v946_v52, %v633_v0  ;;  %v705_v4 = vadd.f32 %v704_v63, %v674_v1  ;;  %v686_v52 = vmul.f32 %v1254_v61, %v1254_v61  ;;  %v690_v0 = vmul.f32 %v564_v17, %v564_v17 }
 0x124   : > { %v706_v7 = vadd.f32 %v705_v4, %v675_v2  ;;  %v950_v8 = vpop.f32.mrb[12].mxu0  ;;  %v635_v9 = vadd.f32 %v947_v60, %v634_v3 }
 0x125   : > { %606 = vst [vmem:[%s1175_s22 + $0x70] sm:$0xff] %v950_v8  ;;  %v513_v11 = vpop.f32.mrb[13].mxu0  ;;  %v679_v22 = vmul.f32 %v950_v8, %v950_v8  ;;  %v966_v25 = vpop.f32.mrb[12].mxu1 }
 0x126   : > { %604 = vst [vmem:[%s1175_s22 + $0x60] sm:$0xff] %v513_v11  ;;  %v636_v13 = vadd.f32 %v635_v9, %v513_v11  ;;  %v677_v14 = vmul.f32 %v513_v11, %v513_v11  ;;  %v707_v15 = vadd.f32 %v706_v7, %v676_v6  ;;  %v951_v16 = vpop.f32.mrb[14].mxu0  ;;  %622 = vst [vmem:[%s1175_s22 + $0xf0] sm:$0xff] %v966_v25  ;;  %v577_v31 = vpop.f32.mrb[13].mxu1 }
 0x127   : > { %607 = vst [vmem:[%s1175_s22 + $0x78] sm:$0xff] %v951_v16  ;;  %v516_v18 = vpop.f32.mrb[15].mxu0  ;;  %v680_v26 = vmul.f32 %v951_v16, %v951_v16  ;;  %620 = vst [vmem:[%s1175_s22 + $0xe0] sm:$0xff] %v577_v31  ;;  %v967_v32 = vpop.f32.mrb[14].mxu1  ;;  %v693_v6 = vmul.f32 %v577_v31, %v577_v31  ;;  %v695_v11 = vmul.f32 %v966_v25, %v966_v25 }
 0x128   : > { %v708_v19 = vadd.f32 %v707_v15, %v677_v14  ;;  %605 = vst [vmem:[%s1175_s22 + $0x68] sm:$0xff] %v516_v18  ;;  %v637_v20 = vadd.f32 %v636_v13, %v516_v18  ;;  %v678_v21 = vmul.f32 %v516_v18, %v516_v18  ;;  %623 = vst [vmem:[%s1175_s22 + $0xf8] sm:$0xff] %v967_v32  ;;  %v580_v37 = vpop.f32.mrb[15].mxu1 }
 0x129   : > { %621 = vst [vmem:[%s1175_s22 + $0xe8] sm:$0xff] %v580_v37  ;;  %v696_v15 = vmul.f32 %v967_v32, %v967_v32 }
 0x12a   : > { %v638_v23 = vadd.f32 %v950_v8, %v637_v20  ;;  %v709_v24 = vadd.f32 %v708_v19, %v678_v21 }
 0x12c   : > { %v710_v27 = vadd.f32 %v709_v24, %v679_v22  ;;  %v639_v28 = vadd.f32 %v951_v16, %v638_v23 }
 0x12e   : > { %v640_v33 = vadd.f32 %v639_v28, %v1224_v34  ;;  %v711_v35 = vadd.f32 %v710_v27, %v680_v26  ;;  %v624_v27 = vld [vmem:[%s1332_s3] sm:$0x1] }
 0x130   : > { %v712_v38 = vadd.f32 %v711_v35, %v681_v30  ;;  %v641_v39 = vadd.f32 %v640_v33, %v1234_v41  ;;  %v664_v30 = vld [vmem:[%s1333_s4] sm:$0x1] }
 0x132   : > { %v642_v43 = vadd.f32 %v1220_v29, %v641_v39  ;;  %v713_v44 = vadd.f32 %v712_v38, %v682_v40  ;;  %v687_v29 = vmul.f32 %v1240_v49, %v1240_v49 }
 0x134   : > { %v714_v34 = vadd.f32 %v713_v44, %v683_v42  ;;  %v643_v46 = vadd.f32 %v1229_v36, %v642_v43  ;;  %v688_v36 = vmul.f32 %v1249_v56, %v1249_v56 }
 0x136   : > { %v644_v48 = vadd.f32 %v643_v46, %v1244_v54  ;;  %v715_v50 = vadd.f32 %v714_v34, %v684_v45  ;;  %v689_v54 = vmul.f32 %v561_v10, %v561_v10 }
 0x138   : > { %v716_v51 = vadd.f32 %v715_v50, %v685_v47  ;;  %v645_v41 = vadd.f32 %v644_v48, %v1254_v61  ;;  %v691_v61 = vmul.f32 %v1260_v5, %v1260_v5 }
 0x13a   : > { %v646_v53 = vadd.f32 %v1240_v49, %v645_v41  ;;  %v717_v55 = vadd.f32 %v716_v51, %v686_v52  ;;  %v692_v49 = vmul.f32 %v1266_v12, %v1266_v12 }
 0x13c   : > { %v718_v57 = vadd.f32 %v717_v55, %v687_v29  ;;  %v647_v58 = vadd.f32 %v1249_v56, %v646_v53 }
 0x13e   : > { %v648_v59 = vadd.f32 %v647_v58, %v561_v10  ;;  %v719_v60 = vadd.f32 %v718_v57, %v688_v36  ;;  %v694_v10 = vmul.f32 %v580_v37, %v580_v37 }
 0x140   : > { %v720_v62 = vadd.f32 %v719_v60, %v689_v54  ;;  %v649_v63 = vadd.f32 %v648_v59, %v564_v17 }
 0x142   : > { %v650_v1 = vadd.f32 %v1260_v5, %v649_v63  ;;  %v721_v2 = vadd.f32 %v720_v62, %v690_v0 }
 0x144   : > { %v722_v3 = vadd.f32 %v721_v2, %v691_v61  ;;  %v651_v4 = vadd.f32 %v1266_v12, %v650_v1 }
 0x146   : > { %v652_v56 = vadd.f32 %v651_v4, %v577_v31  ;;  %v723_v7 = vadd.f32 %v722_v3, %v692_v49 }
 0x148   : > { %v724_v8 = vadd.f32 %v723_v7, %v693_v6  ;;  %v653_v9 = vadd.f32 %v652_v56, %v580_v37 }
 0x14a   : > { %v654_v13 = vadd.f32 %v966_v25, %v653_v9  ;;  %v725_v14 = vadd.f32 %v724_v8, %v694_v10 }
 0x14c   : > { %v655_v16 = vadd.f32 %v967_v32, %v654_v13  ;;  %v726_v17 = vadd.f32 %v725_v14, %v695_v11 }
 0x14e   : > { %v656_v5 = vrot.slane %v655_v16, 4  ;;  %v727_v18 = vadd.f32 %v726_v17, %v696_v15 }
 0x150   : > { %v657_v19 = vadd.f32 %v656_v5, %v655_v16  ;;  %v728_v20 = vrot.slane %v727_v18, 4 }
 0x152   : > { %v658_v21 = vrot.slane %v657_v19, 2  ;;  %v729_v22 = vadd.f32 %v728_v20, %v727_v18 }
 0x154   : > { %v659_v23 = vadd.f32 %v658_v21, %v657_v19  ;;  %v730_v12 = vrot.slane %v729_v22, 2 }
 0x156   : > { %v660_v24 = vrot.slane %v659_v23, 1  ;;  %v731_v26 = vadd.f32 %v730_v12, %v729_v22 }
 0x158   : > { %v661_v28 = vadd.f32 %v660_v24, %v659_v23  ;;  %v732_v25 = vrot.slane %v731_v26, 1 }
 0x15a   : > { %v662_v31 = vadd.f32 %v661_v28, %v624_v27  ;;  %v733_v32 = vadd.f32 %v732_v25, %v731_v26 }
 0x15c   : > { %663 = vst [vmem:[%s1332_s3] sm:$0x1] %v662_v31  ;;  %v734_v33 = vadd.f32 %v733_v32, %v664_v30 }
 0x15e   : > { %735 = vst [vmem:[%s1333_s4] sm:$0x1] %v734_v33 }
 0x15f PF: > { %s16_s17 = sadd.s32 1, %s1078_s17   ;;  %s1342_s15 = smov %s1074_s16 }
 0x160   : > { %p13_p4 = scmp.ge.s32.totalorder %s16_s17, 4   ;;  %s1343_s16 = smov %s1345_s19 }
 0x162   :  { %15 = sbr.rel (!%p13_p4) target bundleno = 2 (0x2), region = 92 }
 0x169   :  { %788 = vsyncpa [#allocation3], 1 }
 0x16a   :  { %790 = vsyncpa [#allocation3 + $0x1], 1 }

// kernel: reduction_block_a.13
= control target key start
LH: loop header
LB: loop body
LE: loop exit
PB: predicated region body
PF: predicated region fallthrough
CT: control target
= control target key end

     0   :  { %s6910_s15 = smov 0   ;;  %s6912_s16 = smov 0   ;;  %s7750_s0 = inlined_call_operand.vmem [shape: bf16[9,512,64], index: 0, kind: input, shape index: {}]   ;;  %s7751_s1 = inlined_call_operand.vmem [shape: bf16[9,64,128], index: 1, kind: input, shape index: {}]   ;;  %s7752_s2 = inlined_call_operand.vmem [shape: f32[512,128], index: 2, kind: output, shape index: {0}]   ;;  %s7753_s3 = inlined_call_operand.vmem [shape: f32[1,128], index: 3, kind: output, shape index: {1}]   ;;  %s7754_s4 = inlined_call_operand.vmem [shape: f32[1,128], index: 4, kind: output, shape index: {2}]  }
   0x1   :  { %s6914_s17 = smov 0   ;;  %s6916_s18 = smov 0  }
   0x2   :  { %s6918_s19 = smov 0  }
   0x3 LB: > { %s24_s20 = sadd.s32 1, %s6878_s18  ;;  %p41_p1 = scmp.ne.s32.totalorder %s6870_s16, %s6866_s15  ;;  %s6882_s19 = sphi %s6918_s19, %s15_s19   ;;  %s6878_s18 = sphi %s6916_s18, %s7758_s18   ;;  %s6874_s17 = sphi %s6914_s17, %s7757_s17   ;;  %s6870_s16 = sphi %s6912_s16, %s7756_s16   ;;  %s6866_s15 = sphi %s6910_s15, %s7755_s15  }
   0x4   : > { %p25_p0 = scmp.ge.s32.totalorder %s24_s20, 2  ;;  %p42_p2 = scmp.eq.s32.totalorder %s6882_s19, 0 }
   0x5   : > { %s34_s22 = sadd.s32 1, %s6870_s16  ;;  %p5157_p5 = scmp.ge.s32.totalorder %s6882_s19, 2 }
   0x6   : > { %s7760_s20 = smov (%p25_p0, %s24_s20), 0  ;;  %p43_p3 = por %p42_p2, %p41_p1 }
   0x7   : > { %s31_s21 = ssub.s32 %s6878_s18, %s7760_s20  ;;  %180 = sbr.rel (%p5157_p5) target bundleno = 91 (0x5b), region = 20 }
   0x8   : > { %p32_p4 = scmp.eq.s32.totalorder %s31_s21, 0 }
   0xa   : > { %s6945_s23 = scalar_select %p32_p4, %s6870_s16, %s34_s22  }
   0xe   : > { %183 = sbr.rel (!%p43_p3) target bundleno = 91 (0x5b), region = 24  ;;  %s185_s24 = sand.u32 (%p43_p3), 1, %s6870_s16  }
   0xf   : > { %s5812_s25 = sshll.u32 (%p43_p3), %s6878_s18, 7  ;;  %s6617_s26 = smul.u32 (%p43_p3), 1152, %s185_s24 }
  0x10   : > { %s6953_s29 = scalar_lea.vmem (%p43_p3), %s7750_s0, %s5812_s25 }
  0x11   : > { %v206_v0 = vld [vmem:[%s6953_s29] sm:$0xff] (%p43_p3)   ;;  %v210_v1 = vld [vmem:[%s6953_s29 + $0x8] sm:$0xff] (%p43_p3)   ;;  %v214_v2 = vld [vmem:[%s6953_s29 + $0x10] sm:$0xff] (%p43_p3)   ;;  %s6961_s30 = scalar_lea.vmem (%p43_p3), [#allocation2], %s6617_s26 }
  0x12   : > { %v218_v3 = vld [vmem:[%s6953_s29 + $0x18] sm:$0xff] (%p43_p3)   ;;  %v222_v4 = vld [vmem:[%s6953_s29 + $0x20] sm:$0xff] (%p43_p3)   ;;  %v226_v5 = vld [vmem:[%s6953_s29 + $0x28] sm:$0xff] (%p43_p3)   ;;  %207 = vst [vmem:[%s6961_s30] sm:$0xff] (%p43_p3), %v206_v0  }
  0x13   : > { %211 = vst [vmem:[%s6961_s30 + $0x8] sm:$0xff] (%p43_p3), %v210_v1   ;;  %215 = vst [vmem:[%s6961_s30 + $0x10] sm:$0xff] (%p43_p3), %v214_v2   ;;  %v230_v6 = vld [vmem:[%s6953_s29 + $0x30] sm:$0xff] (%p43_p3)   ;;  %v234_v7 = vld [vmem:[%s6953_s29 + $0x38] sm:$0xff] (%p43_p3)  }
  0x14   : > { %219 = vst [vmem:[%s6961_s30 + $0x18] sm:$0xff] (%p43_p3), %v218_v3   ;;  %223 = vst [vmem:[%s6961_s30 + $0x20] sm:$0xff] (%p43_p3), %v222_v4   ;;  %v238_v8 = vld [vmem:[%s6953_s29 + $0x40] sm:$0xff] (%p43_p3)   ;;  %v242_v9 = vld [vmem:[%s6953_s29 + $0x48] sm:$0xff] (%p43_p3)  }
  0x15   : > { %227 = vst [vmem:[%s6961_s30 + $0x28] sm:$0xff] %v226_v5   ;;  %231 = vst [vmem:[%s6961_s30 + $0x30] sm:$0xff] %v230_v6   ;;  %v246_v10 = vld [vmem:[%s6953_s29 + $0x50] sm:$0xff]   ;;  %v250_v11 = vld [vmem:[%s6953_s29 + $0x58] sm:$0xff]  }
  0x16   : > { %235 = vst [vmem:[%s6961_s30 + $0x38] sm:$0xff] %v234_v7   ;;  %239 = vst [vmem:[%s6961_s30 + $0x40] sm:$0xff] %v238_v8   ;;  %v254_v12 = vld [vmem:[%s6953_s29 + $0x60] sm:$0xff]   ;;  %v258_v13 = vld [vmem:[%s6953_s29 + $0x68] sm:$0xff]  }
  0x17   : > { %243 = vst [vmem:[%s6961_s30 + $0x48] sm:$0xff] %v242_v9   ;;  %247 = vst [vmem:[%s6961_s30 + $0x50] sm:$0xff] %v246_v10   ;;  %v262_v14 = vld [vmem:[%s6953_s29 + $0x70] sm:$0xff]   ;;  %v266_v15 = vld [vmem:[%s6953_s29 + $0x78] sm:$0xff]  }
  0x18   : > { %251 = vst [vmem:[%s6961_s30 + $0x58] sm:$0xff] %v250_v11   ;;  %255 = vst [vmem:[%s6961_s30 + $0x60] sm:$0xff] %v254_v12   ;;  %v270_v16 = vld [vmem:[%s6953_s29 + $0x100] sm:$0xff]   ;;  %v274_v17 = vld [vmem:[%s6953_s29 + $0x108] sm:$0xff]  }
  0x19   : > { %259 = vst [vmem:[%s6961_s30 + $0x68] sm:$0xff] %v258_v13   ;;  %263 = vst [vmem:[%s6961_s30 + $0x70] sm:$0xff] %v262_v14   ;;  %v278_v18 = vld [vmem:[%s6953_s29 + $0x110] sm:$0xff]   ;;  %v282_v19 = vld [vmem:[%s6953_s29 + $0x118] sm:$0xff]  }
  0x1a   : > { %267 = vst [vmem:[%s6961_s30 + $0x78] sm:$0xff] %v266_v15   ;;  %271 = vst [vmem:[%s6961_s30 + $0x80] sm:$0xff] %v270_v16   ;;  %v286_v20 = vld [vmem:[%s6953_s29 + $0x120] sm:$0xff]   ;;  %v290_v21 = vld [vmem:[%s6953_s29 + $0x128] sm:$0xff]  }
  0x1b   : > { %275 = vst [vmem:[%s6961_s30 + $0x88] sm:$0xff] %v274_v17   ;;  %279 = vst [vmem:[%s6961_s30 + $0x90] sm:$0xff] %v278_v18   ;;  %v294_v22 = vld [vmem:[%s6953_s29 + $0x130] sm:$0xff]   ;;  %v298_v23 = vld [vmem:[%s6953_s29 + $0x138] sm:$0xff]  }
  0x1c   : > { %283 = vst [vmem:[%s6961_s30 + $0x98] sm:$0xff] %v282_v19   ;;  %287 = vst [vmem:[%s6961_s30 + $0xa0] sm:$0xff] %v286_v20   ;;  %v302_v24 = vld [vmem:[%s6953_s29 + $0x140] sm:$0xff]   ;;  %v306_v25 = vld [vmem:[%s6953_s29 + $0x148] sm:$0xff]  }
  0x1d   : > { %291 = vst [vmem:[%s6961_s30 + $0xa8] sm:$0xff] %v290_v21   ;;  %295 = vst [vmem:[%s6961_s30 + $0xb0] sm:$0xff] %v294_v22   ;;  %v310_v26 = vld [vmem:[%s6953_s29 + $0x150] sm:$0xff]   ;;  %v314_v27 = vld [vmem:[%s6953_s29 + $0x158] sm:$0xff]  }
  0x1e   : > { %299 = vst [vmem:[%s6961_s30 + $0xb8] sm:$0xff] %v298_v23   ;;  %303 = vst [vmem:[%s6961_s30 + $0xc0] sm:$0xff] %v302_v24   ;;  %v318_v28 = vld [vmem:[%s6953_s29 + $0x160] sm:$0xff]   ;;  %v322_v29 = vld [vmem:[%s6953_s29 + $0x168] sm:$0xff]  }
  0x1f   : > { %307 = vst [vmem:[%s6961_s30 + $0xc8] sm:$0xff] %v306_v25   ;;  %311 = vst [vmem:[%s6961_s30 + $0xd0] sm:$0xff] %v310_v26   ;;  %v326_v30 = vld [vmem:[%s6953_s29 + $0x170] sm:$0xff]   ;;  %v330_v31 = vld [vmem:[%s6953_s29 + $0x178] sm:$0xff]  }
  0x20   : > { %315 = vst [vmem:[%s6961_s30 + $0xd8] sm:$0xff] %v314_v27   ;;  %319 = vst [vmem:[%s6961_s30 + $0xe0] sm:$0xff] %v318_v28   ;;  %v334_v32 = vld [vmem:[%s6953_s29 + $0x200] sm:$0xff]   ;;  %v338_v33 = vld [vmem:[%s6953_s29 + $0x208] sm:$0xff]  }
  0x21   : > { %323 = vst [vmem:[%s6961_s30 + $0xe8] sm:$0xff] %v322_v29   ;;  %327 = vst [vmem:[%s6961_s30 + $0xf0] sm:$0xff] %v326_v30   ;;  %v342_v34 = vld [vmem:[%s6953_s29 + $0x210] sm:$0xff]   ;;  %v346_v35 = vld [vmem:[%s6953_s29 + $0x218] sm:$0xff]  }
  0x22   : > { %331 = vst [vmem:[%s6961_s30 + $0xf8] sm:$0xff] %v330_v31   ;;  %335 = vst [vmem:[%s6961_s30 + $0x100] sm:$0xff] %v334_v32   ;;  %v350_v36 = vld [vmem:[%s6953_s29 + $0x220] sm:$0xff]   ;;  %v354_v37 = vld [vmem:[%s6953_s29 + $0x228] sm:$0xff]  }
  0x23   : > { %339 = vst [vmem:[%s6961_s30 + $0x108] sm:$0xff] %v338_v33   ;;  %343 = vst [vmem:[%s6961_s30 + $0x110] sm:$0xff] %v342_v34   ;;  %v358_v38 = vld [vmem:[%s6953_s29 + $0x230] sm:$0xff]   ;;  %v362_v39 = vld [vmem:[%s6953_s29 + $0x238] sm:$0xff]  }
  0x24   : > { %347 = vst [vmem:[%s6961_s30 + $0x118] sm:$0xff] %v346_v35   ;;  %351 = vst [vmem:[%s6961_s30 + $0x120] sm:$0xff] %v350_v36   ;;  %v366_v40 = vld [vmem:[%s6953_s29 + $0x240] sm:$0xff]   ;;  %v370_v41 = vld [vmem:[%s6953_s29 + $0x248] sm:$0xff]  }
  0x25   : > { %355 = vst [vmem:[%s6961_s30 + $0x128] sm:$0xff] %v354_v37   ;;  %359 = vst [vmem:[%s6961_s30 + $0x130] sm:$0xff] %v358_v38   ;;  %v374_v42 = vld [vmem:[%s6953_s29 + $0x250] sm:$0xff]   ;;  %v378_v43 = vld [vmem:[%s6953_s29 + $0x258] sm:$0xff]  }
  0x26   : > { %363 = vst [vmem:[%s6961_s30 + $0x138] sm:$0xff] %v362_v39   ;;  %367 = vst [vmem:[%s6961_s30 + $0x140] sm:$0xff] %v366_v40   ;;  %v382_v44 = vld [vmem:[%s6953_s29 + $0x260] sm:$0xff]   ;;  %v386_v45 = vld [vmem:[%s6953_s29 + $0x268] sm:$0xff]  }
  0x27   : > { %371 = vst [vmem:[%s6961_s30 + $0x148] sm:$0xff] %v370_v41   ;;  %375 = vst [vmem:[%s6961_s30 + $0x150] sm:$0xff] %v374_v42   ;;  %v390_v46 = vld [vmem:[%s6953_s29 + $0x270] sm:$0xff]   ;;  %v394_v47 = vld [vmem:[%s6953_s29 + $0x278] sm:$0xff]  }
  0x28   : > { %379 = vst [vmem:[%s6961_s30 + $0x158] sm:$0xff] %v378_v43   ;;  %383 = vst [vmem:[%s6961_s30 + $0x160] sm:$0xff] %v382_v44   ;;  %v398_v48 = vld [vmem:[%s6953_s29 + $0x300] sm:$0xff]   ;;  %v402_v49 = vld [vmem:[%s6953_s29 + $0x308] sm:$0xff]  }
  0x29   : > { %387 = vst [vmem:[%s6961_s30 + $0x168] sm:$0xff] %v386_v45   ;;  %391 = vst [vmem:[%s6961_s30 + $0x170] sm:$0xff] %v390_v46   ;;  %v406_v50 = vld [vmem:[%s6953_s29 + $0x310] sm:$0xff]   ;;  %v410_v51 = vld [vmem:[%s6953_s29 + $0x318] sm:$0xff]  }
  0x2a   : > { %395 = vst [vmem:[%s6961_s30 + $0x178] sm:$0xff] %v394_v47   ;;  %399 = vst [vmem:[%s6961_s30 + $0x180] sm:$0xff] %v398_v48   ;;  %v414_v52 = vld [vmem:[%s6953_s29 + $0x320] sm:$0xff]   ;;  %v418_v53 = vld [vmem:[%s6953_s29 + $0x328] sm:$0xff]  }
  0x2b   : > { %403 = vst [vmem:[%s6961_s30 + $0x188] sm:$0xff] %v402_v49   ;;  %407 = vst [vmem:[%s6961_s30 + $0x190] sm:$0xff] %v406_v50   ;;  %v422_v54 = vld [vmem:[%s6953_s29 + $0x330] sm:$0xff]   ;;  %v426_v55 = vld [vmem:[%s6953_s29 + $0x338] sm:$0xff]  }
  0x2c   : > { %411 = vst [vmem:[%s6961_s30 + $0x198] sm:$0xff] %v410_v51   ;;  %415 = vst [vmem:[%s6961_s30 + $0x1a0] sm:$0xff] %v414_v52   ;;  %v430_v56 = vld [vmem:[%s6953_s29 + $0x340] sm:$0xff]   ;;  %v434_v57 = vld [vmem:[%s6953_s29 + $0x348] sm:$0xff]  }
  0x2d   : > { %419 = vst [vmem:[%s6961_s30 + $0x1a8] sm:$0xff] %v418_v53   ;;  %423 = vst [vmem:[%s6961_s30 + $0x1b0] sm:$0xff] %v422_v54   ;;  %v438_v58 = vld [vmem:[%s6953_s29 + $0x350] sm:$0xff]   ;;  %v442_v59 = vld [vmem:[%s6953_s29 + $0x358] sm:$0xff]  }
  0x2e   : > { %427 = vst [vmem:[%s6961_s30 + $0x1b8] sm:$0xff] %v426_v55   ;;  %431 = vst [vmem:[%s6961_s30 + $0x1c0] sm:$0xff] %v430_v56   ;;  %v446_v60 = vld [vmem:[%s6953_s29 + $0x360] sm:$0xff]   ;;  %v450_v61 = vld [vmem:[%s6953_s29 + $0x368] sm:$0xff]  }
  0x2f   : > { %435 = vst [vmem:[%s6961_s30 + $0x1c8] sm:$0xff] %v434_v57   ;;  %439 = vst [vmem:[%s6961_s30 + $0x1d0] sm:$0xff] %v438_v58   ;;  %v454_v62 = vld [vmem:[%s6953_s29 + $0x370] sm:$0xff]   ;;  %v458_v63 = vld [vmem:[%s6953_s29 + $0x378] sm:$0xff]  }
  0x30   : > { %443 = vst [vmem:[%s6961_s30 + $0x1d8] sm:$0xff] %v442_v59   ;;  %447 = vst [vmem:[%s6961_s30 + $0x1e0] sm:$0xff] %v446_v60   ;;  %v462_v0 = vld [vmem:[%s6953_s29 + $0x400] sm:$0xff]   ;;  %v466_v1 = vld [vmem:[%s6953_s29 + $0x408] sm:$0xff]  }
  0x31   : > { %451 = vst [vmem:[%s6961_s30 + $0x1e8] sm:$0xff] %v450_v61   ;;  %455 = vst [vmem:[%s6961_s30 + $0x1f0] sm:$0xff] %v454_v62   ;;  %v470_v2 = vld [vmem:[%s6953_s29 + $0x410] sm:$0xff]   ;;  %v474_v3 = vld [vmem:[%s6953_s29 + $0x418] sm:$0xff]  }
  0x32   : > { %459 = vst [vmem:[%s6961_s30 + $0x1f8] sm:$0xff] %v458_v63   ;;  %463 = vst [vmem:[%s6961_s30 + $0x200] sm:$0xff] %v462_v0   ;;  %v478_v4 = vld [vmem:[%s6953_s29 + $0x420] sm:$0xff]   ;;  %v482_v5 = vld [vmem:[%s6953_s29 + $0x428] sm:$0xff]  }
  0x33   : > { %467 = vst [vmem:[%s6961_s30 + $0x208] sm:$0xff] %v466_v1   ;;  %471 = vst [vmem:[%s6961_s30 + $0x210] sm:$0xff] %v470_v2   ;;  %v486_v6 = vld [vmem:[%s6953_s29 + $0x430] sm:$0xff]   ;;  %v490_v7 = vld [vmem:[%s6953_s29 + $0x438] sm:$0xff]  }
  0x34   : > { %475 = vst [vmem:[%s6961_s30 + $0x218] sm:$0xff] %v474_v3   ;;  %479 = vst [vmem:[%s6961_s30 + $0x220] sm:$0xff] %v478_v4   ;;  %v494_v8 = vld [vmem:[%s6953_s29 + $0x440] sm:$0xff]   ;;  %v498_v9 = vld [vmem:[%s6953_s29 + $0x448] sm:$0xff]  }
  0x35   : > { %483 = vst [vmem:[%s6961_s30 + $0x228] sm:$0xff] %v482_v5   ;;  %487 = vst [vmem:[%s6961_s30 + $0x230] sm:$0xff] %v486_v6   ;;  %v502_v10 = vld [vmem:[%s6953_s29 + $0x450] sm:$0xff]   ;;  %v506_v11 = vld [vmem:[%s6953_s29 + $0x458] sm:$0xff]  }
  0x36   : > { %491 = vst [vmem:[%s6961_s30 + $0x238] sm:$0xff] %v490_v7   ;;  %495 = vst [vmem:[%s6961_s30 + $0x240] sm:$0xff] %v494_v8   ;;  %v510_v12 = vld [vmem:[%s6953_s29 + $0x460] sm:$0xff]   ;;  %v514_v13 = vld [vmem:[%s6953_s29 + $0x468] sm:$0xff]  }
  0x37   : > { %499 = vst [vmem:[%s6961_s30 + $0x248] sm:$0xff] %v498_v9   ;;  %503 = vst [vmem:[%s6961_s30 + $0x250] sm:$0xff] %v502_v10   ;;  %v518_v14 = vld [vmem:[%s6953_s29 + $0x470] sm:$0xff]   ;;  %v522_v15 = vld [vmem:[%s6953_s29 + $0x478] sm:$0xff]  }
  0x38   : > { %507 = vst [vmem:[%s6961_s30 + $0x258] sm:$0xff] %v506_v11   ;;  %511 = vst [vmem:[%s6961_s30 + $0x260] sm:$0xff] %v510_v12   ;;  %v526_v16 = vld [vmem:[%s6953_s29 + $0x500] sm:$0xff]   ;;  %v530_v17 = vld [vmem:[%s6953_s29 + $0x508] sm:$0xff]  }
  0x39   : > { %515 = vst [vmem:[%s6961_s30 + $0x268] sm:$0xff] %v514_v13   ;;  %519 = vst [vmem:[%s6961_s30 + $0x270] sm:$0xff] %v518_v14   ;;  %v534_v18 = vld [vmem:[%s6953_s29 + $0x510] sm:$0xff]   ;;  %v538_v19 = vld [vmem:[%s6953_s29 + $0x518] sm:$0xff]  }
  0x3a   : > { %523 = vst [vmem:[%s6961_s30 + $0x278] sm:$0xff] %v522_v15   ;;  %527 = vst [vmem:[%s6961_s30 + $0x280] sm:$0xff] %v526_v16   ;;  %v542_v20 = vld [vmem:[%s6953_s29 + $0x520] sm:$0xff]   ;;  %v546_v21 = vld [vmem:[%s6953_s29 + $0x528] sm:$0xff]  }
  0x3b   : > { %531 = vst [vmem:[%s6961_s30 + $0x288] sm:$0xff] %v530_v17   ;;  %535 = vst [vmem:[%s6961_s30 + $0x290] sm:$0xff] %v534_v18   ;;  %v550_v22 = vld [vmem:[%s6953_s29 + $0x530] sm:$0xff]   ;;  %v554_v23 = vld [vmem:[%s6953_s29 + $0x538] sm:$0xff]  }
  0x3c   : > { %539 = vst [vmem:[%s6961_s30 + $0x298] sm:$0xff] %v538_v19   ;;  %543 = vst [vmem:[%s6961_s30 + $0x2a0] sm:$0xff] %v542_v20   ;;  %v558_v24 = vld [vmem:[%s6953_s29 + $0x540] sm:$0xff]   ;;  %v562_v25 = vld [vmem:[%s6953_s29 + $0x548] sm:$0xff]  }
  0x3d   : > { %547 = vst [vmem:[%s6961_s30 + $0x2a8] sm:$0xff] %v546_v21   ;;  %551 = vst [vmem:[%s6961_s30 + $0x2b0] sm:$0xff] %v550_v22   ;;  %v566_v26 = vld [vmem:[%s6953_s29 + $0x550] sm:$0xff]   ;;  %v570_v27 = vld [vmem:[%s6953_s29 + $0x558] sm:$0xff]  }
  0x3e   : > { %555 = vst [vmem:[%s6961_s30 + $0x2b8] sm:$0xff] %v554_v23   ;;  %559 = vst [vmem:[%s6961_s30 + $0x2c0] sm:$0xff] %v558_v24   ;;  %v574_v28 = vld [vmem:[%s6953_s29 + $0x560] sm:$0xff]   ;;  %v578_v29 = vld [vmem:[%s6953_s29 + $0x568] sm:$0xff]  }
  0x3f   : > { %563 = vst [vmem:[%s6961_s30 + $0x2c8] sm:$0xff] %v562_v25   ;;  %567 = vst [vmem:[%s6961_s30 + $0x2d0] sm:$0xff] %v566_v26   ;;  %v582_v30 = vld [vmem:[%s6953_s29 + $0x570] sm:$0xff]   ;;  %v586_v31 = vld [vmem:[%s6953_s29 + $0x578] sm:$0xff]  }
  0x40   : > { %571 = vst [vmem:[%s6961_s30 + $0x2d8] sm:$0xff] %v570_v27   ;;  %575 = vst [vmem:[%s6961_s30 + $0x2e0] sm:$0xff] %v574_v28   ;;  %v590_v32 = vld [vmem:[%s6953_s29 + $0x600] sm:$0xff]   ;;  %v594_v33 = vld [vmem:[%s6953_s29 + $0x608] sm:$0xff]  }
  0x41   : > { %579 = vst [vmem:[%s6961_s30 + $0x2e8] sm:$0xff] %v578_v29   ;;  %583 = vst [vmem:[%s6961_s30 + $0x2f0] sm:$0xff] %v582_v30   ;;  %v598_v34 = vld [vmem:[%s6953_s29 + $0x610] sm:$0xff]   ;;  %v602_v35 = vld [vmem:[%s6953_s29 + $0x618] sm:$0xff]  }
  0x42   : > { %587 = vst [vmem:[%s6961_s30 + $0x2f8] sm:$0xff] %v586_v31   ;;  %591 = vst [vmem:[%s6961_s30 + $0x300] sm:$0xff] %v590_v32   ;;  %v606_v36 = vld [vmem:[%s6953_s29 + $0x620] sm:$0xff]   ;;  %v610_v37 = vld [vmem:[%s6953_s29 + $0x628] sm:$0xff]  }
  0x43   : > { %595 = vst [vmem:[%s6961_s30 + $0x308] sm:$0xff] %v594_v33   ;;  %599 = vst [vmem:[%s6961_s30 + $0x310] sm:$0xff] %v598_v34   ;;  %v614_v38 = vld [vmem:[%s6953_s29 + $0x630] sm:$0xff]   ;;  %v618_v39 = vld [vmem:[%s6953_s29 + $0x638] sm:$0xff]  }
  0x44   : > { %603 = vst [vmem:[%s6961_s30 + $0x318] sm:$0xff] %v602_v35   ;;  %607 = vst [vmem:[%s6961_s30 + $0x320] sm:$0xff] %v606_v36   ;;  %v622_v40 = vld [vmem:[%s6953_s29 + $0x640] sm:$0xff]   ;;  %v626_v41 = vld [vmem:[%s6953_s29 + $0x648] sm:$0xff]  }
  0x45   : > { %611 = vst [vmem:[%s6961_s30 + $0x328] sm:$0xff] %v610_v37   ;;  %615 = vst [vmem:[%s6961_s30 + $0x330] sm:$0xff] %v614_v38   ;;  %v630_v42 = vld [vmem:[%s6953_s29 + $0x650] sm:$0xff]   ;;  %v634_v43 = vld [vmem:[%s6953_s29 + $0x658] sm:$0xff]  }
  0x46   : > { %619 = vst [vmem:[%s6961_s30 + $0x338] sm:$0xff] %v618_v39   ;;  %623 = vst [vmem:[%s6961_s30 + $0x340] sm:$0xff] %v622_v40   ;;  %v638_v44 = vld [vmem:[%s6953_s29 + $0x660] sm:$0xff]   ;;  %v642_v45 = vld [vmem:[%s6953_s29 + $0x668] sm:$0xff]  }
  0x47   : > { %627 = vst [vmem:[%s6961_s30 + $0x348] sm:$0xff] %v626_v41   ;;  %631 = vst [vmem:[%s6961_s30 + $0x350] sm:$0xff] %v630_v42   ;;  %v646_v46 = vld [vmem:[%s6953_s29 + $0x670] sm:$0xff]   ;;  %v650_v47 = vld [vmem:[%s6953_s29 + $0x678] sm:$0xff]  }
  0x48   : > { %635 = vst [vmem:[%s6961_s30 + $0x358] sm:$0xff] %v634_v43   ;;  %639 = vst [vmem:[%s6961_s30 + $0x360] sm:$0xff] %v638_v44   ;;  %v654_v48 = vld [vmem:[%s6953_s29 + $0x700] sm:$0xff]   ;;  %v658_v49 = vld [vmem:[%s6953_s29 + $0x708] sm:$0xff]  }
  0x49   : > { %643 = vst [vmem:[%s6961_s30 + $0x368] sm:$0xff] %v642_v45   ;;  %647 = vst [vmem:[%s6961_s30 + $0x370] sm:$0xff] %v646_v46   ;;  %v662_v50 = vld [vmem:[%s6953_s29 + $0x710] sm:$0xff]   ;;  %v666_v51 = vld [vmem:[%s6953_s29 + $0x718] sm:$0xff]  }
  0x4a   : > { %651 = vst [vmem:[%s6961_s30 + $0x378] sm:$0xff] %v650_v47   ;;  %655 = vst [vmem:[%s6961_s30 + $0x380] sm:$0xff] %v654_v48   ;;  %v670_v52 = vld [vmem:[%s6953_s29 + $0x720] sm:$0xff]   ;;  %v674_v53 = vld [vmem:[%s6953_s29 + $0x728] sm:$0xff]  }
  0x4b   : > { %659 = vst [vmem:[%s6961_s30 + $0x388] sm:$0xff] %v658_v49   ;;  %663 = vst [vmem:[%s6961_s30 + $0x390] sm:$0xff] %v662_v50   ;;  %v678_v54 = vld [vmem:[%s6953_s29 + $0x730] sm:$0xff]   ;;  %v682_v55 = vld [vmem:[%s6953_s29 + $0x738] sm:$0xff]  }
  0x4c   : > { %667 = vst [vmem:[%s6961_s30 + $0x398] sm:$0xff] %v666_v51   ;;  %671 = vst [vmem:[%s6961_s30 + $0x3a0] sm:$0xff] %v670_v52   ;;  %v686_v56 = vld [vmem:[%s6953_s29 + $0x740] sm:$0xff]   ;;  %v690_v57 = vld [vmem:[%s6953_s29 + $0x748] sm:$0xff]  }
  0x4d   : > { %675 = vst [vmem:[%s6961_s30 + $0x3a8] sm:$0xff] %v674_v53   ;;  %679 = vst [vmem:[%s6961_s30 + $0x3b0] sm:$0xff] %v678_v54   ;;  %v694_v58 = vld [vmem:[%s6953_s29 + $0x750] sm:$0xff]   ;;  %v698_v59 = vld [vmem:[%s6953_s29 + $0x758] sm:$0xff]  }
  0x4e   : > { %683 = vst [vmem:[%s6961_s30 + $0x3b8] sm:$0xff] %v682_v55   ;;  %687 = vst [vmem:[%s6961_s30 + $0x3c0] sm:$0xff] %v686_v56   ;;  %v702_v60 = vld [vmem:[%s6953_s29 + $0x760] sm:$0xff]   ;;  %v706_v61 = vld [vmem:[%s6953_s29 + $0x768] sm:$0xff]  }
  0x4f   : > { %691 = vst [vmem:[%s6961_s30 + $0x3c8] sm:$0xff] %v690_v57   ;;  %695 = vst [vmem:[%s6961_s30 + $0x3d0] sm:$0xff] %v694_v58   ;;  %v710_v62 = vld [vmem:[%s6953_s29 + $0x770] sm:$0xff]   ;;  %v714_v63 = vld [vmem:[%s6953_s29 + $0x778] sm:$0xff]  }
  0x50   : > { %699 = vst [vmem:[%s6961_s30 + $0x3d8] sm:$0xff] %v698_v59   ;;  %703 = vst [vmem:[%s6961_s30 + $0x3e0] sm:$0xff] %v702_v60   ;;  %v718_v0 = vld [vmem:[%s6953_s29 + $0x800] sm:$0xff]   ;;  %v722_v1 = vld [vmem:[%s6953_s29 + $0x808] sm:$0xff]  }
  0x51   : > { %707 = vst [vmem:[%s6961_s30 + $0x3e8] sm:$0xff] %v706_v61   ;;  %711 = vst [vmem:[%s6961_s30 + $0x3f0] sm:$0xff] %v710_v62   ;;  %v726_v2 = vld [vmem:[%s6953_s29 + $0x810] sm:$0xff]   ;;  %v730_v3 = vld [vmem:[%s6953_s29 + $0x818] sm:$0xff]  }
  0x52   : > { %715 = vst [vmem:[%s6961_s30 + $0x3f8] sm:$0xff] %v714_v63   ;;  %719 = vst [vmem:[%s6961_s30 + $0x400] sm:$0xff] %v718_v0   ;;  %v734_v4 = vld [vmem:[%s6953_s29 + $0x820] sm:$0xff]   ;;  %v738_v5 = vld [vmem:[%s6953_s29 + $0x828] sm:$0xff]  }
  0x53   : > { %723 = vst [vmem:[%s6961_s30 + $0x408] sm:$0xff] %v722_v1   ;;  %727 = vst [vmem:[%s6961_s30 + $0x410] sm:$0xff] %v726_v2   ;;  %v742_v6 = vld [vmem:[%s6953_s29 + $0x830] sm:$0xff]   ;;  %v746_v7 = vld [vmem:[%s6953_s29 + $0x838] sm:$0xff]  }
  0x54   : > { %731 = vst [vmem:[%s6961_s30 + $0x418] sm:$0xff] %v730_v3   ;;  %735 = vst [vmem:[%s6961_s30 + $0x420] sm:$0xff] %v734_v4   ;;  %v750_v8 = vld [vmem:[%s6953_s29 + $0x840] sm:$0xff]   ;;  %v754_v9 = vld [vmem:[%s6953_s29 + $0x848] sm:$0xff]  }
  0x55   : > { %739 = vst [vmem:[%s6961_s30 + $0x428] sm:$0xff] %v738_v5   ;;  %743 = vst [vmem:[%s6961_s30 + $0x430] sm:$0xff] %v742_v6   ;;  %v758_v10 = vld [vmem:[%s6953_s29 + $0x850] sm:$0xff]   ;;  %v762_v11 = vld [vmem:[%s6953_s29 + $0x858] sm:$0xff]  }
  0x56   : > { %747 = vst [vmem:[%s6961_s30 + $0x438] sm:$0xff] %v746_v7   ;;  %751 = vst [vmem:[%s6961_s30 + $0x440] sm:$0xff] %v750_v8   ;;  %v766_v12 = vld [vmem:[%s6953_s29 + $0x860] sm:$0xff]   ;;  %v770_v13 = vld [vmem:[%s6953_s29 + $0x868] sm:$0xff]  }
  0x57   : > { %755 = vst [vmem:[%s6961_s30 + $0x448] sm:$0xff] %v754_v9   ;;  %759 = vst [vmem:[%s6961_s30 + $0x450] sm:$0xff] %v758_v10   ;;  %v774_v14 = vld [vmem:[%s6953_s29 + $0x870] sm:$0xff]   ;;  %v778_v15 = vld [vmem:[%s6953_s29 + $0x878] sm:$0xff]  }
  0x58   : > { %763 = vst [vmem:[%s6961_s30 + $0x458] sm:$0xff] %v762_v11   ;;  %767 = vst [vmem:[%s6961_s30 + $0x460] sm:$0xff] %v766_v12  }
  0x59   : > { %771 = vst [vmem:[%s6961_s30 + $0x468] sm:$0xff] %v770_v13   ;;  %775 = vst [vmem:[%s6961_s30 + $0x470] sm:$0xff] %v774_v14  }
  0x5a   : > { %779 = vst [vmem:[%s6961_s30 + $0x478] sm:$0xff] %v778_v15  }
  0x5b PF: > { %p5160_p6 = scmp.ge.s32.totalorder %s6882_s19, 1  ;;  %p1379_p7 = scmp.lt.s32.totalorder %s6882_s19, 3 }
  0x5d   : > { %p1380_p8 = pnand %p5160_p6, %p1379_p7 }
  0x5e   : > { %s1386_s5 = sand.u32 (!%p1380_p8), 1, %s6866_s15   ;;  %s5161_s6 = sshll.u32 (!%p1380_p8), %s6874_s17, 5 }
  0x5f   : > { %1383 = sbr.rel (%p1380_p8) target bundleno = 647 (0x287), region = 65  ;;  %p1430_p9 = scmp.lt.s32.totalorder (!%p1380_p8), %s5161_s6, 63 }
  0x60   : > { %s6618_s7 = smul.u32 (!%p1380_p8), 1152, %s1386_s5  ;;  %p5163_p10 = scmp.ne.s32.totalorder (!%p1380_p8), %s6874_s17, 0 }
  0x62   : > { %s7254_s12 = scalar_lea.vmem (!%p1380_p8), [#allocation2], %s6618_s7 }
  0x66   : > { %s7762_s6 = smov (!%p1430_p9, %s5161_s6), 63  ;;  %1448 = sbr.rel (%p5163_p10) target bundleno = 109 (0x6d), region = 73 }
  0x67   : > { %s5162_s8 = sshll.u32 %s7762_s6, 3  ;;  %v6884_v16 = vmov (!%p5163_p10), 0.0  }
  0x68   : > { %s7252_s11 = scalar_lea.vmem %s7752_s2, %s5162_s8  ;;  %1449 = vst [vmem:[%s7753_s3] sm:$0x1] (!%p5163_p10), %v6884_v16  ;;  %1450 = vst [vmem:[%s7754_s4] sm:$0x1] (!%p5163_p10), %v6884_v16 }
  0x6d PF: > { %v6660_v17 = vld [vmem:[%s7751_s1 + $0x20] sm:$0xff]   ;;  %v6662_v19 = vld [vmem:[%s7751_s1 + $0x28] sm:$0xff]   ;;  %v6664_v21 = vld [vmem:[%s7751_s1 + $0x30] sm:$0xff]   ;;  %vm1637_vm0 = vcmask 523264  }
  0x6e   : > { %v6661_v18 = vld [vmem:[%s7751_s1 + $0x80] sm:$0xff]   ;;  %5993 = vmatprep.subr.bf16.mxu1 %v6660_v17  ;;  %v6663_v20 = vld [vmem:[%s7751_s1 + $0x88] sm:$0xff]   ;;  %v6665_v22 = vld [vmem:[%s7751_s1 + $0x90] sm:$0xff]  }
  0x6f   : > { %6153 = vmatprep.subr.bf16.mxu0 %v6661_v18  ;;  %5994 = vmatpush3.bf16.msra.mxu1 %v6660_v17  ;;  %v6666_v23 = vld [vmem:[%s7751_s1 + $0x38] sm:$0xff]   ;;  %v6668_v25 = vld [vmem:[%s7254_s12 + $0x80] sm:$0xff]   ;;  %v6670_v29 = vld [vmem:[%s7254_s12 + $0x88] sm:$0xff]  }
  0x70   : > { %6154 = vmatpush3.bf16.msra.mxu0 %v6661_v18  ;;  %5995 = vmatprep.subr.bf16.mxu1 %v6662_v19  ;;  %v6667_v24 = vld [vmem:[%s7751_s1 + $0x98] sm:$0xff]   ;;  %v6669_v26 = vld [vmem:[%s7254_s12 + $0x200] sm:$0xff]   ;;  %v6672_v30 = vld [vmem:[%s7254_s12 + $0x208] sm:$0xff]  }
  0x71   : > { %6155 = vmatprep.subr.bf16.mxu0 %v6663_v20  ;;  %6001 = vmatprep.mubr.msk.bf16.mxu1 %vm1637_vm0, %v6668_v25  ;;  %v6671_v27 = vld [vmem:[%s7751_s1] sm:$0xff]   ;;  %v6674_v31 = vld [vmem:[%s7254_s12 + $0x90] sm:$0xff]   ;;  %v6678_v33 = vld [vmem:[%s7751_s1 + $0xa8] sm:$0xff]  }
  0x72   : > { %6161 = vmatprep.mubr.msk.bf16.mxu0 %vm1637_vm0, %v6669_v26  ;;  %v6673_v28 = vld [vmem:[%s7751_s1 + $0xa0] sm:$0xff]   ;;  %v6675_v32 = vld [vmem:[%s7254_s12 + $0x210] sm:$0xff]   ;;  %v6676_v34 = vld [vmem:[%s7254_s12 + $0x98] sm:$0xff]  }
  0x73   : > { %5996 = vmatpush3.bf16.msra.mxu1 %v6662_v19  ;;  %v6677_v35 = vld [vmem:[%s7254_s12 + $0x218] sm:$0xff]   ;;  %v6679_v36 = vld [vmem:[%s7254_s12 + $0xa0] sm:$0xff]   ;;  %v6682_v37 = vld [vmem:[%s7751_s1 + $0x8] sm:$0xff]  }
  0x74   : > { %6156 = vmatpush3.bf16.msra.mxu0 %v6663_v20  ;;  %5997 = vmatprep.subr.bf16.mxu1 %v6664_v21  ;;  %v6680_v38 = vld [vmem:[%s7254_s12 + $0x220] sm:$0xff]   ;;  %v6684_v39 = vld [vmem:[%s7751_s1 + $0xb0] sm:$0xff]   ;;  %v6681_v40 = vld [vmem:[%s7254_s12 + $0xa8] sm:$0xff]  }
  0x75   : > { %6157 = vmatprep.subr.bf16.mxu0 %v6665_v22  ;;  %v6689_v41 = vld [vmem:[%s7751_s1 + $0xb8] sm:$0xff]   ;;  %v6683_v42 = vld [vmem:[%s7254_s12 + $0x228] sm:$0xff]   ;;  %v6685_v43 = vld [vmem:[%s7254_s12 + $0xb0] sm:$0xff]  }
  0x76   : > { %v6686_v44 = vld [vmem:[%s7254_s12 + $0x230] sm:$0xff]   ;;  %v6695_v46 = vld [vmem:[%s7751_s1 + $0xc0] sm:$0xff]   ;;  %v6687_v47 = vld [vmem:[%s7254_s12 + $0xb8] sm:$0xff]  }
  0x77   : > { %5998 = vmatpush3.bf16.msra.mxu1 %v6664_v21  ;;  %v6693_v45 = vld [vmem:[%s7751_s1 + $0x10] sm:$0xff]   ;;  %v6688_v48 = vld [vmem:[%s7254_s12 + $0x238] sm:$0xff]   ;;  %v6690_v49 = vld [vmem:[%s7254_s12 + $0xc0] sm:$0xff]  }
  0x78   : > { %6158 = vmatpush3.bf16.msra.mxu0 %v6665_v22  ;;  %5999 = vmatprep.subr.bf16.mxu1 %v6666_v23  ;;  %v6691_v50 = vld [vmem:[%s7254_s12 + $0x280] sm:$0xff]   ;;  %v6703_v51 = vld [vmem:[%s7751_s1 + $0x18] sm:$0xff]   ;;  %v6692_v52 = vld [vmem:[%s7254_s12 + $0xc8] sm:$0xff]  }
  0x79   : > { %6159 = vmatprep.subr.bf16.mxu0 %v6667_v24  ;;  %v6694_v53 = vld [vmem:[%s7254_s12 + $0x288] sm:$0xff]   ;;  %v6696_v54 = vld [vmem:[%s7254_s12 + $0xd0] sm:$0xff]   ;;  %v6698_v57 = vld [vmem:[%s7254_s12 + $0xd8] sm:$0xff]  }
  0x7a   : > { %v6697_v55 = vld [vmem:[%s7254_s12 + $0x290] sm:$0xff]   ;;  %v6705_v56 = vld [vmem:[%s7751_s1 + $0xc8] sm:$0xff]   ;;  %v6699_v58 = vld [vmem:[%s7254_s12 + $0x298] sm:$0xff]  }
  0x7b   : > { %6000 = vmatpush3.bf16.msra.mxu1 %v6666_v23  ;;  %v6713_v59 = vld [vmem:[%s7751_s1 + $0x40] sm:$0xff]   ;;  %v6715_v61 = vld [vmem:[%s7751_s1 + $0xd0] sm:$0xff]   ;;  %v6702_v63 = vld [vmem:[%s7254_s12 + $0xe8] sm:$0xff]  }
  0x7c   : > { %6160 = vmatpush3.bf16.msra.mxu0 %v6667_v24  ;;  %6033 = vmatprep.subr.bf16.mxu1 %v6671_v27  ;;  %v6700_v60 = vld [vmem:[%s7254_s12 + $0xe0] sm:$0xff]   ;;  %v6704_v0 = vld [vmem:[%s7254_s12 + $0x2a8] sm:$0xff]   ;;  %v6706_v1 = vld [vmem:[%s7254_s12 + $0xf0] sm:$0xff]  }
  0x7d   : > { %6193 = vmatprep.subr.bf16.mxu0 %v6673_v28  ;;  %v6701_v62 = vld [vmem:[%s7254_s12 + $0x2a0] sm:$0xff]   ;;  %v6707_v2 = vld [vmem:[%s7254_s12 + $0x2b0] sm:$0xff]   ;;  %v6725_v3 = vld [vmem:[%s7751_s1 + $0xd8] sm:$0xff]  }
  0x7e   : > { %6002 = vmatmul.mubr.msk.bf16.vlgmr.msra.gmra.mrb[0].mxu1 %vm1637_vm0, %v6670_v29  ;;  %v6708_v4 = vld [vmem:[%s7254_s12 + $0xf8] sm:$0xff]   ;;  %v6710_v6 = vld [vmem:[%s7254_s12] sm:$0xff]   ;;  %v6712_v9 = vld [vmem:[%s7254_s12 + $0x8] sm:$0xff]  }
  0x7f   : > { %6162 = vmatmul.mubr.msk.bf16.vlgmr.msra.gmra.mrb[0].mxu0 %vm1637_vm0, %v6672_v30  ;;  %6034 = vmatpush3.bf16.msra.mxu1 %v6671_v27  ;;  %v6709_v5 = vld [vmem:[%s7254_s12 + $0x2b8] sm:$0xff]   ;;  %v6711_v7 = vld [vmem:[%s7254_s12 + $0x2c0] sm:$0xff]   ;;  %v6714_v10 = vld [vmem:[%s7254_s12 + $0x2c8] sm:$0xff]  }
  0x80   : > { %6194 = vmatpush3.bf16.msra.mxu0 %v6673_v28  ;;  %6005 = vmatprep.mubr.msk.bf16.mxu1 %vm1637_vm0, %v6674_v31  ;;  %v6735_v8 = vld [vmem:[%s7751_s1 + $0xe0] sm:$0xff]   ;;  %v6716_v11 = vld [vmem:[%s7254_s12 + $0x10] sm:$0xff]   ;;  %v6723_v13 = vld [vmem:[%s7751_s1 + $0x48] sm:$0xff]  }
  0x81   : > { %6165 = vmatprep.mubr.msk.bf16.mxu0 %vm1637_vm0, %v6675_v32  ;;  %6195 = vmatprep.subr.bf16.mxu0 %v6678_v33  ;;  %v6717_v12 = vld [vmem:[%s7254_s12 + $0x2d0] sm:$0xff]   ;;  %v6718_v15 = vld [vmem:[%s7254_s12 + $0x18] sm:$0xff]   ;;  %v6720_v17 = vld [vmem:[%s7254_s12 + $0x20] sm:$0xff]  }
  0x82   : > { %6035 = vmatprep.subr.bf16.mxu1 %v6682_v37  ;;  %v6733_v14 = vld [vmem:[%s7751_s1 + $0x50] sm:$0xff]   ;;  %v6719_v16 = vld [vmem:[%s7254_s12 + $0x2d8] sm:$0xff]   ;;  %v6721_v18 = vld [vmem:[%s7254_s12 + $0x2e0] sm:$0xff]  }
  0x83   : > { %6036 = vmatpush3.bf16.msra.mxu1 %v6682_v37  ;;  %v6743_v19 = vld [vmem:[%s7751_s1 + $0x58] sm:$0xff]   ;;  %v6722_v20 = vld [vmem:[%s7254_s12 + $0x28] sm:$0xff]   ;;  %v7426_v21 = vld [vmem:[%s7751_s1 + $0x60] sm:$0xff]  }
  0x84   : > { %6196 = vmatpush3.bf16.msra.mxu0 %v6678_v33  ;;  %6037 = vmatprep.subr.bf16.mxu1 %v6693_v45  ;;  %v6724_v22 = vld [vmem:[%s7254_s12 + $0x2e8] sm:$0xff]   ;;  %v6726_v23 = vld [vmem:[%s7254_s12 + $0x30] sm:$0xff]   ;;  %v6728_v25 = vld [vmem:[%s7254_s12 + $0x38] sm:$0xff]  }
  0x85   : > { %6197 = vmatprep.subr.bf16.mxu0 %v6684_v39  ;;  %v6727_v24 = vld [vmem:[%s7254_s12 + $0x2f0] sm:$0xff]   ;;  %v6729_v26 = vld [vmem:[%s7254_s12 + $0x2f8] sm:$0xff]   ;;  %v6730_v27 = vld [vmem:[%s7254_s12 + $0x40] sm:$0xff]  }
  0x86   : > { %6006 = vmatmul.mubr.msk.bf16.gmra.mrb[4].mxu1 %vm1637_vm0, %v6676_v34  ;;  %v6731_v28 = vld [vmem:[%s7254_s12 + $0x300] sm:$0xff]   ;;  %v6732_v29 = vld [vmem:[%s7254_s12 + $0x48] sm:$0xff]   ;;  %v6736_v31 = vld [vmem:[%s7254_s12 + $0x50] sm:$0xff]  }
  0x87   : > { %6166 = vmatmul.mubr.msk.bf16.gmra.mrb[4].mxu0 %vm1637_vm0, %v6677_v35  ;;  %6009 = vmatprep.mubr.msk.bf16.mxu1 %vm1637_vm0, %v6679_v36  ;;  %v6734_v30 = vld [vmem:[%s7254_s12 + $0x308] sm:$0xff]   ;;  %v6737_v32 = vld [vmem:[%s7254_s12 + $0x310] sm:$0xff]   ;;  %v6738_v34 = vld [vmem:[%s7254_s12 + $0x58] sm:$0xff]  }
  0x88   : > { %6169 = vmatprep.mubr.msk.bf16.mxu0 %vm1637_vm0, %v6680_v38  ;;  %6198 = vmatpush3.bf16.msra.mxu0 %v6684_v39  ;;  %v6745_v33 = vld [vmem:[%s7751_s1 + $0xe8] sm:$0xff]   ;;  %v6755_v35 = vld [vmem:[%s7751_s1 + $0xf0] sm:$0xff]   ;;  %v6739_v36 = vld [vmem:[%s7254_s12 + $0x318] sm:$0xff]  }
  0x89   : > { %6199 = vmatprep.subr.bf16.mxu0 %v6689_v41  ;;  %6038 = vmatpush3.bf16.msra.mxu1 %v6693_v45  ;;  %v6740_v37 = vld [vmem:[%s7254_s12 + $0x60] sm:$0xff]   ;;  %v6765_v39 = vld [vmem:[%s7751_s1 + $0xf8] sm:$0xff]  }
  0x8a   : > { %6039 = vmatprep.subr.bf16.mxu1 %v6703_v51  ;;  %v6741_v38 = vld [vmem:[%s7254_s12 + $0x320] sm:$0xff]   ;;  %v6748_v45 = vld [vmem:[%s7254_s12 + $0x78] sm:$0xff]  }
  0x8c   : > { %6200 = vmatpush3.bf16.msra.mxu0 %v6689_v41  ;;  %v7473_v41 = vld [vmem:[%s7751_s1 + $0x100] sm:$0xff]  }
  0x8d   : > { %6233 = vmatprep.subr.bf16.mxu0 %v6695_v46  ;;  %6040 = vmatpush3.bf16.msra.mxu1 %v6703_v51  ;;  %v6756_v51 = vld [vmem:[%s7254_s12 + $0x110] sm:$0xff]  }
  0x8e   : > { %6010 = vmatmul.mubr.msk.bf16.gmra.mrb[8].mxu1 %vm1637_vm0, %v6681_v40  ;;  %6073 = vmatprep.subr.bf16.mxu1 %v6713_v59  ;;  %v6742_v40 = vld [vmem:[%s7254_s12 + $0x68] sm:$0xff]  }
  0x8f   : > { %6170 = vmatmul.mubr.msk.bf16.gmra.mrb[8].mxu0 %vm1637_vm0, %v6683_v42  ;;  %6013 = vmatprep.mubr.msk.bf16.mxu1 %vm1637_vm0, %v6685_v43  ;;  %v6744_v42 = vld [vmem:[%s7254_s12 + $0x328] sm:$0xff]   ;;  %v6746_v43 = vld [vmem:[%s7254_s12 + $0x70] sm:$0xff]  }
  0x90   : > { %6173 = vmatprep.mubr.msk.bf16.mxu0 %vm1637_vm0, %v6686_v44  ;;  %v6747_v44 = vld [vmem:[%s7254_s12 + $0x330] sm:$0xff]  }
  0x96   : > { %6014 = vmatmul.mubr.msk.bf16.gmra.mrb[12].mxu1 %vm1637_vm0, %v6687_v47  ;;  %v6750_v47 = vld [vmem:[%s7254_s12 + $0x100] sm:$0xff]  }
  0x97   : > { %6174 = vmatmul.mubr.msk.bf16.gmra.mrb[12].mxu0 %vm1637_vm0, %v6688_v48  ;;  %6017 = vmatprep.mubr.msk.bf16.mxu1 %vm1637_vm0, %v6690_v49  ;;  %v6751_v48 = vld [vmem:[%s7254_s12 + $0x340] sm:$0xff]   ;;  %v6752_v49 = vld [vmem:[%s7254_s12 + $0x108] sm:$0xff]  }
  0x98   : > { %6201 = vmatprep.mubr.msk.bf16.mxu0 %vm1637_vm0, %v6691_v50  ;;  %v6754_v50 = vld [vmem:[%s7254_s12 + $0x348] sm:$0xff]  }
  0x9e   : > { %6018 = vmatmul.mubr.msk.bf16.gmra.mrb[16].mxu1 %vm1637_vm0, %v6692_v52  ;;  %v6757_v52 = vld [vmem:[%s7254_s12 + $0x350] sm:$0xff]  }
  0x9f   : > { %6202 = vmatmul.mubr.msk.bf16.vlgmr.msra.gmra.mrb[0].mxu0 %vm1637_vm0, %v6694_v53  ;;  %6021 = vmatprep.mubr.msk.bf16.mxu1 %vm1637_vm0, %v6696_v54  ;;  %v6763_v53 = vld [vmem:[%s7751_s1 + $0x68] sm:$0xff]   ;;  %v6773_v54 = vld [vmem:[%s7751_s1 + $0x70] sm:$0xff]  }
  0xa0   : > { %6234 = vmatpush3.bf16.msra.mxu0 %v6695_v46  ;;  %6205 = vmatprep.mubr.msk.bf16.mxu0 %vm1637_vm0, %v6697_v55  ;;  %v6749_v46 = vld [vmem:[%s7254_s12 + $0x338] sm:$0xff]  }
  0xa1   : > { %6235 = vmatprep.subr.bf16.mxu0 %v6705_v56  ;;  %v6758_v55 = vld [vmem:[%s7254_s12 + $0x118] sm:$0xff]  }
  0xa4   : > { %6236 = vmatpush3.bf16.msra.mxu0 %v6705_v56  ;;  %v6759_v56 = vld [vmem:[%s7254_s12 + $0x358] sm:$0xff]  }
  0xa5   : > { %6237 = vmatprep.subr.bf16.mxu0 %v6715_v61 }
  0xa6   : > { %6022 = vmatmul.mubr.msk.bf16.gmra.mrb[20].mxu1 %vm1637_vm0, %v6698_v57  ;;  %v6760_v57 = vld [vmem:[%s7254_s12 + $0x120] sm:$0xff]  }
  0xa7   : > { %6206 = vmatmul.mubr.msk.bf16.gmra.mrb[4].mxu0 %vm1637_vm0, %v6699_v58  ;;  %6025 = vmatprep.mubr.msk.bf16.mxu1 %vm1637_vm0, %v6700_v60  ;;  %v6761_v58 = vld [vmem:[%s7254_s12 + $0x360] sm:$0xff]   ;;  %v6762_v60 = vld [vmem:[%s7254_s12 + $0x128] sm:$0xff]  }
  0xa8   : > { %6209 = vmatprep.mubr.msk.bf16.mxu0 %vm1637_vm0, %v6701_v62  ;;  %6238 = vmatpush3.bf16.msra.mxu0 %v6715_v61  ;;  %v6764_v61 = vld [vmem:[%s7254_s12 + $0x368] sm:$0xff]   ;;  %v6766_v62 = vld [vmem:[%s7254_s12 + $0x130] sm:$0xff]  }
  0xa9   : > { %6239 = vmatprep.subr.bf16.mxu0 %v6725_v3 }
  0xac   : > { %6240 = vmatpush3.bf16.msra.mxu0 %v6725_v3  ;;  %v6770_v3 = vld [vmem:[%s7254_s12 + $0x140] sm:$0xff]  }
  0xad   : > { %6273 = vmatprep.subr.bf16.mxu0 %v6735_v8 }
  0xae   : > { %6026 = vmatmul.mubr.msk.bf16.gmra.mrb[24].mxu1 %vm1637_vm0, %v6702_v63  ;;  %v6767_v63 = vld [vmem:[%s7254_s12 + $0x370] sm:$0xff]  }
  0xaf   : > { %6210 = vmatmul.mubr.msk.bf16.gmra.mrb[8].mxu0 %vm1637_vm0, %v6704_v0  ;;  %6029 = vmatprep.mubr.msk.bf16.mxu1 %vm1637_vm0, %v6706_v1  ;;  %v6840_v0 = vld [vmem:[%s7751_s1 + $0x80] sm:$0xff]   ;;  %v6768_v1 = vld [vmem:[%s7254_s12 + $0x138] sm:$0xff]  }
  0xb0   : > { %6213 = vmatprep.mubr.msk.bf16.mxu0 %vm1637_vm0, %v6707_v2  ;;  %v6769_v2 = vld [vmem:[%s7254_s12 + $0x378] sm:$0xff]  }
  0xb6   : > { %6030 = vmatmul.mubr.msk.bf16.gmra.mrb[28].mxu1 %vm1637_vm0, %v6708_v4  ;;  %v6771_v4 = vld [vmem:[%s7254_s12 + $0x380] sm:$0xff]  }
  0xb7   : > { %6214 = vmatmul.mubr.msk.bf16.gmra.mrb[12].mxu0 %vm1637_vm0, %v6709_v5  ;;  %6041 = vmatprep.mubr.msk.bf16.mxu1 %vm1637_vm0, %v6710_v6  ;;  %v6772_v5 = vld [vmem:[%s7254_s12 + $0x148] sm:$0xff]  }
  0xb8   : > { %6217 = vmatprep.mubr.msk.bf16.mxu0 %vm1637_vm0, %v6711_v7  ;;  %v6774_v6 = vld [vmem:[%s7254_s12 + $0x388] sm:$0xff]   ;;  %v6776_v7 = vld [vmem:[%s7254_s12 + $0x150] sm:$0xff]  }
  0xbe   : > { %6042 = vmatmul.mubr.msk.bf16.vlgmr.msra.gmra.mrb[0].mxu1 %vm1637_vm0, %v6712_v9  ;;  %v6785_v9 = vld [vmem:[%s7751_s1 + $0x108] sm:$0xff]  }
  0xbf   : > { %6218 = vmatmul.mubr.msk.bf16.gmra.mrb[16].mxu0 %vm1637_vm0, %v6714_v10  ;;  %6074 = vmatpush3.bf16.msra.mxu1 %v6713_v59  ;;  %v6783_v59 = vld [vmem:[%s7751_s1 + $0x78] sm:$0xff]   ;;  %v6794_v10 = vld [vmem:[%s7751_s1 + $0x110] sm:$0xff]  }
  0xc0   : > { %6045 = vmatprep.mubr.msk.bf16.mxu1 %vm1637_vm0, %v6716_v11  ;;  %6221 = vmatprep.mubr.msk.bf16.mxu0 %vm1637_vm0, %v6717_v12  ;;  %v6778_v11 = vld [vmem:[%s7254_s12 + $0x158] sm:$0xff]  }
  0xc1   : > { %6075 = vmatprep.subr.bf16.mxu1 %v6723_v13  ;;  %v6779_v12 = vld [vmem:[%s7254_s12 + $0x398] sm:$0xff]  }
  0xc3   : > { %6076 = vmatpush3.bf16.msra.mxu1 %v6723_v13  ;;  %v6780_v13 = vld [vmem:[%s7254_s12 + $0x160] sm:$0xff]  }
  0xc4   : > { %6077 = vmatprep.subr.bf16.mxu1 %v6733_v14 }
  0xc6   : > { %6046 = vmatmul.mubr.msk.bf16.gmra.mrb[4].mxu1 %vm1637_vm0, %v6718_v15  ;;  %v6803_v15 = vld [vmem:[%s7751_s1 + $0x118] sm:$0xff]  }
  0xc7   : > { %6222 = vmatmul.mubr.msk.bf16.gmra.mrb[20].mxu0 %vm1637_vm0, %v6719_v16  ;;  %6049 = vmatprep.mubr.msk.bf16.mxu1 %vm1637_vm0, %v6720_v17  ;;  %v6782_v16 = vld [vmem:[%s7254_s12 + $0x168] sm:$0xff]  }
  0xc8   : > { %6225 = vmatprep.mubr.msk.bf16.mxu0 %vm1637_vm0, %v6721_v18  ;;  %6078 = vmatpush3.bf16.msra.mxu1 %v6733_v14  ;;  %v6781_v14 = vld [vmem:[%s7254_s12 + $0x3a0] sm:$0xff]   ;;  %v6784_v17 = vld [vmem:[%s7254_s12 + $0x3a8] sm:$0xff]   ;;  %v6786_v18 = vld [vmem:[%s7254_s12 + $0x170] sm:$0xff]  }
  0xc9   : > { %6079 = vmatprep.subr.bf16.mxu1 %v6743_v19 }
  0xcc   : > { %6080 = vmatpush3.bf16.msra.mxu1 %v6743_v19  ;;  %v6787_v19 = vld [vmem:[%s7254_s12 + $0x3b0] sm:$0xff]  }
  0xcd   : > { %6113 = vmatprep.subr.bf16.mxu1 %v7426_v21 }
  0xce   : > { %6050 = vmatmul.mubr.msk.bf16.gmra.mrb[8].mxu1 %vm1637_vm0, %v6722_v20  ;;  %v6788_v20 = vld [vmem:[%s7254_s12 + $0x178] sm:$0xff]  }
  0xcf   : > { %6226 = vmatmul.mubr.msk.bf16.gmra.mrb[24].mxu0 %vm1637_vm0, %v6724_v22  ;;  %6053 = vmatprep.mubr.msk.bf16.mxu1 %vm1637_vm0, %v6726_v23  ;;  %v6790_v22 = vld [vmem:[%s7254_s12 + $0x180] sm:$0xff]  }
  0xd0   : > { %6229 = vmatprep.mubr.msk.bf16.mxu0 %vm1637_vm0, %v6727_v24  ;;  %v6791_v23 = vld [vmem:[%s7254_s12 + $0x3c0] sm:$0xff]   ;;  %v6792_v24 = vld [vmem:[%s7254_s12 + $0x188] sm:$0xff]  }
  0xd6   : > { %6054 = vmatmul.mubr.msk.bf16.gmra.mrb[12].mxu1 %vm1637_vm0, %v6728_v25  ;;  %v6793_v25 = vld [vmem:[%s7254_s12 + $0x3c8] sm:$0xff]  }
  0xd7   : > { %6230 = vmatmul.mubr.msk.bf16.gmra.mrb[28].mxu0 %vm1637_vm0, %v6729_v26  ;;  %6057 = vmatprep.mubr.msk.bf16.mxu1 %vm1637_vm0, %v6730_v27  ;;  %v6795_v26 = vld [vmem:[%s7254_s12 + $0x190] sm:$0xff]  }
  0xd8   : > { %6241 = vmatprep.mubr.msk.bf16.mxu0 %vm1637_vm0, %v6731_v28  ;;  %v6796_v27 = vld [vmem:[%s7254_s12 + $0x3d0] sm:$0xff]   ;;  %v6841_v28 = vld [vmem:[%s7751_s1 + $0x88] sm:$0xff]  }
  0xde   : > { %6058 = vmatmul.mubr.msk.bf16.gmra.mrb[16].mxu1 %vm1637_vm0, %v6732_v29  ;;  %v6797_v29 = vld [vmem:[%s7254_s12 + $0x198] sm:$0xff]  }
  0xdf   : > { %6242 = vmatmul.mubr.msk.bf16.vlgmr.msra.gmra.mrb[0].mxu0 %vm1637_vm0, %v6734_v30  ;;  %6061 = vmatprep.mubr.msk.bf16.mxu1 %vm1637_vm0, %v6736_v31  ;;  %v6798_v30 = vld [vmem:[%s7254_s12 + $0x3d8] sm:$0xff]   ;;  %v6799_v31 = vld [vmem:[%s7254_s12 + $0x1a0] sm:$0xff]  }
  0xe0   : > { %6274 = vmatpush3.bf16.msra.mxu0 %v6735_v8  ;;  %6245 = vmatprep.mubr.msk.bf16.mxu0 %vm1637_vm0, %v6737_v32  ;;  %v6777_v8 = vld [vmem:[%s7254_s12 + $0x390] sm:$0xff]   ;;  %v6800_v32 = vld [vmem:[%s7254_s12 + $0x3e0] sm:$0xff]  }
  0xe1   : > { %6275 = vmatprep.subr.bf16.mxu0 %v6745_v33 }
  0xe4   : > { %6276 = vmatpush3.bf16.msra.mxu0 %v6745_v33  ;;  %v6842_v33 = vld [vmem:[%s7751_s1 + $0x90] sm:$0xff]  }
  0xe5   : > { %6277 = vmatprep.subr.bf16.mxu0 %v6755_v35 }
  0xe6   : > { %6062 = vmatmul.mubr.msk.bf16.gmra.mrb[20].mxu1 %vm1637_vm0, %v6738_v34  ;;  %v6843_v34 = vld [vmem:[%s7751_s1 + $0x98] sm:$0xff]  }
  0xe7   : > { %6246 = vmatmul.mubr.msk.bf16.gmra.mrb[4].mxu0 %vm1637_vm0, %v6739_v36  ;;  %6065 = vmatprep.mubr.msk.bf16.mxu1 %vm1637_vm0, %v6740_v37  ;;  %v6802_v36 = vld [vmem:[%s7254_s12 + $0x3e8] sm:$0xff]   ;;  %v6804_v37 = vld [vmem:[%s7254_s12 + $0x1b0] sm:$0xff]  }
  0xe8   : > { %6249 = vmatprep.mubr.msk.bf16.mxu0 %vm1637_vm0, %v6741_v38  ;;  %6278 = vmatpush3.bf16.msra.mxu0 %v6755_v35  ;;  %v6801_v35 = vld [vmem:[%s7254_s12 + $0x1a8] sm:$0xff]   ;;  %v6805_v38 = vld [vmem:[%s7254_s12 + $0x3f0] sm:$0xff]  }
  0xe9   : > { %6279 = vmatprep.subr.bf16.mxu0 %v6765_v39 }
  0xec   : > { %6280 = vmatpush3.bf16.msra.mxu0 %v6765_v39  ;;  %v6806_v39 = vld [vmem:[%s7254_s12 + $0x1b8] sm:$0xff]  }
  0xed   : > { %6313 = vmatprep.subr.bf16.mxu0 %v7473_v41 }
  0xee   : > { %6066 = vmatmul.mubr.msk.bf16.gmra.mrb[24].mxu1 %vm1637_vm0, %v6742_v40  ;;  %v6807_v40 = vld [vmem:[%s7254_s12 + $0x3f8] sm:$0xff]  }
  0xef   : > { %6250 = vmatmul.mubr.msk.bf16.gmra.mrb[8].mxu0 %vm1637_vm0, %v6744_v42  ;;  %6069 = vmatprep.mubr.msk.bf16.mxu1 %vm1637_vm0, %v6746_v43  ;;  %v6809_v42 = vld [vmem:[%s7254_s12 + $0x400] sm:$0xff]   ;;  %v6810_v43 = vld [vmem:[%s7254_s12 + $0x1c8] sm:$0xff]  }
  0xf0   : > { %6253 = vmatprep.mubr.msk.bf16.mxu0 %vm1637_vm0, %v6747_v44  ;;  %v6811_v44 = vld [vmem:[%s7254_s12 + $0x408] sm:$0xff]  }
  0xf6   : > { %6070 = vmatmul.mubr.msk.bf16.gmra.mrb[28].mxu1 %vm1637_vm0, %v6748_v45  ;;  %v6812_v45 = vld [vmem:[%s7254_s12 + $0x1d0] sm:$0xff]  }
  0xf7   : > { %6254 = vmatmul.mubr.msk.bf16.gmra.mrb[12].mxu0 %vm1637_vm0, %v6749_v46  ;;  %6081 = vmatprep.mubr.msk.bf16.mxu1 %vm1637_vm0, %v6750_v47  ;;  %v6813_v46 = vld [vmem:[%s7254_s12 + $0x410] sm:$0xff]   ;;  %v6814_v47 = vld [vmem:[%s7254_s12 + $0x1d8] sm:$0xff]  }
  0xf8   : > { %6257 = vmatprep.mubr.msk.bf16.mxu0 %vm1637_vm0, %v6751_v48  ;;  %v6815_v48 = vld [vmem:[%s7254_s12 + $0x418] sm:$0xff]  }
  0xfe   : > { %6082 = vmatmul.mubr.msk.bf16.vlgmr.msra.gmra.mrb[0].mxu1 %vm1637_vm0, %v6752_v49  ;;  %v6816_v49 = vld [vmem:[%s7254_s12 + $0x1e0] sm:$0xff]  }
  0xff   : > { %6258 = vmatmul.mubr.msk.bf16.gmra.mrb[16].mxu0 %vm1637_vm0, %v6754_v50  ;;  %6114 = vmatpush3.bf16.msra.mxu1 %v7426_v21  ;;  %v6789_v21 = vld [vmem:[%s7254_s12 + $0x3b8] sm:$0xff]   ;;  %v6817_v50 = vld [vmem:[%s7254_s12 + $0x420] sm:$0xff]  }
 0x100   : > { %6085 = vmatprep.mubr.msk.bf16.mxu1 %vm1637_vm0, %v6756_v51  ;;  %6261 = vmatprep.mubr.msk.bf16.mxu0 %vm1637_vm0, %v6757_v52  ;;  %v6818_v51 = vld [vmem:[%s7254_s12 + $0x1e8] sm:$0xff]  }
 0x101   : > { %6115 = vmatprep.subr.bf16.mxu1 %v6763_v53  ;;  %v6819_v52 = vld [vmem:[%s7254_s12 + $0x428] sm:$0xff]  }
 0x103   : > { %6116 = vmatpush3.bf16.msra.mxu1 %v6763_v53  ;;  %v6820_v53 = vld [vmem:[%s7254_s12 + $0x1f0] sm:$0xff]  }
 0x104   : > { %6117 = vmatprep.subr.bf16.mxu1 %v6773_v54 }
 0x106   : > { %6086 = vmatmul.mubr.msk.bf16.gmra.mrb[4].mxu1 %vm1637_vm0, %v6758_v55  ;;  %v6822_v55 = vld [vmem:[%s7254_s12 + $0x1f8] sm:$0xff]  }
 0x107   : > { %6262 = vmatmul.mubr.msk.bf16.gmra.mrb[20].mxu0 %vm1637_vm0, %v6759_v56  ;;  %6089 = vmatprep.mubr.msk.bf16.mxu1 %vm1637_vm0, %v6760_v57  ;;  %v6823_v56 = vld [vmem:[%s7254_s12 + $0x438] sm:$0xff]   ;;  %v6824_v57 = vld [vmem:[%s7254_s12 + $0x240] sm:$0xff]  }
 0x108   : > { %6265 = vmatprep.mubr.msk.bf16.mxu0 %vm1637_vm0, %v6761_v58  ;;  %6118 = vmatpush3.bf16.msra.mxu1 %v6773_v54  ;;  %v6821_v54 = vld [vmem:[%s7254_s12 + $0x430] sm:$0xff]   ;;  %v6825_v58 = vld [vmem:[%s7254_s12 + $0x440] sm:$0xff]  }
 0x109   : > { %6119 = vmatprep.subr.bf16.mxu1 %v6783_v59 }
 0x10c   : > { %6120 = vmatpush3.bf16.msra.mxu1 %v6783_v59  ;;  %v6826_v59 = vld [vmem:[%s7254_s12 + $0x248] sm:$0xff]  }
 0x10d   : > { %6353 = vmatprep.subr.bf16.mxu1 %v6840_v0 }
 0x10e   : > { %6090 = vmatmul.mubr.msk.bf16.gmra.mrb[8].mxu1 %vm1637_vm0, %v6762_v60  ;;  %v6827_v60 = vld [vmem:[%s7254_s12 + $0x448] sm:$0xff]  }
 0x10f   : > { %6266 = vmatmul.mubr.msk.bf16.gmra.mrb[24].mxu0 %vm1637_vm0, %v6764_v61  ;;  %6093 = vmatprep.mubr.msk.bf16.mxu1 %vm1637_vm0, %v6766_v62  ;;  %v6828_v61 = vld [vmem:[%s7254_s12 + $0x250] sm:$0xff]  }
 0x110   : > { %6269 = vmatprep.mubr.msk.bf16.mxu0 %vm1637_vm0, %v6767_v63  ;;  %v6829_v62 = vld [vmem:[%s7254_s12 + $0x450] sm:$0xff]   ;;  %v6830_v63 = vld [vmem:[%s7254_s12 + $0x258] sm:$0xff]  }
 0x116   : > { %6094 = vmatmul.mubr.msk.bf16.gmra.mrb[12].mxu1 %vm1637_vm0, %v6768_v1  ;;  %v6832_v1 = vld [vmem:[%s7254_s12 + $0x260] sm:$0xff]  }
 0x117   : > { %6270 = vmatmul.mubr.msk.bf16.gmra.mrb[28].mxu0 %vm1637_vm0, %v6769_v2  ;;  %6097 = vmatprep.mubr.msk.bf16.mxu1 %vm1637_vm0, %v6770_v3  ;;  %v6833_v2 = vld [vmem:[%s7254_s12 + $0x460] sm:$0xff]   ;;  %v6834_v3 = vld [vmem:[%s7254_s12 + $0x268] sm:$0xff]  }
 0x118   : > { %6281 = vmatprep.mubr.msk.bf16.mxu0 %vm1637_vm0, %v6771_v4  ;;  %v6835_v4 = vld [vmem:[%s7254_s12 + $0x468] sm:$0xff]  }
 0x11e   : > { %6098 = vmatmul.mubr.msk.bf16.gmra.mrb[16].mxu1 %vm1637_vm0, %v6772_v5  ;;  %v6836_v5 = vld [vmem:[%s7254_s12 + $0x270] sm:$0xff]  }
 0x11f   : > { %6282 = vmatmul.mubr.msk.bf16.vlgmr.msra.gmra.mrb[0].mxu0 %vm1637_vm0, %v6774_v6  ;;  %6101 = vmatprep.mubr.msk.bf16.mxu1 %vm1637_vm0, %v6776_v7  ;;  %v6837_v6 = vld [vmem:[%s7254_s12 + $0x470] sm:$0xff]   ;;  %v6838_v7 = vld [vmem:[%s7254_s12 + $0x278] sm:$0xff]  }
 0x120   : > { %6314 = vmatpush3.bf16.msra.mxu0 %v7473_v41  ;;  %6285 = vmatprep.mubr.msk.bf16.mxu0 %vm1637_vm0, %v6777_v8  ;;  %v6808_v41 = vld [vmem:[%s7254_s12 + $0x1c0] sm:$0xff]   ;;  %v6839_v8 = vld [vmem:[%s7254_s12 + $0x478] sm:$0xff]  }
 0x121   : > { %6315 = vmatprep.subr.bf16.mxu0 %v6785_v9 }
 0x124   : > { %6316 = vmatpush3.bf16.msra.mxu0 %v6785_v9 }
 0x125   : > { %6317 = vmatprep.subr.bf16.mxu0 %v6794_v10 }
 0x126   : > { %6102 = vmatmul.mubr.msk.bf16.gmra.mrb[20].mxu1 %vm1637_vm0, %v6778_v11 }
 0x127   : > { %6286 = vmatmul.mubr.msk.bf16.gmra.mrb[4].mxu0 %vm1637_vm0, %v6779_v12  ;;  %6105 = vmatprep.mubr.msk.bf16.mxu1 %vm1637_vm0, %v6780_v13 }
 0x128   : > { %6289 = vmatprep.mubr.msk.bf16.mxu0 %vm1637_vm0, %v6781_v14  ;;  %6318 = vmatpush3.bf16.msra.mxu0 %v6794_v10 }
 0x129   : > { %6319 = vmatprep.subr.bf16.mxu0 %v6803_v15 }
 0x12c   : > { %6320 = vmatpush3.bf16.msra.mxu0 %v6803_v15 }
 0x12e   : > { %6106 = vmatmul.mubr.msk.bf16.gmra.mrb[24].mxu1 %vm1637_vm0, %v6782_v16 }
 0x12f   : > { %6290 = vmatmul.mubr.msk.bf16.gmra.mrb[8].mxu0 %vm1637_vm0, %v6784_v17  ;;  %6109 = vmatprep.mubr.msk.bf16.mxu1 %vm1637_vm0, %v6786_v18 }
 0x130   : > { %6293 = vmatprep.mubr.msk.bf16.mxu0 %vm1637_vm0, %v6787_v19 }
 0x136   : > { %6110 = vmatmul.mubr.msk.bf16.gmra.mrb[28].mxu1 %vm1637_vm0, %v6788_v20 }
 0x137   : > { %6294 = vmatmul.mubr.msk.bf16.gmra.mrb[12].mxu0 %vm1637_vm0, %v6789_v21  ;;  %6121 = vmatprep.mubr.msk.bf16.mxu1 %vm1637_vm0, %v6790_v22 }
 0x138   : > { %6297 = vmatprep.mubr.msk.bf16.mxu0 %vm1637_vm0, %v6791_v23 }
 0x13e   : > { %6122 = vmatmul.mubr.msk.bf16.vlgmr.msra.gmra.mrb[0].mxu1 %vm1637_vm0, %v6792_v24 }
 0x13f   : > { %6298 = vmatmul.mubr.msk.bf16.gmra.mrb[16].mxu0 %vm1637_vm0, %v6793_v25  ;;  %6357 = vmatpush3.bf16.msra.mxu1 %v6840_v0  ;;  %v6831_v0 = vld [vmem:[%s7254_s12 + $0x458] sm:$0xff]  }
 0x140   : > { %6125 = vmatprep.mubr.msk.bf16.mxu1 %vm1637_vm0, %v6795_v26  ;;  %6301 = vmatprep.mubr.msk.bf16.mxu0 %vm1637_vm0, %v6796_v27 }
 0x141   : > { %6354 = vmatprep.subr.bf16.mxu1 %v6841_v28 }
 0x143   : > { %6358 = vmatpush3.bf16.msra.mxu1 %v6841_v28 }
 0x144   : > { %6355 = vmatprep.subr.bf16.mxu1 %v6842_v33 }
 0x146   : > { %6126 = vmatmul.mubr.msk.bf16.gmra.mrb[4].mxu1 %vm1637_vm0, %v6797_v29 }
 0x147   : > { %6302 = vmatmul.mubr.msk.bf16.gmra.mrb[20].mxu0 %vm1637_vm0, %v6798_v30  ;;  %6129 = vmatprep.mubr.msk.bf16.mxu1 %vm1637_vm0, %v6799_v31 }
 0x148   : > { %6305 = vmatprep.mubr.msk.bf16.mxu0 %vm1637_vm0, %v6800_v32  ;;  %6359 = vmatpush3.bf16.msra.mxu1 %v6842_v33 }
 0x149   : > { %6356 = vmatprep.subr.bf16.mxu1 %v6843_v34 }
 0x14c   : > { %6360 = vmatpush3.bf16.msra.mxu1 %v6843_v34 }
 0x14e   : > { %6130 = vmatmul.mubr.msk.bf16.gmra.mrb[8].mxu1 %vm1637_vm0, %v6801_v35 }
 0x14f   : > { %6306 = vmatmul.mubr.msk.bf16.gmra.mrb[24].mxu0 %vm1637_vm0, %v6802_v36  ;;  %6133 = vmatprep.mubr.msk.bf16.mxu1 %vm1637_vm0, %v6804_v37 }
 0x150   : > { %6309 = vmatprep.mubr.msk.bf16.mxu0 %vm1637_vm0, %v6805_v38 }
 0x156   : > { %6134 = vmatmul.mubr.msk.bf16.gmra.mrb[12].mxu1 %vm1637_vm0, %v6806_v39 }
 0x157   : > { %6310 = vmatmul.mubr.msk.bf16.gmra.mrb[28].mxu0 %vm1637_vm0, %v6807_v40  ;;  %6137 = vmatprep.mubr.msk.bf16.mxu1 %vm1637_vm0, %v6808_v41 }
 0x158   : > { %6321 = vmatprep.mubr.msk.bf16.mxu0 %vm1637_vm0, %v6809_v42 }
 0x15e   : > { %6138 = vmatmul.mubr.msk.bf16.gmra.mrb[16].mxu1 %vm1637_vm0, %v6810_v43 }
 0x15f   : > { %6322 = vmatmul.mubr.msk.bf16.vlgmr.msra.gmra.mrb[0].mxu0 %vm1637_vm0, %v6811_v44  ;;  %6141 = vmatprep.mubr.msk.bf16.mxu1 %vm1637_vm0, %v6812_v45 }
 0x160   : > { %6325 = vmatprep.mubr.msk.bf16.mxu0 %vm1637_vm0, %v6813_v46 }
 0x166   : > { %6142 = vmatmul.mubr.msk.bf16.gmra.mrb[20].mxu1 %vm1637_vm0, %v6814_v47 }
 0x167   : > { %6326 = vmatmul.mubr.msk.bf16.gmra.mrb[4].mxu0 %vm1637_vm0, %v6815_v48  ;;  %6145 = vmatprep.mubr.msk.bf16.mxu1 %vm1637_vm0, %v6816_v49 }
 0x168   : > { %6329 = vmatprep.mubr.msk.bf16.mxu0 %vm1637_vm0, %v6817_v50 }
 0x16e   : > { %6146 = vmatmul.mubr.msk.bf16.gmra.mrb[24].mxu1 %vm1637_vm0, %v6818_v51 }
 0x16f   : > { %6330 = vmatmul.mubr.msk.bf16.gmra.mrb[8].mxu0 %vm1637_vm0, %v6819_v52  ;;  %6149 = vmatprep.mubr.msk.bf16.mxu1 %vm1637_vm0, %v6820_v53 }
 0x170   : > { %6333 = vmatprep.mubr.msk.bf16.mxu0 %vm1637_vm0, %v6821_v54 }
 0x176   : > { %6150 = vmatmul.mubr.msk.bf16.gmra.mrb[28].mxu1 %vm1637_vm0, %v6822_v55 }
 0x177   : > { %6334 = vmatmul.mubr.msk.bf16.gmra.mrb[12].mxu0 %vm1637_vm0, %v6823_v56  ;;  %6177 = vmatprep.mubr.msk.bf16.mxu1 %vm1637_vm0, %v6824_v57 }
 0x178   : > { %6337 = vmatprep.mubr.msk.bf16.mxu0 %vm1637_vm0, %v6825_v58 }
 0x17e   : > { %6178 = vmatmul.mubr.msk.bf16.vlgmr.msra.gmra.mrb[16].mxu1 %vm1637_vm0, %v6826_v59 }
 0x17f   : > { %6338 = vmatmul.mubr.msk.bf16.gmra.mrb[16].mxu0 %vm1637_vm0, %v6827_v60  ;;  %6181 = vmatprep.mubr.msk.bf16.mxu1 %vm1637_vm0, %v6828_v61 }
 0x180   : > { %6341 = vmatprep.mubr.msk.bf16.mxu0 %vm1637_vm0, %v6829_v62 }
 0x186   : > { %6182 = vmatmul.mubr.msk.bf16.gmra.mrb[20].mxu1 %vm1637_vm0, %v6830_v63 }
 0x187   : > { %6342 = vmatmul.mubr.msk.bf16.gmra.mrb[20].mxu0 %vm1637_vm0, %v6831_v0  ;;  %6185 = vmatprep.mubr.msk.bf16.mxu1 %vm1637_vm0, %v6832_v1 }
 0x188   : > { %6345 = vmatprep.mubr.msk.bf16.mxu0 %vm1637_vm0, %v6833_v2 }
 0x18e   : > { %6186 = vmatmul.mubr.msk.bf16.gmra.mrb[24].mxu1 %vm1637_vm0, %v6834_v3 }
 0x18f   : > { %6346 = vmatmul.mubr.msk.bf16.gmra.mrb[24].mxu0 %vm1637_vm0, %v6835_v4  ;;  %6189 = vmatprep.mubr.msk.bf16.mxu1 %vm1637_vm0, %v6836_v5 }
 0x190   : > { %6349 = vmatprep.mubr.msk.bf16.mxu0 %vm1637_vm0, %v6837_v6 }
 0x196   : > { %6190 = vmatmul.mubr.msk.bf16.gmra.mrb[28].mxu1 %vm1637_vm0, %v6838_v7 }
 0x197   : > { %6350 = vmatmul.mubr.msk.bf16.gmra.mrb[28].mxu0 %vm1637_vm0, %v6839_v8 }
 0x211   : > { %v6123_v9 = vpop.f32.mrb[0].mxu1 }
 0x212   : > { %v2775_v10 = vpop.f32.mrb[1].mxu1 }
 0x213   : > { %v6124_v11 = vpop.f32.mrb[2].mxu1 }
 0x214   : > { %v2778_v12 = vpop.f32.mrb[3].mxu1 }
 0x219   : > { %v6127_v13 = vpop.f32.mrb[4].mxu1 }
 0x21a   : > { %v2791_v14 = vpop.f32.mrb[5].mxu1 }
 0x21b   : > { %v6128_v15 = vpop.f32.mrb[6].mxu1 }
 0x21c   : > { %v2794_v16 = vpop.f32.mrb[7].mxu1 }
 0x221   : > { %v6131_v17 = vpop.f32.mrb[8].mxu1 }
 0x222   : > { %v2807_v18 = vpop.f32.mrb[9].mxu1 }
 0x223   : > { %v6132_v19 = vpop.f32.mrb[10].mxu1 }
 0x224   : > { %v2810_v20 = vpop.f32.mrb[11].mxu1 }
 0x229   : > { %v7679_v21 = vpop.f32.mrb[12].mxu1 }
 0x22a   : > { %v7681_v22 = vpop.f32.mrb[13].mxu1 }
 0x22b   : > { %v7683_v23 = vpop.f32.mrb[14].mxu1 }
 0x22c   : > { %v7685_v24 = vpop.f32.mrb[15].mxu1 }
 0x232   : > { %v6323_v25 = vpop.f32.mrb[0].mxu0 }
 0x233   : > { %v6361_v26 = vadd.f32 %v6323_v25, %v6123_v9  ;;  %v4710_v27 = vpop.f32.mrb[1].mxu0 }
 0x234   : > { %v6362_v28 = vadd.f32 %v4710_v27, %v2775_v10  ;;  %v6324_v29 = vpop.f32.mrb[2].mxu0 }
 0x235   : > { %4871 = vst [vmem:[%s7252_s11 + $0x10] sm:$0xff] %v6361_v26  ;;  %v6363_v30 = vadd.f32 %v6324_v29, %v6124_v11  ;;  %v4713_v31 = vpop.f32.mrb[3].mxu0  ;;  %v4944_v36 = vmul.f32 %v6361_v26, %v6361_v26 }
 0x236   : > { %4869 = vst [vmem:[%s7252_s11] sm:$0xff] %v6362_v28  ;;  %v6364_v32 = vadd.f32 %v4713_v31, %v2778_v12  ;;  %v4942_v33 = vmul.f32 %v6362_v28, %v6362_v28 }
 0x237   : > { %4872 = vst [vmem:[%s7252_s11 + $0x18] sm:$0xff] %v6363_v30  ;;  %v4945_v42 = vmul.f32 %v6363_v30, %v6363_v30 }
 0x238   : > { %4870 = vst [vmem:[%s7252_s11 + $0x8] sm:$0xff] %v6364_v32  ;;  %v4902_v34 = vadd.f32 %v6364_v32, %v6362_v28  ;;  %v4943_v35 = vmul.f32 %v6364_v32, %v6364_v32 }
 0x23a   : > { %v4903_v37 = vadd.f32 %v6361_v26, %v4902_v34  ;;  %v4974_v38 = vadd.f32 %v4943_v35, %v4942_v33  ;;  %v6327_v39 = vpop.f32.mrb[4].mxu0 }
 0x23b   : > { %v6365_v40 = vadd.f32 %v6327_v39, %v6127_v13  ;;  %v4726_v41 = vpop.f32.mrb[5].mxu0 }
 0x23c   : > { %v4975_v43 = vadd.f32 %v4974_v38, %v4944_v36  ;;  %v6366_v44 = vadd.f32 %v4726_v41, %v2791_v14  ;;  %v4904_v45 = vadd.f32 %v6363_v30, %v4903_v37  ;;  %v6328_v46 = vpop.f32.mrb[6].mxu0 }
 0x23d   : > { %4875 = vst [vmem:[%s7252_s11 + $0x30] sm:$0xff] %v6365_v40  ;;  %v6367_v47 = vadd.f32 %v6328_v46, %v6128_v15  ;;  %v4729_v48 = vpop.f32.mrb[7].mxu0  ;;  %v4948_v56 = vmul.f32 %v6365_v40, %v6365_v40 }
 0x23e   : > { %4873 = vst [vmem:[%s7252_s11 + $0x20] sm:$0xff] %v6366_v44  ;;  %v4905_v49 = vadd.f32 %v6366_v44, %v4904_v45  ;;  %v4946_v50 = vmul.f32 %v6366_v44, %v6366_v44  ;;  %v4976_v51 = vadd.f32 %v4975_v43, %v4945_v42  ;;  %v6368_v52 = vadd.f32 %v4729_v48, %v2794_v16 }
 0x23f   : > { %4876 = vst [vmem:[%s7252_s11 + $0x38] sm:$0xff] %v6367_v47  ;;  %v4949_v62 = vmul.f32 %v6367_v47, %v6367_v47 }
 0x240   : > { %v4977_v53 = vadd.f32 %v4976_v51, %v4946_v50  ;;  %4874 = vst [vmem:[%s7252_s11 + $0x28] sm:$0xff] %v6368_v52  ;;  %v4906_v54 = vadd.f32 %v6368_v52, %v4905_v49  ;;  %v4947_v55 = vmul.f32 %v6368_v52, %v6368_v52 }
 0x242   : > { %v4907_v57 = vadd.f32 %v6365_v40, %v4906_v54  ;;  %v4978_v58 = vadd.f32 %v4977_v53, %v4947_v55  ;;  %v6331_v59 = vpop.f32.mrb[8].mxu0 }
 0x243   : > { %v6369_v60 = vadd.f32 %v6331_v59, %v6131_v17  ;;  %v4742_v61 = vpop.f32.mrb[9].mxu0 }
 0x244   : > { %v4979_v63 = vadd.f32 %v4978_v58, %v4948_v56  ;;  %v6370_v0 = vadd.f32 %v4742_v61, %v2807_v18  ;;  %v4908_v1 = vadd.f32 %v6367_v47, %v4907_v57  ;;  %v6332_v2 = vpop.f32.mrb[10].mxu0 }
 0x245   : > { %4879 = vst [vmem:[%s7252_s11 + $0x50] sm:$0xff] %v6369_v60  ;;  %v6371_v3 = vadd.f32 %v6332_v2, %v6132_v19  ;;  %v4745_v4 = vpop.f32.mrb[11].mxu0  ;;  %v4952_v12 = vmul.f32 %v6369_v60, %v6369_v60 }
 0x246   : > { %4877 = vst [vmem:[%s7252_s11 + $0x40] sm:$0xff] %v6370_v0  ;;  %v4909_v5 = vadd.f32 %v6370_v0, %v4908_v1  ;;  %v4950_v6 = vmul.f32 %v6370_v0, %v6370_v0  ;;  %v4980_v7 = vadd.f32 %v4979_v63, %v4949_v62  ;;  %v6372_v8 = vadd.f32 %v4745_v4, %v2810_v20 }
 0x247   : > { %4880 = vst [vmem:[%s7252_s11 + $0x58] sm:$0xff] %v6371_v3  ;;  %v4953_v18 = vmul.f32 %v6371_v3, %v6371_v3 }
 0x248   : > { %v4981_v9 = vadd.f32 %v4980_v7, %v4950_v6  ;;  %4878 = vst [vmem:[%s7252_s11 + $0x48] sm:$0xff] %v6372_v8  ;;  %v4910_v10 = vadd.f32 %v6372_v8, %v4909_v5  ;;  %v4951_v11 = vmul.f32 %v6372_v8, %v6372_v8 }
 0x24a   : > { %v4911_v13 = vadd.f32 %v6369_v60, %v4910_v10  ;;  %v4982_v14 = vadd.f32 %v4981_v9, %v4951_v11  ;;  %v6335_v15 = vpop.f32.mrb[12].mxu0 }
 0x24b   : > { %v6373_v16 = vadd.f32 %v6335_v15, %v7679_v21  ;;  %v4758_v17 = vpop.f32.mrb[13].mxu0 }
 0x24c   : > { %v4983_v19 = vadd.f32 %v4982_v14, %v4952_v12  ;;  %v6374_v20 = vadd.f32 %v4758_v17, %v7681_v22  ;;  %v4912_v25 = vadd.f32 %v6371_v3, %v4911_v13  ;;  %v6336_v26 = vpop.f32.mrb[14].mxu0 }
 0x24d   : > { %4883 = vst [vmem:[%s7252_s11 + $0x70] sm:$0xff] %v6373_v16  ;;  %v6375_v27 = vadd.f32 %v6336_v26, %v7683_v23  ;;  %v4761_v28 = vpop.f32.mrb[15].mxu0  ;;  %v4956_v22 = vmul.f32 %v6373_v16, %v6373_v16 }
 0x24e   : > { %4881 = vst [vmem:[%s7252_s11 + $0x60] sm:$0xff] %v6374_v20  ;;  %v4913_v29 = vadd.f32 %v6374_v20, %v4912_v25  ;;  %v4954_v30 = vmul.f32 %v6374_v20, %v6374_v20  ;;  %v4984_v31 = vadd.f32 %v4983_v19, %v4953_v18  ;;  %v6376_v32 = vadd.f32 %v4761_v28, %v7685_v24 }
 0x24f   : > { %4884 = vst [vmem:[%s7252_s11 + $0x78] sm:$0xff] %v6375_v27  ;;  %v4957_v42 = vmul.f32 %v6375_v27, %v6375_v27 }
 0x250   : > { %v4985_v21 = vadd.f32 %v4984_v31, %v4954_v30  ;;  %4882 = vst [vmem:[%s7252_s11 + $0x68] sm:$0xff] %v6376_v32  ;;  %v4914_v33 = vadd.f32 %v6376_v32, %v4913_v29  ;;  %v4955_v34 = vmul.f32 %v6376_v32, %v6376_v32 }
 0x251   : > { %v6179_v35 = vpop.f32.mrb[16].mxu1 }
 0x252   : > { %v4915_v36 = vadd.f32 %v6373_v16, %v4914_v33  ;;  %v4986_v37 = vadd.f32 %v4985_v21, %v4955_v34  ;;  %v6339_v38 = vpop.f32.mrb[16].mxu0  ;;  %v3226_v23 = vpop.f32.mrb[17].mxu1 }
 0x253   : > { %v6377_v39 = vadd.f32 %v6339_v38, %v6179_v35  ;;  %v4774_v40 = vpop.f32.mrb[17].mxu0  ;;  %v6180_v41 = vpop.f32.mrb[18].mxu1 }
 0x254   : > { %v4987_v24 = vadd.f32 %v4986_v37, %v4956_v22  ;;  %v6378_v43 = vadd.f32 %v4774_v40, %v3226_v23  ;;  %v4916_v44 = vadd.f32 %v6375_v27, %v4915_v36  ;;  %v6340_v45 = vpop.f32.mrb[18].mxu0  ;;  %v3229_v46 = vpop.f32.mrb[19].mxu1 }
 0x255   : > { %4887 = vst [vmem:[%s7252_s11 + $0x90] sm:$0xff] %v6377_v39  ;;  %v6379_v47 = vadd.f32 %v6340_v45, %v6180_v41  ;;  %v4777_v48 = vpop.f32.mrb[19].mxu0  ;;  %v4960_v57 = vmul.f32 %v6377_v39, %v6377_v39 }
 0x256   : > { %4885 = vst [vmem:[%s7252_s11 + $0x80] sm:$0xff] %v6378_v43  ;;  %v4917_v49 = vadd.f32 %v6378_v43, %v4916_v44  ;;  %v4958_v50 = vmul.f32 %v6378_v43, %v6378_v43  ;;  %v4988_v51 = vadd.f32 %v4987_v24, %v4957_v42  ;;  %v6380_v52 = vadd.f32 %v4777_v48, %v3229_v46 }
 0x257   : > { %4888 = vst [vmem:[%s7252_s11 + $0x98] sm:$0xff] %v6379_v47  ;;  %v4961_v1 = vmul.f32 %v6379_v47, %v6379_v47 }
 0x258   : > { %v4989_v53 = vadd.f32 %v4988_v51, %v4958_v50  ;;  %4886 = vst [vmem:[%s7252_s11 + $0x88] sm:$0xff] %v6380_v52  ;;  %v4918_v54 = vadd.f32 %v6380_v52, %v4917_v49  ;;  %v4959_v55 = vmul.f32 %v6380_v52, %v6380_v52 }
 0x259   : > { %v6183_v56 = vpop.f32.mrb[20].mxu1 }
 0x25a   : > { %v4919_v58 = vadd.f32 %v6377_v39, %v4918_v54  ;;  %v4990_v59 = vadd.f32 %v4989_v53, %v4959_v55  ;;  %v6343_v60 = vpop.f32.mrb[20].mxu0  ;;  %v3242_v61 = vpop.f32.mrb[21].mxu1 }
 0x25b   : > { %v6381_v62 = vadd.f32 %v6343_v60, %v6183_v56  ;;  %v4790_v63 = vpop.f32.mrb[21].mxu0  ;;  %v6184_v0 = vpop.f32.mrb[22].mxu1 }
 0x25c   : > { %v4991_v2 = vadd.f32 %v4990_v59, %v4960_v57  ;;  %v6382_v3 = vadd.f32 %v4790_v63, %v3242_v61  ;;  %v4920_v4 = vadd.f32 %v6379_v47, %v4919_v58  ;;  %v6344_v5 = vpop.f32.mrb[22].mxu0  ;;  %v3245_v6 = vpop.f32.mrb[23].mxu1 }
 0x25d   : > { %4891 = vst [vmem:[%s7252_s11 + $0xb0] sm:$0xff] %v6381_v62  ;;  %v6383_v7 = vadd.f32 %v6344_v5, %v6184_v0  ;;  %v4793_v8 = vpop.f32.mrb[23].mxu0  ;;  %v4964_v17 = vmul.f32 %v6381_v62, %v6381_v62 }
 0x25e   : > { %4889 = vst [vmem:[%s7252_s11 + $0xa0] sm:$0xff] %v6382_v3  ;;  %v4921_v9 = vadd.f32 %v6382_v3, %v4920_v4  ;;  %v4962_v10 = vmul.f32 %v6382_v3, %v6382_v3  ;;  %v4992_v11 = vadd.f32 %v4991_v2, %v4961_v1  ;;  %v6384_v12 = vadd.f32 %v4793_v8, %v3245_v6 }
 0x25f   : > { %4892 = vst [vmem:[%s7252_s11 + $0xb8] sm:$0xff] %v6383_v7  ;;  %v4965_v29 = vmul.f32 %v6383_v7, %v6383_v7 }
 0x260   : > { %v4993_v13 = vadd.f32 %v4992_v11, %v4962_v10  ;;  %4890 = vst [vmem:[%s7252_s11 + $0xa8] sm:$0xff] %v6384_v12  ;;  %v4922_v14 = vadd.f32 %v6384_v12, %v4921_v9  ;;  %v4963_v15 = vmul.f32 %v6384_v12, %v6384_v12 }
 0x261   : > { %v6187_v16 = vpop.f32.mrb[24].mxu1 }
 0x262   : > { %v4923_v18 = vadd.f32 %v6381_v62, %v4922_v14  ;;  %v4994_v19 = vadd.f32 %v4993_v13, %v4963_v15  ;;  %v6347_v20 = vpop.f32.mrb[24].mxu0  ;;  %v3258_v25 = vpop.f32.mrb[25].mxu1 }
 0x263   : > { %v6385_v26 = vadd.f32 %v6347_v20, %v6187_v16  ;;  %v4806_v27 = vpop.f32.mrb[25].mxu0  ;;  %v6188_v28 = vpop.f32.mrb[26].mxu1  ;;  %v4901_v16 = vld [vmem:[%s7753_s3] sm:$0x1] }
 0x264   : > { %v4995_v30 = vadd.f32 %v4994_v19, %v4964_v17  ;;  %v6386_v31 = vadd.f32 %v4806_v27, %v3258_v25  ;;  %v4924_v32 = vadd.f32 %v6383_v7, %v4923_v18  ;;  %v6348_v21 = vpop.f32.mrb[26].mxu0  ;;  %v3261_v33 = vpop.f32.mrb[27].mxu1  ;;  %v4941_v19 = vld [vmem:[%s7754_s4] sm:$0x1] }
 0x265   : > { %4895 = vst [vmem:[%s7252_s11 + $0xd0] sm:$0xff] %v6385_v26  ;;  %v6387_v34 = vadd.f32 %v6348_v21, %v6188_v28  ;;  %v4809_v35 = vpop.f32.mrb[27].mxu0  ;;  %v4968_v42 = vmul.f32 %v6385_v26, %v6385_v26 }
 0x266   : > { %4893 = vst [vmem:[%s7252_s11 + $0xc0] sm:$0xff] %v6386_v31  ;;  %v4925_v22 = vadd.f32 %v6386_v31, %v4924_v32  ;;  %v4966_v36 = vmul.f32 %v6386_v31, %v6386_v31  ;;  %v4996_v37 = vadd.f32 %v4995_v30, %v4965_v29  ;;  %v6388_v38 = vadd.f32 %v4809_v35, %v3261_v33 }
 0x267   : > { %4896 = vst [vmem:[%s7252_s11 + $0xd8] sm:$0xff] %v6387_v34  ;;  %v4969_v49 = vmul.f32 %v6387_v34, %v6387_v34 }
 0x268   : > { %v4997_v23 = vadd.f32 %v4996_v37, %v4966_v36  ;;  %4894 = vst [vmem:[%s7252_s11 + $0xc8] sm:$0xff] %v6388_v38  ;;  %v4926_v39 = vadd.f32 %v6388_v38, %v4925_v22  ;;  %v4967_v40 = vmul.f32 %v6388_v38, %v6388_v38 }
 0x269   : > { %v6191_v41 = vpop.f32.mrb[28].mxu1 }
 0x26a   : > { %v4927_v24 = vadd.f32 %v6385_v26, %v4926_v39  ;;  %v4998_v43 = vadd.f32 %v4997_v23, %v4967_v40  ;;  %v6351_v44 = vpop.f32.mrb[28].mxu0  ;;  %v3274_v45 = vpop.f32.mrb[29].mxu1 }
 0x26b   : > { %v6389_v46 = vadd.f32 %v6351_v44, %v6191_v41  ;;  %v4822_v47 = vpop.f32.mrb[29].mxu0  ;;  %v6192_v48 = vpop.f32.mrb[30].mxu1 }
 0x26c   : > { %v4999_v50 = vadd.f32 %v4998_v43, %v4968_v42  ;;  %v6390_v51 = vadd.f32 %v4822_v47, %v3274_v45  ;;  %v4928_v52 = vadd.f32 %v6387_v34, %v4927_v24  ;;  %v6352_v53 = vpop.f32.mrb[30].mxu0  ;;  %v3277_v54 = vpop.f32.mrb[31].mxu1 }
 0x26d   : > { %4899 = vst [vmem:[%s7252_s11 + $0xf0] sm:$0xff] %v6389_v46  ;;  %v6391_v55 = vadd.f32 %v6352_v53, %v6192_v48  ;;  %v4825_v56 = vpop.f32.mrb[31].mxu0  ;;  %v4972_v0 = vmul.f32 %v6389_v46, %v6389_v46 }
 0x26e   : > { %4897 = vst [vmem:[%s7252_s11 + $0xe0] sm:$0xff] %v6390_v51  ;;  %v4929_v57 = vadd.f32 %v6390_v51, %v4928_v52  ;;  %v4970_v58 = vmul.f32 %v6390_v51, %v6390_v51  ;;  %v5000_v59 = vadd.f32 %v4999_v50, %v4969_v49  ;;  %v6392_v60 = vadd.f32 %v4825_v56, %v3277_v54 }
 0x26f   : > { %4900 = vst [vmem:[%s7252_s11 + $0xf8] sm:$0xff] %v6391_v55  ;;  %v4973_v3 = vmul.f32 %v6391_v55, %v6391_v55 }
 0x270   : > { %v5001_v61 = vadd.f32 %v5000_v59, %v4970_v58  ;;  %4898 = vst [vmem:[%s7252_s11 + $0xe8] sm:$0xff] %v6392_v60  ;;  %v4930_v62 = vadd.f32 %v6392_v60, %v4929_v57  ;;  %v4971_v63 = vmul.f32 %v6392_v60, %v6392_v60 }
 0x272   : > { %v4931_v1 = vadd.f32 %v6389_v46, %v4930_v62  ;;  %v5002_v2 = vadd.f32 %v5001_v61, %v4971_v63 }
 0x274   : > { %v4932_v4 = vadd.f32 %v6391_v55, %v4931_v1  ;;  %v5003_v5 = vadd.f32 %v5002_v2, %v4972_v0 }
 0x276   : > { %v4933_v6 = vrot.slane %v4932_v4, 4  ;;  %v5004_v7 = vadd.f32 %v5003_v5, %v4973_v3 }
 0x278   : > { %v4934_v8 = vadd.f32 %v4933_v6, %v4932_v4  ;;  %v5005_v9 = vrot.slane %v5004_v7, 4 }
 0x27a   : > { %v4935_v10 = vrot.slane %v4934_v8, 2  ;;  %v5006_v11 = vadd.f32 %v5005_v9, %v5004_v7 }
 0x27c   : > { %v4936_v12 = vadd.f32 %v4935_v10, %v4934_v8  ;;  %v5007_v13 = vrot.slane %v5006_v11, 2 }
 0x27e   : > { %v4937_v14 = vrot.slane %v4936_v12, 1  ;;  %v5008_v15 = vadd.f32 %v5007_v13, %v5006_v11 }
 0x280   : > { %v4938_v17 = vadd.f32 %v4937_v14, %v4936_v12  ;;  %v5009_v18 = vrot.slane %v5008_v15, 1 }
 0x282   : > { %v4939_v20 = vadd.f32 %v4938_v17, %v4901_v16  ;;  %v5010_v25 = vadd.f32 %v5009_v18, %v5008_v15 }
 0x284   : > { %4940 = vst [vmem:[%s7753_s3] sm:$0x1] %v4939_v20  ;;  %v5011_v26 = vadd.f32 %v5010_v25, %v4941_v19 }
 0x286   : > { %5012 = vst [vmem:[%s7754_s4] sm:$0x1] %v5011_v26 }
 0x287 PF: > { %s15_s19 = sadd.s32 1, %s6882_s19   ;;  %s7755_s15 = smov %s6870_s16 }
 0x288   : > { %p12_p11 = scmp.ge.s32.totalorder %s15_s19, 4   ;;  %s7756_s16 = smov %s6945_s23 }
 0x289   : > { %s7757_s17 = smov %s6878_s18  ;;  %s7758_s18 = smov %s7760_s20 }
 0x28a   :  { %14 = sbr.rel (!%p12_p11) target bundleno = 3 (0x3), region = 151 }

// kernel: reduction_block_a.16
= control target key start
LH: loop header
LB: loop body
LE: loop exit
PB: predicated region body
PF: predicated region fallthrough
CT: control target
= control target key end

     0   :  { %s480_s0 = inlined_call_operand.vmem [shape: f32[256,128], index: 0, kind: input, shape index: {}]   ;;  %s481_s1 = inlined_call_operand.vmem [shape: f32[1,128], index: 1, kind: input, shape index: {}]   ;;  %s482_s2 = inlined_call_operand.vmem [shape: f32[1,128], index: 2, kind: input, shape index: {}]   ;;  %s483_s3 = inlined_call_operand.vmem [shape: f32[256,128], index: 3, kind: output, shape index: {}]  }
   0x1   :  { %v14_v0 = vld [vmem:[%s480_s0] sm:$0xff]  ;;  %v15_v4 = vld [vmem:[%s480_s0 + $0x8] sm:$0xff]  ;;  %v16_v5 = vld [vmem:[%s480_s0 + $0x10] sm:$0xff] }
   0x2   :  { %v220_v1 = vld [vmem:[%s481_s1] ss:$0 sm:$0xff]  ;;  %v17_v6 = vld [vmem:[%s480_s0 + $0x18] sm:$0xff]  ;;  %v19_v11 = vld [vmem:[%s480_s0 + $0x28] sm:$0xff] }
   0x3   :  { %v225_v2 = vld [vmem:[%s482_s2] ss:$0 sm:$0xff]  ;;  %v53_v3 = vmul.f32 %v220_v1, %v14_v0  ;;  %v54_v7 = vmul.f32 %v220_v1, %v15_v4  ;;  %v55_v8 = vmul.f32 %v220_v1, %v16_v5  ;;  %v56_v9 = vmul.f32 %v220_v1, %v17_v6  ;;  %v20_v12 = vld [vmem:[%s480_s0 + $0x30] sm:$0xff]  ;;  %v21_v17 = vld [vmem:[%s480_s0 + $0x38] sm:$0xff] }
   0x4   :  { %v18_v10 = vld [vmem:[%s480_s0 + $0x20] sm:$0xff]  ;;  %v58_v15 = vmul.f32 %v220_v1, %v19_v11  ;;  %v59_v16 = vmul.f32 %v220_v1, %v20_v12  ;;  %v60_v21 = vmul.f32 %v220_v1, %v21_v17  ;;  %v23_v27 = vld [vmem:[%s480_s0 + $0x48] sm:$0xff]  ;;  %v24_v28 = vld [vmem:[%s480_s0 + $0x50] sm:$0xff] }
   0x5   :  { %v92_v13 = vadd.f32 %v225_v2, %v53_v3  ;;  %v57_v14 = vmul.f32 %v220_v1, %v18_v10  ;;  %v93_v18 = vadd.f32 %v225_v2, %v54_v7  ;;  %v94_v19 = vadd.f32 %v225_v2, %v55_v8  ;;  %v22_v22 = vld [vmem:[%s480_s0 + $0x40] sm:$0xff]  ;;  %v25_v29 = vld [vmem:[%s480_s0 + $0x58] sm:$0xff]  ;;  %v27_v35 = vld [vmem:[%s480_s0 + $0x68] sm:$0xff] }
   0x6   :  { %v95_v20 = vadd.f32 %v225_v2, %v56_v9  ;;  %v97_v25 = vadd.f32 %v225_v2, %v58_v15  ;;  %v98_v26 = vadd.f32 %v225_v2, %v59_v16  ;;  %v99_v33 = vadd.f32 %v225_v2, %v60_v21  ;;  %v26_v34 = vld [vmem:[%s480_s0 + $0x60] sm:$0xff]  ;;  %v28_v36 = vld [vmem:[%s480_s0 + $0x70] sm:$0xff]  ;;  %v29_v41 = vld [vmem:[%s480_s0 + $0x78] sm:$0xff] }
   0x7   :  { %v124_v23 = vmax.f32 %v92_v13, 0.0  ;;  %v96_v24 = vadd.f32 %v225_v2, %v57_v14  ;;  %v125_v30 = vmax.f32 %v93_v18, 0.0  ;;  %v126_v31 = vmax.f32 %v94_v19, 0.0  ;;  %v30_v54 = vld [vmem:[%s480_s0 + $0x80] sm:$0xff]  ;;  %v31_v59 = vld [vmem:[%s480_s0 + $0x88] sm:$0xff]  ;;  %v32_v60 = vld [vmem:[%s480_s0 + $0x90] sm:$0xff] }
   0x8   :  { %v127_v32 = vmax.f32 %v95_v20, 0.0  ;;  %v129_v38 = vmax.f32 %v97_v25, 0.0  ;;  %v130_v39 = vmax.f32 %v98_v26, 0.0  ;;  %v61_v40 = vmul.f32 %v220_v1, %v22_v22  ;;  %v33_v61 = vld [vmem:[%s480_s0 + $0x98] sm:$0xff]  ;;  %v34_v4 = vld [vmem:[%s480_s0 + $0xa0] sm:$0xff]  ;;  %v35_v5 = vld [vmem:[%s480_s0 + $0xa8] sm:$0xff] }
   0x9   :  { %156 = vst [vmem:[%s483_s3] sm:$0xff] %v124_v23  ;;  %v128_v37 = vmax.f32 %v96_v24, 0.0  ;;  %157 = vst [vmem:[%s483_s3 + $0x8] sm:$0xff] %v125_v30  ;;  %v131_v42 = vmax.f32 %v99_v33, 0.0  ;;  %v62_v43 = vmul.f32 %v220_v1, %v23_v27  ;;  %v63_v44 = vmul.f32 %v220_v1, %v24_v28  ;;  %v36_v6 = vld [vmem:[%s480_s0 + $0xb0] sm:$0xff]  ;;  %v37_v11 = vld [vmem:[%s480_s0 + $0xb8] sm:$0xff] }
   0xa   :  { %158 = vst [vmem:[%s483_s3 + $0x10] sm:$0xff] %v126_v31  ;;  %159 = vst [vmem:[%s483_s3 + $0x18] sm:$0xff] %v127_v32  ;;  %v64_v45 = vmul.f32 %v220_v1, %v25_v29  ;;  %v100_v46 = vadd.f32 %v225_v2, %v61_v40  ;;  %v65_v47 = vmul.f32 %v220_v1, %v26_v34  ;;  %v38_v24 = vld [vmem:[%s480_s0 + $0xc0] sm:$0xff]  ;;  %v39_v29 = vld [vmem:[%s480_s0 + $0xc8] sm:$0xff] }
   0xb   :  { %160 = vst [vmem:[%s483_s3 + $0x20] sm:$0xff] %v128_v37  ;;  %161 = vst [vmem:[%s483_s3 + $0x28] sm:$0xff] %v129_v38  ;;  %v66_v48 = vmul.f32 %v220_v1, %v27_v35  ;;  %v67_v49 = vmul.f32 %v220_v1, %v28_v36  ;;  %v101_v50 = vadd.f32 %v225_v2, %v62_v43  ;;  %v40_v30 = vld [vmem:[%s480_s0 + $0xd0] sm:$0xff]  ;;  %v41_v31 = vld [vmem:[%s480_s0 + $0xd8] sm:$0xff] }
   0xc   :  { %162 = vst [vmem:[%s483_s3 + $0x30] sm:$0xff] %v130_v39  ;;  %163 = vst [vmem:[%s483_s3 + $0x38] sm:$0xff] %v131_v42  ;;  %v102_v51 = vadd.f32 %v225_v2, %v63_v44  ;;  %v103_v52 = vadd.f32 %v225_v2, %v64_v45  ;;  %v68_v53 = vmul.f32 %v220_v1, %v29_v41  ;;  %v132_v55 = vmax.f32 %v100_v46, 0.0  ;;  %v42_v36 = vld [vmem:[%s480_s0 + $0xe0] sm:$0xff]  ;;  %v43_v37 = vld [vmem:[%s480_s0 + $0xe8] sm:$0xff] }
   0xd   :  { %v104_v56 = vadd.f32 %v225_v2, %v65_v47  ;;  %v105_v57 = vadd.f32 %v225_v2, %v66_v48  ;;  %v106_v58 = vadd.f32 %v225_v2, %v67_v49  ;;  %v133_v62 = vmax.f32 %v101_v50, 0.0  ;;  %v44_v38 = vld [vmem:[%s480_s0 + $0xf0] sm:$0xff]  ;;  %v45_v43 = vld [vmem:[%s480_s0 + $0xf8] sm:$0xff] }
   0xe   :  { %v134_v63 = vmax.f32 %v102_v51, 0.0  ;;  %v135_v0 = vmax.f32 %v103_v52, 0.0  ;;  %v107_v3 = vadd.f32 %v225_v2, %v68_v53  ;;  %164 = vst [vmem:[%s483_s3 + $0x40] sm:$0xff] %v132_v55  ;;  %v69_v10 = vmul.f32 %v220_v1, %v30_v54 }
   0xf   :  { %v136_v7 = vmax.f32 %v104_v56, 0.0  ;;  %v137_v8 = vmax.f32 %v105_v57, 0.0  ;;  %v138_v9 = vmax.f32 %v106_v58, 0.0  ;;  %165 = vst [vmem:[%s483_s3 + $0x48] sm:$0xff] %v133_v62  ;;  %v70_v13 = vmul.f32 %v220_v1, %v31_v59 }
  0x10   :  { %166 = vst [vmem:[%s483_s3 + $0x50] sm:$0xff] %v134_v63  ;;  %167 = vst [vmem:[%s483_s3 + $0x58] sm:$0xff] %v135_v0  ;;  %v139_v12 = vmax.f32 %v107_v3, 0.0  ;;  %v71_v14 = vmul.f32 %v220_v1, %v32_v60  ;;  %v72_v15 = vmul.f32 %v220_v1, %v33_v61  ;;  %v108_v16 = vadd.f32 %v225_v2, %v69_v10 }
  0x11   :  { %168 = vst [vmem:[%s483_s3 + $0x60] sm:$0xff] %v136_v7  ;;  %169 = vst [vmem:[%s483_s3 + $0x68] sm:$0xff] %v137_v8  ;;  %v73_v17 = vmul.f32 %v220_v1, %v34_v4  ;;  %v74_v18 = vmul.f32 %v220_v1, %v35_v5  ;;  %v75_v19 = vmul.f32 %v220_v1, %v36_v6 }
  0x12   :  { %170 = vst [vmem:[%s483_s3 + $0x70] sm:$0xff] %v138_v9  ;;  %171 = vst [vmem:[%s483_s3 + $0x78] sm:$0xff] %v139_v12  ;;  %v109_v20 = vadd.f32 %v225_v2, %v70_v13  ;;  %v110_v21 = vadd.f32 %v225_v2, %v71_v14  ;;  %v111_v22 = vadd.f32 %v225_v2, %v72_v15  ;;  %v140_v25 = vmax.f32 %v108_v16, 0.0 }
  0x13   :  { %v76_v23 = vmul.f32 %v220_v1, %v37_v11  ;;  %v112_v26 = vadd.f32 %v225_v2, %v73_v17  ;;  %v113_v27 = vadd.f32 %v225_v2, %v74_v18  ;;  %v114_v28 = vadd.f32 %v225_v2, %v75_v19 }
  0x14   :  { %v141_v32 = vmax.f32 %v109_v20, 0.0  ;;  %v142_v33 = vmax.f32 %v110_v21, 0.0  ;;  %v143_v34 = vmax.f32 %v111_v22, 0.0  ;;  %172 = vst [vmem:[%s483_s3 + $0x80] sm:$0xff] %v140_v25  ;;  %v77_v42 = vmul.f32 %v220_v1, %v38_v24 }
  0x15   :  { %v115_v35 = vadd.f32 %v225_v2, %v76_v23  ;;  %v144_v39 = vmax.f32 %v112_v26, 0.0  ;;  %v145_v40 = vmax.f32 %v113_v27, 0.0  ;;  %v146_v41 = vmax.f32 %v114_v28, 0.0 }
  0x16   :  { %173 = vst [vmem:[%s483_s3 + $0x88] sm:$0xff] %v141_v32  ;;  %174 = vst [vmem:[%s483_s3 + $0x90] sm:$0xff] %v142_v33  ;;  %v78_v45 = vmul.f32 %v220_v1, %v39_v29  ;;  %v79_v46 = vmul.f32 %v220_v1, %v40_v30  ;;  %v80_v47 = vmul.f32 %v220_v1, %v41_v31 }
  0x17   :  { %175 = vst [vmem:[%s483_s3 + $0x98] sm:$0xff] %v143_v34  ;;  %v147_v44 = vmax.f32 %v115_v35, 0.0  ;;  %176 = vst [vmem:[%s483_s3 + $0xa0] sm:$0xff] %v144_v39  ;;  %v116_v48 = vadd.f32 %v225_v2, %v77_v42  ;;  %v81_v49 = vmul.f32 %v220_v1, %v42_v36  ;;  %v82_v50 = vmul.f32 %v220_v1, %v43_v37 }
  0x18   :  { %177 = vst [vmem:[%s483_s3 + $0xa8] sm:$0xff] %v145_v40  ;;  %178 = vst [vmem:[%s483_s3 + $0xb0] sm:$0xff] %v146_v41  ;;  %v83_v51 = vmul.f32 %v220_v1, %v44_v38  ;;  %v117_v52 = vadd.f32 %v225_v2, %v78_v45  ;;  %v118_v53 = vadd.f32 %v225_v2, %v79_v46 }
  0x19   :  { %179 = vst [vmem:[%s483_s3 + $0xb8] sm:$0xff] %v147_v44  ;;  %v119_v54 = vadd.f32 %v225_v2, %v80_v47  ;;  %v84_v55 = vmul.f32 %v220_v1, %v45_v43  ;;  %v148_v56 = vmax.f32 %v116_v48, 0.0  ;;  %v120_v57 = vadd.f32 %v225_v2, %v81_v49 }
  0x1a   :  { %v121_v58 = vadd.f32 %v225_v2, %v82_v50  ;;  %v122_v59 = vadd.f32 %v225_v2, %v83_v51  ;;  %v149_v60 = vmax.f32 %v117_v52, 0.0  ;;  %v150_v61 = vmax.f32 %v118_v53, 0.0 }
  0x1b   :  { %v151_v62 = vmax.f32 %v119_v54, 0.0  ;;  %v123_v63 = vadd.f32 %v225_v2, %v84_v55  ;;  %180 = vst [vmem:[%s483_s3 + $0xc0] sm:$0xff] %v148_v56  ;;  %v152_v0 = vmax.f32 %v120_v57, 0.0 }
  0x1c   :  { %v153_v3 = vmax.f32 %v121_v58, 0.0  ;;  %v154_v4 = vmax.f32 %v122_v59, 0.0  ;;  %181 = vst [vmem:[%s483_s3 + $0xc8] sm:$0xff] %v149_v60  ;;  %182 = vst [vmem:[%s483_s3 + $0xd0] sm:$0xff] %v150_v61 }
  0x1d   :  { %183 = vst [vmem:[%s483_s3 + $0xd8] sm:$0xff] %v151_v62  ;;  %v155_v1 = vmax.f32 %v123_v63, 0.0  ;;  %184 = vst [vmem:[%s483_s3 + $0xe0] sm:$0xff] %v152_v0 }
  0x1e   :  { %185 = vst [vmem:[%s483_s3 + $0xe8] sm:$0xff] %v153_v3  ;;  %186 = vst [vmem:[%s483_s3 + $0xf0] sm:$0xff] %v154_v4 }
  0x1f   :  { %187 = vst [vmem:[%s483_s3 + $0xf8] sm:$0xff] %v155_v1 }

// kernel: reduction_block_a.15
= control target key start
LH: loop header
LB: loop body
LE: loop exit
PB: predicated region body
PF: predicated region fallthrough
CT: control target
= control target key end

     0   :  { %vm227_vm0 = vcmask 785408   ;;  %s6419_s1 = inlined_call_operand.vmem [shape: bf16[9,96,128], index: 1, kind: input, shape index: {}]   ;;  %s6420_s0 = inlined_call_operand.vmem [shape: bf16[9,256,96], index: 0, kind: input, shape index: {}]   ;;  %s6421_s3 = inlined_call_operand.vmem [shape: f32[1,128], index: 3, kind: output, shape index: {1}]   ;;  %s6422_s4 = inlined_call_operand.vmem [shape: f32[1,128], index: 4, kind: output, shape index: {2}]   ;;  %s6423_s2 = inlined_call_operand.vmem [shape: f32[256,128], index: 2, kind: output, shape index: {0}]  }
   0x1   :  { %v5296_v0 = vld [vmem:[%s6419_s1 + $0x30] sm:$0xff]   ;;  %v5297_v1 = vld [vmem:[%s6419_s1 + $0xc0] sm:$0xff]   ;;  %v5298_v2 = vld [vmem:[%s6419_s1 + $0x38] sm:$0xff]  }
   0x2   :  { %4631 = vmatprep.subr.bf16.mxu1 %v5296_v0  ;;  %4807 = vmatprep.subr.bf16.mxu0 %v5297_v1  ;;  %v5299_v3 = vld [vmem:[%s6419_s1 + $0xc8] sm:$0xff]   ;;  %v5300_v4 = vld [vmem:[%s6419_s1 + $0x40] sm:$0xff]   ;;  %v5301_v5 = vld [vmem:[%s6419_s1 + $0xd0] sm:$0xff]  }
   0x3   :  { %4632 = vmatpush3.bf16.msra.mxu1 %v5296_v0  ;;  %4808 = vmatpush3.bf16.msra.mxu0 %v5297_v1  ;;  %v5302_v6 = vld [vmem:[%s6419_s1 + $0x48] sm:$0xff]   ;;  %v5303_v7 = vld [vmem:[%s6419_s1 + $0xd8] sm:$0xff]   ;;  %v5304_v8 = vld [vmem:[%s6419_s1 + $0x50] sm:$0xff]  }
   0x4   :  { %4633 = vmatprep.subr.bf16.mxu1 %v5298_v2  ;;  %4809 = vmatprep.subr.bf16.mxu0 %v5299_v3  ;;  %v5305_v9 = vld [vmem:[%s6419_s1 + $0xe0] sm:$0xff]   ;;  %v5306_v12 = vld [vmem:[%s6419_s1 + $0x58] sm:$0xff]   ;;  %v5307_v13 = vld [vmem:[%s6419_s1 + $0xe8] sm:$0xff]  }
   0x5   :  { %v5308_v10 = vld [vmem:[%s6420_s0 + $0x80] sm:$0xff]   ;;  %v5310_v14 = vld [vmem:[%s6420_s0 + $0x88] sm:$0xff]   ;;  %v5313_v16 = vld [vmem:[%s6419_s1 + $0xf0] sm:$0xff]  }
   0x6   :  { %v5309_v11 = vld [vmem:[%s6420_s0 + $0x200] sm:$0xff]   ;;  %4643 = vmatprep.mubr.msk.bf16.mxu1 %vm227_vm0, %v5308_v10  ;;  %v5312_v17 = vld [vmem:[%s6420_s0 + $0x208] sm:$0xff]   ;;  %v5314_v18 = vld [vmem:[%s6419_s1 + $0xf8] sm:$0xff]  }
   0x7   :  { %4634 = vmatpush3.bf16.msra.mxu1 %v5298_v2  ;;  %4810 = vmatpush3.bf16.msra.mxu0 %v5299_v3  ;;  %v5311_v15 = vld [vmem:[%s6419_s1] sm:$0xff]   ;;  %v5315_v19 = vld [vmem:[%s6420_s0 + $0x90] sm:$0xff]   ;;  %v5319_v21 = vld [vmem:[%s6419_s1 + $0x8] sm:$0xff]  }
   0x8   :  { %4635 = vmatprep.subr.bf16.mxu1 %v5300_v4  ;;  %4811 = vmatprep.subr.bf16.mxu0 %v5301_v5  ;;  %v5316_v20 = vld [vmem:[%s6420_s0 + $0x210] sm:$0xff]   ;;  %v5317_v22 = vld [vmem:[%s6420_s0 + $0x98] sm:$0xff]   ;;  %v5320_v24 = vld [vmem:[%s6419_s1 + $0x100] sm:$0xff]  }
   0x9   :  { %4819 = vmatprep.mubr.msk.bf16.mxu0 %vm227_vm0, %v5309_v11  ;;  %v5318_v23 = vld [vmem:[%s6420_s0 + $0x218] sm:$0xff]   ;;  %v5326_v25 = vld [vmem:[%s6419_s1 + $0x10] sm:$0xff]   ;;  %v5321_v26 = vld [vmem:[%s6420_s0 + $0xa0] sm:$0xff]  }
   0xa   :  { %v5322_v27 = vld [vmem:[%s6420_s0 + $0x220] sm:$0xff]   ;;  %v5325_v28 = vld [vmem:[%s6419_s1 + $0x108] sm:$0xff]   ;;  %v5327_v31 = vld [vmem:[%s6419_s1 + $0x110] sm:$0xff]  }
   0xb   :  { %4636 = vmatpush3.bf16.msra.mxu1 %v5300_v4  ;;  %4812 = vmatpush3.bf16.msra.mxu0 %v5301_v5  ;;  %v5323_v29 = vld [vmem:[%s6420_s0 + $0xa8] sm:$0xff]   ;;  %v5328_v32 = vld [vmem:[%s6420_s0 + $0xb0] sm:$0xff]   ;;  %v5336_v34 = vld [vmem:[%s6419_s1 + $0x18] sm:$0xff]  }
   0xc   :  { %4637 = vmatprep.subr.bf16.mxu1 %v5302_v6  ;;  %4813 = vmatprep.subr.bf16.mxu0 %v5303_v7  ;;  %v5324_v30 = vld [vmem:[%s6420_s0 + $0x228] sm:$0xff]   ;;  %v5329_v33 = vld [vmem:[%s6420_s0 + $0x230] sm:$0xff]   ;;  %v5332_v35 = vld [vmem:[%s6419_s1 + $0x118] sm:$0xff]  }
   0xd   :  { %v5330_v36 = vld [vmem:[%s6420_s0 + $0xb8] sm:$0xff]   ;;  %v5338_v38 = vld [vmem:[%s6419_s1 + $0x120] sm:$0xff]   ;;  %v5335_v42 = vld [vmem:[%s6420_s0 + $0xc8] sm:$0xff]  }
   0xe   :  { %v5331_v37 = vld [vmem:[%s6420_s0 + $0x238] sm:$0xff]   ;;  %v5333_v39 = vld [vmem:[%s6420_s0 + $0xc0] sm:$0xff]   ;;  %v5349_v43 = vld [vmem:[%s6419_s1 + $0x28] sm:$0xff]  }
   0xf   :  { %4638 = vmatpush3.bf16.msra.mxu1 %v5302_v6  ;;  %4814 = vmatpush3.bf16.msra.mxu0 %v5303_v7  ;;  %v5343_v40 = vld [vmem:[%s6419_s1 + $0x20] sm:$0xff]   ;;  %v5337_v44 = vld [vmem:[%s6420_s0 + $0x288] sm:$0xff]   ;;  %v5339_v45 = vld [vmem:[%s6420_s0 + $0xd0] sm:$0xff]  }
  0x10   :  { %4639 = vmatprep.subr.bf16.mxu1 %v5304_v8  ;;  %4815 = vmatprep.subr.bf16.mxu0 %v5305_v9  ;;  %v5334_v41 = vld [vmem:[%s6420_s0 + $0x280] sm:$0xff]   ;;  %v5340_v46 = vld [vmem:[%s6420_s0 + $0x290] sm:$0xff]   ;;  %v5344_v47 = vld [vmem:[%s6419_s1 + $0x128] sm:$0xff]  }
  0x11   :  { %v5341_v48 = vld [vmem:[%s6420_s0 + $0xd8] sm:$0xff]   ;;  %v5350_v50 = vld [vmem:[%s6419_s1 + $0x130] sm:$0xff]   ;;  %v5358_v51 = vld [vmem:[%s6419_s1 + $0x60] sm:$0xff]  }
  0x12   :  { %v5342_v49 = vld [vmem:[%s6420_s0 + $0x298] sm:$0xff]   ;;  %v5345_v52 = vld [vmem:[%s6420_s0 + $0xe0] sm:$0xff]   ;;  %v5347_v55 = vld [vmem:[%s6420_s0 + $0xe8] sm:$0xff]  }
  0x13   :  { %4640 = vmatpush3.bf16.msra.mxu1 %v5304_v8  ;;  %4816 = vmatpush3.bf16.msra.mxu0 %v5305_v9  ;;  %v5346_v53 = vld [vmem:[%s6420_s0 + $0x2a0] sm:$0xff]   ;;  %v5360_v54 = vld [vmem:[%s6419_s1 + $0x138] sm:$0xff]   ;;  %v5348_v56 = vld [vmem:[%s6420_s0 + $0x2a8] sm:$0xff]  }
  0x14   :  { %4641 = vmatprep.subr.bf16.mxu1 %v5306_v12  ;;  %4817 = vmatprep.subr.bf16.mxu0 %v5307_v13  ;;  %v5366_v57 = vld [vmem:[%s6419_s1 + $0x140] sm:$0xff]   ;;  %v5351_v58 = vld [vmem:[%s6420_s0 + $0xf0] sm:$0xff]   ;;  %v5372_v60 = vld [vmem:[%s6419_s1 + $0x148] sm:$0xff]  }
  0x15   :  { %v5352_v59 = vld [vmem:[%s6420_s0 + $0x2b0] sm:$0xff]   ;;  %v5353_v61 = vld [vmem:[%s6420_s0 + $0xf8] sm:$0xff]   ;;  %v5355_v63 = vld [vmem:[%s6420_s0] sm:$0xff]  }
  0x16   :  { %v5354_v62 = vld [vmem:[%s6420_s0 + $0x2b8] sm:$0xff]   ;;  %v5356_v0 = vld [vmem:[%s6420_s0 + $0x2c0] sm:$0xff]   ;;  %v5357_v1 = vld [vmem:[%s6420_s0 + $0x8] sm:$0xff]  }
  0x17   :  { %4642 = vmatpush3.bf16.msra.mxu1 %v5306_v12  ;;  %4818 = vmatpush3.bf16.msra.mxu0 %v5307_v13  ;;  %v5359_v2 = vld [vmem:[%s6420_s0 + $0x2c8] sm:$0xff]   ;;  %v5382_v3 = vld [vmem:[%s6419_s1 + $0x150] sm:$0xff]   ;;  %v5363_v8 = vld [vmem:[%s6420_s0 + $0x18] sm:$0xff]  }
  0x18   :  { %4675 = vmatprep.subr.bf16.mxu1 %v5311_v15  ;;  %4851 = vmatprep.subr.bf16.mxu0 %v5313_v16  ;;  %v5361_v4 = vld [vmem:[%s6420_s0 + $0x10] sm:$0xff]   ;;  %v5365_v6 = vld [vmem:[%s6419_s1 + $0x68] sm:$0xff]   ;;  %v5364_v9 = vld [vmem:[%s6420_s0 + $0x2d8] sm:$0xff]  }
  0x19   :  { %v5362_v5 = vld [vmem:[%s6420_s0 + $0x2d0] sm:$0xff]   ;;  %v5367_v10 = vld [vmem:[%s6420_s0 + $0x20] sm:$0xff]   ;;  %v5380_v12 = vld [vmem:[%s6419_s1 + $0x78] sm:$0xff]  }
  0x1a   :  { %4644 = vmatmul.mubr.msk.bf16.vlgmr.msra.gmra.mrb[0].mxu1 %vm227_vm0, %v5310_v14  ;;  %4820 = vmatmul.mubr.msk.bf16.vlgmr.msra.gmra.mrb[0].mxu0 %vm227_vm0, %v5312_v17  ;;  %v5371_v7 = vld [vmem:[%s6419_s1 + $0x70] sm:$0xff]   ;;  %v5368_v11 = vld [vmem:[%s6420_s0 + $0x2e0] sm:$0xff]   ;;  %v5369_v13 = vld [vmem:[%s6420_s0 + $0x28] sm:$0xff]  }
  0x1b   :  { %4676 = vmatpush3.bf16.msra.mxu1 %v5311_v15  ;;  %4852 = vmatpush3.bf16.msra.mxu0 %v5313_v16  ;;  %v5387_v14 = vld [vmem:[%s6419_s1 + $0x80] sm:$0xff]   ;;  %v5370_v15 = vld [vmem:[%s6420_s0 + $0x2e8] sm:$0xff]   ;;  %v5373_v16 = vld [vmem:[%s6420_s0 + $0x30] sm:$0xff]  }
  0x1c   :  { %4647 = vmatprep.mubr.msk.bf16.mxu1 %vm227_vm0, %v5315_v19  ;;  %4853 = vmatprep.subr.bf16.mxu0 %v5314_v18  ;;  %v5374_v17 = vld [vmem:[%s6420_s0 + $0x2f0] sm:$0xff]   ;;  %v5375_v19 = vld [vmem:[%s6420_s0 + $0x38] sm:$0xff]  }
  0x1d   :  { %4823 = vmatprep.mubr.msk.bf16.mxu0 %vm227_vm0, %v5316_v20  ;;  %4677 = vmatprep.subr.bf16.mxu1 %v5319_v21  ;;  %v5827_v20 = vld [vmem:[%s6419_s1 + $0x90] sm:$0xff]  }
  0x1f   :  { %4678 = vmatpush3.bf16.msra.mxu1 %v5319_v21  ;;  %4854 = vmatpush3.bf16.msra.mxu0 %v5314_v18  ;;  %v5393_v18 = vld [vmem:[%s6419_s1 + $0x88] sm:$0xff]   ;;  %v5376_v21 = vld [vmem:[%s6420_s0 + $0x2f8] sm:$0xff]  }
  0x20   :  { %4679 = vmatprep.subr.bf16.mxu1 %v5326_v25  ;;  %4855 = vmatprep.subr.bf16.mxu0 %v5320_v24 }
  0x22   :  { %4648 = vmatmul.mubr.msk.bf16.gmra.mrb[4].mxu1 %vm227_vm0, %v5317_v22  ;;  %4824 = vmatmul.mubr.msk.bf16.gmra.mrb[4].mxu0 %vm227_vm0, %v5318_v23  ;;  %v5377_v22 = vld [vmem:[%s6420_s0 + $0x40] sm:$0xff]  }
  0x23   :  { %4651 = vmatprep.mubr.msk.bf16.mxu1 %vm227_vm0, %v5321_v26  ;;  %4856 = vmatpush3.bf16.msra.mxu0 %v5320_v24  ;;  %v5378_v23 = vld [vmem:[%s6420_s0 + $0x300] sm:$0xff]   ;;  %v5379_v24 = vld [vmem:[%s6420_s0 + $0x48] sm:$0xff]   ;;  %v5383_v26 = vld [vmem:[%s6420_s0 + $0x50] sm:$0xff]  }
  0x24   :  { %4827 = vmatprep.mubr.msk.bf16.mxu0 %vm227_vm0, %v5322_v27  ;;  %4857 = vmatprep.subr.bf16.mxu0 %v5325_v28  ;;  %v5384_v27 = vld [vmem:[%s6420_s0 + $0x310] sm:$0xff]  }
  0x25   :  { %4680 = vmatpush3.bf16.msra.mxu1 %v5326_v25  ;;  %v5381_v25 = vld [vmem:[%s6420_s0 + $0x308] sm:$0xff]  }
  0x26   :  { %4681 = vmatprep.subr.bf16.mxu1 %v5336_v34 }
  0x27   :  { %4858 = vmatpush3.bf16.msra.mxu0 %v5325_v28  ;;  %v5388_v28 = vld [vmem:[%s6419_s1 + $0x158] sm:$0xff]  }
  0x28   :  { %4859 = vmatprep.subr.bf16.mxu0 %v5327_v31 }
  0x29   :  { %4682 = vmatpush3.bf16.msra.mxu1 %v5336_v34  ;;  %v5404_v34 = vld [vmem:[%s6419_s1 + $0x168] sm:$0xff]  }
  0x2a   :  { %4652 = vmatmul.mubr.msk.bf16.gmra.mrb[8].mxu1 %vm227_vm0, %v5323_v29  ;;  %4828 = vmatmul.mubr.msk.bf16.gmra.mrb[8].mxu0 %vm227_vm0, %v5324_v30  ;;  %v5385_v29 = vld [vmem:[%s6420_s0 + $0x58] sm:$0xff]   ;;  %v5394_v30 = vld [vmem:[%s6419_s1 + $0x160] sm:$0xff]  }
  0x2b   :  { %4655 = vmatprep.mubr.msk.bf16.mxu1 %vm227_vm0, %v5328_v32  ;;  %4831 = vmatprep.mubr.msk.bf16.mxu0 %vm227_vm0, %v5329_v33  ;;  %v5389_v32 = vld [vmem:[%s6420_s0 + $0x60] sm:$0xff]  }
  0x2c   :  { %4860 = vmatpush3.bf16.msra.mxu0 %v5327_v31  ;;  %4683 = vmatprep.subr.bf16.mxu1 %v5343_v40  ;;  %v5386_v31 = vld [vmem:[%s6420_s0 + $0x318] sm:$0xff]   ;;  %v5390_v33 = vld [vmem:[%s6420_s0 + $0x320] sm:$0xff]  }
  0x2d   :  { %4861 = vmatprep.subr.bf16.mxu0 %v5332_v35  ;;  %4684 = vmatpush3.bf16.msra.mxu1 %v5343_v40  ;;  %v5416_v40 = vld [vmem:[%s6419_s1 + $0x178] sm:$0xff]  }
  0x2e   :  { %4685 = vmatprep.subr.bf16.mxu1 %v5349_v43 }
  0x30   :  { %4862 = vmatpush3.bf16.msra.mxu0 %v5332_v35  ;;  %v5391_v35 = vld [vmem:[%s6420_s0 + $0x68] sm:$0xff]  }
  0x31   :  { %4895 = vmatprep.subr.bf16.mxu0 %v5338_v38  ;;  %4686 = vmatpush3.bf16.msra.mxu1 %v5349_v43  ;;  %v5398_v43 = vld [vmem:[%s6420_s0 + $0x338] sm:$0xff]  }
  0x32   :  { %4656 = vmatmul.mubr.msk.bf16.gmra.mrb[12].mxu1 %vm227_vm0, %v5330_v36  ;;  %4832 = vmatmul.mubr.msk.bf16.gmra.mrb[12].mxu0 %vm227_vm0, %v5331_v37  ;;  %v5410_v36 = vld [vmem:[%s6419_s1 + $0x170] sm:$0xff]   ;;  %v5392_v37 = vld [vmem:[%s6420_s0 + $0x328] sm:$0xff]  }
  0x33   :  { %4659 = vmatprep.mubr.msk.bf16.mxu1 %vm227_vm0, %v5333_v39  ;;  %4863 = vmatprep.mubr.msk.bf16.mxu0 %vm227_vm0, %v5334_v41  ;;  %v5396_v39 = vld [vmem:[%s6420_s0 + $0x330] sm:$0xff]   ;;  %v5397_v41 = vld [vmem:[%s6420_s0 + $0x78] sm:$0xff]  }
  0x34   :  { %4719 = vmatprep.subr.bf16.mxu1 %v5358_v51 }
  0x3a   :  { %4660 = vmatmul.mubr.msk.bf16.gmra.mrb[16].mxu1 %vm227_vm0, %v5335_v42  ;;  %4864 = vmatmul.mubr.msk.bf16.vlgmr.msra.gmra.mrb[0].mxu0 %vm227_vm0, %v5337_v44  ;;  %v5912_v42 = vld [vmem:[%s6419_s1 + $0x180] sm:$0xff]  }
  0x3b   :  { %4663 = vmatprep.mubr.msk.bf16.mxu1 %vm227_vm0, %v5339_v45  ;;  %4896 = vmatpush3.bf16.msra.mxu0 %v5338_v38  ;;  %v5395_v38 = vld [vmem:[%s6420_s0 + $0x70] sm:$0xff]   ;;  %v5399_v44 = vld [vmem:[%s6420_s0 + $0x100] sm:$0xff]  }
  0x3c   :  { %4867 = vmatprep.mubr.msk.bf16.mxu0 %vm227_vm0, %v5340_v46  ;;  %4897 = vmatprep.subr.bf16.mxu0 %v5344_v47  ;;  %v5400_v45 = vld [vmem:[%s6420_s0 + $0x340] sm:$0xff]   ;;  %v5401_v46 = vld [vmem:[%s6420_s0 + $0x108] sm:$0xff]  }
  0x3f   :  { %4898 = vmatpush3.bf16.msra.mxu0 %v5344_v47  ;;  %v5403_v47 = vld [vmem:[%s6420_s0 + $0x348] sm:$0xff]  }
  0x40   :  { %4899 = vmatprep.subr.bf16.mxu0 %v5350_v50 }
  0x42   :  { %4664 = vmatmul.mubr.msk.bf16.gmra.mrb[20].mxu1 %vm227_vm0, %v5341_v48  ;;  %4868 = vmatmul.mubr.msk.bf16.gmra.mrb[4].mxu0 %vm227_vm0, %v5342_v49  ;;  %v5405_v48 = vld [vmem:[%s6420_s0 + $0x110] sm:$0xff]  }
  0x43   :  { %4667 = vmatprep.mubr.msk.bf16.mxu1 %vm227_vm0, %v5345_v52  ;;  %4871 = vmatprep.mubr.msk.bf16.mxu0 %vm227_vm0, %v5346_v53  ;;  %v5406_v49 = vld [vmem:[%s6420_s0 + $0x350] sm:$0xff]   ;;  %v5407_v52 = vld [vmem:[%s6420_s0 + $0x118] sm:$0xff]  }
  0x44   :  { %4900 = vmatpush3.bf16.msra.mxu0 %v5350_v50  ;;  %v5409_v50 = vld [vmem:[%s6419_s1 + $0x98] sm:$0xff]  }
  0x45   :  { %4901 = vmatprep.subr.bf16.mxu0 %v5360_v54  ;;  %v5408_v53 = vld [vmem:[%s6420_s0 + $0x358] sm:$0xff]  }
  0x48   :  { %4902 = vmatpush3.bf16.msra.mxu0 %v5360_v54  ;;  %v5411_v54 = vld [vmem:[%s6420_s0 + $0x120] sm:$0xff]  }
  0x49   :  { %4903 = vmatprep.subr.bf16.mxu0 %v5366_v57 }
  0x4a   :  { %4668 = vmatmul.mubr.msk.bf16.gmra.mrb[24].mxu1 %vm227_vm0, %v5347_v55  ;;  %4872 = vmatmul.mubr.msk.bf16.gmra.mrb[8].mxu0 %vm227_vm0, %v5348_v56  ;;  %v5412_v55 = vld [vmem:[%s6420_s0 + $0x360] sm:$0xff]   ;;  %v5424_v56 = vld [vmem:[%s6419_s1 + $0xa8] sm:$0xff]  }
  0x4b   :  { %4671 = vmatprep.mubr.msk.bf16.mxu1 %vm227_vm0, %v5351_v58  ;;  %4875 = vmatprep.mubr.msk.bf16.mxu0 %vm227_vm0, %v5352_v59  ;;  %v5431_v58 = vld [vmem:[%s6419_s1 + $0xb0] sm:$0xff]   ;;  %v5414_v59 = vld [vmem:[%s6420_s0 + $0x368] sm:$0xff]  }
  0x4c   :  { %4904 = vmatpush3.bf16.msra.mxu0 %v5366_v57  ;;  %v5413_v57 = vld [vmem:[%s6420_s0 + $0x128] sm:$0xff]  }
  0x4d   :  { %4905 = vmatprep.subr.bf16.mxu0 %v5372_v60 }
  0x50   :  { %4906 = vmatpush3.bf16.msra.mxu0 %v5372_v60  ;;  %v5417_v60 = vld [vmem:[%s6420_s0 + $0x130] sm:$0xff]  }
  0x51   :  { %4939 = vmatprep.subr.bf16.mxu0 %v5382_v3 }
  0x52   :  { %4672 = vmatmul.mubr.msk.bf16.gmra.mrb[28].mxu1 %vm227_vm0, %v5353_v61  ;;  %4876 = vmatmul.mubr.msk.bf16.gmra.mrb[12].mxu0 %vm227_vm0, %v5354_v62  ;;  %v5418_v61 = vld [vmem:[%s6420_s0 + $0x370] sm:$0xff]   ;;  %v5437_v62 = vld [vmem:[%s6419_s1 + $0xb8] sm:$0xff]  }
  0x53   :  { %4687 = vmatprep.mubr.msk.bf16.mxu1 %vm227_vm0, %v5355_v63  ;;  %4879 = vmatprep.mubr.msk.bf16.mxu0 %vm227_vm0, %v5356_v0  ;;  %v5419_v63 = vld [vmem:[%s6420_s0 + $0x138] sm:$0xff]  }
  0x54   :  { %v5420_v0 = vld [vmem:[%s6420_s0 + $0x378] sm:$0xff]  }
  0x5a   :  { %4688 = vmatmul.mubr.msk.bf16.vlgmr.msra.gmra.mrb[0].mxu1 %vm227_vm0, %v5357_v1  ;;  %4880 = vmatmul.mubr.msk.bf16.gmra.mrb[16].mxu0 %vm227_vm0, %v5359_v2  ;;  %v5421_v1 = vld [vmem:[%s6420_s0 + $0x140] sm:$0xff]  }
  0x5b   :  { %4720 = vmatpush3.bf16.msra.mxu1 %v5358_v51  ;;  %4691 = vmatprep.mubr.msk.bf16.mxu1 %vm227_vm0, %v5361_v4  ;;  %v5415_v51 = vld [vmem:[%s6419_s1 + $0xa0] sm:$0xff]   ;;  %v5423_v4 = vld [vmem:[%s6420_s0 + $0x148] sm:$0xff]  }
  0x5c   :  { %4883 = vmatprep.mubr.msk.bf16.mxu0 %vm227_vm0, %v5362_v5  ;;  %4721 = vmatprep.subr.bf16.mxu1 %v5365_v6  ;;  %v5422_v2 = vld [vmem:[%s6420_s0 + $0x380] sm:$0xff]   ;;  %v5425_v5 = vld [vmem:[%s6420_s0 + $0x388] sm:$0xff]  }
  0x5f   :  { %4722 = vmatpush3.bf16.msra.mxu1 %v5365_v6  ;;  %v5427_v6 = vld [vmem:[%s6420_s0 + $0x150] sm:$0xff]  }
  0x60   :  { %4723 = vmatprep.subr.bf16.mxu1 %v5371_v7 }
  0x62   :  { %4692 = vmatmul.mubr.msk.bf16.gmra.mrb[4].mxu1 %vm227_vm0, %v5363_v8  ;;  %4884 = vmatmul.mubr.msk.bf16.gmra.mrb[20].mxu0 %vm227_vm0, %v5364_v9  ;;  %v5432_v8 = vld [vmem:[%s6419_s1 + $0x188] sm:$0xff]   ;;  %v5429_v9 = vld [vmem:[%s6420_s0 + $0x158] sm:$0xff]  }
  0x63   :  { %4695 = vmatprep.mubr.msk.bf16.mxu1 %vm227_vm0, %v5367_v10  ;;  %4887 = vmatprep.mubr.msk.bf16.mxu0 %vm227_vm0, %v5368_v11  ;;  %v5438_v10 = vld [vmem:[%s6419_s1 + $0x190] sm:$0xff]   ;;  %v5430_v11 = vld [vmem:[%s6420_s0 + $0x398] sm:$0xff]  }
  0x64   :  { %4724 = vmatpush3.bf16.msra.mxu1 %v5371_v7  ;;  %v5428_v7 = vld [vmem:[%s6420_s0 + $0x390] sm:$0xff]  }
  0x65   :  { %4725 = vmatprep.subr.bf16.mxu1 %v5380_v12 }
  0x68   :  { %4726 = vmatpush3.bf16.msra.mxu1 %v5380_v12  ;;  %v5433_v12 = vld [vmem:[%s6420_s0 + $0x160] sm:$0xff]  }
  0x69   :  { %4727 = vmatprep.subr.bf16.mxu1 %v5387_v14 }
  0x6a   :  { %4696 = vmatmul.mubr.msk.bf16.gmra.mrb[8].mxu1 %vm227_vm0, %v5369_v13  ;;  %4888 = vmatmul.mubr.msk.bf16.gmra.mrb[24].mxu0 %vm227_vm0, %v5370_v15  ;;  %v5434_v13 = vld [vmem:[%s6420_s0 + $0x3a0] sm:$0xff]  }
  0x6b   :  { %4699 = vmatprep.mubr.msk.bf16.mxu1 %vm227_vm0, %v5373_v16  ;;  %4891 = vmatprep.mubr.msk.bf16.mxu0 %vm227_vm0, %v5374_v17  ;;  %v5452_v15 = vld [vmem:[%s6419_s1 + $0x1a0] sm:$0xff]   ;;  %v5435_v16 = vld [vmem:[%s6420_s0 + $0x168] sm:$0xff]  }
  0x6c   :  { %4728 = vmatpush3.bf16.msra.mxu1 %v5387_v14  ;;  %v5447_v14 = vld [vmem:[%s6419_s1 + $0x198] sm:$0xff]   ;;  %v5436_v17 = vld [vmem:[%s6420_s0 + $0x3a8] sm:$0xff]  }
  0x6d   :  { %4729 = vmatprep.subr.bf16.mxu1 %v5393_v18 }
  0x70   :  { %4730 = vmatpush3.bf16.msra.mxu1 %v5393_v18  ;;  %v5439_v18 = vld [vmem:[%s6420_s0 + $0x170] sm:$0xff]  }
  0x71   :  { %4763 = vmatprep.subr.bf16.mxu1 %v5827_v20 }
  0x72   :  { %4700 = vmatmul.mubr.msk.bf16.gmra.mrb[12].mxu1 %vm227_vm0, %v5375_v19  ;;  %4892 = vmatmul.mubr.msk.bf16.gmra.mrb[28].mxu0 %vm227_vm0, %v5376_v21  ;;  %v5440_v19 = vld [vmem:[%s6420_s0 + $0x3b0] sm:$0xff]   ;;  %v5441_v21 = vld [vmem:[%s6420_s0 + $0x178] sm:$0xff]  }
  0x73   :  { %4703 = vmatprep.mubr.msk.bf16.mxu1 %vm227_vm0, %v5377_v22  ;;  %4907 = vmatprep.mubr.msk.bf16.mxu0 %vm227_vm0, %v5378_v23  ;;  %v5442_v22 = vld [vmem:[%s6420_s0 + $0x3b8] sm:$0xff]   ;;  %v5443_v23 = vld [vmem:[%s6420_s0 + $0x180] sm:$0xff]  }
  0x7a   :  { %4704 = vmatmul.mubr.msk.bf16.gmra.mrb[16].mxu1 %vm227_vm0, %v5379_v24  ;;  %4908 = vmatmul.mubr.msk.bf16.vlgmr.msra.gmra.mrb[0].mxu0 %vm227_vm0, %v5381_v25  ;;  %v5444_v24 = vld [vmem:[%s6420_s0 + $0x3c0] sm:$0xff]   ;;  %v5445_v25 = vld [vmem:[%s6420_s0 + $0x188] sm:$0xff]  }
  0x7b   :  { %4707 = vmatprep.mubr.msk.bf16.mxu1 %vm227_vm0, %v5383_v26  ;;  %4940 = vmatpush3.bf16.msra.mxu0 %v5382_v3  ;;  %v5494_v3 = vld [vmem:[%s6419_s1 + $0xc0] sm:$0xff]   ;;  %v5446_v26 = vld [vmem:[%s6420_s0 + $0x3c8] sm:$0xff]  }
  0x7c   :  { %4911 = vmatprep.mubr.msk.bf16.mxu0 %vm227_vm0, %v5384_v27  ;;  %4941 = vmatprep.subr.bf16.mxu0 %v5388_v28  ;;  %v5448_v27 = vld [vmem:[%s6420_s0 + $0x190] sm:$0xff]  }
  0x7f   :  { %4942 = vmatpush3.bf16.msra.mxu0 %v5388_v28  ;;  %v5449_v28 = vld [vmem:[%s6420_s0 + $0x3d0] sm:$0xff]  }
  0x80   :  { %4943 = vmatprep.subr.bf16.mxu0 %v5394_v30 }
  0x82   :  { %4708 = vmatmul.mubr.msk.bf16.gmra.mrb[20].mxu1 %vm227_vm0, %v5385_v29  ;;  %4912 = vmatmul.mubr.msk.bf16.gmra.mrb[4].mxu0 %vm227_vm0, %v5386_v31  ;;  %v5495_v29 = vld [vmem:[%s6419_s1 + $0xc8] sm:$0xff]   ;;  %v5451_v31 = vld [vmem:[%s6420_s0 + $0x3d8] sm:$0xff]  }
  0x83   :  { %4711 = vmatprep.mubr.msk.bf16.mxu1 %vm227_vm0, %v5389_v32  ;;  %4915 = vmatprep.mubr.msk.bf16.mxu0 %vm227_vm0, %v5390_v33  ;;  %v5453_v32 = vld [vmem:[%s6420_s0 + $0x1a0] sm:$0xff]  }
  0x84   :  { %4944 = vmatpush3.bf16.msra.mxu0 %v5394_v30  ;;  %v5450_v30 = vld [vmem:[%s6420_s0 + $0x198] sm:$0xff]   ;;  %v5454_v33 = vld [vmem:[%s6420_s0 + $0x3e0] sm:$0xff]  }
  0x85   :  { %4945 = vmatprep.subr.bf16.mxu0 %v5404_v34 }
  0x88   :  { %4946 = vmatpush3.bf16.msra.mxu0 %v5404_v34  ;;  %v5496_v34 = vld [vmem:[%s6419_s1 + $0xd0] sm:$0xff]  }
  0x89   :  { %4947 = vmatprep.subr.bf16.mxu0 %v5410_v36 }
  0x8a   :  { %4712 = vmatmul.mubr.msk.bf16.gmra.mrb[24].mxu1 %vm227_vm0, %v5391_v35  ;;  %4916 = vmatmul.mubr.msk.bf16.gmra.mrb[8].mxu0 %vm227_vm0, %v5392_v37  ;;  %v5497_v35 = vld [vmem:[%s6419_s1 + $0xd8] sm:$0xff]   ;;  %v5456_v37 = vld [vmem:[%s6420_s0 + $0x3e8] sm:$0xff]  }
  0x8b   :  { %4715 = vmatprep.mubr.msk.bf16.mxu1 %vm227_vm0, %v5395_v38  ;;  %4919 = vmatprep.mubr.msk.bf16.mxu0 %vm227_vm0, %v5396_v39  ;;  %v5458_v38 = vld [vmem:[%s6420_s0 + $0x1b0] sm:$0xff]  }
  0x8c   :  { %4948 = vmatpush3.bf16.msra.mxu0 %v5410_v36  ;;  %v5455_v36 = vld [vmem:[%s6420_s0 + $0x1a8] sm:$0xff]   ;;  %v5459_v39 = vld [vmem:[%s6420_s0 + $0x3f0] sm:$0xff]  }
  0x8d   :  { %4949 = vmatprep.subr.bf16.mxu0 %v5416_v40 }
  0x90   :  { %4950 = vmatpush3.bf16.msra.mxu0 %v5416_v40  ;;  %v5498_v40 = vld [vmem:[%s6419_s1 + $0xe0] sm:$0xff]  }
  0x91   :  { %4983 = vmatprep.subr.bf16.mxu0 %v5912_v42 }
  0x92   :  { %4716 = vmatmul.mubr.msk.bf16.gmra.mrb[28].mxu1 %vm227_vm0, %v5397_v41  ;;  %4920 = vmatmul.mubr.msk.bf16.gmra.mrb[12].mxu0 %vm227_vm0, %v5398_v43  ;;  %v5499_v41 = vld [vmem:[%s6419_s1 + $0xe8] sm:$0xff]   ;;  %v5461_v43 = vld [vmem:[%s6420_s0 + $0x3f8] sm:$0xff]  }
  0x93   :  { %4731 = vmatprep.mubr.msk.bf16.mxu1 %vm227_vm0, %v5399_v44  ;;  %4923 = vmatprep.mubr.msk.bf16.mxu0 %vm227_vm0, %v5400_v45  ;;  %v5462_v44 = vld [vmem:[%s6420_s0 + $0x1c0] sm:$0xff]  }
  0x94   :  { %v5463_v45 = vld [vmem:[%s6420_s0 + $0x400] sm:$0xff]  }
  0x9a   :  { %4732 = vmatmul.mubr.msk.bf16.vlgmr.msra.gmra.mrb[0].mxu1 %vm227_vm0, %v5401_v46  ;;  %4924 = vmatmul.mubr.msk.bf16.gmra.mrb[16].mxu0 %vm227_vm0, %v5403_v47  ;;  %v5464_v46 = vld [vmem:[%s6420_s0 + $0x1c8] sm:$0xff]  }
  0x9b   :  { %4764 = vmatpush3.bf16.msra.mxu1 %v5827_v20  ;;  %4735 = vmatprep.mubr.msk.bf16.mxu1 %vm227_vm0, %v5405_v48  ;;  %v5457_v20 = vld [vmem:[%s6419_s1 + $0x1a8] sm:$0xff]   ;;  %v5466_v48 = vld [vmem:[%s6420_s0 + $0x1d0] sm:$0xff]  }
  0x9c   :  { %4927 = vmatprep.mubr.msk.bf16.mxu0 %vm227_vm0, %v5406_v49  ;;  %4765 = vmatprep.subr.bf16.mxu1 %v5409_v50  ;;  %v5465_v47 = vld [vmem:[%s6420_s0 + $0x408] sm:$0xff]   ;;  %v5467_v49 = vld [vmem:[%s6420_s0 + $0x410] sm:$0xff]  }
  0x9f   :  { %4766 = vmatpush3.bf16.msra.mxu1 %v5409_v50  ;;  %v5468_v50 = vld [vmem:[%s6420_s0 + $0x1d8] sm:$0xff]  }
  0xa0   :  { %4767 = vmatprep.subr.bf16.mxu1 %v5415_v51 }
  0xa2   :  { %4736 = vmatmul.mubr.msk.bf16.gmra.mrb[4].mxu1 %vm227_vm0, %v5407_v52  ;;  %4928 = vmatmul.mubr.msk.bf16.gmra.mrb[20].mxu0 %vm227_vm0, %v5408_v53  ;;  %v5470_v52 = vld [vmem:[%s6420_s0 + $0x1e0] sm:$0xff]  }
  0xa3   :  { %4739 = vmatprep.mubr.msk.bf16.mxu1 %vm227_vm0, %v5411_v54  ;;  %4931 = vmatprep.mubr.msk.bf16.mxu0 %vm227_vm0, %v5412_v55  ;;  %v5471_v53 = vld [vmem:[%s6420_s0 + $0x420] sm:$0xff]   ;;  %v5472_v54 = vld [vmem:[%s6420_s0 + $0x1e8] sm:$0xff]  }
  0xa4   :  { %4768 = vmatpush3.bf16.msra.mxu1 %v5415_v51  ;;  %v5469_v51 = vld [vmem:[%s6420_s0 + $0x418] sm:$0xff]   ;;  %v5473_v55 = vld [vmem:[%s6420_s0 + $0x428] sm:$0xff]  }
  0xa5   :  { %4769 = vmatprep.subr.bf16.mxu1 %v5424_v56 }
  0xa8   :  { %4770 = vmatpush3.bf16.msra.mxu1 %v5424_v56  ;;  %v5474_v56 = vld [vmem:[%s6420_s0 + $0x1f0] sm:$0xff]  }
  0xa9   :  { %4771 = vmatprep.subr.bf16.mxu1 %v5431_v58 }
  0xaa   :  { %4740 = vmatmul.mubr.msk.bf16.gmra.mrb[8].mxu1 %vm227_vm0, %v5413_v57  ;;  %4932 = vmatmul.mubr.msk.bf16.gmra.mrb[24].mxu0 %vm227_vm0, %v5414_v59  ;;  %v5475_v57 = vld [vmem:[%s6420_s0 + $0x430] sm:$0xff]   ;;  %v5477_v59 = vld [vmem:[%s6420_s0 + $0x438] sm:$0xff]  }
  0xab   :  { %4743 = vmatprep.mubr.msk.bf16.mxu1 %vm227_vm0, %v5417_v60  ;;  %4935 = vmatprep.mubr.msk.bf16.mxu0 %vm227_vm0, %v5418_v61  ;;  %v5478_v60 = vld [vmem:[%s6420_s0 + $0x240] sm:$0xff]  }
  0xac   :  { %4772 = vmatpush3.bf16.msra.mxu1 %v5431_v58  ;;  %v5476_v58 = vld [vmem:[%s6420_s0 + $0x1f8] sm:$0xff]   ;;  %v5479_v61 = vld [vmem:[%s6420_s0 + $0x440] sm:$0xff]  }
  0xad   :  { %4773 = vmatprep.subr.bf16.mxu1 %v5437_v62 }
  0xb0   :  { %4774 = vmatpush3.bf16.msra.mxu1 %v5437_v62  ;;  %v5480_v62 = vld [vmem:[%s6420_s0 + $0x248] sm:$0xff]  }
  0xb1   :  { %5027 = vmatprep.subr.bf16.mxu1 %v5494_v3 }
  0xb2   :  { %4744 = vmatmul.mubr.msk.bf16.gmra.mrb[12].mxu1 %vm227_vm0, %v5419_v63  ;;  %4936 = vmatmul.mubr.msk.bf16.gmra.mrb[28].mxu0 %vm227_vm0, %v5420_v0  ;;  %v5481_v63 = vld [vmem:[%s6420_s0 + $0x448] sm:$0xff]   ;;  %v5482_v0 = vld [vmem:[%s6420_s0 + $0x250] sm:$0xff]  }
  0xb3   :  { %4747 = vmatprep.mubr.msk.bf16.mxu1 %vm227_vm0, %v5421_v1  ;;  %4951 = vmatprep.mubr.msk.bf16.mxu0 %vm227_vm0, %v5422_v2  ;;  %v5483_v1 = vld [vmem:[%s6420_s0 + $0x450] sm:$0xff]   ;;  %v5484_v2 = vld [vmem:[%s6420_s0 + $0x258] sm:$0xff]  }
  0xba   :  { %4748 = vmatmul.mubr.msk.bf16.gmra.mrb[16].mxu1 %vm227_vm0, %v5423_v4  ;;  %4952 = vmatmul.mubr.msk.bf16.vlgmr.msra.gmra.mrb[0].mxu0 %vm227_vm0, %v5425_v5  ;;  %v5486_v4 = vld [vmem:[%s6420_s0 + $0x260] sm:$0xff]  }
  0xbb   :  { %4751 = vmatprep.mubr.msk.bf16.mxu1 %vm227_vm0, %v5427_v6  ;;  %4984 = vmatpush3.bf16.msra.mxu0 %v5912_v42  ;;  %v5460_v42 = vld [vmem:[%s6420_s0 + $0x1b8] sm:$0xff]   ;;  %v5487_v5 = vld [vmem:[%s6420_s0 + $0x460] sm:$0xff]   ;;  %v5488_v6 = vld [vmem:[%s6420_s0 + $0x268] sm:$0xff]  }
  0xbc   :  { %4955 = vmatprep.mubr.msk.bf16.mxu0 %vm227_vm0, %v5428_v7  ;;  %4985 = vmatprep.subr.bf16.mxu0 %v5432_v8  ;;  %v5489_v7 = vld [vmem:[%s6420_s0 + $0x468] sm:$0xff]  }
  0xbf   :  { %4986 = vmatpush3.bf16.msra.mxu0 %v5432_v8  ;;  %v5490_v8 = vld [vmem:[%s6420_s0 + $0x270] sm:$0xff]  }
  0xc0   :  { %4987 = vmatprep.subr.bf16.mxu0 %v5438_v10 }
  0xc2   :  { %4752 = vmatmul.mubr.msk.bf16.gmra.mrb[20].mxu1 %vm227_vm0, %v5429_v9  ;;  %4956 = vmatmul.mubr.msk.bf16.gmra.mrb[4].mxu0 %vm227_vm0, %v5430_v11  ;;  %v5491_v9 = vld [vmem:[%s6420_s0 + $0x470] sm:$0xff]   ;;  %v5493_v11 = vld [vmem:[%s6420_s0 + $0x478] sm:$0xff]  }
  0xc3   :  { %4755 = vmatprep.mubr.msk.bf16.mxu1 %vm227_vm0, %v5433_v12  ;;  %4959 = vmatprep.mubr.msk.bf16.mxu0 %vm227_vm0, %v5434_v13  ;;  %v5500_v12 = vmov 0.0  }
  0xc4   :  { %4988 = vmatpush3.bf16.msra.mxu0 %v5438_v10  ;;  %v5492_v10 = vld [vmem:[%s6420_s0 + $0x278] sm:$0xff]   ;;  %19 = vst [vmem:[%s6421_s3] sm:$0x1] %v5500_v12  ;;  %20 = vst [vmem:[%s6422_s4] sm:$0x1] %v5500_v12 }
  0xc5   :  { %4989 = vmatprep.subr.bf16.mxu0 %v5447_v14 }
  0xc8   :  { %4990 = vmatpush3.bf16.msra.mxu0 %v5447_v14 }
  0xc9   :  { %4991 = vmatprep.subr.bf16.mxu0 %v5452_v15 }
  0xca   :  { %4756 = vmatmul.mubr.msk.bf16.gmra.mrb[24].mxu1 %vm227_vm0, %v5435_v16  ;;  %4960 = vmatmul.mubr.msk.bf16.gmra.mrb[8].mxu0 %vm227_vm0, %v5436_v17 }
  0xcb   :  { %4759 = vmatprep.mubr.msk.bf16.mxu1 %vm227_vm0, %v5439_v18  ;;  %4963 = vmatprep.mubr.msk.bf16.mxu0 %vm227_vm0, %v5440_v19 }
  0xcc   :  { %4992 = vmatpush3.bf16.msra.mxu0 %v5452_v15 }
  0xcd   :  { %4993 = vmatprep.subr.bf16.mxu0 %v5457_v20 }
  0xd0   :  { %4994 = vmatpush3.bf16.msra.mxu0 %v5457_v20 }
  0xd2   :  { %4760 = vmatmul.mubr.msk.bf16.gmra.mrb[28].mxu1 %vm227_vm0, %v5441_v21  ;;  %4964 = vmatmul.mubr.msk.bf16.gmra.mrb[12].mxu0 %vm227_vm0, %v5442_v22 }
  0xd3   :  { %4775 = vmatprep.mubr.msk.bf16.mxu1 %vm227_vm0, %v5443_v23  ;;  %4967 = vmatprep.mubr.msk.bf16.mxu0 %vm227_vm0, %v5444_v24 }
  0xda   :  { %4776 = vmatmul.mubr.msk.bf16.vlgmr.msra.gmra.mrb[0].mxu1 %vm227_vm0, %v5445_v25  ;;  %4968 = vmatmul.mubr.msk.bf16.gmra.mrb[16].mxu0 %vm227_vm0, %v5446_v26 }
  0xdb   :  { %5033 = vmatpush3.bf16.msra.mxu1 %v5494_v3  ;;  %4779 = vmatprep.mubr.msk.bf16.mxu1 %vm227_vm0, %v5448_v27  ;;  %v5485_v3 = vld [vmem:[%s6420_s0 + $0x458] sm:$0xff]  }
  0xdc   :  { %4971 = vmatprep.mubr.msk.bf16.mxu0 %vm227_vm0, %v5449_v28  ;;  %5028 = vmatprep.subr.bf16.mxu1 %v5495_v29 }
  0xdf   :  { %5034 = vmatpush3.bf16.msra.mxu1 %v5495_v29 }
  0xe0   :  { %5029 = vmatprep.subr.bf16.mxu1 %v5496_v34 }
  0xe2   :  { %4780 = vmatmul.mubr.msk.bf16.gmra.mrb[4].mxu1 %vm227_vm0, %v5450_v30  ;;  %4972 = vmatmul.mubr.msk.bf16.gmra.mrb[20].mxu0 %vm227_vm0, %v5451_v31 }
  0xe3   :  { %4783 = vmatprep.mubr.msk.bf16.mxu1 %vm227_vm0, %v5453_v32  ;;  %4975 = vmatprep.mubr.msk.bf16.mxu0 %vm227_vm0, %v5454_v33 }
  0xe4   :  { %5035 = vmatpush3.bf16.msra.mxu1 %v5496_v34 }
  0xe5   :  { %5030 = vmatprep.subr.bf16.mxu1 %v5497_v35 }
  0xe8   :  { %5036 = vmatpush3.bf16.msra.mxu1 %v5497_v35 }
  0xe9   :  { %5031 = vmatprep.subr.bf16.mxu1 %v5498_v40 }
  0xea   :  { %4784 = vmatmul.mubr.msk.bf16.gmra.mrb[8].mxu1 %vm227_vm0, %v5455_v36  ;;  %4976 = vmatmul.mubr.msk.bf16.gmra.mrb[24].mxu0 %vm227_vm0, %v5456_v37 }
  0xeb   :  { %4787 = vmatprep.mubr.msk.bf16.mxu1 %vm227_vm0, %v5458_v38  ;;  %4979 = vmatprep.mubr.msk.bf16.mxu0 %vm227_vm0, %v5459_v39 }
  0xec   :  { %5037 = vmatpush3.bf16.msra.mxu1 %v5498_v40 }
  0xed   :  { %5032 = vmatprep.subr.bf16.mxu1 %v5499_v41 }
  0xf0   :  { %5038 = vmatpush3.bf16.msra.mxu1 %v5499_v41 }
  0xf2   :  { %4788 = vmatmul.mubr.msk.bf16.gmra.mrb[12].mxu1 %vm227_vm0, %v5460_v42  ;;  %4980 = vmatmul.mubr.msk.bf16.gmra.mrb[28].mxu0 %vm227_vm0, %v5461_v43 }
  0xf3   :  { %4791 = vmatprep.mubr.msk.bf16.mxu1 %vm227_vm0, %v5462_v44  ;;  %4995 = vmatprep.mubr.msk.bf16.mxu0 %vm227_vm0, %v5463_v45 }
  0xfa   :  { %4792 = vmatmul.mubr.msk.bf16.gmra.mrb[16].mxu1 %vm227_vm0, %v5464_v46  ;;  %4996 = vmatmul.mubr.msk.bf16.vlgmr.msra.gmra.mrb[0].mxu0 %vm227_vm0, %v5465_v47 }
  0xfb   :  { %4795 = vmatprep.mubr.msk.bf16.mxu1 %vm227_vm0, %v5466_v48  ;;  %4999 = vmatprep.mubr.msk.bf16.mxu0 %vm227_vm0, %v5467_v49 }
 0x102   :  { %4796 = vmatmul.mubr.msk.bf16.gmra.mrb[20].mxu1 %vm227_vm0, %v5468_v50  ;;  %5000 = vmatmul.mubr.msk.bf16.gmra.mrb[4].mxu0 %vm227_vm0, %v5469_v51 }
 0x103   :  { %4799 = vmatprep.mubr.msk.bf16.mxu1 %vm227_vm0, %v5470_v52  ;;  %5003 = vmatprep.mubr.msk.bf16.mxu0 %vm227_vm0, %v5471_v53 }
 0x10a   :  { %4800 = vmatmul.mubr.msk.bf16.gmra.mrb[24].mxu1 %vm227_vm0, %v5472_v54  ;;  %5004 = vmatmul.mubr.msk.bf16.gmra.mrb[8].mxu0 %vm227_vm0, %v5473_v55 }
 0x10b   :  { %4803 = vmatprep.mubr.msk.bf16.mxu1 %vm227_vm0, %v5474_v56  ;;  %5007 = vmatprep.mubr.msk.bf16.mxu0 %vm227_vm0, %v5475_v57 }
 0x112   :  { %4804 = vmatmul.mubr.msk.bf16.gmra.mrb[28].mxu1 %vm227_vm0, %v5476_v58  ;;  %5008 = vmatmul.mubr.msk.bf16.gmra.mrb[12].mxu0 %vm227_vm0, %v5477_v59 }
 0x113   :  { %4835 = vmatprep.mubr.msk.bf16.mxu1 %vm227_vm0, %v5478_v60  ;;  %5011 = vmatprep.mubr.msk.bf16.mxu0 %vm227_vm0, %v5479_v61 }
 0x11a   :  { %4836 = vmatmul.mubr.msk.bf16.vlgmr.msra.gmra.mrb[16].mxu1 %vm227_vm0, %v5480_v62  ;;  %5012 = vmatmul.mubr.msk.bf16.gmra.mrb[16].mxu0 %vm227_vm0, %v5481_v63 }
 0x11b   :  { %4839 = vmatprep.mubr.msk.bf16.mxu1 %vm227_vm0, %v5482_v0  ;;  %5015 = vmatprep.mubr.msk.bf16.mxu0 %vm227_vm0, %v5483_v1 }
 0x122   :  { %4840 = vmatmul.mubr.msk.bf16.gmra.mrb[20].mxu1 %vm227_vm0, %v5484_v2  ;;  %5016 = vmatmul.mubr.msk.bf16.gmra.mrb[20].mxu0 %vm227_vm0, %v5485_v3 }
 0x123   :  { %4843 = vmatprep.mubr.msk.bf16.mxu1 %vm227_vm0, %v5486_v4  ;;  %5019 = vmatprep.mubr.msk.bf16.mxu0 %vm227_vm0, %v5487_v5 }
 0x12a   :  { %4844 = vmatmul.mubr.msk.bf16.gmra.mrb[24].mxu1 %vm227_vm0, %v5488_v6  ;;  %5020 = vmatmul.mubr.msk.bf16.gmra.mrb[24].mxu0 %vm227_vm0, %v5489_v7 }
 0x12b   :  { %4847 = vmatprep.mubr.msk.bf16.mxu1 %vm227_vm0, %v5490_v8  ;;  %5023 = vmatprep.mubr.msk.bf16.mxu0 %vm227_vm0, %v5491_v9 }
 0x132   :  { %4848 = vmatmul.mubr.msk.bf16.gmra.mrb[28].mxu1 %vm227_vm0, %v5492_v10  ;;  %5024 = vmatmul.mubr.msk.bf16.gmra.mrb[28].mxu0 %vm227_vm0, %v5493_v11 }
 0x1ad   :  { %v4777_v13 = vpop.f32.mrb[0].mxu1 }
 0x1ae   :  { %v1409_v14 = vpop.f32.mrb[1].mxu1 }
 0x1af   :  { %v4778_v15 = vpop.f32.mrb[2].mxu1 }
 0x1b0   :  { %v1412_v16 = vpop.f32.mrb[3].mxu1 }
 0x1b5   :  { %v4781_v17 = vpop.f32.mrb[4].mxu1 }
 0x1b6   :  { %v1425_v18 = vpop.f32.mrb[5].mxu1 }
 0x1b7   :  { %v4782_v19 = vpop.f32.mrb[6].mxu1 }
 0x1b8   :  { %v1428_v20 = vpop.f32.mrb[7].mxu1 }
 0x1bd   :  { %v4785_v21 = vpop.f32.mrb[8].mxu1 }
 0x1be   :  { %v1441_v22 = vpop.f32.mrb[9].mxu1 }
 0x1bf   :  { %v4786_v23 = vpop.f32.mrb[10].mxu1 }
 0x1c0   :  { %v6296_v24 = vpop.f32.mrb[11].mxu1 }
 0x1c5   :  { %v6298_v25 = vpop.f32.mrb[12].mxu1 }
 0x1c6   :  { %v6300_v26 = vpop.f32.mrb[13].mxu1 }
 0x1c7   :  { %v6302_v27 = vpop.f32.mrb[14].mxu1 }
 0x1c8   :  { %v6304_v28 = vpop.f32.mrb[15].mxu1 }
 0x1cd   :  { %v4997_v29 = vpop.f32.mrb[0].mxu0 }
 0x1ce   :  { %v5039_v30 = vadd.f32 %v4997_v29, %v4777_v13  ;;  %v3424_v31 = vpop.f32.mrb[1].mxu0 }
 0x1cf   :  { %v5040_v32 = vadd.f32 %v3424_v31, %v1409_v14  ;;  %v4998_v33 = vpop.f32.mrb[2].mxu0 }
 0x1d0   :  { %3585 = vst [vmem:[%s6423_s2 + $0x10] sm:$0xff] %v5039_v30  ;;  %v5041_v34 = vadd.f32 %v4998_v33, %v4778_v15  ;;  %v3427_v35 = vpop.f32.mrb[3].mxu0  ;;  %v3658_v40 = vmul.f32 %v5039_v30, %v5039_v30 }
 0x1d1   :  { %3583 = vst [vmem:[%s6423_s2] sm:$0xff] %v5040_v32  ;;  %v5042_v36 = vadd.f32 %v3427_v35, %v1412_v16  ;;  %v3656_v37 = vmul.f32 %v5040_v32, %v5040_v32 }
 0x1d2   :  { %3586 = vst [vmem:[%s6423_s2 + $0x18] sm:$0xff] %v5041_v34  ;;  %v3659_v46 = vmul.f32 %v5041_v34, %v5041_v34 }
 0x1d3   :  { %3584 = vst [vmem:[%s6423_s2 + $0x8] sm:$0xff] %v5042_v36  ;;  %v3616_v38 = vadd.f32 %v5042_v36, %v5040_v32  ;;  %v3657_v39 = vmul.f32 %v5042_v36, %v5042_v36 }
 0x1d5   :  { %v3617_v41 = vadd.f32 %v5039_v30, %v3616_v38  ;;  %v3688_v42 = vadd.f32 %v3657_v39, %v3656_v37  ;;  %v5001_v43 = vpop.f32.mrb[4].mxu0 }
 0x1d6   :  { %v5043_v44 = vadd.f32 %v5001_v43, %v4781_v17  ;;  %v3440_v45 = vpop.f32.mrb[5].mxu0 }
 0x1d7   :  { %v3689_v47 = vadd.f32 %v3688_v42, %v3658_v40  ;;  %v5044_v48 = vadd.f32 %v3440_v45, %v1425_v18  ;;  %v3618_v49 = vadd.f32 %v5041_v34, %v3617_v41  ;;  %v5002_v50 = vpop.f32.mrb[6].mxu0 }
 0x1d8   :  { %3589 = vst [vmem:[%s6423_s2 + $0x30] sm:$0xff] %v5043_v44  ;;  %v5045_v51 = vadd.f32 %v5002_v50, %v4782_v19  ;;  %v3443_v52 = vpop.f32.mrb[7].mxu0  ;;  %v3662_v60 = vmul.f32 %v5043_v44, %v5043_v44 }
 0x1d9   :  { %3587 = vst [vmem:[%s6423_s2 + $0x20] sm:$0xff] %v5044_v48  ;;  %v3619_v53 = vadd.f32 %v5044_v48, %v3618_v49  ;;  %v3660_v54 = vmul.f32 %v5044_v48, %v5044_v48  ;;  %v3690_v55 = vadd.f32 %v3689_v47, %v3659_v46  ;;  %v5046_v56 = vadd.f32 %v3443_v52, %v1428_v20 }
 0x1da   :  { %3590 = vst [vmem:[%s6423_s2 + $0x38] sm:$0xff] %v5045_v51  ;;  %v3663_v2 = vmul.f32 %v5045_v51, %v5045_v51 }
 0x1db   :  { %v3691_v57 = vadd.f32 %v3690_v55, %v3660_v54  ;;  %3588 = vst [vmem:[%s6423_s2 + $0x28] sm:$0xff] %v5046_v56  ;;  %v3620_v58 = vadd.f32 %v5046_v56, %v3619_v53  ;;  %v3661_v59 = vmul.f32 %v5046_v56, %v5046_v56 }
 0x1dd   :  { %v3621_v61 = vadd.f32 %v5043_v44, %v3620_v58  ;;  %v3692_v62 = vadd.f32 %v3691_v57, %v3661_v59  ;;  %v5005_v63 = vpop.f32.mrb[8].mxu0 }
 0x1de   :  { %v5047_v0 = vadd.f32 %v5005_v63, %v4785_v21  ;;  %v3456_v1 = vpop.f32.mrb[9].mxu0 }
 0x1df   :  { %v3693_v3 = vadd.f32 %v3692_v62, %v3662_v60  ;;  %v5048_v4 = vadd.f32 %v3456_v1, %v1441_v22  ;;  %v3622_v5 = vadd.f32 %v5045_v51, %v3621_v61  ;;  %v5006_v6 = vpop.f32.mrb[10].mxu0 }
 0x1e0   :  { %3593 = vst [vmem:[%s6423_s2 + $0x50] sm:$0xff] %v5047_v0  ;;  %v5049_v7 = vadd.f32 %v5006_v6, %v4786_v23  ;;  %v3459_v8 = vpop.f32.mrb[11].mxu0  ;;  %v3666_v16 = vmul.f32 %v5047_v0, %v5047_v0 }
 0x1e1   :  { %3591 = vst [vmem:[%s6423_s2 + $0x40] sm:$0xff] %v5048_v4  ;;  %v3623_v9 = vadd.f32 %v5048_v4, %v3622_v5  ;;  %v3664_v10 = vmul.f32 %v5048_v4, %v5048_v4  ;;  %v3694_v11 = vadd.f32 %v3693_v3, %v3663_v2  ;;  %v5050_v12 = vadd.f32 %v3459_v8, %v6296_v24 }
 0x1e2   :  { %3594 = vst [vmem:[%s6423_s2 + $0x58] sm:$0xff] %v5049_v7  ;;  %v3667_v22 = vmul.f32 %v5049_v7, %v5049_v7 }
 0x1e3   :  { %v3695_v13 = vadd.f32 %v3694_v11, %v3664_v10  ;;  %3592 = vst [vmem:[%s6423_s2 + $0x48] sm:$0xff] %v5050_v12  ;;  %v3624_v14 = vadd.f32 %v5050_v12, %v3623_v9  ;;  %v3665_v15 = vmul.f32 %v5050_v12, %v5050_v12 }
 0x1e5   :  { %v3625_v17 = vadd.f32 %v5047_v0, %v3624_v14  ;;  %v3696_v18 = vadd.f32 %v3695_v13, %v3665_v15  ;;  %v5009_v19 = vpop.f32.mrb[12].mxu0 }
 0x1e6   :  { %v5051_v20 = vadd.f32 %v5009_v19, %v6298_v25  ;;  %v3472_v21 = vpop.f32.mrb[13].mxu0 }
 0x1e7   :  { %v3697_v23 = vadd.f32 %v3696_v18, %v3666_v16  ;;  %v5052_v24 = vadd.f32 %v3472_v21, %v6300_v26  ;;  %v3626_v29 = vadd.f32 %v5049_v7, %v3625_v17  ;;  %v5010_v30 = vpop.f32.mrb[14].mxu0 }
 0x1e8   :  { %3597 = vst [vmem:[%s6423_s2 + $0x70] sm:$0xff] %v5051_v20  ;;  %v5053_v31 = vadd.f32 %v5010_v30, %v6302_v27  ;;  %v3475_v32 = vpop.f32.mrb[15].mxu0  ;;  %v3670_v38 = vmul.f32 %v5051_v20, %v5051_v20 }
 0x1e9   :  { %3595 = vst [vmem:[%s6423_s2 + $0x60] sm:$0xff] %v5052_v24  ;;  %v3627_v33 = vadd.f32 %v5052_v24, %v3626_v29  ;;  %v3668_v25 = vmul.f32 %v5052_v24, %v5052_v24  ;;  %v3698_v34 = vadd.f32 %v3697_v23, %v3667_v22  ;;  %v5054_v35 = vadd.f32 %v3475_v32, %v6304_v28 }
 0x1ea   :  { %3598 = vst [vmem:[%s6423_s2 + $0x78] sm:$0xff] %v5053_v31  ;;  %v3671_v45 = vmul.f32 %v5053_v31, %v5053_v31 }
 0x1eb   :  { %v3699_v26 = vadd.f32 %v3698_v34, %v3668_v25  ;;  %3596 = vst [vmem:[%s6423_s2 + $0x68] sm:$0xff] %v5054_v35  ;;  %v3628_v27 = vadd.f32 %v5054_v35, %v3627_v33  ;;  %v3669_v36 = vmul.f32 %v5054_v35, %v5054_v35 }
 0x1ed   :  { %v4837_v37 = vpop.f32.mrb[16].mxu1  ;;  %v3629_v39 = vadd.f32 %v5051_v20, %v3628_v27  ;;  %v3700_v40 = vadd.f32 %v3699_v26, %v3669_v36  ;;  %v5013_v41 = vpop.f32.mrb[16].mxu0 }
 0x1ee   :  { %v1876_v42 = vpop.f32.mrb[17].mxu1  ;;  %v5055_v43 = vadd.f32 %v5013_v41, %v4837_v37  ;;  %v3488_v44 = vpop.f32.mrb[17].mxu0 }
 0x1ef   :  { %v4838_v28 = vpop.f32.mrb[18].mxu1  ;;  %v3701_v46 = vadd.f32 %v3700_v40, %v3670_v38  ;;  %v5056_v47 = vadd.f32 %v3488_v44, %v1876_v42  ;;  %v3630_v48 = vadd.f32 %v5053_v31, %v3629_v39  ;;  %v5014_v49 = vpop.f32.mrb[18].mxu0 }
 0x1f0   :  { %v1879_v50 = vpop.f32.mrb[19].mxu1  ;;  %3601 = vst [vmem:[%s6423_s2 + $0x90] sm:$0xff] %v5055_v43  ;;  %v5057_v51 = vadd.f32 %v5014_v49, %v4838_v28  ;;  %v3491_v52 = vpop.f32.mrb[19].mxu0  ;;  %v3674_v61 = vmul.f32 %v5055_v43, %v5055_v43 }
 0x1f1   :  { %3599 = vst [vmem:[%s6423_s2 + $0x80] sm:$0xff] %v5056_v47  ;;  %v3631_v53 = vadd.f32 %v5056_v47, %v3630_v48  ;;  %v3672_v54 = vmul.f32 %v5056_v47, %v5056_v47  ;;  %v3702_v55 = vadd.f32 %v3701_v46, %v3671_v45  ;;  %v5058_v56 = vadd.f32 %v3491_v52, %v1879_v50 }
 0x1f2   :  { %3602 = vst [vmem:[%s6423_s2 + $0x98] sm:$0xff] %v5057_v51  ;;  %v3675_v5 = vmul.f32 %v5057_v51, %v5057_v51 }
 0x1f3   :  { %v3703_v57 = vadd.f32 %v3702_v55, %v3672_v54  ;;  %3600 = vst [vmem:[%s6423_s2 + $0x88] sm:$0xff] %v5058_v56  ;;  %v3632_v58 = vadd.f32 %v5058_v56, %v3631_v53  ;;  %v3673_v59 = vmul.f32 %v5058_v56, %v5058_v56 }
 0x1f5   :  { %v4841_v60 = vpop.f32.mrb[20].mxu1  ;;  %v3633_v62 = vadd.f32 %v5055_v43, %v3632_v58  ;;  %v3704_v63 = vadd.f32 %v3703_v57, %v3673_v59  ;;  %v5017_v0 = vpop.f32.mrb[20].mxu0 }
 0x1f6   :  { %v1892_v1 = vpop.f32.mrb[21].mxu1  ;;  %v5059_v2 = vadd.f32 %v5017_v0, %v4841_v60  ;;  %v3504_v3 = vpop.f32.mrb[21].mxu0 }
 0x1f7   :  { %v4842_v4 = vpop.f32.mrb[22].mxu1  ;;  %v3705_v6 = vadd.f32 %v3704_v63, %v3674_v61  ;;  %v5060_v7 = vadd.f32 %v3504_v3, %v1892_v1  ;;  %v3634_v8 = vadd.f32 %v5057_v51, %v3633_v62  ;;  %v5018_v9 = vpop.f32.mrb[22].mxu0 }
 0x1f8   :  { %v1895_v10 = vpop.f32.mrb[23].mxu1  ;;  %3605 = vst [vmem:[%s6423_s2 + $0xb0] sm:$0xff] %v5059_v2  ;;  %v5061_v11 = vadd.f32 %v5018_v9, %v4842_v4  ;;  %v3507_v12 = vpop.f32.mrb[23].mxu0  ;;  %v3678_v21 = vmul.f32 %v5059_v2, %v5059_v2 }
 0x1f9   :  { %3603 = vst [vmem:[%s6423_s2 + $0xa0] sm:$0xff] %v5060_v7  ;;  %v3635_v13 = vadd.f32 %v5060_v7, %v3634_v8  ;;  %v3676_v14 = vmul.f32 %v5060_v7, %v5060_v7  ;;  %v3706_v15 = vadd.f32 %v3705_v6, %v3675_v5  ;;  %v5062_v16 = vadd.f32 %v3507_v12, %v1895_v10 }
 0x1fa   :  { %3606 = vst [vmem:[%s6423_s2 + $0xb8] sm:$0xff] %v5061_v11  ;;  %v3679_v33 = vmul.f32 %v5061_v11, %v5061_v11 }
 0x1fb   :  { %v3707_v17 = vadd.f32 %v3706_v15, %v3676_v14  ;;  %3604 = vst [vmem:[%s6423_s2 + $0xa8] sm:$0xff] %v5062_v16  ;;  %v3636_v18 = vadd.f32 %v5062_v16, %v3635_v13  ;;  %v3677_v19 = vmul.f32 %v5062_v16, %v5062_v16 }
 0x1fd   :  { %v4845_v20 = vpop.f32.mrb[24].mxu1  ;;  %v3637_v22 = vadd.f32 %v5059_v2, %v3636_v18  ;;  %v3708_v23 = vadd.f32 %v3707_v17, %v3677_v19  ;;  %v5021_v24 = vpop.f32.mrb[24].mxu0 }
 0x1fe   :  { %v1908_v29 = vpop.f32.mrb[25].mxu1  ;;  %v5063_v30 = vadd.f32 %v5021_v24, %v4845_v20  ;;  %v3520_v31 = vpop.f32.mrb[25].mxu0  ;;  %v3615_v20 = vld [vmem:[%s6421_s3] sm:$0x1] }
 0x1ff   :  { %v4846_v32 = vpop.f32.mrb[26].mxu1  ;;  %v3709_v25 = vadd.f32 %v3708_v23, %v3678_v21  ;;  %v5064_v34 = vadd.f32 %v3520_v31, %v1908_v29  ;;  %v3638_v35 = vadd.f32 %v5061_v11, %v3637_v22  ;;  %v5022_v26 = vpop.f32.mrb[26].mxu0  ;;  %v3655_v23 = vld [vmem:[%s6422_s4] sm:$0x1] }
 0x200   :  { %v1911_v27 = vpop.f32.mrb[27].mxu1  ;;  %3609 = vst [vmem:[%s6423_s2 + $0xd0] sm:$0xff] %v5063_v30  ;;  %v5065_v36 = vadd.f32 %v5022_v26, %v4846_v32  ;;  %v3523_v37 = vpop.f32.mrb[27].mxu0  ;;  %v3682_v45 = vmul.f32 %v5063_v30, %v5063_v30 }
 0x201   :  { %3607 = vst [vmem:[%s6423_s2 + $0xc0] sm:$0xff] %v5064_v34  ;;  %v3639_v38 = vadd.f32 %v5064_v34, %v3638_v35  ;;  %v3680_v39 = vmul.f32 %v5064_v34, %v5064_v34  ;;  %v3710_v40 = vadd.f32 %v3709_v25, %v3679_v33  ;;  %v5066_v41 = vadd.f32 %v3523_v37, %v1911_v27 }
 0x202   :  { %3610 = vst [vmem:[%s6423_s2 + $0xd8] sm:$0xff] %v5065_v36  ;;  %v3683_v53 = vmul.f32 %v5065_v36, %v5065_v36 }
 0x203   :  { %v3711_v42 = vadd.f32 %v3710_v40, %v3680_v39  ;;  %3608 = vst [vmem:[%s6423_s2 + $0xc8] sm:$0xff] %v5066_v41  ;;  %v3640_v43 = vadd.f32 %v5066_v41, %v3639_v38  ;;  %v3681_v44 = vmul.f32 %v5066_v41, %v5066_v41 }
 0x205   :  { %v4849_v28 = vpop.f32.mrb[28].mxu1  ;;  %v3641_v46 = vadd.f32 %v5063_v30, %v3640_v43  ;;  %v3712_v47 = vadd.f32 %v3711_v42, %v3681_v44  ;;  %v5025_v48 = vpop.f32.mrb[28].mxu0 }
 0x206   :  { %v1924_v49 = vpop.f32.mrb[29].mxu1  ;;  %v5067_v50 = vadd.f32 %v5025_v48, %v4849_v28  ;;  %v3536_v51 = vpop.f32.mrb[29].mxu0 }
 0x207   :  { %v4850_v52 = vpop.f32.mrb[30].mxu1  ;;  %v3713_v54 = vadd.f32 %v3712_v47, %v3682_v45  ;;  %v5068_v55 = vadd.f32 %v3536_v51, %v1924_v49  ;;  %v3642_v56 = vadd.f32 %v5065_v36, %v3641_v46  ;;  %v5026_v57 = vpop.f32.mrb[30].mxu0 }
 0x208   :  { %v1927_v58 = vpop.f32.mrb[31].mxu1  ;;  %3613 = vst [vmem:[%s6423_s2 + $0xf0] sm:$0xff] %v5067_v50  ;;  %v5069_v59 = vadd.f32 %v5026_v57, %v4850_v52  ;;  %v3539_v60 = vpop.f32.mrb[31].mxu0  ;;  %v3686_v4 = vmul.f32 %v5067_v50, %v5067_v50 }
 0x209   :  { %3611 = vst [vmem:[%s6423_s2 + $0xe0] sm:$0xff] %v5068_v55  ;;  %v3643_v61 = vadd.f32 %v5068_v55, %v3642_v56  ;;  %v3684_v62 = vmul.f32 %v5068_v55, %v5068_v55  ;;  %v3714_v63 = vadd.f32 %v3713_v54, %v3683_v53  ;;  %v5070_v0 = vadd.f32 %v3539_v60, %v1927_v58 }
 0x20a   :  { %3614 = vst [vmem:[%s6423_s2 + $0xf8] sm:$0xff] %v5069_v59  ;;  %v3687_v7 = vmul.f32 %v5069_v59, %v5069_v59 }
 0x20b   :  { %v3715_v1 = vadd.f32 %v3714_v63, %v3684_v62  ;;  %3612 = vst [vmem:[%s6423_s2 + $0xe8] sm:$0xff] %v5070_v0  ;;  %v3644_v2 = vadd.f32 %v5070_v0, %v3643_v61  ;;  %v3685_v3 = vmul.f32 %v5070_v0, %v5070_v0 }
 0x20d   :  { %v3645_v5 = vadd.f32 %v5067_v50, %v3644_v2  ;;  %v3716_v6 = vadd.f32 %v3715_v1, %v3685_v3 }
 0x20f   :  { %v3646_v8 = vadd.f32 %v5069_v59, %v3645_v5  ;;  %v3717_v9 = vadd.f32 %v3716_v6, %v3686_v4 }
 0x211   :  { %v3647_v10 = vrot.slane %v3646_v8, 4  ;;  %v3718_v11 = vadd.f32 %v3717_v9, %v3687_v7 }
 0x213   :  { %v3648_v12 = vadd.f32 %v3647_v10, %v3646_v8  ;;  %v3719_v13 = vrot.slane %v3718_v11, 4 }
 0x215   :  { %v3649_v14 = vrot.slane %v3648_v12, 2  ;;  %v3720_v15 = vadd.f32 %v3719_v13, %v3718_v11 }
 0x217   :  { %v3650_v16 = vadd.f32 %v3649_v14, %v3648_v12  ;;  %v3721_v17 = vrot.slane %v3720_v15, 2 }
 0x219   :  { %v3651_v18 = vrot.slane %v3650_v16, 1  ;;  %v3722_v19 = vadd.f32 %v3721_v17, %v3720_v15 }
 0x21b   :  { %v3652_v21 = vadd.f32 %v3651_v18, %v3650_v16  ;;  %v3723_v22 = vrot.slane %v3722_v19, 1 }
 0x21d   :  { %v3653_v24 = vadd.f32 %v3652_v21, %v3615_v20  ;;  %v3724_v29 = vadd.f32 %v3723_v22, %v3722_v19 }
 0x21f   :  { %3654 = vst [vmem:[%s6421_s3] sm:$0x1] %v3653_v24  ;;  %v3725_v30 = vadd.f32 %v3724_v29, %v3655_v23 }
 0x221   :  { %3726 = vst [vmem:[%s6422_s4] sm:$0x1] %v3725_v30 }

// kernel: reduction_block_a.10
= control target key start
LH: loop header
LB: loop body
LE: loop exit
PB: predicated region body
PF: predicated region fallthrough
CT: control target
= control target key end

     0   :  { %s916_s12 = smov 0   ;;  %s918_s13 = smov 0   ;;  %s1270_s0 = inlined_call_operand.vmem [shape: f32[256,384], index: 0, kind: input, shape index: {}]   ;;  %s1271_s1 = inlined_call_operand.vmem [shape: f32[1,384], index: 1, kind: input, shape index: {}]   ;;  %s1272_s2 = inlined_call_operand.vmem [shape: f32[1,384], index: 2, kind: input, shape index: {}]   ;;  %s1273_s3 = inlined_call_operand.vmem [shape: f32[256,384], index: 3, kind: output, shape index: {}]  }
   0x1   :  { %s920_s14 = smov 0   ;;  %s922_s15 = smov 0  }
   0x2   :  { %s924_s16 = smov 0  }
   0x3 LB: > { %s25_s17 = sadd.s32 1, %s890_s15  ;;  %s801_s18 = sadd.s32 4294967295, %s894_s16   ;;  %s894_s16 = sphi %s924_s16, %s13_s16   ;;  %s890_s15 = sphi %s922_s15, %s1278_s15   ;;  %s886_s14 = sphi %s920_s14, %s1277_s14   ;;  %s882_s13 = sphi %s918_s13, %s1276_s13   ;;  %s878_s12 = sphi %s916_s12, %s1275_s12  }
   0x4   : > { %p27_p0 = scmp.ge.s32.totalorder %s25_s17, 3  ;;  %p41_p1 = scmp.ne.s32.totalorder %s882_s13, %s878_s12 }
   0x5   : > { %p42_p2 = scmp.eq.s32.totalorder %s894_s16, 0  ;;  %p125_p4 = scmp.eq.s32.totalorder %s801_s18, 2 }
   0x6   : > { %s1280_s17 = smov (%p27_p0, %s25_s17), 0  ;;  %s34_s20 = sadd.s32 1, %s882_s13 }
   0x7   : > { %p43_p3 = por %p42_p2, %p41_p1  ;;  %s30_s19 = ssub.s32 %s890_s15, %s1280_s17 }
   0x8   : > { %p32_p5 = scmp.eq.s32.totalorder %s30_s19, 0  ;;  %p951_p6 = por %p125_p4, %p41_p1 }
   0x9   : > { %p804_p7 = scmp.ge.s32.totalorder %s894_s16, 3 }
   0xa   : > { %s956_s22 = scalar_select %p32_p5, %s882_s13, %s34_s20  }
   0xb   : > { %147 = sbr.rel (%p804_p7) target bundleno = 38 (0x26), region = 16 }
  0x12   : > { %150 = sbr.rel (!%p43_p3) target bundleno = 38 (0x26), region = 20  ;;  %s152_s23 = sand.u32 (%p43_p3), 1, %s882_s13  }
  0x13   : > { %s806_s24 = sshll.u32 (%p43_p3), %s890_s15, 3  ;;  %s805_s25 = sshll.u32 (%p43_p3), %s152_s23, 8 }
  0x14   : > { %s964_s28 = scalar_lea.vmem (%p43_p3), %s1270_s0, %s806_s24  ;;  %s969_s29 = scalar_lea.vmem (%p43_p3), [#allocation2], %s805_s25 }
  0x15   : > { %v249_v0 = vld [vmem:[%s964_s28] sm:$0xff] (%p43_p3)  ;;  %v251_v1 = vld [vmem:[%s964_s28 + $0x18] sm:$0xff] (%p43_p3)  ;;  %v253_v2 = vld [vmem:[%s964_s28 + $0x30] sm:$0xff] (%p43_p3) }
  0x16   : > { %250 = vst [vmem:[%s969_s29] sm:$0xff] (%p43_p3), %v249_v0  ;;  %252 = vst [vmem:[%s969_s29 + $0x8] sm:$0xff] (%p43_p3), %v251_v1  ;;  %v255_v3 = vld [vmem:[%s964_s28 + $0x48] sm:$0xff] (%p43_p3)  ;;  %v257_v4 = vld [vmem:[%s964_s28 + $0x60] sm:$0xff] (%p43_p3) }
  0x17   : > { %254 = vst [vmem:[%s969_s29 + $0x10] sm:$0xff] (%p43_p3), %v253_v2  ;;  %v259_v5 = vld [vmem:[%s964_s28 + $0x78] sm:$0xff] (%p43_p3)  ;;  %256 = vst [vmem:[%s969_s29 + $0x18] sm:$0xff] (%p43_p3), %v255_v3  ;;  %v261_v6 = vld [vmem:[%s964_s28 + $0x90] sm:$0xff] (%p43_p3) }
  0x18   : > { %258 = vst [vmem:[%s969_s29 + $0x20] sm:$0xff] (%p43_p3), %v257_v4  ;;  %260 = vst [vmem:[%s969_s29 + $0x28] sm:$0xff] (%p43_p3), %v259_v5  ;;  %v263_v7 = vld [vmem:[%s964_s28 + $0xa8] sm:$0xff] (%p43_p3)  ;;  %v265_v8 = vld [vmem:[%s964_s28 + $0xc0] sm:$0xff] (%p43_p3) }
  0x19   : > { %262 = vst [vmem:[%s969_s29 + $0x30] sm:$0xff] %v261_v6  ;;  %264 = vst [vmem:[%s969_s29 + $0x38] sm:$0xff] %v263_v7  ;;  %v267_v9 = vld [vmem:[%s964_s28 + $0xd8] sm:$0xff]  ;;  %v269_v10 = vld [vmem:[%s964_s28 + $0xf0] sm:$0xff] }
  0x1a   : > { %266 = vst [vmem:[%s969_s29 + $0x40] sm:$0xff] %v265_v8  ;;  %v271_v11 = vld [vmem:[%s964_s28 + $0x108] sm:$0xff]  ;;  %268 = vst [vmem:[%s969_s29 + $0x48] sm:$0xff] %v267_v9  ;;  %v273_v12 = vld [vmem:[%s964_s28 + $0x120] sm:$0xff] }
  0x1b   : > { %270 = vst [vmem:[%s969_s29 + $0x50] sm:$0xff] %v269_v10  ;;  %272 = vst [vmem:[%s969_s29 + $0x58] sm:$0xff] %v271_v11  ;;  %v275_v13 = vld [vmem:[%s964_s28 + $0x138] sm:$0xff]  ;;  %v277_v14 = vld [vmem:[%s964_s28 + $0x150] sm:$0xff] }
  0x1c   : > { %274 = vst [vmem:[%s969_s29 + $0x60] sm:$0xff] %v273_v12  ;;  %276 = vst [vmem:[%s969_s29 + $0x68] sm:$0xff] %v275_v13  ;;  %v279_v15 = vld [vmem:[%s964_s28 + $0x168] sm:$0xff]  ;;  %v281_v16 = vld [vmem:[%s964_s28 + $0x180] sm:$0xff] }
  0x1d   : > { %278 = vst [vmem:[%s969_s29 + $0x70] sm:$0xff] %v277_v14  ;;  %v283_v17 = vld [vmem:[%s964_s28 + $0x198] sm:$0xff]  ;;  %280 = vst [vmem:[%s969_s29 + $0x78] sm:$0xff] %v279_v15  ;;  %v285_v18 = vld [vmem:[%s964_s28 + $0x1b0] sm:$0xff] }
  0x1e   : > { %282 = vst [vmem:[%s969_s29 + $0x80] sm:$0xff] %v281_v16  ;;  %284 = vst [vmem:[%s969_s29 + $0x88] sm:$0xff] %v283_v17  ;;  %v287_v19 = vld [vmem:[%s964_s28 + $0x1c8] sm:$0xff]  ;;  %v289_v20 = vld [vmem:[%s964_s28 + $0x1e0] sm:$0xff] }
  0x1f   : > { %286 = vst [vmem:[%s969_s29 + $0x90] sm:$0xff] %v285_v18  ;;  %288 = vst [vmem:[%s969_s29 + $0x98] sm:$0xff] %v287_v19  ;;  %v291_v21 = vld [vmem:[%s964_s28 + $0x1f8] sm:$0xff]  ;;  %v293_v22 = vld [vmem:[%s964_s28 + $0x210] sm:$0xff] }
  0x20   : > { %290 = vst [vmem:[%s969_s29 + $0xa0] sm:$0xff] %v289_v20  ;;  %v295_v23 = vld [vmem:[%s964_s28 + $0x228] sm:$0xff]  ;;  %292 = vst [vmem:[%s969_s29 + $0xa8] sm:$0xff] %v291_v21  ;;  %v297_v24 = vld [vmem:[%s964_s28 + $0x240] sm:$0xff] }
  0x21   : > { %294 = vst [vmem:[%s969_s29 + $0xb0] sm:$0xff] %v293_v22  ;;  %296 = vst [vmem:[%s969_s29 + $0xb8] sm:$0xff] %v295_v23  ;;  %v299_v25 = vld [vmem:[%s964_s28 + $0x258] sm:$0xff]  ;;  %v301_v26 = vld [vmem:[%s964_s28 + $0x270] sm:$0xff] }
  0x22   : > { %298 = vst [vmem:[%s969_s29 + $0xc0] sm:$0xff] %v297_v24  ;;  %300 = vst [vmem:[%s969_s29 + $0xc8] sm:$0xff] %v299_v25  ;;  %v303_v27 = vld [vmem:[%s964_s28 + $0x288] sm:$0xff]  ;;  %v305_v28 = vld [vmem:[%s964_s28 + $0x2a0] sm:$0xff] }
  0x23   : > { %302 = vst [vmem:[%s969_s29 + $0xd0] sm:$0xff] %v301_v26  ;;  %v307_v29 = vld [vmem:[%s964_s28 + $0x2b8] sm:$0xff]  ;;  %304 = vst [vmem:[%s969_s29 + $0xd8] sm:$0xff] %v303_v27  ;;  %v309_v30 = vld [vmem:[%s964_s28 + $0x2d0] sm:$0xff] }
  0x24   : > { %306 = vst [vmem:[%s969_s29 + $0xe0] sm:$0xff] %v305_v28  ;;  %308 = vst [vmem:[%s969_s29 + $0xe8] sm:$0xff] %v307_v29  ;;  %v311_v31 = vld [vmem:[%s964_s28 + $0x2e8] sm:$0xff] }
  0x25   : > { %310 = vst [vmem:[%s969_s29 + $0xf0] sm:$0xff] %v309_v30  ;;  %312 = vst [vmem:[%s969_s29 + $0xf8] sm:$0xff] %v311_v31 }
  0x26 PF: > { %p807_p8 = scmp.ge.s32.totalorder %s894_s16, 1  ;;  %p329_p9 = scmp.lt.s32.totalorder %s894_s16, 4 }
  0x28   : > { %p330_p10 = pnand %p807_p8, %p329_p9 }
  0x29   : > { %s336_s30 = sand.u32 (!%p330_p10), 1, %s878_s12   ;;  %p365_p11 = scmp.lt.s32.totalorder (!%p330_p10), %s886_s14, 2 }
  0x2a   : > { %333 = sbr.rel (%p330_p10) target bundleno = 95 (0x5f), region = 66  ;;  %s1036_s4 = sshll.u32 (!%p330_p10), %s336_s30, 8 }
  0x2b   : > { %s1040_s6 = scalar_lea.vmem (!%p330_p10), [#allocation2], %s1036_s4  ;;  %s1085_s18 = scalar_lea.vmem (!%p330_p10), [#allocation3], %s1036_s4 }
  0x2c   : > { %v372_v32 = vld [vmem:[%s1040_s6] sm:$0xff] (!%p330_p10)  ;;  %v373_v33 = vld [vmem:[%s1040_s6 + $0x8] sm:$0xff] (!%p330_p10)  ;;  %v374_v34 = vld [vmem:[%s1040_s6 + $0x10] sm:$0xff] (!%p330_p10) }
  0x2d   : > { %v375_v35 = vld [vmem:[%s1040_s6 + $0x18] sm:$0xff] (!%p330_p10)  ;;  %v376_v36 = vld [vmem:[%s1040_s6 + $0x20] sm:$0xff] (!%p330_p10)  ;;  %v377_v37 = vld [vmem:[%s1040_s6 + $0x28] sm:$0xff] (!%p330_p10) }
  0x2e   : > { %v378_v38 = vld [vmem:[%s1040_s6 + $0x30] sm:$0xff] (!%p330_p10)  ;;  %v379_v39 = vld [vmem:[%s1040_s6 + $0x38] sm:$0xff] (!%p330_p10)  ;;  %v380_v54 = vld [vmem:[%s1040_s6 + $0x40] sm:$0xff] (!%p330_p10) }
  0x2f   : > { %v381_v55 = vld [vmem:[%s1040_s6 + $0x48] sm:$0xff] (!%p330_p10)  ;;  %v382_v56 = vld [vmem:[%s1040_s6 + $0x50] sm:$0xff] (!%p330_p10)  ;;  %v383_v61 = vld [vmem:[%s1040_s6 + $0x58] sm:$0xff] (!%p330_p10) }
  0x30   : > { %v384_v62 = vld [vmem:[%s1040_s6 + $0x60] sm:$0xff] (!%p330_p10)  ;;  %v385_v63 = vld [vmem:[%s1040_s6 + $0x68] sm:$0xff] (!%p330_p10)  ;;  %v386_v4 = vld [vmem:[%s1040_s6 + $0x70] sm:$0xff] (!%p330_p10) }
  0x31   : > { %s366_s5 = scalar_select %p365_p11, %s886_s14, 2  ;;  %v387_v5 = vld [vmem:[%s1040_s6 + $0x78] sm:$0xff]  ;;  %v388_v22 = vld [vmem:[%s1040_s6 + $0x80] sm:$0xff]  ;;  %v389_v23 = vld [vmem:[%s1040_s6 + $0x88] sm:$0xff] }
  0x32   : > { %v390_v24 = vld [vmem:[%s1040_s6 + $0x90] sm:$0xff]  ;;  %v391_v29 = vld [vmem:[%s1040_s6 + $0x98] sm:$0xff]  ;;  %v392_v30 = vld [vmem:[%s1040_s6 + $0xa0] sm:$0xff]  ;;  %s813_s19 = sshll.u32 (%p951_p6), %s886_s14, 3 }
  0x33   : > { %s367_s9 = scalar_lea.vmem %s1271_s1, %s366_s5  ;;  %s370_s12 = scalar_lea.vmem %s1272_s2, %s366_s5  ;;  %v393_v31 = vld [vmem:[%s1040_s6 + $0xa8] sm:$0xff] }
  0x34   : > { %v1056_v40 = vld [vmem:[%s367_s9] ss:$0 sm:$0xff]  ;;  %s1192_s24 = scalar_lea.vmem (%p951_p6), %s1273_s3, %s813_s19 }
  0x35   : > { %v1058_v41 = vld [vmem:[%s370_s12] ss:$0 sm:$0xff]  ;;  %v411_v42 = vmul.f32 %v1056_v40, %v372_v32  ;;  %v412_v43 = vmul.f32 %v1056_v40, %v373_v33  ;;  %v413_v44 = vmul.f32 %v1056_v40, %v374_v34  ;;  %v414_v45 = vmul.f32 %v1056_v40, %v375_v35 }
  0x36   : > { %v415_v46 = vmul.f32 %v1056_v40, %v376_v36  ;;  %v416_v47 = vmul.f32 %v1056_v40, %v377_v37  ;;  %v417_v48 = vmul.f32 %v1056_v40, %v378_v38  ;;  %v418_v49 = vmul.f32 %v1056_v40, %v379_v39  ;;  %v394_v36 = vld [vmem:[%s1040_s6 + $0xb0] sm:$0xff]  ;;  %v395_v37 = vld [vmem:[%s1040_s6 + $0xb8] sm:$0xff] }
  0x37   : > { %v450_v50 = vadd.f32 %v1058_v41, %v411_v42  ;;  %v451_v51 = vadd.f32 %v1058_v41, %v412_v43  ;;  %v452_v52 = vadd.f32 %v1058_v41, %v413_v44  ;;  %v453_v53 = vadd.f32 %v1058_v41, %v414_v45 }
  0x38   : > { %v454_v57 = vadd.f32 %v1058_v41, %v415_v46  ;;  %v455_v58 = vadd.f32 %v1058_v41, %v416_v47  ;;  %v456_v59 = vadd.f32 %v1058_v41, %v417_v48  ;;  %v457_v60 = vadd.f32 %v1058_v41, %v418_v49 }
  0x39   : > { %v482_v0 = vmax.f32 %v450_v50, 0.0  ;;  %v483_v1 = vmax.f32 %v451_v51, 0.0  ;;  %v484_v2 = vmax.f32 %v452_v52, 0.0  ;;  %v485_v3 = vmax.f32 %v453_v53, 0.0 }
  0x3a   : > { %v486_v6 = vmax.f32 %v454_v57, 0.0  ;;  %v487_v7 = vmax.f32 %v455_v58, 0.0  ;;  %v488_v8 = vmax.f32 %v456_v59, 0.0  ;;  %v489_v9 = vmax.f32 %v457_v60, 0.0  ;;  %v397_v57 = vld [vmem:[%s1040_s6 + $0xc8] sm:$0xff]  ;;  %v398_v58 = vld [vmem:[%s1040_s6 + $0xd0] sm:$0xff] }
  0x3b   : > { %514 = vst [vmem:[%s1085_s18] sm:$0xff] %v482_v0  ;;  %515 = vst [vmem:[%s1085_s18 + $0x8] sm:$0xff] %v483_v1  ;;  %v419_v10 = vmul.f32 %v1056_v40, %v380_v54  ;;  %v420_v11 = vmul.f32 %v1056_v40, %v381_v55  ;;  %v421_v12 = vmul.f32 %v1056_v40, %v382_v56  ;;  %v396_v56 = vld [vmem:[%s1040_s6 + $0xc0] sm:$0xff]  ;;  %v401_v1 = vld [vmem:[%s1040_s6 + $0xe8] sm:$0xff] }
  0x3c   : > { %516 = vst [vmem:[%s1085_s18 + $0x10] sm:$0xff] %v484_v2  ;;  %517 = vst [vmem:[%s1085_s18 + $0x18] sm:$0xff] %v485_v3  ;;  %v422_v13 = vmul.f32 %v1056_v40, %v383_v61  ;;  %v423_v14 = vmul.f32 %v1056_v40, %v384_v62  ;;  %v424_v15 = vmul.f32 %v1056_v40, %v385_v63  ;;  %v399_v63 = vld [vmem:[%s1040_s6 + $0xd8] sm:$0xff]  ;;  %v400_v0 = vld [vmem:[%s1040_s6 + $0xe0] sm:$0xff] }
  0x3d   : > { %518 = vst [vmem:[%s1085_s18 + $0x20] sm:$0xff] %v486_v6  ;;  %519 = vst [vmem:[%s1085_s18 + $0x28] sm:$0xff] %v487_v7  ;;  %v425_v16 = vmul.f32 %v1056_v40, %v386_v4  ;;  %v426_v17 = vmul.f32 %v1056_v40, %v387_v5  ;;  %v458_v18 = vadd.f32 %v1058_v41, %v419_v10  ;;  %v402_v6 = vld [vmem:[%s1040_s6 + $0xf0] sm:$0xff]  ;;  %v403_v7 = vld [vmem:[%s1040_s6 + $0xf8] sm:$0xff] }
  0x3e   : > { %520 = vst [vmem:[%s1085_s18 + $0x30] sm:$0xff] %v488_v8  ;;  %521 = vst [vmem:[%s1085_s18 + $0x38] sm:$0xff] %v489_v9  ;;  %v459_v19 = vadd.f32 %v1058_v41, %v420_v11  ;;  %v460_v20 = vadd.f32 %v1058_v41, %v421_v12  ;;  %v461_v21 = vadd.f32 %v1058_v41, %v422_v13 }
  0x3f   : > { %v462_v25 = vadd.f32 %v1058_v41, %v423_v14  ;;  %v463_v26 = vadd.f32 %v1058_v41, %v424_v15  ;;  %v464_v27 = vadd.f32 %v1058_v41, %v425_v16  ;;  %v465_v28 = vadd.f32 %v1058_v41, %v426_v17 }
  0x40   : > { %v490_v32 = vmax.f32 %v458_v18, 0.0  ;;  %v491_v33 = vmax.f32 %v459_v19, 0.0  ;;  %v492_v34 = vmax.f32 %v460_v20, 0.0  ;;  %v493_v35 = vmax.f32 %v461_v21, 0.0 }
  0x41   : > { %v494_v38 = vmax.f32 %v462_v25, 0.0  ;;  %v495_v39 = vmax.f32 %v463_v26, 0.0  ;;  %v496_v42 = vmax.f32 %v464_v27, 0.0  ;;  %v497_v43 = vmax.f32 %v465_v28, 0.0 }
  0x42   : > { %522 = vst [vmem:[%s1085_s18 + $0x40] sm:$0xff] %v490_v32  ;;  %523 = vst [vmem:[%s1085_s18 + $0x48] sm:$0xff] %v491_v33  ;;  %v427_v44 = vmul.f32 %v1056_v40, %v388_v22  ;;  %v428_v45 = vmul.f32 %v1056_v40, %v389_v23  ;;  %v429_v46 = vmul.f32 %v1056_v40, %v390_v24 }
  0x43   : > { %524 = vst [vmem:[%s1085_s18 + $0x50] sm:$0xff] %v492_v34  ;;  %525 = vst [vmem:[%s1085_s18 + $0x58] sm:$0xff] %v493_v35  ;;  %v430_v47 = vmul.f32 %v1056_v40, %v391_v29  ;;  %v431_v48 = vmul.f32 %v1056_v40, %v392_v30  ;;  %v432_v49 = vmul.f32 %v1056_v40, %v393_v31  ;;  %v649_v35 = vld [vmem:[%s1085_s18 + $0x8] sm:$0xff] (%p951_p6) }
  0x44   : > { %526 = vst [vmem:[%s1085_s18 + $0x60] sm:$0xff] %v494_v38  ;;  %527 = vst [vmem:[%s1085_s18 + $0x68] sm:$0xff] %v495_v39  ;;  %v433_v50 = vmul.f32 %v1056_v40, %v394_v36  ;;  %v434_v51 = vmul.f32 %v1056_v40, %v395_v37  ;;  %v466_v52 = vadd.f32 %v1058_v41, %v427_v44  ;;  %v651_v36 = vld [vmem:[%s1085_s18 + $0x10] sm:$0xff] (%p951_p6)  ;;  %v653_v37 = vld [vmem:[%s1085_s18 + $0x18] sm:$0xff] (%p951_p6) }
  0x45   : > { %528 = vst [vmem:[%s1085_s18 + $0x70] sm:$0xff] %v496_v42  ;;  %529 = vst [vmem:[%s1085_s18 + $0x78] sm:$0xff] %v497_v43  ;;  %v467_v53 = vadd.f32 %v1058_v41, %v428_v45  ;;  %v468_v54 = vadd.f32 %v1058_v41, %v429_v46  ;;  %v469_v55 = vadd.f32 %v1058_v41, %v430_v47  ;;  %v655_v38 = vld [vmem:[%s1085_s18 + $0x20] sm:$0xff] (%p951_p6)  ;;  %v657_v39 = vld [vmem:[%s1085_s18 + $0x28] sm:$0xff] (%p951_p6) }
  0x46   : > { %v470_v59 = vadd.f32 %v1058_v41, %v431_v48  ;;  %v471_v60 = vadd.f32 %v1058_v41, %v432_v49  ;;  %v472_v61 = vadd.f32 %v1058_v41, %v433_v50  ;;  %v473_v62 = vadd.f32 %v1058_v41, %v434_v51  ;;  %650 = vst [vmem:[%s1192_s24 + $0x18] sm:$0xff] (%p951_p6), %v649_v35  ;;  %v659_v42 = vld [vmem:[%s1085_s18 + $0x30] sm:$0xff] (%p951_p6)  ;;  %v661_v43 = vld [vmem:[%s1085_s18 + $0x38] sm:$0xff] (%p951_p6) }
  0x47   : > { %v498_v2 = vmax.f32 %v466_v52, 0.0  ;;  %v499_v3 = vmax.f32 %v467_v53, 0.0  ;;  %v500_v4 = vmax.f32 %v468_v54, 0.0  ;;  %v501_v5 = vmax.f32 %v469_v55, 0.0  ;;  %652 = vst [vmem:[%s1192_s24 + $0x30] sm:$0xff] (%p951_p6), %v651_v36  ;;  %654 = vst [vmem:[%s1192_s24 + $0x48] sm:$0xff] (%p951_p6), %v653_v37 }
  0x48   : > { %v502_v8 = vmax.f32 %v470_v59, 0.0  ;;  %v503_v9 = vmax.f32 %v471_v60, 0.0  ;;  %v504_v10 = vmax.f32 %v472_v61, 0.0  ;;  %v505_v11 = vmax.f32 %v473_v62, 0.0  ;;  %656 = vst [vmem:[%s1192_s24 + $0x60] sm:$0xff] (%p951_p6), %v655_v38  ;;  %658 = vst [vmem:[%s1192_s24 + $0x78] sm:$0xff] (%p951_p6), %v657_v39 }
  0x49   : > { %530 = vst [vmem:[%s1085_s18 + $0x80] sm:$0xff] %v498_v2  ;;  %531 = vst [vmem:[%s1085_s18 + $0x88] sm:$0xff] %v499_v3  ;;  %v435_v12 = vmul.f32 %v1056_v40, %v396_v56  ;;  %v436_v13 = vmul.f32 %v1056_v40, %v397_v57  ;;  %v437_v14 = vmul.f32 %v1056_v40, %v398_v58  ;;  %v663_v44 = vld [vmem:[%s1085_s18 + $0x40] sm:$0xff] (%p951_p6)  ;;  %v665_v45 = vld [vmem:[%s1085_s18 + $0x48] sm:$0xff] (%p951_p6) }
  0x4a   : > { %532 = vst [vmem:[%s1085_s18 + $0x90] sm:$0xff] %v500_v4  ;;  %533 = vst [vmem:[%s1085_s18 + $0x98] sm:$0xff] %v501_v5  ;;  %v438_v15 = vmul.f32 %v1056_v40, %v399_v63  ;;  %v439_v16 = vmul.f32 %v1056_v40, %v400_v0  ;;  %v440_v17 = vmul.f32 %v1056_v40, %v401_v1  ;;  %v667_v46 = vld [vmem:[%s1085_s18 + $0x50] sm:$0xff] (%p951_p6)  ;;  %v669_v47 = vld [vmem:[%s1085_s18 + $0x58] sm:$0xff] (%p951_p6) }
  0x4b   : > { %534 = vst [vmem:[%s1085_s18 + $0xa0] sm:$0xff] %v502_v8  ;;  %535 = vst [vmem:[%s1085_s18 + $0xa8] sm:$0xff] %v503_v9  ;;  %v441_v18 = vmul.f32 %v1056_v40, %v402_v6  ;;  %v442_v19 = vmul.f32 %v1056_v40, %v403_v7  ;;  %v474_v20 = vadd.f32 %v1058_v41, %v435_v12  ;;  %v671_v48 = vld [vmem:[%s1085_s18 + $0x60] sm:$0xff] (%p951_p6)  ;;  %v673_v49 = vld [vmem:[%s1085_s18 + $0x68] sm:$0xff] (%p951_p6) }
  0x4c   : > { %536 = vst [vmem:[%s1085_s18 + $0xb0] sm:$0xff] %v504_v10  ;;  %537 = vst [vmem:[%s1085_s18 + $0xb8] sm:$0xff] %v505_v11  ;;  %v475_v21 = vadd.f32 %v1058_v41, %v436_v13  ;;  %v476_v22 = vadd.f32 %v1058_v41, %v437_v14  ;;  %v477_v23 = vadd.f32 %v1058_v41, %v438_v15  ;;  %v675_v50 = vld [vmem:[%s1085_s18 + $0x70] sm:$0xff] (%p951_p6)  ;;  %v677_v51 = vld [vmem:[%s1085_s18 + $0x78] sm:$0xff] (%p951_p6) }
  0x4d   : > { %v478_v24 = vadd.f32 %v1058_v41, %v439_v16  ;;  %v479_v25 = vadd.f32 %v1058_v41, %v440_v17  ;;  %v480_v40 = vadd.f32 %v1058_v41, %v441_v18  ;;  %v481_v26 = vadd.f32 %v1058_v41, %v442_v19  ;;  %552 = sbr.rel (!%p951_p6) target bundleno = 95 (0x5f), region = 74  ;;  %v647_v41 = vld [vmem:[%s1085_s18] sm:$0xff] (%p951_p6)  ;;  %660 = vst [vmem:[%s1192_s24 + $0x90] sm:$0xff] (%p951_p6), %v659_v42 }
  0x4e   : > { %v506_v27 = vmax.f32 %v474_v20, 0.0  ;;  %v507_v28 = vmax.f32 %v475_v21, 0.0  ;;  %v508_v29 = vmax.f32 %v476_v22, 0.0  ;;  %v509_v30 = vmax.f32 %v477_v23, 0.0  ;;  %648 = vst [vmem:[%s1192_s24] sm:$0xff] (%p951_p6), %v647_v41  ;;  %662 = vst [vmem:[%s1192_s24 + $0xa8] sm:$0xff] (%p951_p6), %v661_v43 }
  0x4f   : > { %v510_v31 = vmax.f32 %v478_v24, 0.0  ;;  %v511_v32 = vmax.f32 %v479_v25, 0.0  ;;  %v512_v33 = vmax.f32 %v480_v40, 0.0  ;;  %v513_v34 = vmax.f32 %v481_v26, 0.0  ;;  %664 = vst [vmem:[%s1192_s24 + $0xc0] sm:$0xff] (%p951_p6), %v663_v44  ;;  %666 = vst [vmem:[%s1192_s24 + $0xd8] sm:$0xff] (%p951_p6), %v665_v45 }
  0x50   : > { %538 = vst [vmem:[%s1085_s18 + $0xc0] sm:$0xff] %v506_v27  ;;  %539 = vst [vmem:[%s1085_s18 + $0xc8] sm:$0xff] %v507_v28  ;;  %v679_v52 = vld [vmem:[%s1085_s18 + $0x80] sm:$0xff] (%p951_p6)  ;;  %v681_v53 = vld [vmem:[%s1085_s18 + $0x88] sm:$0xff] (%p951_p6) }
  0x51   : > { %540 = vst [vmem:[%s1085_s18 + $0xd0] sm:$0xff] %v508_v29  ;;  %541 = vst [vmem:[%s1085_s18 + $0xd8] sm:$0xff] %v509_v30  ;;  %v683_v54 = vld [vmem:[%s1085_s18 + $0x90] sm:$0xff] (%p951_p6)  ;;  %v685_v55 = vld [vmem:[%s1085_s18 + $0x98] sm:$0xff] (%p951_p6) }
  0x52   : > { %542 = vst [vmem:[%s1085_s18 + $0xe0] sm:$0xff] %v510_v31  ;;  %543 = vst [vmem:[%s1085_s18 + $0xe8] sm:$0xff] %v511_v32  ;;  %v687_v56 = vld [vmem:[%s1085_s18 + $0xa0] sm:$0xff] (%p951_p6)  ;;  %v689_v57 = vld [vmem:[%s1085_s18 + $0xa8] sm:$0xff] (%p951_p6) }
  0x53   : > { %544 = vst [vmem:[%s1085_s18 + $0xf0] sm:$0xff] %v512_v33  ;;  %545 = vst [vmem:[%s1085_s18 + $0xf8] sm:$0xff] %v513_v34  ;;  %v691_v58 = vld [vmem:[%s1085_s18 + $0xb0] sm:$0xff] (%p951_p6)  ;;  %v693_v59 = vld [vmem:[%s1085_s18 + $0xb8] sm:$0xff] (%p951_p6) }
  0x54   : > { %668 = vst [vmem:[%s1192_s24 + $0xf0] sm:$0xff] %v667_v46  ;;  %670 = vst [vmem:[%s1192_s24 + $0x108] sm:$0xff] %v669_v47 }
  0x55   : > { %672 = vst [vmem:[%s1192_s24 + $0x120] sm:$0xff] %v671_v48  ;;  %674 = vst [vmem:[%s1192_s24 + $0x138] sm:$0xff] %v673_v49 }
  0x56   : > { %676 = vst [vmem:[%s1192_s24 + $0x150] sm:$0xff] %v675_v50  ;;  %678 = vst [vmem:[%s1192_s24 + $0x168] sm:$0xff] %v677_v51 }
  0x57   : > { %680 = vst [vmem:[%s1192_s24 + $0x180] sm:$0xff] %v679_v52  ;;  %682 = vst [vmem:[%s1192_s24 + $0x198] sm:$0xff] %v681_v53  ;;  %v695_v60 = vld [vmem:[%s1085_s18 + $0xc0] sm:$0xff]  ;;  %v697_v61 = vld [vmem:[%s1085_s18 + $0xc8] sm:$0xff] }
  0x58   : > { %684 = vst [vmem:[%s1192_s24 + $0x1b0] sm:$0xff] %v683_v54  ;;  %686 = vst [vmem:[%s1192_s24 + $0x1c8] sm:$0xff] %v685_v55  ;;  %v699_v62 = vld [vmem:[%s1085_s18 + $0xd0] sm:$0xff]  ;;  %v701_v63 = vld [vmem:[%s1085_s18 + $0xd8] sm:$0xff] }
  0x59   : > { %688 = vst [vmem:[%s1192_s24 + $0x1e0] sm:$0xff] %v687_v56  ;;  %690 = vst [vmem:[%s1192_s24 + $0x1f8] sm:$0xff] %v689_v57  ;;  %v703_v0 = vld [vmem:[%s1085_s18 + $0xe0] sm:$0xff]  ;;  %v705_v1 = vld [vmem:[%s1085_s18 + $0xe8] sm:$0xff] }
  0x5a   : > { %692 = vst [vmem:[%s1192_s24 + $0x210] sm:$0xff] %v691_v58  ;;  %694 = vst [vmem:[%s1192_s24 + $0x228] sm:$0xff] %v693_v59  ;;  %v707_v2 = vld [vmem:[%s1085_s18 + $0xf0] sm:$0xff]  ;;  %v709_v3 = vld [vmem:[%s1085_s18 + $0xf8] sm:$0xff] }
  0x5b   : > { %696 = vst [vmem:[%s1192_s24 + $0x240] sm:$0xff] %v695_v60  ;;  %698 = vst [vmem:[%s1192_s24 + $0x258] sm:$0xff] %v697_v61 }
  0x5c   : > { %700 = vst [vmem:[%s1192_s24 + $0x270] sm:$0xff] %v699_v62  ;;  %702 = vst [vmem:[%s1192_s24 + $0x288] sm:$0xff] %v701_v63 }
  0x5d   : > { %704 = vst [vmem:[%s1192_s24 + $0x2a0] sm:$0xff] %v703_v0  ;;  %706 = vst [vmem:[%s1192_s24 + $0x2b8] sm:$0xff] %v705_v1 }
  0x5e   : > { %708 = vst [vmem:[%s1192_s24 + $0x2d0] sm:$0xff] %v707_v2  ;;  %710 = vst [vmem:[%s1192_s24 + $0x2e8] sm:$0xff] %v709_v3 }
  0x5f PF: > { %s13_s16 = sadd.s32 1, %s894_s16   ;;  %s1275_s12 = smov %s882_s13 }
  0x60   : > { %p10_p12 = scmp.ge.s32.totalorder %s13_s16, 5   ;;  %s1276_s13 = smov %s956_s22 }
  0x61   : > { %s1277_s14 = smov %s890_s15  ;;  %s1278_s15 = smov %s1280_s17 }
  0x62   :  { %12 = sbr.rel (!%p10_p12) target bundleno = 3 (0x3), region = 149 }

// kernel: reduction_block_a.17
= control target key start
LH: loop header
LB: loop body
LE: loop exit
PB: predicated region body
PF: predicated region fallthrough
CT: control target
= control target key end

     0   :  { %s724_s6 = smov 0   ;;  %s726_s7 = smov 0   ;;  %s991_s0 = inlined_call_operand.vmem [shape: f32[9,2,49,4], index: 0, kind: input, shape index: {}]   ;;  %s992_s1 = inlined_call_operand.vmem [shape: f32[2,49,4], index: 1, kind: output, shape index: {}]  }
   0x1   :  { %s728_s8 = smov 0  }
   0x2 LB: > { %s597_s9 = sadd.s32 4294967295, %s712_s8   ;;  %s741_s10 = sadd.s32 1, %s712_s8   ;;  %s712_s8 = sphi %s728_s8, %s995_s8   ;;  %s708_s7 = sphi %s726_s7, %s994_s7   ;;  %s704_s6 = sphi %s724_s6, %s993_s6  }
   0x3   : > { %s15_s11 = ssub.s32 %s712_s8, %s741_s10  ;;  %s18_s12 = sadd.s32 1, %s708_s7 }
   0x4   : > { %p16_p0 = scmp.eq.s32.totalorder %s15_s11, 0  ;;  %p25_p1 = scmp.ne.s32.totalorder %s708_s7, %s704_s6 }
   0x5   : > { %p26_p2 = scmp.eq.s32.totalorder %s712_s8, 0  ;;  %p600_p4 = scmp.ge.s32.totalorder %s712_s8, 2 }
   0x6   : > { %s750_s13 = scalar_select %p16_p0, %s708_s7, %s18_s12  }
   0x7   : > { %p27_p3 = por %p26_p2, %p25_p1  ;;  %77 = sbr.rel (%p600_p4) target bundleno = 51 (0x33), region = 16 }
   0xe   : > { %80 = sbr.rel (!%p27_p3) target bundleno = 51 (0x33), region = 20  ;;  %s82_s14 = sand.u32 (%p27_p3), 1, %s708_s7  }
   0xf   : > { %s663_s15 = smul.u32 (%p27_p3), 56, %s712_s8 }
  0x10   : > { %s662_s16 = smul.u32 (%p27_p3), 504, %s82_s14 }
  0x11   : > { %s758_s19 = scalar_lea.vmem (%p27_p3), %s991_s0, %s663_s15 }
  0x12   : > { %v239_v0 = vld [vmem:[%s758_s19] sm:$0xff] (%p27_p3)  ;;  %v241_v1 = vld [vmem:[%s758_s19 + $0x8] sm:$0xff] (%p27_p3)  ;;  %v243_v2 = vld [vmem:[%s758_s19 + $0x10] sm:$0xff] (%p27_p3)  ;;  %s763_s20 = scalar_lea.vmem (%p27_p3), [#allocation2], %s662_s16 }
  0x13   : > { %240 = vst [vmem:[%s763_s20] sm:$0xff] (%p27_p3), %v239_v0  ;;  %242 = vst [vmem:[%s763_s20 + $0x8] sm:$0xff] (%p27_p3), %v241_v1  ;;  %v245_v3 = vld [vmem:[%s758_s19 + $0x18] sm:$0xff] (%p27_p3)  ;;  %v247_v4 = vld [vmem:[%s758_s19 + $0x20] sm:$0xff] (%p27_p3) }
  0x14   : > { %244 = vst [vmem:[%s763_s20 + $0x10] sm:$0xff] (%p27_p3), %v243_v2  ;;  %v249_v5 = vld [vmem:[%s758_s19 + $0x28] sm:$0xff] (%p27_p3)  ;;  %246 = vst [vmem:[%s763_s20 + $0x18] sm:$0xff] (%p27_p3), %v245_v3  ;;  %v251_v6 = vld [vmem:[%s758_s19 + $0x30] sm:$0xff] (%p27_p3) }
  0x15   : > { %248 = vst [vmem:[%s763_s20 + $0x20] sm:$0xff] %v247_v4  ;;  %250 = vst [vmem:[%s763_s20 + $0x28] sm:$0xff] %v249_v5  ;;  %v253_v7 = vld [vmem:[%s758_s19 + $0x70] sm:$0xff]  ;;  %v255_v8 = vld [vmem:[%s758_s19 + $0x78] sm:$0xff] }
  0x16   : > { %252 = vst [vmem:[%s763_s20 + $0x30] sm:$0xff] %v251_v6  ;;  %254 = vst [vmem:[%s763_s20 + $0x38] sm:$0xff] %v253_v7  ;;  %v257_v9 = vld [vmem:[%s758_s19 + $0x80] sm:$0xff]  ;;  %v259_v10 = vld [vmem:[%s758_s19 + $0x88] sm:$0xff] }
  0x17   : > { %256 = vst [vmem:[%s763_s20 + $0x40] sm:$0xff] %v255_v8  ;;  %v261_v11 = vld [vmem:[%s758_s19 + $0x90] sm:$0xff]  ;;  %258 = vst [vmem:[%s763_s20 + $0x48] sm:$0xff] %v257_v9  ;;  %v263_v12 = vld [vmem:[%s758_s19 + $0x98] sm:$0xff] }
  0x18   : > { %260 = vst [vmem:[%s763_s20 + $0x50] sm:$0xff] %v259_v10  ;;  %262 = vst [vmem:[%s763_s20 + $0x58] sm:$0xff] %v261_v11  ;;  %v265_v13 = vld [vmem:[%s758_s19 + $0xa0] sm:$0xff]  ;;  %v269_v15 = vld [vmem:[%s758_s19 + $0xe8] sm:$0xff] }
  0x19   : > { %v267_v14 = vld [vmem:[%s758_s19 + $0xe0] sm:$0xff]  ;;  %264 = vst [vmem:[%s763_s20 + $0x60] sm:$0xff] %v263_v12  ;;  %266 = vst [vmem:[%s763_s20 + $0x68] sm:$0xff] %v265_v13  ;;  %v271_v16 = vld [vmem:[%s758_s19 + $0xf0] sm:$0xff] }
  0x1a   : > { %268 = vst [vmem:[%s763_s20 + $0x70] sm:$0xff] %v267_v14  ;;  %v273_v17 = vld [vmem:[%s758_s19 + $0xf8] sm:$0xff]  ;;  %270 = vst [vmem:[%s763_s20 + $0x78] sm:$0xff] %v269_v15  ;;  %v275_v18 = vld [vmem:[%s758_s19 + $0x100] sm:$0xff] }
  0x1b   : > { %272 = vst [vmem:[%s763_s20 + $0x80] sm:$0xff] %v271_v16  ;;  %274 = vst [vmem:[%s763_s20 + $0x88] sm:$0xff] %v273_v17  ;;  %v277_v19 = vld [vmem:[%s758_s19 + $0x108] sm:$0xff]  ;;  %v279_v20 = vld [vmem:[%s758_s19 + $0x110] sm:$0xff] }
  0x1c   : > { %276 = vst [vmem:[%s763_s20 + $0x90] sm:$0xff] %v275_v18  ;;  %278 = vst [vmem:[%s763_s20 + $0x98] sm:$0xff] %v277_v19  ;;  %v281_v21 = vld [vmem:[%s758_s19 + $0x150] sm:$0xff]  ;;  %v283_v22 = vld [vmem:[%s758_s19 + $0x158] sm:$0xff] }
  0x1d   : > { %280 = vst [vmem:[%s763_s20 + $0xa0] sm:$0xff] %v279_v20  ;;  %v285_v23 = vld [vmem:[%s758_s19 + $0x160] sm:$0xff]  ;;  %282 = vst [vmem:[%s763_s20 + $0xa8] sm:$0xff] %v281_v21  ;;  %v287_v24 = vld [vmem:[%s758_s19 + $0x168] sm:$0xff] }
  0x1e   : > { %284 = vst [vmem:[%s763_s20 + $0xb0] sm:$0xff] %v283_v22  ;;  %286 = vst [vmem:[%s763_s20 + $0xb8] sm:$0xff] %v285_v23  ;;  %v289_v25 = vld [vmem:[%s758_s19 + $0x170] sm:$0xff]  ;;  %v291_v26 = vld [vmem:[%s758_s19 + $0x178] sm:$0xff] }
  0x1f   : > { %288 = vst [vmem:[%s763_s20 + $0xc0] sm:$0xff] %v287_v24  ;;  %290 = vst [vmem:[%s763_s20 + $0xc8] sm:$0xff] %v289_v25  ;;  %v293_v27 = vld [vmem:[%s758_s19 + $0x180] sm:$0xff]  ;;  %v297_v29 = vld [vmem:[%s758_s19 + $0x1c8] sm:$0xff] }
  0x20   : > { %292 = vst [vmem:[%s763_s20 + $0xd0] sm:$0xff] %v291_v26  ;;  %v295_v28 = vld [vmem:[%s758_s19 + $0x1c0] sm:$0xff]  ;;  %294 = vst [vmem:[%s763_s20 + $0xd8] sm:$0xff] %v293_v27  ;;  %v299_v30 = vld [vmem:[%s758_s19 + $0x1d0] sm:$0xff] }
  0x21   : > { %296 = vst [vmem:[%s763_s20 + $0xe0] sm:$0xff] %v295_v28  ;;  %298 = vst [vmem:[%s763_s20 + $0xe8] sm:$0xff] %v297_v29  ;;  %v301_v31 = vld [vmem:[%s758_s19 + $0x1d8] sm:$0xff]  ;;  %v303_v32 = vld [vmem:[%s758_s19 + $0x1e0] sm:$0xff] }
  0x22   : > { %300 = vst [vmem:[%s763_s20 + $0xf0] sm:$0xff] %v299_v30  ;;  %302 = vst [vmem:[%s763_s20 + $0xf8] sm:$0xff] %v301_v31  ;;  %v305_v33 = vld [vmem:[%s758_s19 + $0x1e8] sm:$0xff]  ;;  %v307_v34 = vld [vmem:[%s758_s19 + $0x1f0] sm:$0xff] }
  0x23   : > { %304 = vst [vmem:[%s763_s20 + $0x100] sm:$0xff] %v303_v32  ;;  %v309_v35 = vld [vmem:[%s758_s19 + $0x230] sm:$0xff]  ;;  %306 = vst [vmem:[%s763_s20 + $0x108] sm:$0xff] %v305_v33  ;;  %v311_v36 = vld [vmem:[%s758_s19 + $0x238] sm:$0xff] }
  0x24   : > { %308 = vst [vmem:[%s763_s20 + $0x110] sm:$0xff] %v307_v34  ;;  %310 = vst [vmem:[%s763_s20 + $0x118] sm:$0xff] %v309_v35  ;;  %v313_v37 = vld [vmem:[%s758_s19 + $0x240] sm:$0xff]  ;;  %v315_v38 = vld [vmem:[%s758_s19 + $0x248] sm:$0xff] }
  0x25   : > { %312 = vst [vmem:[%s763_s20 + $0x120] sm:$0xff] %v311_v36  ;;  %314 = vst [vmem:[%s763_s20 + $0x128] sm:$0xff] %v313_v37  ;;  %v317_v39 = vld [vmem:[%s758_s19 + $0x250] sm:$0xff]  ;;  %v319_v40 = vld [vmem:[%s758_s19 + $0x258] sm:$0xff] }
  0x26   : > { %316 = vst [vmem:[%s763_s20 + $0x130] sm:$0xff] %v315_v38  ;;  %v321_v41 = vld [vmem:[%s758_s19 + $0x260] sm:$0xff]  ;;  %318 = vst [vmem:[%s763_s20 + $0x138] sm:$0xff] %v317_v39  ;;  %v325_v43 = vld [vmem:[%s758_s19 + $0x2a8] sm:$0xff] }
  0x27   : > { %320 = vst [vmem:[%s763_s20 + $0x140] sm:$0xff] %v319_v40  ;;  %322 = vst [vmem:[%s763_s20 + $0x148] sm:$0xff] %v321_v41  ;;  %v323_v42 = vld [vmem:[%s758_s19 + $0x2a0] sm:$0xff]  ;;  %v327_v44 = vld [vmem:[%s758_s19 + $0x2b0] sm:$0xff] }
  0x28   : > { %324 = vst [vmem:[%s763_s20 + $0x150] sm:$0xff] %v323_v42  ;;  %326 = vst [vmem:[%s763_s20 + $0x158] sm:$0xff] %v325_v43  ;;  %v329_v45 = vld [vmem:[%s758_s19 + $0x2b8] sm:$0xff]  ;;  %v331_v46 = vld [vmem:[%s758_s19 + $0x2c0] sm:$0xff] }
  0x29   : > { %328 = vst [vmem:[%s763_s20 + $0x160] sm:$0xff] %v327_v44  ;;  %v333_v47 = vld [vmem:[%s758_s19 + $0x2c8] sm:$0xff]  ;;  %330 = vst [vmem:[%s763_s20 + $0x168] sm:$0xff] %v329_v45  ;;  %v335_v48 = vld [vmem:[%s758_s19 + $0x2d0] sm:$0xff] }
  0x2a   : > { %332 = vst [vmem:[%s763_s20 + $0x170] sm:$0xff] %v331_v46  ;;  %334 = vst [vmem:[%s763_s20 + $0x178] sm:$0xff] %v333_v47  ;;  %v337_v49 = vld [vmem:[%s758_s19 + $0x310] sm:$0xff]  ;;  %v339_v50 = vld [vmem:[%s758_s19 + $0x318] sm:$0xff] }
  0x2b   : > { %336 = vst [vmem:[%s763_s20 + $0x180] sm:$0xff] %v335_v48  ;;  %338 = vst [vmem:[%s763_s20 + $0x188] sm:$0xff] %v337_v49  ;;  %v341_v51 = vld [vmem:[%s758_s19 + $0x320] sm:$0xff]  ;;  %v343_v52 = vld [vmem:[%s758_s19 + $0x328] sm:$0xff] }
  0x2c   : > { %340 = vst [vmem:[%s763_s20 + $0x190] sm:$0xff] %v339_v50  ;;  %v345_v53 = vld [vmem:[%s758_s19 + $0x330] sm:$0xff]  ;;  %342 = vst [vmem:[%s763_s20 + $0x198] sm:$0xff] %v341_v51  ;;  %v347_v54 = vld [vmem:[%s758_s19 + $0x338] sm:$0xff] }
  0x2d   : > { %344 = vst [vmem:[%s763_s20 + $0x1a0] sm:$0xff] %v343_v52  ;;  %346 = vst [vmem:[%s763_s20 + $0x1a8] sm:$0xff] %v345_v53  ;;  %v349_v55 = vld [vmem:[%s758_s19 + $0x340] sm:$0xff]  ;;  %v353_v57 = vld [vmem:[%s758_s19 + $0x388] sm:$0xff] }
  0x2e   : > { %v351_v56 = vld [vmem:[%s758_s19 + $0x380] sm:$0xff]  ;;  %348 = vst [vmem:[%s763_s20 + $0x1b0] sm:$0xff] %v347_v54  ;;  %350 = vst [vmem:[%s763_s20 + $0x1b8] sm:$0xff] %v349_v55  ;;  %v355_v58 = vld [vmem:[%s758_s19 + $0x390] sm:$0xff] }
  0x2f   : > { %352 = vst [vmem:[%s763_s20 + $0x1c0] sm:$0xff] %v351_v56  ;;  %v357_v59 = vld [vmem:[%s758_s19 + $0x398] sm:$0xff]  ;;  %354 = vst [vmem:[%s763_s20 + $0x1c8] sm:$0xff] %v353_v57  ;;  %v359_v60 = vld [vmem:[%s758_s19 + $0x3a0] sm:$0xff] }
  0x30   : > { %356 = vst [vmem:[%s763_s20 + $0x1d0] sm:$0xff] %v355_v58  ;;  %358 = vst [vmem:[%s763_s20 + $0x1d8] sm:$0xff] %v357_v59  ;;  %v361_v61 = vld [vmem:[%s758_s19 + $0x3a8] sm:$0xff]  ;;  %v363_v62 = vld [vmem:[%s758_s19 + $0x3b0] sm:$0xff] }
  0x31   : > { %360 = vst [vmem:[%s763_s20 + $0x1e0] sm:$0xff] %v359_v60  ;;  %362 = vst [vmem:[%s763_s20 + $0x1e8] sm:$0xff] %v361_v61 }
  0x32   : > { %364 = vst [vmem:[%s763_s20 + $0x1f0] sm:$0xff] %v363_v62 }
  0x33 PF: > { %p602_p5 = scmp.ge.s32.totalorder %s712_s8, 1  ;;  %p369_p6 = scmp.lt.s32.totalorder %s712_s8, 3 }
  0x35   : > { %p370_p7 = pnand %p602_p5, %p369_p6 }
  0x36   : > { %s376_s21 = sand.u32 (!%p370_p7), 1, %s704_s6   ;;  %p395_p8 = scmp.lt.s32.totalorder (!%p370_p7), %s597_s9, 1  ;;  %vm527_vm0 = vcmask (!%p370_p7), 31744   ;;  %vm534_vm1 = vcmask (!%p370_p7), 24576  }
  0x37   : > { %373 = sbr.rel (%p370_p7) target bundleno = 92 (0x5c), region = 58 }
  0x38   : > { %s664_s22 = smul.u32 (!%p370_p7), 504, %s376_s21 }
  0x3a   : > { %s891_s23 = scalar_lea.vmem (!%p370_p7), [#allocation2], %s664_s22 }
  0x3b   : > { %v400_v63 = vld [vmem:[%s891_s23] sm:$0xff] (!%p370_p7)  ;;  %v604_v0 = vld [vmem:[%s891_s23 + $0x38] sm:$0xff] (!%p370_p7)  ;;  %v611_v1 = vld [vmem:[%s891_s23 + $0x70] sm:$0xff] (!%p370_p7) }
  0x3c   : > { %v415_v2 = vmax.f32 (!%p370_p7), %v400_v63, %v604_v0  ;;  %v618_v3 = vld [vmem:[%s891_s23 + $0xa8] sm:$0xff] (!%p370_p7)  ;;  %v605_v6 = vld [vmem:[%s891_s23 + $0x40] sm:$0xff] (!%p370_p7)  ;;  %v612_v7 = vld [vmem:[%s891_s23 + $0x78] sm:$0xff] (!%p370_p7) }
  0x3d   : > { %v401_v5 = vld [vmem:[%s891_s23 + $0x8] sm:$0xff] (!%p370_p7)  ;;  %v625_v8 = vld [vmem:[%s891_s23 + $0xe0] sm:$0xff] (!%p370_p7)  ;;  %v632_v11 = vld [vmem:[%s891_s23 + $0x118] sm:$0xff] (!%p370_p7) }
  0x3e   : > { %v430_v4 = vmax.f32 %v415_v2, %v611_v1  ;;  %v416_v9 = vmax.f32 %v401_v5, %v605_v6  ;;  %v619_v12 = vld [vmem:[%s891_s23 + $0xb0] sm:$0xff]  ;;  %s997_s9 = smov (!%p395_p8, %s597_s9), 1  ;;  %v606_v15 = vld [vmem:[%s891_s23 + $0x48] sm:$0xff]  ;;  %v613_v16 = vld [vmem:[%s891_s23 + $0x80] sm:$0xff] }
  0x3f   : > { %v402_v14 = vld [vmem:[%s891_s23 + $0x10] sm:$0xff]  ;;  %v626_v18 = vld [vmem:[%s891_s23 + $0xe8] sm:$0xff]  ;;  %v633_v22 = vld [vmem:[%s891_s23 + $0x120] sm:$0xff]  ;;  %s665_s24 = smul.u32 56, %s997_s9 }
  0x40   : > { %v445_v10 = vmax.f32 %v430_v4, %v618_v3  ;;  %v431_v13 = vmax.f32 %v416_v9, %v612_v7  ;;  %v417_v19 = vmax.f32 %v402_v14, %v606_v15  ;;  %v639_v20 = vld [vmem:[%s891_s23 + $0x150] sm:$0xff]  ;;  %v620_v23 = vld [vmem:[%s891_s23 + $0xb8] sm:$0xff]  ;;  %v614_v28 = vld [vmem:[%s891_s23 + $0x88] sm:$0xff] }
  0x41   : > { %v403_v26 = vld [vmem:[%s891_s23 + $0x18] sm:$0xff]  ;;  %v607_v27 = vld [vmem:[%s891_s23 + $0x50] sm:$0xff]  ;;  %v646_v29 = vld [vmem:[%s891_s23 + $0x188] sm:$0xff]  ;;  %s935_s27 = scalar_lea.vmem %s992_s1, %s665_s24 }
  0x42   : > { %v460_v17 = vmax.f32 %v445_v10, %v625_v8  ;;  %v446_v21 = vmax.f32 %v431_v13, %v619_v12  ;;  %v432_v25 = vmax.f32 %v417_v19, %v613_v16  ;;  %v653_v30 = vld [vmem:[%s891_s23 + $0x1c0] sm:$0xff]  ;;  %v627_v32 = vld [vmem:[%s891_s23 + $0xf0] sm:$0xff]  ;;  %v418_v33 = vmax.f32 %v403_v26, %v607_v27  ;;  %v640_v35 = vld [vmem:[%s891_s23 + $0x158] sm:$0xff] }
  0x43   : > { %v634_v37 = vld [vmem:[%s891_s23 + $0x128] sm:$0xff]  ;;  %v621_v38 = vld [vmem:[%s891_s23 + $0xc0] sm:$0xff]  ;;  %v608_v42 = vld [vmem:[%s891_s23 + $0x58] sm:$0xff] }
  0x44   : > { %v475_v24 = vmax.f32 %v460_v17, %v632_v11  ;;  %v461_v31 = vmax.f32 %v446_v21, %v626_v18  ;;  %v447_v36 = vmax.f32 %v432_v25, %v620_v23  ;;  %v433_v40 = vmax.f32 %v418_v33, %v614_v28  ;;  %v404_v41 = vld [vmem:[%s891_s23 + $0x20] sm:$0xff]  ;;  %v615_v43 = vld [vmem:[%s891_s23 + $0x90] sm:$0xff]  ;;  %v654_v46 = vld [vmem:[%s891_s23 + $0x1c8] sm:$0xff] }
  0x45   : > { %v647_v45 = vld [vmem:[%s891_s23 + $0x190] sm:$0xff]  ;;  %v628_v48 = vld [vmem:[%s891_s23 + $0xf8] sm:$0xff]  ;;  %v419_v49 = vmax.f32 %v404_v41, %v608_v42  ;;  %v641_v51 = vld [vmem:[%s891_s23 + $0x160] sm:$0xff] }
  0x46   : > { %v490_v34 = vmax.f32 %v475_v24, %v639_v20  ;;  %v476_v39 = vmax.f32 %v461_v31, %v633_v22  ;;  %v462_v47 = vmax.f32 %v447_v36, %v627_v32  ;;  %v448_v52 = vmax.f32 %v433_v40, %v621_v38  ;;  %v635_v53 = vld [vmem:[%s891_s23 + $0x130] sm:$0xff]  ;;  %v622_v54 = vld [vmem:[%s891_s23 + $0xc8] sm:$0xff]  ;;  %v609_v59 = vld [vmem:[%s891_s23 + $0x60] sm:$0xff] }
  0x47   : > { %v434_v57 = vmax.f32 %v419_v49, %v615_v43  ;;  %v405_v58 = vld [vmem:[%s891_s23 + $0x28] sm:$0xff]  ;;  %v616_v60 = vld [vmem:[%s891_s23 + $0x98] sm:$0xff]  ;;  %v655_v63 = vld [vmem:[%s891_s23 + $0x1d0] sm:$0xff] }
  0x48   : > { %v505_v44 = vmax.f32 %v490_v34, %v646_v29  ;;  %v491_v50 = vmax.f32 %v476_v39, %v640_v35  ;;  %v477_v56 = vmax.f32 %v462_v47, %v634_v37  ;;  %v648_v62 = vld [vmem:[%s891_s23 + $0x198] sm:$0xff]  ;;  %v463_v0 = vmax.f32 %v448_v52, %v628_v48  ;;  %v629_v1 = vld [vmem:[%s891_s23 + $0x100] sm:$0xff]  ;;  %v642_v4 = vld [vmem:[%s891_s23 + $0x168] sm:$0xff] }
  0x49   : > { %v420_v2 = vmax.f32 %v405_v58, %v609_v59  ;;  %v449_v5 = vmax.f32 %v434_v57, %v622_v54  ;;  %v636_v6 = vld [vmem:[%s891_s23 + $0x138] sm:$0xff]  ;;  %v623_v7 = vld [vmem:[%s891_s23 + $0xd0] sm:$0xff]  ;;  %v610_v12 = vld [vmem:[%s891_s23 + $0x68] sm:$0x1] }
  0x4a   : > { %v520_v55 = vmax.f32 %v505_v44, %v653_v30  ;;  %v506_v61 = vmax.f32 %v491_v50, %v647_v45  ;;  %v492_v3 = vmax.f32 %v477_v56, %v641_v51  ;;  %v478_v9 = vmax.f32 %v463_v0, %v635_v53  ;;  %v406_v11 = vld [vmem:[%s891_s23 + $0x30] sm:$0x1]  ;;  %v617_v13 = vld [vmem:[%s891_s23 + $0xa0] sm:$0x1]  ;;  %v630_v17 = vld [vmem:[%s891_s23 + $0x108] sm:$0xff] }
  0x4b   : > { %v435_v10 = vmax.f32 %v420_v2, %v616_v60  ;;  %v649_v15 = vld [vmem:[%s891_s23 + $0x1a0] sm:$0xff]  ;;  %v464_v16 = vmax.f32 %v449_v5, %v629_v1  ;;  %v421_v18 = vmax.f32 %v406_v11, %v610_v12  ;;  %v643_v20 = vld [vmem:[%s891_s23 + $0x170] sm:$0xff]  ;;  %v624_v22 = vld [vmem:[%s891_s23 + $0xd8] sm:$0x1] }
  0x4c   : > { %528 = vst.msk [vmem:[%s935_s27] sm:$0xff] %vm527_vm0, %v520_v55  ;;  %v521_v8 = vmax.f32 %v506_v61, %v654_v46  ;;  %v507_v14 = vmax.f32 %v492_v3, %v648_v62  ;;  %v493_v19 = vmax.f32 %v478_v9, %v642_v4  ;;  %v656_v24 = vld [vmem:[%s891_s23 + $0x1d8] sm:$0xff]  ;;  %v637_v26 = vld [vmem:[%s891_s23 + $0x140] sm:$0xff]  ;;  %v650_v29 = vld [vmem:[%s891_s23 + $0x1a8] sm:$0xff] }
  0x4d   : > { %v450_v21 = vmax.f32 %v435_v10, %v623_v7  ;;  %v479_v25 = vmax.f32 %v464_v16, %v636_v6  ;;  %v436_v27 = vmax.f32 %v421_v18, %v617_v13  ;;  %v631_v31 = vld [vmem:[%s891_s23 + $0x110] sm:$0x1]  ;;  %v644_v33 = vld [vmem:[%s891_s23 + $0x178] sm:$0xff]  ;;  %v657_v36 = vld [vmem:[%s891_s23 + $0x1e0] sm:$0xff] }
  0x4e   : > { %529 = vst.msk [vmem:[%s935_s27 + $0x8] sm:$0xff] %vm527_vm0, %v521_v8  ;;  %v522_v23 = vmax.f32 %v507_v14, %v655_v63  ;;  %v508_v28 = vmax.f32 %v493_v19, %v649_v15  ;;  %v638_v38 = vld [vmem:[%s891_s23 + $0x148] sm:$0x1]  ;;  %v651_v40 = vld [vmem:[%s891_s23 + $0x1b0] sm:$0xff]  ;;  %v645_v43 = vld [vmem:[%s891_s23 + $0x180] sm:$0x1] }
  0x4f   : > { %v465_v30 = vmax.f32 %v450_v21, %v630_v17  ;;  %v494_v32 = vmax.f32 %v479_v25, %v643_v20  ;;  %v451_v34 = vmax.f32 %v436_v27, %v624_v22  ;;  %v658_v45 = vld [vmem:[%s891_s23 + $0x1e8] sm:$0xff]  ;;  %v652_v48 = vld [vmem:[%s891_s23 + $0x1b8] sm:$0x1]  ;;  %v659_v51 = vld [vmem:[%s891_s23 + $0x1f0] sm:$0x1] }
  0x50   : > { %530 = vst.msk [vmem:[%s935_s27 + $0x10] sm:$0xff] %vm527_vm0, %v522_v23  ;;  %v523_v35 = vmax.f32 %v508_v28, %v656_v24 }
  0x51   : > { %v480_v37 = vmax.f32 %v465_v30, %v637_v26  ;;  %v509_v39 = vmax.f32 %v494_v32, %v650_v29  ;;  %v466_v41 = vmax.f32 %v451_v34, %v631_v31 }
  0x52   : > { %531 = vst.msk [vmem:[%s935_s27 + $0x18] sm:$0xff] %vm527_vm0, %v523_v35 }
  0x53   : > { %v495_v42 = vmax.f32 %v480_v37, %v644_v33  ;;  %v524_v44 = vmax.f32 %v509_v39, %v657_v36  ;;  %v481_v46 = vmax.f32 %v466_v41, %v638_v38 }
  0x55   : > { %v510_v47 = vmax.f32 %v495_v42, %v651_v40  ;;  %532 = vst.msk [vmem:[%s935_s27 + $0x20] sm:$0xff] %vm527_vm0, %v524_v44  ;;  %v496_v49 = vmax.f32 %v481_v46, %v645_v43 }
  0x57   : > { %v525_v50 = vmax.f32 %v510_v47, %v658_v45  ;;  %v511_v52 = vmax.f32 %v496_v49, %v652_v48 }
  0x59   : > { %533 = vst.msk [vmem:[%s935_s27 + $0x28] sm:$0xff] %vm527_vm0, %v525_v50  ;;  %v526_v53 = vmax.f32 %v511_v52, %v659_v51 }
  0x5b   : > { %535 = vst.msk [vmem:[%s935_s27 + $0x30] sm:$0x1] %vm534_vm1, %v526_v53 }
  0x5c PF: > { %p8_p9 = scmp.ge.s32.totalorder %s741_s10, 4   ;;  %s993_s6 = smov %s708_s7 }
  0x5d   : > { %s994_s7 = smov %s750_s13  ;;  %s995_s8 = smov %s741_s10 }
  0x5e   :  { %10 = sbr.rel (!%p8_p9) target bundleno = 2 (0x2), region = 105 }

// kernel: reduction_block_a.9
= control target key start
LH: loop header
LB: loop body
LE: loop exit
PB: predicated region body
PF: predicated region fallthrough
CT: control target
= control target key end

     0   :  { %s5481_s15 = smov 0   ;;  %s5483_s16 = smov 0   ;;  %s6313_s0 = inlined_call_operand.vmem [shape: bf16[9,256,4], index: 0, kind: input, shape index: {}]   ;;  %s6314_s1 = inlined_call_operand.vmem [shape: bf16[9,4,384], index: 1, kind: input, shape index: {}]   ;;  %s6315_s2 = inlined_call_operand.vmem [shape: f32[256,384], index: 2, kind: output, shape index: {0}]   ;;  %s6316_s3 = inlined_call_operand.vmem [shape: f32[1,384], index: 3, kind: output, shape index: {1}]   ;;  %s6317_s4 = inlined_call_operand.vmem [shape: f32[1,384], index: 4, kind: output, shape index: {2}]  }
   0x1   :  { %s5485_s17 = smov 0   ;;  %s5487_s18 = smov 0  }
   0x2   :  { %s5489_s19 = smov 0  }
   0x3 LB: > { %s27_s20 = sadd.s32 1, %s5449_s18  ;;  %s3937_s21 = sadd.s32 4294967295, %s5453_s19   ;;  %s5453_s19 = sphi %s5489_s19, %s15_s19   ;;  %s5449_s18 = sphi %s5487_s18, %s6322_s18   ;;  %s5445_s17 = sphi %s5485_s17, %s6321_s17   ;;  %s5441_s16 = sphi %s5483_s16, %s6320_s16   ;;  %s5437_s15 = sphi %s5481_s15, %s6319_s15  }
   0x4   : > { %p29_p0 = scmp.ge.s32.totalorder %s27_s20, 3  ;;  %p67_p1 = scmp.ne.s32.totalorder %s5441_s16, %s5437_s15 }
   0x5   : > { %p68_p2 = scmp.eq.s32.totalorder %s5453_s19, 0  ;;  %p99_p4 = scmp.eq.s32.totalorder %s3937_s21, 2 }
   0x6   : > { %s6324_s20 = smov (%p29_p0, %s27_s20), 0  ;;  %s60_s23 = sadd.s32 1, %s5441_s16 }
   0x7   : > { %p69_p3 = por %p68_p2, %p67_p1  ;;  %s57_s22 = ssub.s32 %s5449_s18, %s6324_s20 }
   0x8   : > { %p58_p5 = scmp.eq.s32.totalorder %s57_s22, 0  ;;  %p5516_p6 = por %p99_p4, %p67_p1 }
   0x9   : > { %p3941_p7 = scmp.ge.s32.totalorder %s5453_s19, 3 }
   0xa   : > { %s5521_s25 = scalar_select %p58_p5, %s5441_s16, %s60_s23  }
   0xb   : > { %182 = sbr.rel (%p3941_p7) target bundleno = 28 (0x1c), region = 20 }
  0x12   : > { %185 = sbr.rel (!%p69_p3) target bundleno = 28 (0x1c), region = 24  ;;  %s187_s26 = sand.u32 (%p69_p3), 1, %s5441_s16  }
  0x13   : > { %s3942_s27 = sshll.u32 (%p69_p3), %s5449_s18, 1  ;;  %s5228_s28 = smul.u32 (%p69_p3), 18, %s187_s26 }
  0x14   : > { %s191_s5 = scalar_lea.vmem (%p69_p3), %s6314_s1, %s3942_s27 }
  0x15   : > { %v207_v0 = vld [vmem:[%s191_s5] sm:$0x3] (%p69_p3)  ;;  %v209_v1 = vld [vmem:[%s191_s5 + $0x6] sm:$0x3] (%p69_p3)  ;;  %v211_v2 = vld [vmem:[%s191_s5 + $0xc] sm:$0x3] (%p69_p3) }
  0x16   : > { %v213_v3 = vld [vmem:[%s191_s5 + $0x12] sm:$0x3] (%p69_p3)  ;;  %v215_v4 = vld [vmem:[%s191_s5 + $0x18] sm:$0x3] (%p69_p3)  ;;  %s189_s6 = scalar_lea.vmem (%p69_p3), [#allocation2], %s5228_s28 }
  0x17   : > { %208 = vst [vmem:[%s189_s6] sm:$0x3] (%p69_p3), %v207_v0  ;;  %210 = vst [vmem:[%s189_s6 + $0x2] sm:$0x3] (%p69_p3), %v209_v1  ;;  %v217_v5 = vld [vmem:[%s191_s5 + $0x1e] sm:$0x3] (%p69_p3) }
  0x18   : > { %212 = vst [vmem:[%s189_s6 + $0x4] sm:$0x3] (%p69_p3), %v211_v2  ;;  %214 = vst [vmem:[%s189_s6 + $0x6] sm:$0x3] (%p69_p3), %v213_v3  ;;  %v219_v6 = vld [vmem:[%s191_s5 + $0x24] sm:$0x3] (%p69_p3) }
  0x19   : > { %216 = vst [vmem:[%s189_s6 + $0x8] sm:$0x3] %v215_v4  ;;  %v221_v7 = vld [vmem:[%s191_s5 + $0x2a] sm:$0x3]  ;;  %218 = vst [vmem:[%s189_s6 + $0xa] sm:$0x3] %v217_v5 }
  0x1a   : > { %220 = vst [vmem:[%s189_s6 + $0xc] sm:$0x3] %v219_v6  ;;  %222 = vst [vmem:[%s189_s6 + $0xe] sm:$0x3] %v221_v7  ;;  %v223_v8 = vld [vmem:[%s191_s5 + $0x30] sm:$0x3] }
  0x1b   : > { %224 = vst [vmem:[%s189_s6 + $0x10] sm:$0x3] %v223_v8 }
  0x1c PF: > { %p3943_p8 = scmp.ge.s32.totalorder %s5453_s19, 1  ;;  %p264_p9 = scmp.lt.s32.totalorder %s5453_s19, 4 }
  0x1e   : > { %p265_p10 = pnand %p3943_p8, %p264_p9 }
  0x1f   : > { %s271_s7 = sand.u32 (!%p265_p10), 1, %s5437_s15   ;;  %v5271_v9 = vld [vmem:[%s6313_s0 + $0x80] sm:$0xff] (!%p265_p10)   ;;  %vm474_vm0 = vcmask (!%p265_p10), 31744   ;;  %vm523_vm1 = vcmask (!%p265_p10), 1041408   ;;  %v5273_v11 = vld [vmem:[%s6313_s0 + $0x88] sm:$0xff] (!%p265_p10)   ;;  %v5275_v21 = vld [vmem:[%s6313_s0 + $0x90] sm:$0xff] (!%p265_p10)  }
  0x20   : > { %268 = sbr.rel (%p265_p10) target bundleno = 561 (0x231), region = 65  ;;  %v5272_v10 = vld [vmem:[%s6313_s0 + $0x200] sm:$0xff] (!%p265_p10)   ;;  %4656 = vmatprep.mubr.msk.bf16.mxu1 (!%p265_p10), %vm474_vm0, %v5271_v9  ;;  %v5274_v17 = vld [vmem:[%s6313_s0 + $0x208] sm:$0xff] (!%p265_p10)   ;;  %v5276_v22 = vld [vmem:[%s6313_s0 + $0x210] sm:$0xff] (!%p265_p10)   ;;  %p313_p11 = scmp.lt.s32.totalorder (!%p265_p10), %s5445_s17, 2 }
  0x21   : > { %s5229_s8 = smul.u32 (!%p265_p10), 18, %s271_s7  ;;  %4792 = vmatprep.mubr.msk.bf16.mxu0 (!%p265_p10), %vm474_vm0, %v5272_v10  ;;  %v5277_v23 = vld [vmem:[%s6313_s0 + $0x98] sm:$0xff] (!%p265_p10)   ;;  %v5279_v25 = vld [vmem:[%s6313_s0 + $0xa0] sm:$0xff] (!%p265_p10)   ;;  %v5281_v27 = vld [vmem:[%s6313_s0 + $0xa8] sm:$0xff] (!%p265_p10)   ;;  %s3944_s30 = sshll.u32 (!%p265_p10), %s271_s7, 8 }
  0x22   : > { %v5278_v24 = vld [vmem:[%s6313_s0 + $0x218] sm:$0xff] (!%p265_p10)   ;;  %v5280_v26 = vld [vmem:[%s6313_s0 + $0x220] sm:$0xff] (!%p265_p10)   ;;  %v5282_v28 = vld [vmem:[%s6313_s0 + $0x228] sm:$0xff] (!%p265_p10)   ;;  %s6183_s5 = scalar_lea.vmem (!%p265_p10), [#allocation3], %s3944_s30 }
  0x23   : > { %s5544_s21 = scalar_lea.vmem (!%p265_p10), [#allocation2], %s5229_s8  ;;  %v5283_v29 = vld [vmem:[%s6313_s0 + $0xb0] sm:$0xff] (!%p265_p10)   ;;  %v5285_v32 = vld [vmem:[%s6313_s0 + $0xb8] sm:$0xff] (!%p265_p10)   ;;  %v5287_v34 = vld [vmem:[%s6313_s0 + $0xc0] sm:$0xff] (!%p265_p10)  }
  0x24   : > { %v3977_v12 = vld [vmem:[%s5544_s21 + $0x2] sm:$0x3] (!%p265_p10)  ;;  %v5548_v13 = vld [vmem:[%s5544_s21 + $0x8] sm:$0x3] (!%p265_p10)  ;;  %v358_v14 = vld [vmem:[%s5544_s21] sm:$0x3] (!%p265_p10) }
  0x25   : > { %5218 = vmatprep.subr.msk.bf16.mxu1 (!%p265_p10), %vm523_vm1, %v3977_v12  ;;  %5222 = vmatprep.subr.msk.bf16.mxu0 (!%p265_p10), %vm523_vm1, %v5548_v13  ;;  %v525_v15 = vsel (!%p265_p10), %vm523_vm1, %v3977_v12, 0  ;;  %v5558_v16 = vsel (!%p265_p10), %vm523_vm1, %v5548_v13, 0  ;;  %v817_v18 = vsel (!%p265_p10), %vm523_vm1, %v358_v14, 0  ;;  %v4269_v19 = vld [vmem:[%s5544_s21 + $0xa] sm:$0x3] (!%p265_p10)  ;;  %v5284_v30 = vld [vmem:[%s6313_s0 + $0x230] sm:$0xff] (!%p265_p10)  }
  0x26   : > { %4655 = vmatpush3.bf16.msra.mxu1 (!%p265_p10), %v525_v15  ;;  %4791 = vmatpush3.bf16.msra.mxu0 (!%p265_p10), %v5558_v16  ;;  %v2221_v20 = vsel (!%p265_p10), %vm523_vm1, %v4269_v19, 0  ;;  %v4334_v31 = vld [vmem:[%s5544_s21 + $0xc] sm:$0x3] (!%p265_p10)  ;;  %v5288_v35 = vld [vmem:[%s6313_s0 + $0x280] sm:$0xff] (!%p265_p10)   ;;  %v5291_v39 = vld [vmem:[%s6313_s0 + $0xd0] sm:$0xff] (!%p265_p10)  }
  0x27   : > { %5219 = vmatprep.subr.msk.bf16.mxu1 %vm523_vm1, %v358_v14  ;;  %5224 = vmatprep.subr.msk.bf16.mxu0 %vm523_vm1, %v4269_v19  ;;  %v5286_v33 = vld [vmem:[%s6313_s0 + $0x238] sm:$0xff]   ;;  %v5289_v36 = vld [vmem:[%s6313_s0 + $0xc8] sm:$0xff]   ;;  %v4074_v38 = vld [vmem:[%s5544_s21 + $0x4] sm:$0x3]  ;;  %v2580_v40 = vsel %vm523_vm1, %v4334_v31, 0  ;;  %s314_s14 = scalar_select %p313_p11, %s5445_s17, 2 }
  0x28   : > { %v5290_v37 = vld [vmem:[%s6313_s0 + $0x288] sm:$0xff]   ;;  %v5292_v41 = vld [vmem:[%s6313_s0 + $0x290] sm:$0xff]   ;;  %v5293_v42 = vld [vmem:[%s6313_s0 + $0xd8] sm:$0xff]   ;;  %v1144_v58 = vsel %vm523_vm1, %v4074_v38, 0  ;;  %s4498_s15 = sshll.u32 (%p5516_p6), %s5445_s17, 3 }
  0x29   : > { %4657 = vmatmul.mubr.msk.bf16.vlgmr.msra.gmra.mrb[0].mxu1 %vm474_vm0, %v5273_v11  ;;  %4793 = vmatmul.mubr.msk.bf16.vlgmr.msra.gmra.mrb[0].mxu0 %vm474_vm0, %v5274_v17  ;;  %v5294_v43 = vld [vmem:[%s6313_s0 + $0x298] sm:$0xff]   ;;  %v5295_v44 = vld [vmem:[%s6313_s0 + $0xe0] sm:$0xff]   ;;  %v5297_v46 = vld [vmem:[%s6313_s0 + $0xe8] sm:$0xff]   ;;  %s6162_s26 = scalar_lea.vmem %s6316_s3, %s314_s14  ;;  %s6167_s29 = scalar_lea.vmem %s6317_s4, %s314_s14 }
  0x2a   : > { %4689 = vmatpush3.bf16.msra.mxu1 %v817_v18  ;;  %4825 = vmatpush3.bf16.msra.mxu0 %v2221_v20  ;;  %v5296_v45 = vld [vmem:[%s6313_s0 + $0x2a0] sm:$0xff]   ;;  %v5298_v47 = vld [vmem:[%s6313_s0 + $0x2a8] sm:$0xff]   ;;  %v5299_v48 = vld [vmem:[%s6313_s0 + $0xf0] sm:$0xff]   ;;  %s6235_s8 = scalar_lea.vmem (%p5516_p6), %s6315_s2, %s4498_s15 }
  0x2b   : > { %4660 = vmatprep.mubr.msk.bf16.mxu1 %vm474_vm0, %v5275_v21  ;;  %4796 = vmatprep.mubr.msk.bf16.mxu0 %vm474_vm0, %v5276_v22  ;;  %v5300_v49 = vld [vmem:[%s6313_s0 + $0x2b0] sm:$0xff]   ;;  %v4399_v50 = vld [vmem:[%s5544_s21 + $0xe] sm:$0x3]  ;;  %v5301_v51 = vld [vmem:[%s6313_s0 + $0xf8] sm:$0xff]  }
  0x2c   : > { %5225 = vmatprep.subr.msk.bf16.mxu0 %vm523_vm1, %v4334_v31  ;;  %5220 = vmatprep.subr.msk.bf16.mxu1 %vm523_vm1, %v4074_v38  ;;  %v5302_v52 = vld [vmem:[%s6313_s0 + $0x2b8] sm:$0xff]   ;;  %v5303_v53 = vld [vmem:[%s6313_s0] sm:$0xff]   ;;  %v5305_v55 = vld [vmem:[%s6313_s0 + $0x8] sm:$0xff]   ;;  %v2939_v12 = vsel %vm523_vm1, %v4399_v50, 0 }
  0x2d   : > { %v5304_v54 = vld [vmem:[%s6313_s0 + $0x2c0] sm:$0xff]   ;;  %v5306_v56 = vld [vmem:[%s6313_s0 + $0x2c8] sm:$0xff]   ;;  %v5307_v57 = vld [vmem:[%s6313_s0 + $0x10] sm:$0xff]  }
  0x2e   : > { %v5308_v59 = vld [vmem:[%s6313_s0 + $0x2d0] sm:$0xff]   ;;  %v5712_v60 = vld [vmem:[%s5544_s21 + $0x6] sm:$0x3]  ;;  %v5313_v1 = vld [vmem:[%s6313_s0 + $0x28] sm:$0xff]  }
  0x2f   : > { %v5309_v61 = vld [vmem:[%s6313_s0 + $0x18] sm:$0xff]   ;;  %v5311_v63 = vld [vmem:[%s6313_s0 + $0x20] sm:$0xff]   ;;  %v5314_v2 = vld [vmem:[%s6313_s0 + $0x2e8] sm:$0xff]  }
  0x30   : > { %v5310_v62 = vld [vmem:[%s6313_s0 + $0x2d8] sm:$0xff]   ;;  %v5312_v0 = vld [vmem:[%s6313_s0 + $0x2e0] sm:$0xff]   ;;  %v5315_v3 = vld [vmem:[%s6313_s0 + $0x30] sm:$0xff]  }
  0x31   : > { %4661 = vmatmul.mubr.msk.bf16.gmra.mrb[4].mxu1 %vm474_vm0, %v5277_v23  ;;  %4797 = vmatmul.mubr.msk.bf16.gmra.mrb[4].mxu0 %vm474_vm0, %v5278_v24  ;;  %v5316_v4 = vld [vmem:[%s6313_s0 + $0x2f0] sm:$0xff]   ;;  %v5317_v5 = vld [vmem:[%s6313_s0 + $0x38] sm:$0xff]   ;;  %v5319_v7 = vld [vmem:[%s6313_s0 + $0x40] sm:$0xff]  }
  0x32   : > { %4664 = vmatprep.mubr.msk.bf16.mxu1 %vm474_vm0, %v5279_v25  ;;  %4800 = vmatprep.mubr.msk.bf16.mxu0 %vm474_vm0, %v5280_v26  ;;  %v5318_v6 = vld [vmem:[%s6313_s0 + $0x2f8] sm:$0xff]   ;;  %v5320_v8 = vld [vmem:[%s6313_s0 + $0x300] sm:$0xff]   ;;  %v5321_v9 = vld [vmem:[%s6313_s0 + $0x48] sm:$0xff]  }
  0x33   : > { %v5322_v10 = vld [vmem:[%s6313_s0 + $0x308] sm:$0xff]   ;;  %v5323_v11 = vld [vmem:[%s6313_s0 + $0x50] sm:$0xff]   ;;  %v5325_v17 = vld [vmem:[%s6313_s0 + $0x58] sm:$0xff]  }
  0x34   : > { %v5324_v14 = vld [vmem:[%s6313_s0 + $0x310] sm:$0xff]   ;;  %v5326_v18 = vld [vmem:[%s6313_s0 + $0x318] sm:$0xff]   ;;  %v5327_v19 = vld [vmem:[%s6313_s0 + $0x60] sm:$0xff]  }
  0x35   : > { %v5782_v15 = vld [vmem:[%s5544_s21 + $0x10] sm:$0x3]  ;;  %v5329_v21 = vld [vmem:[%s6313_s0 + $0x68] sm:$0xff]   ;;  %v5333_v25 = vld [vmem:[%s6313_s0 + $0x78] sm:$0xff]  }
  0x36   : > { %v5328_v20 = vld [vmem:[%s6313_s0 + $0x320] sm:$0xff]   ;;  %v5330_v22 = vld [vmem:[%s6313_s0 + $0x328] sm:$0xff]   ;;  %v5331_v23 = vld [vmem:[%s6313_s0 + $0x70] sm:$0xff]  }
  0x37   : > { %v5332_v24 = vld [vmem:[%s6313_s0 + $0x330] sm:$0xff]   ;;  %v5334_v26 = vld [vmem:[%s6313_s0 + $0x338] sm:$0xff]   ;;  %v5346_v38 = vld [vmem:[%s6313_s0 + $0x368] sm:$0xff]  }
  0x38   : > { %v5339_v31 = vld [vmem:[%s6313_s0 + $0x110] sm:$0xff]  }
  0x39   : > { %4665 = vmatmul.mubr.msk.bf16.gmra.mrb[8].mxu1 %vm474_vm0, %v5281_v27  ;;  %4801 = vmatmul.mubr.msk.bf16.gmra.mrb[8].mxu0 %vm474_vm0, %v5282_v28  ;;  %v5335_v27 = vld [vmem:[%s6313_s0 + $0x100] sm:$0xff]  }
  0x3a   : > { %4668 = vmatprep.mubr.msk.bf16.mxu1 %vm474_vm0, %v5283_v29  ;;  %4804 = vmatprep.mubr.msk.bf16.mxu0 %vm474_vm0, %v5284_v30  ;;  %v5336_v28 = vld [vmem:[%s6313_s0 + $0x340] sm:$0xff]   ;;  %v5337_v29 = vld [vmem:[%s6313_s0 + $0x108] sm:$0xff]  }
  0x3b   : > { %v5338_v30 = vld [vmem:[%s6313_s0 + $0x348] sm:$0xff]  }
  0x41   : > { %4669 = vmatmul.mubr.msk.bf16.gmra.mrb[12].mxu1 %vm474_vm0, %v5285_v32  ;;  %4805 = vmatmul.mubr.msk.bf16.gmra.mrb[12].mxu0 %vm474_vm0, %v5286_v33  ;;  %v1503_v32 = vsel %vm523_vm1, %v5712_v60, 0  ;;  %v5340_v33 = vld [vmem:[%s6313_s0 + $0x350] sm:$0xff]  }
  0x42   : > { %4672 = vmatprep.mubr.msk.bf16.mxu1 %vm474_vm0, %v5287_v34  ;;  %4826 = vmatprep.mubr.msk.bf16.mxu0 %vm474_vm0, %v5288_v35  ;;  %v5341_v34 = vld [vmem:[%s6313_s0 + $0x118] sm:$0xff]  }
  0x43   : > { %v5342_v35 = vld [vmem:[%s6313_s0 + $0x358] sm:$0xff]  }
  0x49   : > { %4673 = vmatmul.mubr.msk.bf16.gmra.mrb[16].mxu1 %vm474_vm0, %v5289_v36  ;;  %4827 = vmatmul.mubr.msk.bf16.vlgmr.msra.gmra.mrb[0].mxu0 %vm474_vm0, %v5290_v37  ;;  %v5343_v36 = vld [vmem:[%s6313_s0 + $0x120] sm:$0xff]  }
  0x4a   : > { %4859 = vmatpush3.bf16.msra.mxu0 %v2580_v40  ;;  %4676 = vmatprep.mubr.msk.bf16.mxu1 %vm474_vm0, %v5291_v39  ;;  %v5344_v37 = vld [vmem:[%s6313_s0 + $0x360] sm:$0xff]   ;;  %v5347_v39 = vld [vmem:[%s6313_s0 + $0x130] sm:$0xff]  }
  0x4b   : > { %4830 = vmatprep.mubr.msk.bf16.mxu0 %vm474_vm0, %v5292_v41  ;;  %5226 = vmatprep.subr.msk.bf16.mxu0 %vm523_vm1, %v4399_v50  ;;  %v5348_v40 = vld [vmem:[%s6313_s0 + $0x370] sm:$0xff]   ;;  %v5349_v41 = vld [vmem:[%s6313_s0 + $0x138] sm:$0xff]  }
  0x4c   : > { %v5357_v50 = vld [vmem:[%s6313_s0 + $0x158] sm:$0xff]  }
  0x51   : > { %4677 = vmatmul.mubr.msk.bf16.gmra.mrb[20].mxu1 %vm474_vm0, %v5293_v42  ;;  %4831 = vmatmul.mubr.msk.bf16.gmra.mrb[4].mxu0 %vm474_vm0, %v5294_v43  ;;  %v5350_v42 = vld [vmem:[%s6313_s0 + $0x378] sm:$0xff]   ;;  %v5351_v43 = vld [vmem:[%s6313_s0 + $0x140] sm:$0xff]  }
  0x52   : > { %4680 = vmatprep.mubr.msk.bf16.mxu1 %vm474_vm0, %v5295_v44  ;;  %4834 = vmatprep.mubr.msk.bf16.mxu0 %vm474_vm0, %v5296_v45  ;;  %v5352_v44 = vld [vmem:[%s6313_s0 + $0x380] sm:$0xff]   ;;  %v5353_v45 = vld [vmem:[%s6313_s0 + $0x148] sm:$0xff]  }
  0x59   : > { %4681 = vmatmul.mubr.msk.bf16.gmra.mrb[24].mxu1 %vm474_vm0, %v5297_v46  ;;  %4835 = vmatmul.mubr.msk.bf16.gmra.mrb[8].mxu0 %vm474_vm0, %v5298_v47  ;;  %v5354_v46 = vld [vmem:[%s6313_s0 + $0x388] sm:$0xff]   ;;  %v5355_v47 = vld [vmem:[%s6313_s0 + $0x150] sm:$0xff]  }
  0x5a   : > { %4684 = vmatprep.mubr.msk.bf16.mxu1 %vm474_vm0, %v5299_v48  ;;  %4838 = vmatprep.mubr.msk.bf16.mxu0 %vm474_vm0, %v5300_v49  ;;  %v3298_v48 = vsel %vm523_vm1, %v5782_v15, 0  ;;  %v5356_v49 = vld [vmem:[%s6313_s0 + $0x390] sm:$0xff]  }
  0x61   : > { %4685 = vmatmul.mubr.msk.bf16.gmra.mrb[28].mxu1 %vm474_vm0, %v5301_v51  ;;  %4839 = vmatmul.mubr.msk.bf16.gmra.mrb[12].mxu0 %vm474_vm0, %v5302_v52  ;;  %v5358_v51 = vld [vmem:[%s6313_s0 + $0x398] sm:$0xff]   ;;  %v5359_v52 = vld [vmem:[%s6313_s0 + $0x160] sm:$0xff]  }
  0x62   : > { %4690 = vmatprep.mubr.msk.bf16.mxu1 %vm474_vm0, %v5303_v53  ;;  %4842 = vmatprep.mubr.msk.bf16.mxu0 %vm474_vm0, %v5304_v54  ;;  %v5360_v53 = vld [vmem:[%s6313_s0 + $0x3a0] sm:$0xff]   ;;  %v5361_v54 = vld [vmem:[%s6313_s0 + $0x168] sm:$0xff]  }
  0x69   : > { %4691 = vmatmul.mubr.msk.bf16.vlgmr.msra.gmra.mrb[0].mxu1 %vm474_vm0, %v5305_v55  ;;  %4843 = vmatmul.mubr.msk.bf16.gmra.mrb[16].mxu0 %vm474_vm0, %v5306_v56  ;;  %v5362_v55 = vld [vmem:[%s6313_s0 + $0x3a8] sm:$0xff]   ;;  %v5363_v56 = vld [vmem:[%s6313_s0 + $0x170] sm:$0xff]  }
  0x6a   : > { %4723 = vmatpush3.bf16.msra.mxu1 %v1144_v58  ;;  %4694 = vmatprep.mubr.msk.bf16.mxu1 %vm474_vm0, %v5307_v57  ;;  %v5364_v57 = vld [vmem:[%s6313_s0 + $0x3b0] sm:$0xff]   ;;  %v5365_v58 = vld [vmem:[%s6313_s0 + $0x178] sm:$0xff]  }
  0x6b   : > { %4846 = vmatprep.mubr.msk.bf16.mxu0 %vm474_vm0, %v5308_v59  ;;  %5221 = vmatprep.subr.msk.bf16.mxu1 %vm523_vm1, %v5712_v60  ;;  %v5366_v59 = vld [vmem:[%s6313_s0 + $0x3b8] sm:$0xff]   ;;  %v5367_v60 = vld [vmem:[%s6313_s0 + $0x180] sm:$0xff]  }
  0x71   : > { %4695 = vmatmul.mubr.msk.bf16.gmra.mrb[4].mxu1 %vm474_vm0, %v5309_v61  ;;  %4847 = vmatmul.mubr.msk.bf16.gmra.mrb[20].mxu0 %vm474_vm0, %v5310_v62  ;;  %v5368_v61 = vld [vmem:[%s6313_s0 + $0x3c0] sm:$0xff]   ;;  %v5369_v62 = vld [vmem:[%s6313_s0 + $0x188] sm:$0xff]  }
  0x72   : > { %4698 = vmatprep.mubr.msk.bf16.mxu1 %vm474_vm0, %v5311_v63  ;;  %4850 = vmatprep.mubr.msk.bf16.mxu0 %vm474_vm0, %v5312_v0  ;;  %v5370_v63 = vld [vmem:[%s6313_s0 + $0x3c8] sm:$0xff]   ;;  %v5371_v0 = vld [vmem:[%s6313_s0 + $0x190] sm:$0xff]  }
  0x79   : > { %4699 = vmatmul.mubr.msk.bf16.gmra.mrb[8].mxu1 %vm474_vm0, %v5313_v1  ;;  %4851 = vmatmul.mubr.msk.bf16.gmra.mrb[24].mxu0 %vm474_vm0, %v5314_v2  ;;  %v5372_v1 = vld [vmem:[%s6313_s0 + $0x3d0] sm:$0xff]   ;;  %v5373_v2 = vld [vmem:[%s6313_s0 + $0x198] sm:$0xff]  }
  0x7a   : > { %4702 = vmatprep.mubr.msk.bf16.mxu1 %vm474_vm0, %v5315_v3  ;;  %4854 = vmatprep.mubr.msk.bf16.mxu0 %vm474_vm0, %v5316_v4  ;;  %v5374_v3 = vld [vmem:[%s6313_s0 + $0x3d8] sm:$0xff]   ;;  %v5375_v4 = vld [vmem:[%s6313_s0 + $0x1a0] sm:$0xff]  }
  0x81   : > { %4703 = vmatmul.mubr.msk.bf16.gmra.mrb[12].mxu1 %vm474_vm0, %v5317_v5  ;;  %4855 = vmatmul.mubr.msk.bf16.gmra.mrb[28].mxu0 %vm474_vm0, %v5318_v6  ;;  %v5377_v5 = vld [vmem:[%s6313_s0 + $0x1a8] sm:$0xff]  }
  0x82   : > { %4706 = vmatprep.mubr.msk.bf16.mxu1 %vm474_vm0, %v5319_v7  ;;  %4860 = vmatprep.mubr.msk.bf16.mxu0 %vm474_vm0, %v5320_v8  ;;  %v5378_v6 = vld [vmem:[%s6313_s0 + $0x3e8] sm:$0xff]   ;;  %v5379_v7 = vld [vmem:[%s6313_s0 + $0x1b0] sm:$0xff]  }
  0x83   : > { %v5380_v8 = vld [vmem:[%s6313_s0 + $0x3f0] sm:$0xff]  }
  0x89   : > { %4707 = vmatmul.mubr.msk.bf16.gmra.mrb[16].mxu1 %vm474_vm0, %v5321_v9  ;;  %4861 = vmatmul.mubr.msk.bf16.vlgmr.msra.gmra.mrb[0].mxu0 %vm474_vm0, %v5322_v10  ;;  %v5381_v9 = vld [vmem:[%s6313_s0 + $0x1b8] sm:$0xff]  }
  0x8a   : > { %4893 = vmatpush3.bf16.msra.mxu0 %v2939_v12  ;;  %4710 = vmatprep.mubr.msk.bf16.mxu1 %vm474_vm0, %v5323_v11  ;;  %v5382_v10 = vld [vmem:[%s6313_s0 + $0x3f8] sm:$0xff]   ;;  %v5383_v11 = vld [vmem:[%s6313_s0 + $0x1c0] sm:$0xff]  }
  0x8b   : > { %4864 = vmatprep.mubr.msk.bf16.mxu0 %vm474_vm0, %v5324_v14  ;;  %5227 = vmatprep.subr.msk.bf16.mxu0 %vm523_vm1, %v5782_v15  ;;  %v5384_v12 = vld [vmem:[%s6313_s0 + $0x400] sm:$0xff]   ;;  %v5385_v14 = vld [vmem:[%s6313_s0 + $0x1c8] sm:$0xff]  }
  0x8c   : > { %v5386_v15 = vld [vmem:[%s6313_s0 + $0x408] sm:$0xff]  }
  0x91   : > { %4711 = vmatmul.mubr.msk.bf16.gmra.mrb[20].mxu1 %vm474_vm0, %v5325_v17  ;;  %4865 = vmatmul.mubr.msk.bf16.gmra.mrb[4].mxu0 %vm474_vm0, %v5326_v18  ;;  %v5387_v17 = vld [vmem:[%s6313_s0 + $0x1d0] sm:$0xff]  }
  0x92   : > { %4714 = vmatprep.mubr.msk.bf16.mxu1 %vm474_vm0, %v5327_v19  ;;  %4868 = vmatprep.mubr.msk.bf16.mxu0 %vm474_vm0, %v5328_v20  ;;  %v5388_v18 = vld [vmem:[%s6313_s0 + $0x410] sm:$0xff]   ;;  %v5389_v19 = vld [vmem:[%s6313_s0 + $0x1d8] sm:$0xff]  }
  0x93   : > { %v5390_v20 = vld [vmem:[%s6313_s0 + $0x418] sm:$0xff]  }
  0x99   : > { %4715 = vmatmul.mubr.msk.bf16.gmra.mrb[24].mxu1 %vm474_vm0, %v5329_v21  ;;  %4869 = vmatmul.mubr.msk.bf16.gmra.mrb[8].mxu0 %vm474_vm0, %v5330_v22  ;;  %v5391_v21 = vld [vmem:[%s6313_s0 + $0x1e0] sm:$0xff]  }
  0x9a   : > { %4718 = vmatprep.mubr.msk.bf16.mxu1 %vm474_vm0, %v5331_v23  ;;  %4872 = vmatprep.mubr.msk.bf16.mxu0 %vm474_vm0, %v5332_v24  ;;  %v5392_v22 = vld [vmem:[%s6313_s0 + $0x420] sm:$0xff]   ;;  %v5393_v23 = vld [vmem:[%s6313_s0 + $0x1e8] sm:$0xff]  }
  0x9b   : > { %v5394_v24 = vld [vmem:[%s6313_s0 + $0x428] sm:$0xff]  }
  0xa1   : > { %4719 = vmatmul.mubr.msk.bf16.gmra.mrb[28].mxu1 %vm474_vm0, %v5333_v25  ;;  %4873 = vmatmul.mubr.msk.bf16.gmra.mrb[12].mxu0 %vm474_vm0, %v5334_v26  ;;  %v5395_v25 = vld [vmem:[%s6313_s0 + $0x1f0] sm:$0xff]  }
  0xa2   : > { %4724 = vmatprep.mubr.msk.bf16.mxu1 %vm474_vm0, %v5335_v27  ;;  %4876 = vmatprep.mubr.msk.bf16.mxu0 %vm474_vm0, %v5336_v28  ;;  %v5396_v26 = vld [vmem:[%s6313_s0 + $0x430] sm:$0xff]   ;;  %v5397_v27 = vld [vmem:[%s6313_s0 + $0x1f8] sm:$0xff]  }
  0xa3   : > { %v5398_v28 = vld [vmem:[%s6313_s0 + $0x438] sm:$0xff]  }
  0xa9   : > { %4725 = vmatmul.mubr.msk.bf16.vlgmr.msra.gmra.mrb[0].mxu1 %vm474_vm0, %v5337_v29  ;;  %4877 = vmatmul.mubr.msk.bf16.gmra.mrb[16].mxu0 %vm474_vm0, %v5338_v30  ;;  %v5399_v29 = vld [vmem:[%s6313_s0 + $0x240] sm:$0xff]  }
  0xaa   : > { %4757 = vmatpush3.bf16.msra.mxu1 %v1503_v32  ;;  %4728 = vmatprep.mubr.msk.bf16.mxu1 %vm474_vm0, %v5339_v31  ;;  %v5400_v30 = vld [vmem:[%s6313_s0 + $0x440] sm:$0xff]   ;;  %v5401_v31 = vld [vmem:[%s6313_s0 + $0x248] sm:$0xff]  }
  0xab   : > { %4880 = vmatprep.mubr.msk.bf16.mxu0 %vm474_vm0, %v5340_v33  ;;  %5223 = vmatprep.subr.msk.bf16.mxu1 %vm523_vm1, %v5548_v13  ;;  %v5345_v13 = vld [vmem:[%s6313_s0 + $0x128] sm:$0xff]   ;;  %v5403_v33 = vld [vmem:[%s6313_s0 + $0x250] sm:$0xff]  }
  0xac   : > { %v5402_v32 = vld [vmem:[%s6313_s0 + $0x448] sm:$0xff]  }
  0xb1   : > { %4729 = vmatmul.mubr.msk.bf16.gmra.mrb[4].mxu1 %vm474_vm0, %v5341_v34  ;;  %4881 = vmatmul.mubr.msk.bf16.gmra.mrb[20].mxu0 %vm474_vm0, %v5342_v35  ;;  %v5404_v34 = vld [vmem:[%s6313_s0 + $0x450] sm:$0xff]   ;;  %v5405_v35 = vld [vmem:[%s6313_s0 + $0x258] sm:$0xff]  }
  0xb2   : > { %4732 = vmatprep.mubr.msk.bf16.mxu1 %vm474_vm0, %v5343_v36  ;;  %4884 = vmatprep.mubr.msk.bf16.mxu0 %vm474_vm0, %v5344_v37  ;;  %v5406_v36 = vld [vmem:[%s6313_s0 + $0x458] sm:$0xff]   ;;  %v5407_v37 = vld [vmem:[%s6313_s0 + $0x260] sm:$0xff]  }
  0xb9   : > { %4733 = vmatmul.mubr.msk.bf16.gmra.mrb[8].mxu1 %vm474_vm0, %v5345_v13  ;;  %4885 = vmatmul.mubr.msk.bf16.gmra.mrb[24].mxu0 %vm474_vm0, %v5346_v38  ;;  %v5408_v13 = vld [vmem:[%s6313_s0 + $0x460] sm:$0xff]   ;;  %v5409_v38 = vld [vmem:[%s6313_s0 + $0x268] sm:$0xff]  }
  0xba   : > { %4736 = vmatprep.mubr.msk.bf16.mxu1 %vm474_vm0, %v5347_v39  ;;  %4888 = vmatprep.mubr.msk.bf16.mxu0 %vm474_vm0, %v5348_v40  ;;  %v5410_v39 = vld [vmem:[%s6313_s0 + $0x468] sm:$0xff]   ;;  %v5411_v40 = vld [vmem:[%s6313_s0 + $0x270] sm:$0xff]  }
  0xc1   : > { %4737 = vmatmul.mubr.msk.bf16.gmra.mrb[12].mxu1 %vm474_vm0, %v5349_v41  ;;  %4889 = vmatmul.mubr.msk.bf16.gmra.mrb[28].mxu0 %vm474_vm0, %v5350_v42  ;;  %v5412_v41 = vld [vmem:[%s6313_s0 + $0x470] sm:$0xff]   ;;  %v5413_v42 = vld [vmem:[%s6313_s0 + $0x278] sm:$0xff]  }
  0xc2   : > { %4740 = vmatprep.mubr.msk.bf16.mxu1 %vm474_vm0, %v5351_v43  ;;  %4894 = vmatprep.mubr.msk.bf16.mxu0 %vm474_vm0, %v5352_v44  ;;  %v5414_v43 = vld [vmem:[%s6313_s0 + $0x478] sm:$0xff]   ;;  %v5455_v44 = vmov 0.0  }
  0xc3   : > { %324 = vst [vmem:[%s6162_s26] sm:$0x1] %v5455_v44  ;;  %325 = vst [vmem:[%s6167_s29] sm:$0x1] %v5455_v44 }
  0xc9   : > { %4741 = vmatmul.mubr.msk.bf16.gmra.mrb[16].mxu1 %vm474_vm0, %v5353_v45  ;;  %4895 = vmatmul.mubr.msk.bf16.vlgmr.msra.gmra.mrb[0].mxu0 %vm474_vm0, %v5354_v46 }
  0xca   : > { %4927 = vmatpush3.bf16.msra.mxu0 %v3298_v48  ;;  %4744 = vmatprep.mubr.msk.bf16.mxu1 %vm474_vm0, %v5355_v47 }
  0xcb   : > { %4898 = vmatprep.mubr.msk.bf16.mxu0 %vm474_vm0, %v5356_v49 }
  0xd1   : > { %4745 = vmatmul.mubr.msk.bf16.gmra.mrb[20].mxu1 %vm474_vm0, %v5357_v50  ;;  %4899 = vmatmul.mubr.msk.bf16.gmra.mrb[4].mxu0 %vm474_vm0, %v5358_v51 }
  0xd2   : > { %4748 = vmatprep.mubr.msk.bf16.mxu1 %vm474_vm0, %v5359_v52  ;;  %4902 = vmatprep.mubr.msk.bf16.mxu0 %vm474_vm0, %v5360_v53 }
  0xd9   : > { %4749 = vmatmul.mubr.msk.bf16.gmra.mrb[24].mxu1 %vm474_vm0, %v5361_v54  ;;  %4903 = vmatmul.mubr.msk.bf16.gmra.mrb[8].mxu0 %vm474_vm0, %v5362_v55 }
  0xda   : > { %4752 = vmatprep.mubr.msk.bf16.mxu1 %vm474_vm0, %v5363_v56  ;;  %4906 = vmatprep.mubr.msk.bf16.mxu0 %vm474_vm0, %v5364_v57 }
  0xe1   : > { %4753 = vmatmul.mubr.msk.bf16.gmra.mrb[28].mxu1 %vm474_vm0, %v5365_v58  ;;  %4907 = vmatmul.mubr.msk.bf16.gmra.mrb[12].mxu0 %vm474_vm0, %v5366_v59 }
  0xe2   : > { %4758 = vmatprep.mubr.msk.bf16.mxu1 %vm474_vm0, %v5367_v60  ;;  %4910 = vmatprep.mubr.msk.bf16.mxu0 %vm474_vm0, %v5368_v61 }
  0xe9   : > { %4759 = vmatmul.mubr.msk.bf16.vlgmr.msra.gmra.mrb[0].mxu1 %vm474_vm0, %v5369_v62  ;;  %4911 = vmatmul.mubr.msk.bf16.gmra.mrb[16].mxu0 %vm474_vm0, %v5370_v63 }
  0xea   : > { %4961 = vmatpush3.bf16.msra.mxu1 %v5558_v16  ;;  %4762 = vmatprep.mubr.msk.bf16.mxu1 %vm474_vm0, %v5371_v0  ;;  %v5376_v16 = vld [vmem:[%s6313_s0 + $0x3e0] sm:$0xff]  }
  0xeb   : > { %4914 = vmatprep.mubr.msk.bf16.mxu0 %vm474_vm0, %v5372_v1 }
  0xf1   : > { %4763 = vmatmul.mubr.msk.bf16.gmra.mrb[4].mxu1 %vm474_vm0, %v5373_v2  ;;  %4915 = vmatmul.mubr.msk.bf16.gmra.mrb[20].mxu0 %vm474_vm0, %v5374_v3 }
  0xf2   : > { %4766 = vmatprep.mubr.msk.bf16.mxu1 %vm474_vm0, %v5375_v4  ;;  %4918 = vmatprep.mubr.msk.bf16.mxu0 %vm474_vm0, %v5376_v16 }
  0xf9   : > { %4767 = vmatmul.mubr.msk.bf16.gmra.mrb[8].mxu1 %vm474_vm0, %v5377_v5  ;;  %4919 = vmatmul.mubr.msk.bf16.gmra.mrb[24].mxu0 %vm474_vm0, %v5378_v6 }
  0xfa   : > { %4770 = vmatprep.mubr.msk.bf16.mxu1 %vm474_vm0, %v5379_v7  ;;  %4922 = vmatprep.mubr.msk.bf16.mxu0 %vm474_vm0, %v5380_v8 }
 0x101   : > { %4771 = vmatmul.mubr.msk.bf16.gmra.mrb[12].mxu1 %vm474_vm0, %v5381_v9  ;;  %4923 = vmatmul.mubr.msk.bf16.gmra.mrb[28].mxu0 %vm474_vm0, %v5382_v10 }
 0x102   : > { %4774 = vmatprep.mubr.msk.bf16.mxu1 %vm474_vm0, %v5383_v11  ;;  %4928 = vmatprep.mubr.msk.bf16.mxu0 %vm474_vm0, %v5384_v12 }
 0x109   : > { %4775 = vmatmul.mubr.msk.bf16.gmra.mrb[16].mxu1 %vm474_vm0, %v5385_v14  ;;  %4929 = vmatmul.mubr.msk.bf16.vlgmr.msra.gmra.mrb[0].mxu0 %vm474_vm0, %v5386_v15 }
 0x10a   : > { %4778 = vmatprep.mubr.msk.bf16.mxu1 %vm474_vm0, %v5387_v17  ;;  %4932 = vmatprep.mubr.msk.bf16.mxu0 %vm474_vm0, %v5388_v18 }
 0x111   : > { %4779 = vmatmul.mubr.msk.bf16.gmra.mrb[20].mxu1 %vm474_vm0, %v5389_v19  ;;  %4933 = vmatmul.mubr.msk.bf16.gmra.mrb[4].mxu0 %vm474_vm0, %v5390_v20 }
 0x112   : > { %4782 = vmatprep.mubr.msk.bf16.mxu1 %vm474_vm0, %v5391_v21  ;;  %4936 = vmatprep.mubr.msk.bf16.mxu0 %vm474_vm0, %v5392_v22 }
 0x119   : > { %4783 = vmatmul.mubr.msk.bf16.gmra.mrb[24].mxu1 %vm474_vm0, %v5393_v23  ;;  %4937 = vmatmul.mubr.msk.bf16.gmra.mrb[8].mxu0 %vm474_vm0, %v5394_v24 }
 0x11a   : > { %4786 = vmatprep.mubr.msk.bf16.mxu1 %vm474_vm0, %v5395_v25  ;;  %4940 = vmatprep.mubr.msk.bf16.mxu0 %vm474_vm0, %v5396_v26 }
 0x121   : > { %4787 = vmatmul.mubr.msk.bf16.gmra.mrb[28].mxu1 %vm474_vm0, %v5397_v27  ;;  %4941 = vmatmul.mubr.msk.bf16.gmra.mrb[12].mxu0 %vm474_vm0, %v5398_v28 }
 0x122   : > { %4808 = vmatprep.mubr.msk.bf16.mxu1 %vm474_vm0, %v5399_v29  ;;  %4944 = vmatprep.mubr.msk.bf16.mxu0 %vm474_vm0, %v5400_v30 }
 0x129   : > { %4809 = vmatmul.mubr.msk.bf16.vlgmr.msra.gmra.mrb[16].mxu1 %vm474_vm0, %v5401_v31  ;;  %4945 = vmatmul.mubr.msk.bf16.gmra.mrb[16].mxu0 %vm474_vm0, %v5402_v32 }
 0x12a   : > { %4812 = vmatprep.mubr.msk.bf16.mxu1 %vm474_vm0, %v5403_v33  ;;  %4948 = vmatprep.mubr.msk.bf16.mxu0 %vm474_vm0, %v5404_v34 }
 0x131   : > { %4813 = vmatmul.mubr.msk.bf16.gmra.mrb[20].mxu1 %vm474_vm0, %v5405_v35  ;;  %4949 = vmatmul.mubr.msk.bf16.gmra.mrb[20].mxu0 %vm474_vm0, %v5406_v36 }
 0x132   : > { %4816 = vmatprep.mubr.msk.bf16.mxu1 %vm474_vm0, %v5407_v37  ;;  %4952 = vmatprep.mubr.msk.bf16.mxu0 %vm474_vm0, %v5408_v13 }
 0x139   : > { %4817 = vmatmul.mubr.msk.bf16.gmra.mrb[24].mxu1 %vm474_vm0, %v5409_v38  ;;  %4953 = vmatmul.mubr.msk.bf16.gmra.mrb[24].mxu0 %vm474_vm0, %v5410_v39 }
 0x13a   : > { %4820 = vmatprep.mubr.msk.bf16.mxu1 %vm474_vm0, %v5411_v40  ;;  %4956 = vmatprep.mubr.msk.bf16.mxu0 %vm474_vm0, %v5412_v41 }
 0x141   : > { %4821 = vmatmul.mubr.msk.bf16.gmra.mrb[28].mxu1 %vm474_vm0, %v5413_v42  ;;  %4957 = vmatmul.mubr.msk.bf16.gmra.mrb[28].mxu0 %vm474_vm0, %v5414_v43 }
 0x1bc   : > { %v4760_v45 = vpop.f32.mrb[0].mxu1 }
 0x1bd   : > { %v1539_v46 = vpop.f32.mrb[1].mxu1 }
 0x1be   : > { %v4761_v47 = vpop.f32.mrb[2].mxu1 }
 0x1bf   : > { %v1542_v48 = vpop.f32.mrb[3].mxu1 }
 0x1c4   : > { %v4764_v49 = vpop.f32.mrb[4].mxu1 }
 0x1c5   : > { %v1555_v50 = vpop.f32.mrb[5].mxu1 }
 0x1c6   : > { %v4765_v51 = vpop.f32.mrb[6].mxu1 }
 0x1c7   : > { %v1558_v52 = vpop.f32.mrb[7].mxu1 }
 0x1cc   : > { %v4768_v53 = vpop.f32.mrb[8].mxu1 }
 0x1cd   : > { %v1571_v54 = vpop.f32.mrb[9].mxu1 }
 0x1ce   : > { %v4769_v55 = vpop.f32.mrb[10].mxu1 }
 0x1cf   : > { %v6171_v56 = vpop.f32.mrb[11].mxu1 }
 0x1d4   : > { %v6173_v57 = vpop.f32.mrb[12].mxu1 }
 0x1d5   : > { %v6175_v58 = vpop.f32.mrb[13].mxu1 }
 0x1d6   : > { %v6177_v59 = vpop.f32.mrb[14].mxu1 }
 0x1d7   : > { %v6179_v60 = vpop.f32.mrb[15].mxu1 }
 0x1dc   : > { %v4930_v61 = vpop.f32.mrb[0].mxu0 }
 0x1dd   : > { %v4962_v62 = vadd.f32 %v4930_v61, %v4760_v45  ;;  %v3334_v63 = vpop.f32.mrb[1].mxu0 }
 0x1de   : > { %v4963_v0 = vadd.f32 %v3334_v63, %v1539_v46  ;;  %v4931_v1 = vpop.f32.mrb[2].mxu0 }
 0x1df   : > { %3495 = vst [vmem:[%s6183_s5 + $0x10] sm:$0xff] %v4962_v62  ;;  %v4964_v2 = vadd.f32 %v4931_v1, %v4761_v47  ;;  %v3337_v3 = vpop.f32.mrb[3].mxu0  ;;  %v3568_v7 = vmul.f32 %v4962_v62, %v4962_v62 }
 0x1e0   : > { %3493 = vst [vmem:[%s6183_s5] sm:$0xff] %v4963_v0  ;;  %v4965_v4 = vadd.f32 %v3337_v3, %v1542_v48  ;;  %v3566_v16 = vmul.f32 %v4963_v0, %v4963_v0 }
 0x1e1   : > { %3496 = vst [vmem:[%s6183_s5 + $0x18] sm:$0xff] %v4964_v2  ;;  %v3569_v14 = vmul.f32 %v4964_v2, %v4964_v2 }
 0x1e2   : > { %3494 = vst [vmem:[%s6183_s5 + $0x8] sm:$0xff] %v4965_v4  ;;  %v3526_v5 = vadd.f32 %v4965_v4, %v4963_v0  ;;  %v3567_v6 = vmul.f32 %v4965_v4, %v4965_v4 }
 0x1e4   : > { %v3527_v8 = vadd.f32 %v4962_v62, %v3526_v5  ;;  %v3598_v9 = vadd.f32 %v3567_v6, %v3566_v16  ;;  %v4934_v10 = vpop.f32.mrb[4].mxu0 }
 0x1e5   : > { %v4966_v11 = vadd.f32 %v4934_v10, %v4764_v49  ;;  %v3350_v12 = vpop.f32.mrb[5].mxu0 }
 0x1e6   : > { %v3599_v15 = vadd.f32 %v3598_v9, %v3568_v7  ;;  %v4967_v17 = vadd.f32 %v3350_v12, %v1555_v50  ;;  %v3528_v18 = vadd.f32 %v4964_v2, %v3527_v8  ;;  %v4935_v19 = vpop.f32.mrb[6].mxu0 }
 0x1e7   : > { %3499 = vst [vmem:[%s6183_s5 + $0x30] sm:$0xff] %v4966_v11  ;;  %v4968_v20 = vadd.f32 %v4935_v19, %v4765_v51  ;;  %v3353_v21 = vpop.f32.mrb[7].mxu0  ;;  %v3572_v29 = vmul.f32 %v4966_v11, %v4966_v11 }
 0x1e8   : > { %3497 = vst [vmem:[%s6183_s5 + $0x20] sm:$0xff] %v4967_v17  ;;  %v3529_v22 = vadd.f32 %v4967_v17, %v3528_v18  ;;  %v3570_v23 = vmul.f32 %v4967_v17, %v4967_v17  ;;  %v3600_v24 = vadd.f32 %v3599_v15, %v3569_v14  ;;  %v4969_v25 = vadd.f32 %v3353_v21, %v1558_v52 }
 0x1e9   : > { %3500 = vst [vmem:[%s6183_s5 + $0x38] sm:$0xff] %v4968_v20  ;;  %v3573_v35 = vmul.f32 %v4968_v20, %v4968_v20 }
 0x1ea   : > { %v3601_v26 = vadd.f32 %v3600_v24, %v3570_v23  ;;  %3498 = vst [vmem:[%s6183_s5 + $0x28] sm:$0xff] %v4969_v25  ;;  %v3530_v27 = vadd.f32 %v4969_v25, %v3529_v22  ;;  %v3571_v28 = vmul.f32 %v4969_v25, %v4969_v25 }
 0x1ec   : > { %v3531_v30 = vadd.f32 %v4966_v11, %v3530_v27  ;;  %v3602_v31 = vadd.f32 %v3601_v26, %v3571_v28  ;;  %v4938_v32 = vpop.f32.mrb[8].mxu0 }
 0x1ed   : > { %v4970_v33 = vadd.f32 %v4938_v32, %v4768_v53  ;;  %v3366_v34 = vpop.f32.mrb[9].mxu0 }
 0x1ee   : > { %v3603_v36 = vadd.f32 %v3602_v31, %v3572_v29  ;;  %v4971_v37 = vadd.f32 %v3366_v34, %v1571_v54  ;;  %v3532_v13 = vadd.f32 %v4968_v20, %v3531_v30  ;;  %v4939_v38 = vpop.f32.mrb[10].mxu0 }
 0x1ef   : > { %3503 = vst [vmem:[%s6183_s5 + $0x50] sm:$0xff] %v4970_v33  ;;  %v4972_v39 = vadd.f32 %v4939_v38, %v4769_v55  ;;  %v3369_v40 = vpop.f32.mrb[11].mxu0  ;;  %v3576_v48 = vmul.f32 %v4970_v33, %v4970_v33 }
 0x1f0   : > { %3501 = vst [vmem:[%s6183_s5 + $0x40] sm:$0xff] %v4971_v37  ;;  %v3533_v41 = vadd.f32 %v4971_v37, %v3532_v13  ;;  %v3574_v42 = vmul.f32 %v4971_v37, %v4971_v37  ;;  %v3604_v43 = vadd.f32 %v3603_v36, %v3573_v35  ;;  %v4973_v44 = vadd.f32 %v3369_v40, %v6171_v56 }
 0x1f1   : > { %3504 = vst [vmem:[%s6183_s5 + $0x58] sm:$0xff] %v4972_v39  ;;  %v3577_v54 = vmul.f32 %v4972_v39, %v4972_v39 }
 0x1f2   : > { %v3605_v45 = vadd.f32 %v3604_v43, %v3574_v42  ;;  %3502 = vst [vmem:[%s6183_s5 + $0x48] sm:$0xff] %v4973_v44  ;;  %v3534_v46 = vadd.f32 %v4973_v44, %v3533_v41  ;;  %v3575_v47 = vmul.f32 %v4973_v44, %v4973_v44 }
 0x1f4   : > { %v3535_v49 = vadd.f32 %v4970_v33, %v3534_v46  ;;  %v3606_v50 = vadd.f32 %v3605_v45, %v3575_v47  ;;  %v4942_v51 = vpop.f32.mrb[12].mxu0 }
 0x1f5   : > { %v4974_v52 = vadd.f32 %v4942_v51, %v6173_v57  ;;  %v3382_v53 = vpop.f32.mrb[13].mxu0 }
 0x1f6   : > { %v3607_v55 = vadd.f32 %v3606_v50, %v3576_v48  ;;  %v4975_v56 = vadd.f32 %v3382_v53, %v6175_v58  ;;  %v3536_v61 = vadd.f32 %v4972_v39, %v3535_v49  ;;  %v4943_v62 = vpop.f32.mrb[14].mxu0 }
 0x1f7   : > { %3507 = vst [vmem:[%s6183_s5 + $0x70] sm:$0xff] %v4974_v52  ;;  %v4976_v63 = vadd.f32 %v4943_v62, %v6177_v59  ;;  %v3385_v0 = vpop.f32.mrb[15].mxu0  ;;  %v3580_v6 = vmul.f32 %v4974_v52, %v4974_v52 }
 0x1f8   : > { %3505 = vst [vmem:[%s6183_s5 + $0x60] sm:$0xff] %v4975_v56  ;;  %v3537_v1 = vadd.f32 %v4975_v56, %v3536_v61  ;;  %v3578_v2 = vmul.f32 %v4975_v56, %v4975_v56  ;;  %v3608_v3 = vadd.f32 %v3607_v55, %v3577_v54  ;;  %v4977_v4 = vadd.f32 %v3385_v0, %v6179_v60 }
 0x1f9   : > { %3508 = vst [vmem:[%s6183_s5 + $0x78] sm:$0xff] %v4976_v63  ;;  %v3581_v12 = vmul.f32 %v4976_v63, %v4976_v63 }
 0x1fa   : > { %v3609_v57 = vadd.f32 %v3608_v3, %v3578_v2  ;;  %3506 = vst [vmem:[%s6183_s5 + $0x68] sm:$0xff] %v4977_v4  ;;  %v3538_v16 = vadd.f32 %v4977_v4, %v3537_v1  ;;  %v3579_v5 = vmul.f32 %v4977_v4, %v4977_v4 }
 0x1fc   : > { %v3539_v58 = vadd.f32 %v4974_v52, %v3538_v16  ;;  %v3610_v7 = vadd.f32 %v3609_v57, %v3579_v5  ;;  %v4810_v8 = vpop.f32.mrb[16].mxu1  ;;  %v4946_v9 = vpop.f32.mrb[16].mxu0 }
 0x1fd   : > { %v4978_v59 = vadd.f32 %v4946_v9, %v4810_v8  ;;  %v1962_v10 = vpop.f32.mrb[17].mxu1  ;;  %v3398_v11 = vpop.f32.mrb[17].mxu0 }
 0x1fe   : > { %v3611_v14 = vadd.f32 %v3610_v7, %v3580_v6  ;;  %v4979_v60 = vadd.f32 %v3398_v11, %v1962_v10  ;;  %v3540_v15 = vadd.f32 %v4976_v63, %v3539_v58  ;;  %v4811_v17 = vpop.f32.mrb[18].mxu1  ;;  %v4947_v18 = vpop.f32.mrb[18].mxu0 }
 0x1ff   : > { %3511 = vst [vmem:[%s6183_s5 + $0x90] sm:$0xff] %v4978_v59  ;;  %v4980_v19 = vadd.f32 %v4947_v18, %v4811_v17  ;;  %v1965_v20 = vpop.f32.mrb[19].mxu1  ;;  %v3401_v21 = vpop.f32.mrb[19].mxu0  ;;  %v3584_v29 = vmul.f32 %v4978_v59, %v4978_v59 }
 0x200   : > { %3509 = vst [vmem:[%s6183_s5 + $0x80] sm:$0xff] %v4979_v60  ;;  %v3541_v22 = vadd.f32 %v4979_v60, %v3540_v15  ;;  %v3582_v23 = vmul.f32 %v4979_v60, %v4979_v60  ;;  %v3612_v24 = vadd.f32 %v3611_v14, %v3581_v12  ;;  %v4981_v25 = vadd.f32 %v3401_v21, %v1965_v20 }
 0x201   : > { %3512 = vst [vmem:[%s6183_s5 + $0x98] sm:$0xff] %v4980_v19  ;;  %v3585_v37 = vmul.f32 %v4980_v19, %v4980_v19 }
 0x202   : > { %v3613_v26 = vadd.f32 %v3612_v24, %v3582_v23  ;;  %3510 = vst [vmem:[%s6183_s5 + $0x88] sm:$0xff] %v4981_v25  ;;  %v3542_v27 = vadd.f32 %v4981_v25, %v3541_v22  ;;  %v3583_v28 = vmul.f32 %v4981_v25, %v4981_v25 }
 0x204   : > { %v3543_v30 = vadd.f32 %v4978_v59, %v3542_v27  ;;  %v3614_v31 = vadd.f32 %v3613_v26, %v3583_v28  ;;  %v4814_v32 = vpop.f32.mrb[20].mxu1  ;;  %v4950_v33 = vpop.f32.mrb[20].mxu0 }
 0x205   : > { %v4982_v34 = vadd.f32 %v4950_v33, %v4814_v32  ;;  %v1978_v35 = vpop.f32.mrb[21].mxu1  ;;  %v3414_v36 = vpop.f32.mrb[21].mxu0 }
 0x206   : > { %v3615_v13 = vadd.f32 %v3614_v31, %v3584_v29  ;;  %v4983_v38 = vadd.f32 %v3414_v36, %v1978_v35  ;;  %v3544_v39 = vadd.f32 %v4980_v19, %v3543_v30  ;;  %v4815_v40 = vpop.f32.mrb[22].mxu1  ;;  %v4951_v41 = vpop.f32.mrb[22].mxu0 }
 0x207   : > { %3515 = vst [vmem:[%s6183_s5 + $0xb0] sm:$0xff] %v4982_v34  ;;  %v4984_v42 = vadd.f32 %v4951_v41, %v4815_v40  ;;  %v1981_v43 = vpop.f32.mrb[23].mxu1  ;;  %v3417_v44 = vpop.f32.mrb[23].mxu0  ;;  %v3588_v52 = vmul.f32 %v4982_v34, %v4982_v34 }
 0x208   : > { %3513 = vst [vmem:[%s6183_s5 + $0xa0] sm:$0xff] %v4983_v38  ;;  %v3545_v45 = vadd.f32 %v4983_v38, %v3544_v39  ;;  %v3586_v46 = vmul.f32 %v4983_v38, %v4983_v38  ;;  %v3616_v47 = vadd.f32 %v3615_v13, %v3585_v37  ;;  %v4985_v48 = vadd.f32 %v3417_v44, %v1981_v43 }
 0x209   : > { %3516 = vst [vmem:[%s6183_s5 + $0xb8] sm:$0xff] %v4984_v42  ;;  %v3589_v0 = vmul.f32 %v4984_v42, %v4984_v42 }
 0x20a   : > { %v3617_v49 = vadd.f32 %v3616_v47, %v3586_v46  ;;  %3514 = vst [vmem:[%s6183_s5 + $0xa8] sm:$0xff] %v4985_v48  ;;  %v3546_v50 = vadd.f32 %v4985_v48, %v3545_v45  ;;  %v3587_v51 = vmul.f32 %v4985_v48, %v4985_v48 }
 0x20c   : > { %v3547_v53 = vadd.f32 %v4982_v34, %v3546_v50  ;;  %v3618_v54 = vadd.f32 %v3617_v49, %v3587_v51  ;;  %v4818_v55 = vpop.f32.mrb[24].mxu1  ;;  %v4954_v56 = vpop.f32.mrb[24].mxu0 }
 0x20d   : > { %v4986_v61 = vadd.f32 %v4954_v56, %v4818_v55  ;;  %v1994_v62 = vpop.f32.mrb[25].mxu1  ;;  %v3430_v63 = vpop.f32.mrb[25].mxu0  ;;  %v3565_v55 = vld [vmem:[%s6167_s29] sm:$0x1] }
 0x20e   : > { %v3619_v1 = vadd.f32 %v3618_v54, %v3588_v52  ;;  %v4987_v2 = vadd.f32 %v3430_v63, %v1994_v62  ;;  %v3548_v3 = vadd.f32 %v4984_v42, %v3547_v53  ;;  %v4819_v4 = vpop.f32.mrb[26].mxu1  ;;  %v4955_v57 = vpop.f32.mrb[26].mxu0  ;;  %v3525_v52 = vld [vmem:[%s6162_s26] sm:$0x1]  ;;  %v3744_v63 = vld [vmem:[%s6183_s5] sm:$0xff] (%p5516_p6) }
 0x20f   : > { %3519 = vst [vmem:[%s6183_s5 + $0xd0] sm:$0xff] %v4986_v61  ;;  %v4988_v16 = vadd.f32 %v4955_v57, %v4819_v4  ;;  %v1997_v5 = vpop.f32.mrb[27].mxu1  ;;  %v3433_v6 = vpop.f32.mrb[27].mxu0  ;;  %v3592_v12 = vmul.f32 %v4986_v61, %v4986_v61  ;;  %v3754_v4 = vld [vmem:[%s6183_s5 + $0x28] sm:$0xff] (%p5516_p6)  ;;  %3745 = vst [vmem:[%s6235_s8] sm:$0xff] (%p5516_p6), %v3744_v63  ;;  %v3756_v57 = vld [vmem:[%s6183_s5 + $0x30] sm:$0xff] (%p5516_p6) }
 0x210   : > { %3517 = vst [vmem:[%s6183_s5 + $0xc0] sm:$0xff] %v4987_v2  ;;  %v3549_v58 = vadd.f32 %v4987_v2, %v3548_v3  ;;  %v3590_v7 = vmul.f32 %v4987_v2, %v4987_v2  ;;  %v3620_v8 = vadd.f32 %v3619_v1, %v3589_v0  ;;  %v4989_v9 = vadd.f32 %v3433_v6, %v1997_v5  ;;  %v3746_v0 = vld [vmem:[%s6183_s5 + $0x8] sm:$0xff] (%p5516_p6)  ;;  %v3748_v1 = vld [vmem:[%s6183_s5 + $0x10] sm:$0xff] (%p5516_p6)  ;;  %v3750_v2 = vld [vmem:[%s6183_s5 + $0x18] sm:$0xff] (%p5516_p6) }
 0x211   : > { %3520 = vst [vmem:[%s6183_s5 + $0xd8] sm:$0xff] %v4988_v16  ;;  %v3593_v21 = vmul.f32 %v4988_v16, %v4988_v16  ;;  %v3752_v3 = vld [vmem:[%s6183_s5 + $0x20] sm:$0xff] (%p5516_p6)  ;;  %3747 = vst [vmem:[%s6235_s8 + $0x18] sm:$0xff] (%p5516_p6), %v3746_v0  ;;  %v3762_v6 = vld [vmem:[%s6183_s5 + $0x48] sm:$0xff] (%p5516_p6) }
 0x212   : > { %v3621_v59 = vadd.f32 %v3620_v8, %v3590_v7  ;;  %3518 = vst [vmem:[%s6183_s5 + $0xc8] sm:$0xff] %v4989_v9  ;;  %v3550_v10 = vadd.f32 %v4989_v9, %v3549_v58  ;;  %v3591_v11 = vmul.f32 %v4989_v9, %v4989_v9  ;;  %3749 = vst [vmem:[%s6235_s8 + $0x30] sm:$0xff] (%p5516_p6), %v3748_v1  ;;  %v3760_v5 = vld [vmem:[%s6183_s5 + $0x40] sm:$0xff] (%p5516_p6)  ;;  %v3764_v58 = vld [vmem:[%s6183_s5 + $0x50] sm:$0xff] (%p5516_p6) }
 0x213   : > { %3751 = vst [vmem:[%s6235_s8 + $0x48] sm:$0xff] (%p5516_p6), %v3750_v2  ;;  %3753 = vst [vmem:[%s6235_s8 + $0x60] sm:$0xff] (%p5516_p6), %v3752_v3  ;;  %v3766_v7 = vld [vmem:[%s6183_s5 + $0x58] sm:$0xff] (%p5516_p6)  ;;  %v3768_v8 = vld [vmem:[%s6183_s5 + $0x60] sm:$0xff] (%p5516_p6) }
 0x214   : > { %v3551_v14 = vadd.f32 %v4986_v61, %v3550_v10  ;;  %v3622_v60 = vadd.f32 %v3621_v59, %v3591_v11  ;;  %v4822_v15 = vpop.f32.mrb[28].mxu1  ;;  %v4958_v17 = vpop.f32.mrb[28].mxu0  ;;  %3755 = vst [vmem:[%s6235_s8 + $0x78] sm:$0xff] (%p5516_p6), %v3754_v4  ;;  %3757 = vst [vmem:[%s6235_s8 + $0x90] sm:$0xff] (%p5516_p6), %v3756_v57  ;;  %v3770_v9 = vld [vmem:[%s6183_s5 + $0x68] sm:$0xff] (%p5516_p6)  ;;  %v3772_v59 = vld [vmem:[%s6183_s5 + $0x70] sm:$0xff] (%p5516_p6) }
 0x215   : > { %v4990_v18 = vadd.f32 %v4958_v17, %v4822_v15  ;;  %v2010_v19 = vpop.f32.mrb[29].mxu1  ;;  %v3446_v20 = vpop.f32.mrb[29].mxu0  ;;  %3761 = vst [vmem:[%s6235_s8 + $0xc0] sm:$0xff] (%p5516_p6), %v3760_v5  ;;  %3763 = vst [vmem:[%s6235_s8 + $0xd8] sm:$0xff] (%p5516_p6), %v3762_v6  ;;  %v3774_v10 = vld [vmem:[%s6183_s5 + $0x78] sm:$0xff] (%p5516_p6)  ;;  %v3776_v11 = vld [vmem:[%s6183_s5 + $0x80] sm:$0xff] (%p5516_p6) }
 0x216   : > { %v3623_v22 = vadd.f32 %v3622_v60, %v3592_v12  ;;  %v4991_v23 = vadd.f32 %v3446_v20, %v2010_v19  ;;  %v3552_v24 = vadd.f32 %v4988_v16, %v3551_v14  ;;  %v4823_v25 = vpop.f32.mrb[30].mxu1  ;;  %v4959_v26 = vpop.f32.mrb[30].mxu0  ;;  %v3758_v16 = vld [vmem:[%s6183_s5 + $0x38] sm:$0xff] (%p5516_p6)  ;;  %3765 = vst [vmem:[%s6235_s8 + $0xf0] sm:$0xff] (%p5516_p6), %v3764_v58  ;;  %3767 = vst [vmem:[%s6235_s8 + $0x108] sm:$0xff] (%p5516_p6), %v3766_v7  ;;  %v3778_v12 = vld [vmem:[%s6183_s5 + $0x88] sm:$0xff] (%p5516_p6) }
 0x217   : > { %3523 = vst [vmem:[%s6183_s5 + $0xf0] sm:$0xff] %v4990_v18  ;;  %v4992_v27 = vadd.f32 %v4959_v26, %v4823_v25  ;;  %v2013_v28 = vpop.f32.mrb[31].mxu1  ;;  %v3449_v29 = vpop.f32.mrb[31].mxu0  ;;  %v3596_v37 = vmul.f32 %v4990_v18, %v4990_v18  ;;  %3759 = vst [vmem:[%s6235_s8 + $0xa8] sm:$0xff] (%p5516_p6), %v3758_v16  ;;  %v3780_v14 = vld [vmem:[%s6183_s5 + $0x90] sm:$0xff] (%p5516_p6)  ;;  %v3782_v60 = vld [vmem:[%s6183_s5 + $0x98] sm:$0xff] (%p5516_p6) }
 0x218   : > { %3521 = vst [vmem:[%s6183_s5 + $0xe0] sm:$0xff] %v4991_v23  ;;  %v3553_v30 = vadd.f32 %v4991_v23, %v3552_v24  ;;  %v3594_v31 = vmul.f32 %v4991_v23, %v4991_v23  ;;  %v3624_v32 = vadd.f32 %v3623_v22, %v3593_v21  ;;  %v4993_v33 = vadd.f32 %v3449_v29, %v2013_v28  ;;  %v3784_v15 = vld [vmem:[%s6183_s5 + $0xa0] sm:$0xff] (%p5516_p6)  ;;  %v3786_v17 = vld [vmem:[%s6183_s5 + $0xa8] sm:$0xff] (%p5516_p6)  ;;  %v3790_v19 = vld [vmem:[%s6183_s5 + $0xb8] sm:$0xff] (%p5516_p6) }
 0x219   : > { %3524 = vst [vmem:[%s6183_s5 + $0xf8] sm:$0xff] %v4992_v27  ;;  %v3597_v39 = vmul.f32 %v4992_v27, %v4992_v27  ;;  %3769 = vst [vmem:[%s6235_s8 + $0x120] sm:$0xff] (%p5516_p6), %v3768_v8  ;;  %v3792_v20 = vld [vmem:[%s6183_s5 + $0xc0] sm:$0xff] (%p5516_p6)  ;;  %v3794_v21 = vld [vmem:[%s6183_s5 + $0xc8] sm:$0xff] (%p5516_p6) }
 0x21a   : > { %v3625_v34 = vadd.f32 %v3624_v32, %v3594_v31  ;;  %3522 = vst [vmem:[%s6183_s5 + $0xe8] sm:$0xff] %v4993_v33  ;;  %v3554_v35 = vadd.f32 %v4993_v33, %v3553_v30  ;;  %v3595_v36 = vmul.f32 %v4993_v33, %v4993_v33  ;;  %3771 = vst [vmem:[%s6235_s8 + $0x138] sm:$0xff] (%p5516_p6), %v3770_v9  ;;  %v3796_v22 = vld [vmem:[%s6183_s5 + $0xd0] sm:$0xff] (%p5516_p6)  ;;  %v3798_v23 = vld [vmem:[%s6183_s5 + $0xd8] sm:$0xff] (%p5516_p6) }
 0x21b   : > { %3773 = vst [vmem:[%s6235_s8 + $0x150] sm:$0xff] (%p5516_p6), %v3772_v59  ;;  %3775 = vst [vmem:[%s6235_s8 + $0x168] sm:$0xff] (%p5516_p6), %v3774_v10 }
 0x21c   : > { %v3555_v13 = vadd.f32 %v4990_v18, %v3554_v35  ;;  %v3626_v38 = vadd.f32 %v3625_v34, %v3595_v36  ;;  %3777 = vst [vmem:[%s6235_s8 + $0x180] sm:$0xff] (%p5516_p6), %v3776_v11  ;;  %3779 = vst [vmem:[%s6235_s8 + $0x198] sm:$0xff] (%p5516_p6), %v3778_v12  ;;  %v3788_v18 = vld [vmem:[%s6183_s5 + $0xb0] sm:$0xff] (%p5516_p6) }
 0x21d   : > { %3781 = vst [vmem:[%s6235_s8 + $0x1b0] sm:$0xff] (%p5516_p6), %v3780_v14  ;;  %3783 = vst [vmem:[%s6235_s8 + $0x1c8] sm:$0xff] (%p5516_p6), %v3782_v60 }
 0x21e   : > { %v3556_v40 = vadd.f32 %v4992_v27, %v3555_v13  ;;  %v3627_v41 = vadd.f32 %v3626_v38, %v3596_v37  ;;  %3785 = vst [vmem:[%s6235_s8 + $0x1e0] sm:$0xff] (%p5516_p6), %v3784_v15  ;;  %3787 = vst [vmem:[%s6235_s8 + $0x1f8] sm:$0xff] (%p5516_p6), %v3786_v17  ;;  %v3804_v26 = vld [vmem:[%s6183_s5 + $0xf0] sm:$0xff] (%p5516_p6) }
 0x21f   : > { %3789 = vst [vmem:[%s6235_s8 + $0x210] sm:$0xff] (%p5516_p6), %v3788_v18  ;;  %3791 = vst [vmem:[%s6235_s8 + $0x228] sm:$0xff] (%p5516_p6), %v3790_v19  ;;  %v3800_v24 = vld [vmem:[%s6183_s5 + $0xe0] sm:$0xff] (%p5516_p6) }
 0x220   : > { %v3557_v42 = vrot.slane %v3556_v40, 4  ;;  %v3628_v43 = vadd.f32 %v3627_v41, %v3597_v39  ;;  %3793 = vst [vmem:[%s6235_s8 + $0x240] sm:$0xff] (%p5516_p6), %v3792_v20  ;;  %3795 = vst [vmem:[%s6235_s8 + $0x258] sm:$0xff] (%p5516_p6), %v3794_v21  ;;  %v3806_v27 = vld [vmem:[%s6183_s5 + $0xf8] sm:$0xff] (%p5516_p6) }
 0x221   : > { %3797 = vst [vmem:[%s6235_s8 + $0x270] sm:$0xff] (%p5516_p6), %v3796_v22  ;;  %v3802_v25 = vld [vmem:[%s6183_s5 + $0xe8] sm:$0xff] (%p5516_p6)  ;;  %3799 = vst [vmem:[%s6235_s8 + $0x288] sm:$0xff] (%p5516_p6), %v3798_v23 }
 0x222   : > { %v3558_v44 = vadd.f32 %v3557_v42, %v3556_v40  ;;  %v3629_v45 = vrot.slane %v3628_v43, 4  ;;  %3801 = vst [vmem:[%s6235_s8 + $0x2a0] sm:$0xff] (%p5516_p6), %v3800_v24  ;;  %3803 = vst [vmem:[%s6235_s8 + $0x2b8] sm:$0xff] (%p5516_p6), %v3802_v25 }
 0x223   : > { %3805 = vst [vmem:[%s6235_s8 + $0x2d0] sm:$0xff] (%p5516_p6), %v3804_v26  ;;  %3807 = vst [vmem:[%s6235_s8 + $0x2e8] sm:$0xff] (%p5516_p6), %v3806_v27 }
 0x224   : > { %v3559_v46 = vrot.slane %v3558_v44, 2  ;;  %v3630_v47 = vadd.f32 %v3629_v45, %v3628_v43 }
 0x226   : > { %v3560_v48 = vadd.f32 %v3559_v46, %v3558_v44  ;;  %v3631_v49 = vrot.slane %v3630_v47, 2 }
 0x228   : > { %v3561_v50 = vrot.slane %v3560_v48, 1  ;;  %v3632_v51 = vadd.f32 %v3631_v49, %v3630_v47 }
 0x22a   : > { %v3562_v53 = vadd.f32 %v3561_v50, %v3560_v48  ;;  %v3633_v54 = vrot.slane %v3632_v51, 1  ;;  %3649 = sbr.rel (!%p5516_p6) target bundleno = 561 (0x231), region = 77 }
 0x22c   : > { %v3563_v56 = vadd.f32 %v3562_v53, %v3525_v52  ;;  %v3634_v61 = vadd.f32 %v3633_v54, %v3632_v51 }
 0x22e   : > { %3564 = vst [vmem:[%s6162_s26] sm:$0x1] %v3563_v56  ;;  %v3635_v62 = vadd.f32 %v3634_v61, %v3565_v55 }
 0x230   : > { %3636 = vst [vmem:[%s6167_s29] sm:$0x1] %v3635_v62 }
 0x231 PF: > { %s15_s19 = sadd.s32 1, %s5453_s19   ;;  %s6319_s15 = smov %s5441_s16 }
 0x232   : > { %p12_p12 = scmp.ge.s32.totalorder %s15_s19, 5   ;;  %s6320_s16 = smov %s5521_s25 }
 0x233   : > { %s6321_s17 = smov %s5449_s18  ;;  %s6322_s18 = smov %s6324_s20 }
 0x234   :  { %14 = sbr.rel (!%p12_p12) target bundleno = 3 (0x3), region = 189 }

</bundles_post_ra>
